<compile_context>
chip_gen: v7x
topology: tpu7x:2x2x1
jax: 0.10.0
libtpu: 0.0.40
codegen_flags: <defaults>
</compile_context>

<pallas_src>
import functools

import jax
import jax.numpy as jnp
from jax.experimental import pallas as pl
from jax.experimental.pallas import tpu as pltpu

K_WIDTH = 1  # '200 * k' in the original module; conv2 takes 200 inputs => k == 1

_HAS_BUFFERED = hasattr(pl, "Buffered")


# -----------------------------------------------------------------------------
# Trace-time helpers
# -----------------------------------------------------------------------------
def _round_up(x, m):
    return (x + m - 1) // m * m


@functools.lru_cache(maxsize=1)
def _num_tensorcores():
    """Best-effort TensorCores-per-chip (2 on megacore / v7x, else 1).
    Falls back to 1 (safe everywhere) if detection fails."""
    try:
        d = jax.devices()[0]
        if d.platform != "tpu":
            return 1
        kind = str(getattr(d, "device_kind", "")).lower()
        for tag in ("v7", "7x", "v4", "v5p"):
            if tag in kind:
                return 2
    except Exception:
        pass
    return 1


def _choose_k_tiling(K, Np, target=2048):
    """Single K step whenever the bf16 weight block is small enough to sit in
    VMEM; otherwise stream K in large (multiple-of-256) tiles."""
    if K * Np * 2 <= (8 << 20):
        return K, K
    n_steps = max(2, -(-K // target))
    tk = _round_up(-(-K // n_steps), 256)
    return tk, tk * n_steps


def _choose_m_tiling(M, num_cores):
    """bf16-friendly (multiple-of-16) M tiling.  Big M: one large block on
    single-TC chips, two 256-row 'parallel' blocks where a second core exists."""
    if M >= 256:
        if num_cores > 1:
            tm = 256
        else:
            tm = min(_round_up(M, 16), 512)
        return tm, _round_up(M, tm)
    tm = _round_up(M, 16)
    return tm, tm


# -----------------------------------------------------------------------------
# Pallas kernels
# -----------------------------------------------------------------------------
def _sconv_mm_fast_kernel(*refs, relu, has_mask):
    """Single-K-step path: dot + bias (+mask, +relu) straight to the output."""
    if has_mask:
        p_ref, w_ref, b_ref, m_ref, o_ref = refs
    else:
        p_ref, w_ref, b_ref, o_ref = refs
        m_ref = None
    out = jnp.dot(p_ref[...], w_ref[...], preferred_element_type=jnp.float32)
    out = out + b_ref[...]                      # bias first ...
    if has_mask:
        out = out * m_ref[...]                  # ... so masked rows are exactly 0
    if relu:
        out = jnp.maximum(out, 0.0)
    o_ref[...] = out.astype(o_ref.dtype)


def _sconv_mm_stream_kernel(*refs, relu, has_mask):
    """K-streamed fallback (only used when the weight is too big for one step).
    Bias is folded into the accumulator init."""
    if has_mask:
        p_ref, w_ref, b_ref, m_ref, o_ref, acc_ref = refs
    else:
        p_ref, w_ref, b_ref, o_ref, acc_ref = refs
        m_ref = None

    kk = pl.program_id(2)

    @pl.when(kk == 0)
    def _():
        acc_ref[...] = jnp.broadcast_to(b_ref[...], acc_ref.shape).astype(jnp.float32)

    acc_ref[...] += jnp.dot(p_ref[...], w_ref[...],
                            preferred_element_type=jnp.float32)

    @pl.when(kk == pl.num_programs(2) - 1)
    def _():
        out = acc_ref[...]
        if has_mask:
            out = out * m_ref[...]
        if relu:
            out = jnp.maximum(out, 0.0)
        o_ref[...] = out.astype(o_ref.dtype)


def sconv_matmul(patches, layer, mask_rows, relu, num_cores):
    """patches: (M, K) bf16; layer['w2d']: (Kp, Np) bf16; layer['b2d']: (1, Np) f32;
    mask_rows: (M, 1) f32 or None.  Returns (M, N) bf16."""
    M, K = patches.shape
    Kp, tk, N, Np = layer["Kp"], layer["tk"], layer["N"], layer["Np"]
    tm, Mp = _choose_m_tiling(M, num_cores)
    gm, gk = Mp // tm, Kp // tk

    # Split N across TensorCores only when the M axis alone can't feed them.
    if num_cores > 1 and gm < num_cores and Np % (128 * num_cores) == 0:
        gn = num_cores
    else:
        gn = 1
    tn = Np // gn

    pb = patches.astype(jnp.bfloat16)
    if Mp > M or Kp > K:
        pb = jnp.pad(pb, ((0, Mp - M), (0, Kp - K)))

    has_mask = mask_rows is not None
    if has_mask and Mp > M:
        mask_rows = jnp.pad(mask_rows, ((0, Mp - M), (0, 0)))

    if gk == 1:
        grid = (gm, gn)
        dims = ("parallel", "parallel")
        p_map = lambda i, j: (i, 0)
        w_map = lambda i, j: (0, j)
        b_map = lambda i, j: (0, j)
        m_map = lambda i, j: (i, 0)
        o_map = lambda i, j: (i, j)
        kernel = functools.partial(_sconv_mm_fast_kernel, relu=relu,
                                   has_mask=has_mask)
        scratch = []
        wbuf = 2
        w_kwargs = {}
        if _HAS_BUFFERED:
            # Whole weight in one shot -> do not double-buffer it.
            w_kwargs["pipeline_mode"] = pl.Buffered(1)
            wbuf = 1
        w_spec = pl.BlockSpec((tk, tn), w_map, **w_kwargs)
    else:
        grid = (gm, gn, gk)
        dims = ("parallel", "parallel", "arbitrary")
        p_map = lambda i, j, kk: (i, kk)
        w_map = lambda i, j, kk: (kk, j)
        b_map = lambda i, j, kk: (0, j)
        m_map = lambda i, j, kk: (i, 0)
        o_map = lambda i, j, kk: (i, j)
        kernel = functools.partial(_sconv_mm_stream_kernel, relu=relu,
                                   has_mask=has_mask)
        scratch = [pltpu.VMEM((tm, tn), jnp.float32)]
        wbuf = 2
        w_spec = pl.BlockSpec((tk, tn), w_map)

    in_specs = [pl.BlockSpec((tm, tk), p_map), w_spec, pl.BlockSpec((1, tn), b_map)]
    args = [pb, layer["w2d"], layer["b2d"]]
    if has_mask:
        in_specs.append(pl.BlockSpec((tm, 1), m_map))
        args.append(mask_rows)

    # VMEM budget from the actual buffer set (bf16 tiles, f32 bias/mask/acc).
    vmem_bytes = (2 * tm * tk * 2            # patches, double-buffered
                  + wbuf * tk * tn * 2       # weight
                  + 2 * tn * 4               # bias
                  + (2 * tm * 4 if has_mask else 0)
                  + 2 * tm * tn * 2)         # output
    if gk > 1:
        vmem_bytes += tm * tn * 4            # f32 accumulator scratch
    vmem_limit = min(max(int(vmem_bytes * 1.25) + (2 << 20), 8 << 20), 32 << 20)

    out = pl.pallas_call(
        kernel,
        out_shape=jax.ShapeDtypeStruct((Mp, Np), jnp.bfloat16),
        grid=grid,
        in_specs=in_specs,
        out_specs=pl.BlockSpec((tm, tn), o_map),
        scratch_shapes=scratch,
        compiler_params=pltpu.CompilerParams(
            dimension_semantics=dims,
            vmem_limit_bytes=vmem_limit,
        ),
    )(*args)
    return out[:M, :N]


# -----------------------------------------------------------------------------
# SConv2dAvg helpers (sizes, stochastic sampling, forward).
# -----------------------------------------------------------------------------
def get_size(h, w, k, stride, ceil_mode):
    ah, aw = h - k + 1, w - k + 1                      # conv (stride 1, pad 0)
    if ceil_mode:
        return -(-ah // stride), -(-aw // stride)      # ceil
    return ah // stride, aw // stride                  # floor


def sample(key, h, w, k, stride, ceil_mode, mask_out):
    """Sample one conv position per pooling window; propagate the mask to the
    layer's input positions (which outputs of the previous layer are needed)."""
    ah, aw = h - k + 1, w - k + 1
    oh, ow = get_size(h, w, k, stride, ceil_mode)
    key_h, key_w = jax.random.split(key)
    selh = jax.random.randint(key_h, (oh, ow), 0, stride)
    selw = jax.random.randint(key_w, (oh, ow), 0, stride)
    # absolute top-left of the selected k x k window, clamped for ceil_mode tails
    sel_y = jnp.minimum(jnp.arange(oh)[:, None] * stride + selh, ah - 1)
    sel_x = jnp.minimum(jnp.arange(ow)[None, :] * stride + selw, aw - 1)
    # mask over this layer's input: union of selected k x k windows at masked outputs
    ys = sel_y[:, :, None] + jnp.arange(k)                         # (oh, ow, k)
    xs = sel_x[:, :, None] + jnp.arange(k)                         # (oh, ow, k)
    cov_y = jax.nn.one_hot(ys, h, dtype=jnp.float32)               # (oh, ow, k, h)
    cov_x = jax.nn.one_hot(xs, w, dtype=jnp.float32)               # (oh, ow, k, w)
    cov = jnp.einsum("ijay,ijbx,ij->yx", cov_y, cov_x, mask_out)
    mask_in = (cov > 0).astype(jnp.float32)
    return sel_y, sel_x, mask_in


def sconv_forward(x_nhwc, layer, sel_y, sel_x, mask_out, relu, num_cores):
    """Stochastic conv+avgpool layer: gather selected bf16 patches, then one
    Pallas matmul.  mask_out=None means the mask is statically all-ones."""
    B = x_nhwc.shape[0]
    C = x_nhwc.shape[-1]
    k = layer["k"]
    oh, ow = sel_y.shape
    ys = sel_y[:, :, None, None] + jnp.arange(k)[None, None, :, None]   # (oh,ow,k,1)
    xs = sel_x[:, :, None, None] + jnp.arange(k)[None, None, None, :]   # (oh,ow,1,k)
    # TODO(synk): im2col gather stays in XLA; fusing it via scalar prefetch
    # (PrefetchScalarGridSpec + manual DMA per M tile) would remove one HBM
    # round trip of the patch tensor per layer.
    patches = x_nhwc[:, ys, xs, :].reshape(B * oh * ow, k * k * C)       # bf16
    mask_rows = None
    if mask_out is not None:
        mask_rows = jnp.broadcast_to(
            mask_out.reshape(1, oh * ow), (B, oh * ow)
        ).reshape(B * oh * ow, 1)
    out = sconv_matmul(patches, layer, mask_rows, relu, num_cores)
    return out.reshape(B, oh, ow, layer["N"])


# -----------------------------------------------------------------------------
# Model
# -----------------------------------------------------------------------------
def prepare_sconv_layer(w, b, k, stride, ceil, num_cores):
    """Pack a (kh, kw, Cin, Cout) weight as a (Kp, Np) bf16 matrix with
    lane-dense (multiple-of-128) Np, splittable across TensorCores when >1."""
    kh, kw, cin, cout = w.shape
    K = kh * kw * cin
    n_align = 128 * num_cores if (num_cores > 1 and cout >= 256) else 128
    Np = _round_up(cout, n_align)
    tk, Kp = _choose_k_tiling(K, Np)
    w2d = w.reshape(K, cout).astype(jnp.bfloat16)
    w2d = jnp.pad(w2d, ((0, Kp - K), (0, Np - cout)))
    b2d = jnp.pad(b.astype(jnp.float32).reshape(1, cout), ((0, 0), (0, Np - cout)))
    return dict(w2d=w2d, b2d=b2d, k=k, stride=stride, ceil=ceil,
                K=K, Kp=Kp, tk=tk, N=cout, Np=Np)


def init_params(key, num_cores):
    def make(key, cin, cout, k):
        kw_, kb_ = jax.random.split(key)
        fan_in = cin * k * k
        w = jax.random.normal(kw_, (k, k, cin, cout), jnp.float32) * jnp.sqrt(
            2.0 / fan_in
        )
        bound = 1.0 / jnp.sqrt(fan_in)
        b = jax.random.uniform(kb_, (cout,), jnp.float32, -bound, bound)
        return w, b

    k1, k2, k3, k4 = jax.random.split(key, 4)
    w1, b1 = make(k1, 3, 200 * K_WIDTH, 3)
    w2, b2 = make(k2, 200, 400, 3)
    w3, b3 = make(k3, 400, 800, 3)
    w4, b4 = make(k4, 800, 10, 3)
    conv1 = prepare_sconv_layer(w1, b1, k=3, stride=2, ceil=False, num_cores=num_cores)
    conv2 = prepare_sconv_layer(w2, b2, k=3, stride=2, ceil=False, num_cores=num_cores)
    conv3 = prepare_sconv_layer(w3, b3, k=3, stride=2, ceil=True, num_cores=num_cores)
    # conv4 stays raw: computed as a plain XLA matmul (M=2, N=10).
    conv4 = dict(w=w4, b=b4, k=3, stride=1, ceil=False)
    return conv1, conv2, conv3, conv4


def mylenet_mat_stoch_bu_forward(x_nchw, params, key, num_cores):
    """x_nchw: (B, 3, H, W) float32 -> (B, 10*h4*w4) float32."""
    c1, c2, c3, c4 = params
    # NHWC + bf16 internally: halves gather/store HBM traffic, MXU is bf16 anyway.
    x = jnp.transpose(x_nchw, (0, 2, 3, 1)).astype(jnp.bfloat16)
    B = x_nchw.shape[0]
    h0, w0 = x_nchw.shape[2], x_nchw.shape[3]
    h1, w1 = get_size(h0, w0, 3, 2, c1["ceil"])
    h2, w2 = get_size(h1, w1, 3, 2, c2["ceil"])
    h3, w3 = get_size(h2, w2, 3, 2, c3["ceil"])

    # bottom-up mask / selection sampling (conv3 -> conv2 -> conv1)
    key3, key2, key1 = jax.random.split(key, 3)
    mask3 = jnp.ones((h3, w3), jnp.float32)
    sely3, selx3, mask2 = sample(key3, h2, w2, 3, 2, c3["ceil"], mask3)
    sely2, selx2, mask1 = sample(key2, h1, w1, 3, 2, c2["ceil"], mask2)
    sely1, selx1, _mask0 = sample(key1, h0, w0, 3, 2, c1["ceil"], mask1)  # unused

    out = sconv_forward(x, c1, sely1, selx1, mask1, relu=True, num_cores=num_cores)
    out = sconv_forward(out, c2, sely2, selx2, mask2, relu=True, num_cores=num_cores)
    # conv3's output mask (mask3) is statically all-ones -> drop the mask operand.
    out = sconv_forward(out, c3, sely3, selx3, None, relu=True, num_cores=num_cores)

    # conv4: stride 1 => stochastic offset is always 0 and the mask is all ones,
    # so it is a dense valid conv.  M = B*h4*w4 (= 2 here), N = 10: a dedicated
    # pallas_call costs more than the math, so it runs as a plain XLA matmul.
    h4, w4 = get_size(h3, w3, 3, 1, c4["ceil"])
    k4 = c4["k"]
    c3_out = out.shape[-1]
    ys4 = jnp.arange(h4)[:, None, None, None] + jnp.arange(k4)[None, None, :, None]
    xs4 = jnp.arange(w4)[None, :, None, None] + jnp.arange(k4)[None, None, None, :]
    patches4 = out[:, ys4, xs4, :].reshape(B * h4 * w4, k4 * k4 * c3_out)
    w4_2d = c4["w"].reshape(k4 * k4 * c3_out, -1)
    out4 = jnp.dot(patches4.astype(jnp.float32), w4_2d,
                   preferred_element_type=jnp.float32) + c4["b"][None, :]
    out4 = out4.reshape(B, h4, w4, -1)

    # match torch `out.view(B, -1)` on NCHW
    out4 = jnp.transpose(out4, (0, 3, 1, 2))
    return out4.reshape(B, -1)


if __name__ == "__main__":
    root = jax.random.PRNGKey(0)
    k_params, k_input, k_sample = jax.random.split(root, 3)

    num_cores = _num_tensorcores()
    params = init_params(k_params, num_cores)

    # Small input consistent with the module: 3-channel image, 35x35 so that
    # conv4 (kernel 3, stride 1) still has a valid spatial extent (-> 1x1).
    B, C, H, W = 2, 3, 35, 35
    x = jax.random.normal(k_input, (B, C, H, W), jnp.float32)

    fwd = jax.jit(
        lambda x_, key_: mylenet_mat_stoch_bu_forward(x_, params, key_, num_cores)
    )
    out = fwd(x, k_sample)
    out = jax.block_until_ready(out)

    assert out.shape == (B, 10), out.shape
    assert jnp.all(jnp.isfinite(out))
    print("KERNEL_OK")
</pallas_src>

<mosaic_0001>
module attributes {stable_mosaic.version = 11 : i64} {
  func.func @_sconv_mm_fast_kernel(%arg0: i32, %arg1: i32, %arg2: memref<512x27xbf16, #tpu.memory_space<vmem>>, %arg3: memref<27x256xbf16, #tpu.memory_space<vmem>>, %arg4: memref<1x256xf32, #tpu.memory_space<vmem>>, %arg5: memref<512x1xf32, #tpu.memory_space<vmem>>, %arg6: memref<512x256xbf16, #tpu.memory_space<vmem>>) attributes {dimension_semantics = [#tpu.dimension_semantics<parallel>, #tpu.dimension_semantics<parallel>], iteration_bounds = array<i64: 1, 1>, scalar_prefetch = 0 : i64, scratch_operands = 0 : i64, tpu.core_type = #tpu.core_type<tc>, window_params = [{transform_indices = @transform_0, window_bounds = array<i64: 512, 27>}, {pipeline_mode = #tpu.pipeline_mode<synchronous>, transform_indices = @transform_1, window_bounds = array<i64: 27, 256>}, {transform_indices = @transform_2, window_bounds = array<i64: 1, 256>}, {transform_indices = @transform_3, window_bounds = array<i64: 512, 1>}, {transform_indices = @transform_4, window_bounds = array<i64: 512, 256>}]} {
    %c0 = arith.constant 0 : index
    %c0_0 = arith.constant 0 : index
    %0 = vector.load %arg2[%c0, %c0_0] : memref<512x27xbf16, #tpu.memory_space<vmem>>, vector<512x27xbf16>
    %c0_1 = arith.constant 0 : index
    %c0_2 = arith.constant 0 : index
    %1 = vector.load %arg3[%c0_1, %c0_2] : memref<27x256xbf16, #tpu.memory_space<vmem>>, vector<27x256xbf16>
    %cst = arith.constant dense<0.000000e+00> : vector<512x256xf32>
    %2 = tpu.matmul %0, %1, %cst {dimension_numbers = #tpu.dot_dimension_numbers<[1], [0], [0], [1], [0, 0, 1, 1], [], []>} : vector<512x27xbf16>, vector<27x256xbf16>, vector<512x256xf32> -> vector<512x256xf32>
    %c0_3 = arith.constant 0 : index
    %c0_4 = arith.constant 0 : index
    %3 = vector.load %arg4[%c0_3, %c0_4] : memref<1x256xf32, #tpu.memory_space<vmem>>, vector<1x256xf32>
    %4 = vector.broadcast %3 : vector<1x256xf32> to vector<512x256xf32>
    %5 = arith.addf %2, %4 : vector<512x256xf32>
    %c0_5 = arith.constant 0 : index
    %c0_6 = arith.constant 0 : index
    %6 = vector.load %arg5[%c0_5, %c0_6] : memref<512x1xf32, #tpu.memory_space<vmem>>, vector<512x1xf32>
    %7 = vector.broadcast %6 : vector<512x1xf32> to vector<512x256xf32>
    %8 = arith.mulf %5, %7 : vector<512x256xf32>
    %cst_7 = arith.constant 0.000000e+00 : f32
    %9 = vector.broadcast %cst_7 : f32 to vector<512x256xf32>
    %10 = arith.maximumf %8, %9 : vector<512x256xf32>
    %11 = arith.truncf %10 : vector<512x256xf32> to vector<512x256xbf16>
    %c0_8 = arith.constant 0 : index
    %c0_9 = arith.constant 0 : index
    %12 = vector.load %arg6[%c0_8, %c0_9] : memref<512x256xbf16, #tpu.memory_space<vmem>>, vector<512x256xbf16>
    tpu.vector_store %arg6[%c0_8, %c0_9], %11 {strides = array<i32>} : memref<512x256xbf16, #tpu.memory_space<vmem>>, vector<512x256xbf16>,
    return
  }
  func.func @transform_0(%arg0: i32, %arg1: i32) -> (i32, i32) {
    %c0_i32 = arith.constant 0 : i32
    %c0_i32_0 = arith.constant 0 : i32
    return %arg0, %c0_i32 : i32, i32
  }
  func.func @transform_1(%arg0: i32, %arg1: i32) -> (i32, i32) {
    %c0_i32 = arith.constant 0 : i32
    %c0_i32_0 = arith.constant 0 : i32
    return %c0_i32, %arg1 : i32, i32
  }
  func.func @transform_2(%arg0: i32, %arg1: i32) -> (i32, i32) {
    %c0_i32 = arith.constant 0 : i32
    %c0_i32_0 = arith.constant 0 : i32
    return %c0_i32, %arg1 : i32, i32
  }
  func.func @transform_3(%arg0: i32, %arg1: i32) -> (i32, i32) {
    %c0_i32 = arith.constant 0 : i32
    %c0_i32_0 = arith.constant 0 : i32
    return %arg0, %c0_i32 : i32, i32
  }
  func.func @transform_4(%arg0: i32, %arg1: i32) -> (i32, i32) {
    %c0_i32 = arith.constant 0 : i32
    return %arg0, %arg1 : i32, i32
  }
}

module attributes {stable_mosaic.version = 11 : i64} {
  func.func @_sconv_mm_fast_kernel(%arg0: i32, %arg1: i32, %arg2: memref<112x1800xbf16, #tpu.memory_space<vmem>>, %arg3: memref<1800x512xbf16, #tpu.memory_space<vmem>>, %arg4: memref<1x512xf32, #tpu.memory_space<vmem>>, %arg5: memref<112x1xf32, #tpu.memory_space<vmem>>, %arg6: memref<112x512xbf16, #tpu.memory_space<vmem>>) attributes {dimension_semantics = [#tpu.dimension_semantics<parallel>, #tpu.dimension_semantics<parallel>], iteration_bounds = array<i64: 1, 1>, scalar_prefetch = 0 : i64, scratch_operands = 0 : i64, tpu.core_type = #tpu.core_type<tc>, window_params = [{transform_indices = @transform_0, window_bounds = array<i64: 112, 1800>}, {pipeline_mode = #tpu.pipeline_mode<synchronous>, transform_indices = @transform_1, window_bounds = array<i64: 1800, 512>}, {transform_indices = @transform_2, window_bounds = array<i64: 1, 512>}, {transform_indices = @transform_3, window_bounds = array<i64: 112, 1>}, {transform_indices = @transform_4, window_bounds = array<i64: 112, 512>}]} {
    %c0 = arith.constant 0 : index
    %c0_0 = arith.constant 0 : index
    %0 = vector.load %arg2[%c0, %c0_0] : memref<112x1800xbf16, #tpu.memory_space<vmem>>, vector<112x1800xbf16>
    %c0_1 = arith.constant 0 : index
    %c0_2 = arith.constant 0 : index
    %1 = vector.load %arg3[%c0_1, %c0_2] : memref<1800x512xbf16, #tpu.memory_space<vmem>>, vector<1800x512xbf16>
    %cst = arith.constant dense<0.000000e+00> : vector<112x512xf32>
    %2 = tpu.matmul %0, %1, %cst {dimension_numbers = #tpu.dot_dimension_numbers<[1], [0], [0], [1], [0, 0, 1, 1], [], []>} : vector<112x1800xbf16>, vector<1800x512xbf16>, vector<112x512xf32> -> vector<112x512xf32>
    %c0_3 = arith.constant 0 : index
    %c0_4 = arith.constant 0 : index
    %3 = vector.load %arg4[%c0_3, %c0_4] : memref<1x512xf32, #tpu.memory_space<vmem>>, vector<1x512xf32>
    %4 = vector.broadcast %3 : vector<1x512xf32> to vector<112x512xf32>
    %5 = arith.addf %2, %4 : vector<112x512xf32>
    %c0_5 = arith.constant 0 : index
    %c0_6 = arith.constant 0 : index
    %6 = vector.load %arg5[%c0_5, %c0_6] : memref<112x1xf32, #tpu.memory_space<vmem>>, vector<112x1xf32>
    %7 = vector.broadcast %6 : vector<112x1xf32> to vector<112x512xf32>
    %8 = arith.mulf %5, %7 : vector<112x512xf32>
    %cst_7 = arith.constant 0.000000e+00 : f32
    %9 = vector.broadcast %cst_7 : f32 to vector<112x512xf32>
    %10 = arith.maximumf %8, %9 : vector<112x512xf32>
    %11 = arith.truncf %10 : vector<112x512xf32> to vector<112x512xbf16>
    %c0_8 = arith.constant 0 : index
    %c0_9 = arith.constant 0 : index
    %12 = vector.load %arg6[%c0_8, %c0_9] : memref<112x512xbf16, #tpu.memory_space<vmem>>, vector<112x512xbf16>
    tpu.vector_store %arg6[%c0_8, %c0_9], %11 {strides = array<i32>} : memref<112x512xbf16, #tpu.memory_space<vmem>>, vector<112x512xbf16>,
    return
  }
  func.func @transform_0(%arg0: i32, %arg1: i32) -> (i32, i32) {
    %c0_i32 = arith.constant 0 : i32
    %c0_i32_0 = arith.constant 0 : i32
    return %arg0, %c0_i32 : i32, i32
  }
  func.func @transform_1(%arg0: i32, %arg1: i32) -> (i32, i32) {
    %c0_i32 = arith.constant 0 : i32
    %c0_i32_0 = arith.constant 0 : i32
    return %c0_i32, %arg1 : i32, i32
  }
  func.func @transform_2(%arg0: i32, %arg1: i32) -> (i32, i32) {
    %c0_i32 = arith.constant 0 : i32
    %c0_i32_0 = arith.constant 0 : i32
    return %c0_i32, %arg1 : i32, i32
  }
  func.func @transform_3(%arg0: i32, %arg1: i32) -> (i32, i32) {
    %c0_i32 = arith.constant 0 : i32
    %c0_i32_0 = arith.constant 0 : i32
    return %arg0, %c0_i32 : i32, i32
  }
  func.func @transform_4(%arg0: i32, %arg1: i32) -> (i32, i32) {
    %c0_i32 = arith.constant 0 : i32
    return %arg0, %arg1 : i32, i32
  }
}

module attributes {stable_mosaic.version = 11 : i64} {
  func.func @_sconv_mm_fast_kernel(%arg0: i32, %arg1: i32, %arg2: memref<32x3600xbf16, #tpu.memory_space<vmem>>, %arg3: memref<3600x896xbf16, #tpu.memory_space<vmem>>, %arg4: memref<1x896xf32, #tpu.memory_space<vmem>>, %arg5: memref<32x896xbf16, #tpu.memory_space<vmem>>) attributes {dimension_semantics = [#tpu.dimension_semantics<parallel>, #tpu.dimension_semantics<parallel>], iteration_bounds = array<i64: 1, 1>, scalar_prefetch = 0 : i64, scratch_operands = 0 : i64, tpu.core_type = #tpu.core_type<tc>, window_params = [{transform_indices = @transform_0, window_bounds = array<i64: 32, 3600>}, {pipeline_mode = #tpu.pipeline_mode<synchronous>, transform_indices = @transform_1, window_bounds = array<i64: 3600, 896>}, {transform_indices = @transform_2, window_bounds = array<i64: 1, 896>}, {transform_indices = @transform_3, window_bounds = array<i64: 32, 896>}]} {
    %c0 = arith.constant 0 : index
    %c0_0 = arith.constant 0 : index
    %0 = vector.load %arg2[%c0, %c0_0] : memref<32x3600xbf16, #tpu.memory_space<vmem>>, vector<32x3600xbf16>
    %c0_1 = arith.constant 0 : index
    %c0_2 = arith.constant 0 : index
    %1 = vector.load %arg3[%c0_1, %c0_2] : memref<3600x896xbf16, #tpu.memory_space<vmem>>, vector<3600x896xbf16>
    %cst = arith.constant dense<0.000000e+00> : vector<32x896xf32>
    %2 = tpu.matmul %0, %1, %cst {dimension_numbers = #tpu.dot_dimension_numbers<[1], [0], [0], [1], [0, 0, 1, 1], [], []>} : vector<32x3600xbf16>, vector<3600x896xbf16>, vector<32x896xf32> -> vector<32x896xf32>
    %c0_3 = arith.constant 0 : index
    %c0_4 = arith.constant 0 : index
    %3 = vector.load %arg4[%c0_3, %c0_4] : memref<1x896xf32, #tpu.memory_space<vmem>>, vector<1x896xf32>
    %4 = vector.broadcast %3 : vector<1x896xf32> to vector<32x896xf32>
    %5 = arith.addf %2, %4 : vector<32x896xf32>
    %cst_5 = arith.constant 0.000000e+00 : f32
    %6 = vector.broadcast %cst_5 : f32 to vector<32x896xf32>
    %7 = arith.maximumf %5, %6 : vector<32x896xf32>
    %8 = arith.truncf %7 : vector<32x896xf32> to vector<32x896xbf16>
    %c0_6 = arith.constant 0 : index
    %c0_7 = arith.constant 0 : index
    %9 = vector.load %arg5[%c0_6, %c0_7] : memref<32x896xbf16, #tpu.memory_space<vmem>>, vector<32x896xbf16>
    tpu.vector_store %arg5[%c0_6, %c0_7], %8 {strides = array<i32>} : memref<32x896xbf16, #tpu.memory_space<vmem>>, vector<32x896xbf16>,
    return
  }
  func.func @transform_0(%arg0: i32, %arg1: i32) -> (i32, i32) {
    %c0_i32 = arith.constant 0 : i32
    %c0_i32_0 = arith.constant 0 : i32
    return %arg0, %c0_i32 : i32, i32
  }
  func.func @transform_1(%arg0: i32, %arg1: i32) -> (i32, i32) {
    %c0_i32 = arith.constant 0 : i32
    %c0_i32_0 = arith.constant 0 : i32
    return %c0_i32, %arg1 : i32, i32
  }
  func.func @transform_2(%arg0: i32, %arg1: i32) -> (i32, i32) {
    %c0_i32 = arith.constant 0 : i32
    %c0_i32_0 = arith.constant 0 : i32
    return %c0_i32, %arg1 : i32, i32
  }
  func.func @transform_3(%arg0: i32, %arg1: i32) -> (i32, i32) {
    %c0_i32 = arith.constant 0 : i32
    return %arg0, %arg1 : i32, i32
  }
}

</mosaic_0001>

<bundles_post_ra>
// kernel: _lambda_.3
= control target key start
LH: loop header
LB: loop body
LE: loop exit
PB: predicated region body
PF: predicated region fallthrough
CT: control target
= control target key end

     0   :  { %vm373_vm0 = vcmask 1044480   ;;  %vm374_vm1 = vcmask 1045504   ;;  %v2070_v0 = vmov 0   ;;  %v2071_v3 = vmov 65535   ;;  %s2914_s3 = inlined_call_operand.vmem [shape: f32[512,1], index: 3, kind: input, shape index: {}]   ;;  %s2915_s1 = inlined_call_operand.vmem [shape: bf16[27,256], index: 1, kind: input, shape index: {}]   ;;  %s2916_s0 = inlined_call_operand.vmem [shape: bf16[512,27], index: 0, kind: input, shape index: {}]   ;;  %s2917_s2 = inlined_call_operand.vmem [shape: f32[1,256], index: 2, kind: input, shape index: {}]   ;;  %s2918_s4 = inlined_call_operand.vmem [shape: bf16[512,256], index: 4, kind: output, shape index: {}]  }
   0x1   :  { %2031 = vset.pattern.permute.xlu1 %v2070_v0  ;;  %2030 = vset.pattern.permute.xlu0 %v2070_v0  ;;  %v738_v1 = vld [vmem:[%s2914_s3 + $0x10] sm:$0xff]  ;;  %v736_v2 = vld [vmem:[%s2914_s3] sm:$0xff]  ;;  %v375_v4 = vsel %vm373_vm0, 4294967295, %v2071_v3  ;;  %v739_v7 = vld [vmem:[%s2914_s3 + $0x18] sm:$0xff]  ;;  %vm276_vm2 = vcmask 220160  }
   0x2   :  { %812 = vperm.xlu1 %2031, %v738_v1   ;;  %802 = vperm.xlu0 %2030, %v736_v2   ;;  %v2032_v5 = vld [vmem:[%s2915_s1 + $0x4] ss:$8 sps:$4 sm:$0xff]   ;;  %v2034_v6 = vld [vmem:[%s2915_s1] ss:$8 sps:$4 sm:$0xff]   ;;  %v376_v9 = vsel %vm374_vm1, %v375_v4, 0  ;;  %v743_v18 = vld [vmem:[%s2914_s3 + $0x38] sm:$0xff] }
   0x3   :  { %v737_v8 = vld [vmem:[%s2914_s3 + $0x8] sm:$0xff]  ;;  %415 = vmatprep.mubr.bf16.mxu0 %v2070_v0  ;;  %575 = vmatprep.mubr.bf16.mxu1 %v2070_v0  ;;  %v2035_v10 = vld [vmem:[%s2915_s1 + $0x14] ss:$8 sps:$4 sm:$0x3f]   ;;  %v740_v15 = vld [vmem:[%s2914_s3 + $0x20] sm:$0xff] }
   0x4   :  { %383 = vmatprep.subr.bf16.mxu0 %v2032_v5  ;;  %2024 = vmatprep.subr.bf16.mxu1 %v2032_v5  ;;  %v2037_v11 = vld [vmem:[%s2915_s1 + $0x10] ss:$8 sps:$4 sm:$0x3f]   ;;  %v381_v12 = vand.u32 %v2035_v10, %v376_v9  ;;  %v741_v14 = vld [vmem:[%s2914_s3 + $0x28] sm:$0xff]  ;;  %v2038_v16 = vld [vmem:[%s2916_s0] sm:$0xff]  }
   0x5   :  { %384 = vmatpush1.bf16.msra.mxu0 %v2034_v6  ;;  %2026 = vmatpush1.bf16.msra.mxu1 %v2034_v6  ;;  %v378_v13 = vand.u32 %v2037_v11, %v376_v9  ;;  %v2039_v17 = vld [vmem:[%s2916_s0 + $0x80] sm:$0xff]   ;;  %v742_v19 = vld [vmem:[%s2914_s3 + $0x30] sm:$0xff]  ;;  %v745_v20 = vld [vmem:[%s2914_s3 + $0x48] sm:$0xff] }
   0x6   :  { %817 = vperm.xlu1 %2031, %v739_v7   ;;  %807 = vperm.xlu0 %2030, %v737_v8   ;;  %v744_v21 = vld [vmem:[%s2914_s3 + $0x40] sm:$0xff]  ;;  %v2040_v22 = vld [vmem:[%s2916_s0 + $0x8] sm:$0xff]   ;;  %v747_v24 = vld [vmem:[%s2914_s3 + $0x58] sm:$0xff] }
   0x7   :  { %385 = vmatprep.subr.bf16.mxu0 %v381_v12  ;;  %2025 = vmatprep.subr.bf16.mxu1 %v381_v12  ;;  %v2041_v23 = vld [vmem:[%s2916_s0 + $0x88] sm:$0xff]   ;;  %v746_v25 = vld [vmem:[%s2914_s3 + $0x50] sm:$0xff]  ;;  %v748_v27 = vld [vmem:[%s2914_s3 + $0x60] sm:$0xff] }
   0x8   :  { %v749_v26 = vld [vmem:[%s2914_s3 + $0x68] sm:$0xff]  ;;  %v2042_v28 = vld [vmem:[%s2916_s0 + $0x10] sm:$0xff]   ;;  %v751_v30 = vld [vmem:[%s2914_s3 + $0x78] sm:$0xff] }
   0x9   :  { %386 = vmatpush1.bf16.msra.mxu0 %v378_v13  ;;  %2027 = vmatpush1.bf16.msra.mxu1 %v378_v13  ;;  %v2043_v29 = vld [vmem:[%s2916_s0 + $0x90] sm:$0xff]   ;;  %v753_v32 = vld [vmem:[%s2914_s3 + $0x88] sm:$0xff]  ;;  %v752_v33 = vld [vmem:[%s2914_s3 + $0x80] sm:$0xff] }
   0xa   :  { %827 = vperm.xlu1 %2031, %v741_v14   ;;  %822 = vperm.xlu0 %2030, %v740_v15   ;;  %v750_v31 = vld [vmem:[%s2914_s3 + $0x70] sm:$0xff]  ;;  %v2044_v34 = vld [vmem:[%s2916_s0 + $0x18] sm:$0xff]   ;;  %v757_v38 = vld [vmem:[%s2914_s3 + $0xa8] sm:$0xff] }
   0xb   :  { %v2045_v35 = vld [vmem:[%s2916_s0 + $0x98] sm:$0xff]   ;;  %v754_v37 = vld [vmem:[%s2914_s3 + $0x90] sm:$0xff]  ;;  %v756_v39 = vld [vmem:[%s2914_s3 + $0xa0] sm:$0xff] }
   0xc   :  { %1864 = vmatmul.mubr.msk.bf16.vlgmr.msra.gmra.mrb[0].mxu0 %vm276_vm2, %v2038_v16  ;;  %1880 = vmatmul.mubr.msk.bf16.vlgmr.msra.gmra.mrb[0].mxu1 %vm276_vm2, %v2039_v17  ;;  %v755_v36 = vld [vmem:[%s2914_s3 + $0x98] sm:$0xff]  ;;  %v2046_v40 = vld [vmem:[%s2916_s0 + $0x20] sm:$0xff]   ;;  %v758_v43 = vld [vmem:[%s2914_s3 + $0xb0] sm:$0xff] }
   0xd   :  { %425 = vmatprep.mubr.bf16.mxu0 %v2070_v0  ;;  %585 = vmatprep.mubr.bf16.mxu1 %v2070_v0  ;;  %v2047_v41 = vld [vmem:[%s2916_s0 + $0xa0] sm:$0xff]   ;;  %v759_v42 = vld [vmem:[%s2914_s3 + $0xb8] sm:$0xff]  ;;  %v761_v44 = vld [vmem:[%s2914_s3 + $0xc8] sm:$0xff] }
   0xe   :  { %837 = vperm.xlu1 %2031, %v743_v18   ;;  %832 = vperm.xlu0 %2030, %v742_v19   ;;  %v760_v45 = vld [vmem:[%s2914_s3 + $0xc0] sm:$0xff]  ;;  %v2048_v46 = vld [vmem:[%s2916_s0 + $0x28] sm:$0xff]   ;;  %v763_v48 = vld [vmem:[%s2914_s3 + $0xd8] sm:$0xff] }
   0xf   :  { %v2049_v47 = vld [vmem:[%s2916_s0 + $0xa8] sm:$0xff]   ;;  %v762_v49 = vld [vmem:[%s2914_s3 + $0xd0] sm:$0xff]  ;;  %v764_v51 = vld [vmem:[%s2914_s3 + $0xe0] sm:$0xff] }
  0x10   :  { %v765_v50 = vld [vmem:[%s2914_s3 + $0xe8] sm:$0xff]  ;;  %v2050_v52 = vld [vmem:[%s2916_s0 + $0x30] sm:$0xff]   ;;  %v767_v54 = vld [vmem:[%s2914_s3 + $0xf8] sm:$0xff] }
  0x11   :  { %v2051_v53 = vld [vmem:[%s2916_s0 + $0xb0] sm:$0xff]   ;;  %v769_v56 = vld [vmem:[%s2914_s3 + $0x108] sm:$0xff]  ;;  %v768_v57 = vld [vmem:[%s2914_s3 + $0x100] sm:$0xff] }
  0x12   :  { %847 = vperm.xlu1 %2031, %v745_v20   ;;  %842 = vperm.xlu0 %2030, %v744_v21   ;;  %v766_v55 = vld [vmem:[%s2914_s3 + $0xf0] sm:$0xff]  ;;  %v2052_v58 = vld [vmem:[%s2916_s0 + $0x38] sm:$0xff]   ;;  %v773_v62 = vld [vmem:[%s2914_s3 + $0x128] sm:$0xff] }
  0x13   :  { %v2053_v59 = vld [vmem:[%s2916_s0 + $0xb8] sm:$0xff]   ;;  %v770_v61 = vld [vmem:[%s2914_s3 + $0x110] sm:$0xff]  ;;  %v772_v63 = vld [vmem:[%s2914_s3 + $0x120] sm:$0xff] }
  0x14   :  { %1865 = vmatmul.mubr.msk.bf16.gmra.mrb[4].mxu0 %vm276_vm2, %v2040_v22  ;;  %1881 = vmatmul.mubr.msk.bf16.gmra.mrb[4].mxu1 %vm276_vm2, %v2041_v23  ;;  %v771_v60 = vld [vmem:[%s2914_s3 + $0x118] sm:$0xff]  ;;  %v2054_v1 = vld [vmem:[%s2916_s0 + $0x40] sm:$0xff]   ;;  %v774_v4 = vld [vmem:[%s2914_s3 + $0x130] sm:$0xff] }
  0x15   :  { %435 = vmatprep.mubr.bf16.mxu0 %v2070_v0  ;;  %595 = vmatprep.mubr.bf16.mxu1 %v2070_v0  ;;  %v2055_v2 = vld [vmem:[%s2916_s0 + $0xc0] sm:$0xff]   ;;  %v775_v3 = vld [vmem:[%s2914_s3 + $0x138] sm:$0xff]  ;;  %v777_v5 = vld [vmem:[%s2914_s3 + $0x148] sm:$0xff] }
  0x16   :  { %857 = vperm.xlu1 %2031, %v747_v24   ;;  %852 = vperm.xlu0 %2030, %v746_v25   ;;  %v776_v6 = vld [vmem:[%s2914_s3 + $0x140] sm:$0xff]  ;;  %v2056_v7 = vld [vmem:[%s2916_s0 + $0x48] sm:$0xff]   ;;  %v779_v9 = vld [vmem:[%s2914_s3 + $0x158] sm:$0xff] }
  0x17   :  { %v2057_v8 = vld [vmem:[%s2916_s0 + $0xc8] sm:$0xff]   ;;  %v778_v10 = vld [vmem:[%s2914_s3 + $0x150] sm:$0xff]  ;;  %v780_v12 = vld [vmem:[%s2914_s3 + $0x160] sm:$0xff] }
  0x18   :  { %v781_v11 = vld [vmem:[%s2914_s3 + $0x168] sm:$0xff]  ;;  %v2058_v13 = vld [vmem:[%s2916_s0 + $0x50] sm:$0xff]   ;;  %v783_v15 = vld [vmem:[%s2914_s3 + $0x178] sm:$0xff] }
  0x19   :  { %v2059_v14 = vld [vmem:[%s2916_s0 + $0xd0] sm:$0xff]   ;;  %v785_v17 = vld [vmem:[%s2914_s3 + $0x188] sm:$0xff]  ;;  %v784_v18 = vld [vmem:[%s2914_s3 + $0x180] sm:$0xff] }
  0x1a   :  { %867 = vperm.xlu1 %2031, %v749_v26   ;;  %862 = vperm.xlu0 %2030, %v748_v27   ;;  %v782_v16 = vld [vmem:[%s2914_s3 + $0x170] sm:$0xff]  ;;  %v2060_v19 = vld [vmem:[%s2916_s0 + $0x58] sm:$0xff]   ;;  %v789_v23 = vld [vmem:[%s2914_s3 + $0x1a8] sm:$0xff] }
  0x1b   :  { %v2061_v20 = vld [vmem:[%s2916_s0 + $0xd8] sm:$0xff]   ;;  %v786_v22 = vld [vmem:[%s2914_s3 + $0x190] sm:$0xff]  ;;  %v788_v24 = vld [vmem:[%s2914_s3 + $0x1a0] sm:$0xff] }
  0x1c   :  { %1866 = vmatmul.mubr.msk.bf16.gmra.mrb[8].mxu0 %vm276_vm2, %v2042_v28  ;;  %1882 = vmatmul.mubr.msk.bf16.gmra.mrb[8].mxu1 %vm276_vm2, %v2043_v29  ;;  %v787_v21 = vld [vmem:[%s2914_s3 + $0x198] sm:$0xff]  ;;  %v2062_v25 = vld [vmem:[%s2916_s0 + $0x60] sm:$0xff]   ;;  %v790_v28 = vld [vmem:[%s2914_s3 + $0x1b0] sm:$0xff] }
  0x1d   :  { %445 = vmatprep.mubr.bf16.mxu0 %v2070_v0  ;;  %605 = vmatprep.mubr.bf16.mxu1 %v2070_v0  ;;  %v2063_v26 = vld [vmem:[%s2916_s0 + $0xe0] sm:$0xff]   ;;  %v791_v27 = vld [vmem:[%s2914_s3 + $0x1b8] sm:$0xff]  ;;  %v793_v29 = vld [vmem:[%s2914_s3 + $0x1c8] sm:$0xff] }
  0x1e   :  { %877 = vperm.xlu1 %2031, %v751_v30   ;;  %872 = vperm.xlu0 %2030, %v750_v31   ;;  %v792_v30 = vld [vmem:[%s2914_s3 + $0x1c0] sm:$0xff]  ;;  %v2064_v31 = vld [vmem:[%s2916_s0 + $0x68] sm:$0xff]  }
  0x22   :  { %887 = vperm.xlu1 %2031, %v753_v32   ;;  %882 = vperm.xlu0 %2030, %v752_v33   ;;  %v2065_v32 = vld [vmem:[%s2916_s0 + $0xe8] sm:$0xff]   ;;  %v795_v33 = vld [vmem:[%s2914_s3 + $0x1d8] sm:$0xff] }
  0x24   :  { %1867 = vmatmul.mubr.msk.bf16.gmra.mrb[12].mxu0 %vm276_vm2, %v2044_v34  ;;  %1883 = vmatmul.mubr.msk.bf16.gmra.mrb[12].mxu1 %vm276_vm2, %v2045_v35  ;;  %v794_v34 = vld [vmem:[%s2914_s3 + $0x1d0] sm:$0xff]  ;;  %v797_v35 = vld [vmem:[%s2914_s3 + $0x1e8] sm:$0xff] }
  0x25   :  { %455 = vmatprep.mubr.bf16.mxu0 %v2070_v0  ;;  %615 = vmatprep.mubr.bf16.mxu1 %v2070_v0 }
  0x26   :  { %897 = vperm.xlu1 %2031, %v755_v36   ;;  %892 = vperm.xlu0 %2030, %v754_v37   ;;  %v796_v36 = vld [vmem:[%s2914_s3 + $0x1e0] sm:$0xff]  ;;  %v2066_v37 = vld [vmem:[%s2916_s0 + $0x70] sm:$0xff]  }
  0x2a   :  { %907 = vperm.xlu1 %2031, %v757_v38   ;;  %902 = vperm.xlu0 %2030, %v756_v39   ;;  %v2067_v38 = vld [vmem:[%s2916_s0 + $0xf0] sm:$0xff]   ;;  %v799_v39 = vld [vmem:[%s2914_s3 + $0x1f8] sm:$0xff] }
  0x2c   :  { %1868 = vmatmul.mubr.msk.bf16.gmra.mrb[16].mxu0 %vm276_vm2, %v2046_v40  ;;  %1884 = vmatmul.mubr.msk.bf16.gmra.mrb[16].mxu1 %vm276_vm2, %v2047_v41  ;;  %v798_v40 = vld [vmem:[%s2914_s3 + $0x1f0] sm:$0xff]  ;;  %v2068_v41 = vld [vmem:[%s2916_s0 + $0x78] sm:$0xff]  }
  0x2d   :  { %465 = vmatprep.mubr.bf16.mxu0 %v2070_v0  ;;  %625 = vmatprep.mubr.bf16.mxu1 %v2070_v0 }
  0x2e   :  { %917 = vperm.xlu1 %2031, %v759_v42   ;;  %912 = vperm.xlu0 %2030, %v758_v43   ;;  %v2069_v42 = vld [vmem:[%s2916_s0 + $0xf8] sm:$0xff]  }
  0x32   :  { %927 = vperm.xlu1 %2031, %v761_v44   ;;  %922 = vperm.xlu0 %2030, %v760_v45  }
  0x34   :  { %1869 = vmatmul.mubr.msk.bf16.gmra.mrb[20].mxu0 %vm276_vm2, %v2048_v46  ;;  %1885 = vmatmul.mubr.msk.bf16.gmra.mrb[20].mxu1 %vm276_vm2, %v2049_v47 }
  0x35   :  { %475 = vmatprep.mubr.bf16.mxu0 %v2070_v0  ;;  %635 = vmatprep.mubr.bf16.mxu1 %v2070_v0 }
  0x36   :  { %937 = vperm.xlu1 %2031, %v763_v48   ;;  %932 = vperm.xlu0 %2030, %v762_v49  }
  0x3a   :  { %947 = vperm.xlu1 %2031, %v765_v50   ;;  %942 = vperm.xlu0 %2030, %v764_v51  }
  0x3c   :  { %1870 = vmatmul.mubr.msk.bf16.gmra.mrb[24].mxu0 %vm276_vm2, %v2050_v52  ;;  %1886 = vmatmul.mubr.msk.bf16.gmra.mrb[24].mxu1 %vm276_vm2, %v2051_v53 }
  0x3d   :  { %485 = vmatprep.mubr.bf16.mxu0 %v2070_v0  ;;  %645 = vmatprep.mubr.bf16.mxu1 %v2070_v0 }
  0x3e   :  { %957 = vperm.xlu1 %2031, %v767_v54   ;;  %952 = vperm.xlu0 %2030, %v766_v55  }
  0x42   :  { %967 = vperm.xlu1 %2031, %v769_v56   ;;  %962 = vperm.xlu0 %2030, %v768_v57  }
  0x44   :  { %1871 = vmatmul.mubr.msk.bf16.gmra.mrb[28].mxu0 %vm276_vm2, %v2052_v58  ;;  %1887 = vmatmul.mubr.msk.bf16.gmra.mrb[28].mxu1 %vm276_vm2, %v2053_v59 }
  0x45   :  { %495 = vmatprep.mubr.bf16.mxu0 %v2070_v0  ;;  %655 = vmatprep.mubr.bf16.mxu1 %v2070_v0 }
  0x46   :  { %977 = vperm.xlu1 %2031, %v771_v60   ;;  %972 = vperm.xlu0 %2030, %v770_v61  }
  0x4a   :  { %987 = vperm.xlu1 %2031, %v773_v62   ;;  %982 = vperm.xlu0 %2030, %v772_v63  }
  0x4c   :  { %1872 = vmatmul.mubr.msk.bf16.gmra.mrb[32].mxu0 %vm276_vm2, %v2054_v1  ;;  %1888 = vmatmul.mubr.msk.bf16.gmra.mrb[32].mxu1 %vm276_vm2, %v2055_v2 }
  0x4d   :  { %505 = vmatprep.mubr.bf16.mxu0 %v2070_v0  ;;  %665 = vmatprep.mubr.bf16.mxu1 %v2070_v0 }
  0x4e   :  { %997 = vperm.xlu1 %2031, %v775_v3   ;;  %992 = vperm.xlu0 %2030, %v774_v4  }
  0x52   :  { %1007 = vperm.xlu1 %2031, %v777_v5   ;;  %1002 = vperm.xlu0 %2030, %v776_v6   ;;  %v88_v6 = vlaneseq }
  0x54   :  { %1873 = vmatmul.mubr.msk.bf16.gmra.mrb[36].mxu0 %vm276_vm2, %v2056_v7  ;;  %1889 = vmatmul.mubr.msk.bf16.gmra.mrb[36].mxu1 %vm276_vm2, %v2057_v8 }
  0x55   :  { %515 = vmatprep.mubr.bf16.mxu0 %v2070_v0  ;;  %675 = vmatprep.mubr.bf16.mxu1 %v2070_v0 }
  0x56   :  { %1017 = vperm.xlu1 %2031, %v779_v9   ;;  %1012 = vperm.xlu0 %2030, %v778_v10   ;;  %v89_v9 = vshrl.u32 %v88_v6, 7 }
  0x5a   :  { %1027 = vperm.xlu1 %2031, %v781_v11   ;;  %1022 = vperm.xlu0 %2030, %v780_v12   ;;  %v90_v12 = vsub.s32 0, %v89_v9 }
  0x5c   :  { %1874 = vmatmul.mubr.msk.bf16.gmra.mrb[40].mxu0 %vm276_vm2, %v2058_v13  ;;  %1890 = vmatmul.mubr.msk.bf16.gmra.mrb[40].mxu1 %vm276_vm2, %v2059_v14  ;;  %v86_v13 = vld [vmem:[%s2917_s2] sm:$0x3]  ;;  %v94_v14 = vsub.s32 1, %v89_v9 }
  0x5d   :  { %525 = vmatprep.mubr.bf16.mxu0 %v2070_v0  ;;  %685 = vmatprep.mubr.bf16.mxu1 %v2070_v0 }
  0x5e   :  { %1037 = vperm.xlu1 %2031, %v783_v15   ;;  %1032 = vperm.xlu0 %2030, %v782_v16   ;;  %v2526_v15 = vrot.slane %v86_v13, %v90_v12  ;;  %v2528_v16 = vrot.slane %v86_v13, %v94_v14 }
  0x62   :  { %1047 = vperm.xlu1 %2031, %v785_v17   ;;  %1042 = vperm.xlu0 %2030, %v784_v18  }
  0x64   :  { %1875 = vmatmul.mubr.msk.bf16.gmra.mrb[44].mxu0 %vm276_vm2, %v2060_v19  ;;  %1891 = vmatmul.mubr.msk.bf16.gmra.mrb[44].mxu1 %vm276_vm2, %v2061_v20 }
  0x65   :  { %535 = vmatprep.mubr.bf16.mxu0 %v2070_v0  ;;  %695 = vmatprep.mubr.bf16.mxu1 %v2070_v0 }
  0x66   :  { %1057 = vperm.xlu1 %2031, %v787_v21   ;;  %1052 = vperm.xlu0 %2030, %v786_v22  }
  0x6a   :  { %1067 = vperm.xlu1 %2031, %v789_v23   ;;  %1062 = vperm.xlu0 %2030, %v788_v24  }
  0x6c   :  { %1876 = vmatmul.mubr.msk.bf16.gmra.mrb[48].mxu0 %vm276_vm2, %v2062_v25  ;;  %1892 = vmatmul.mubr.msk.bf16.gmra.mrb[48].mxu1 %vm276_vm2, %v2063_v26 }
  0x6d   :  { %545 = vmatprep.mubr.bf16.mxu0 %v2070_v0  ;;  %705 = vmatprep.mubr.bf16.mxu1 %v2070_v0 }
  0x6e   :  { %1077 = vperm.xlu1 %2031, %v791_v27   ;;  %1072 = vperm.xlu0 %2030, %v790_v28  }
  0x72   :  { %1087 = vperm.xlu1 %2031, %v793_v29   ;;  %1082 = vperm.xlu0 %2030, %v792_v30  }
  0x74   :  { %1877 = vmatmul.mubr.msk.bf16.gmra.mrb[52].mxu0 %vm276_vm2, %v2064_v31  ;;  %1893 = vmatmul.mubr.msk.bf16.gmra.mrb[52].mxu1 %vm276_vm2, %v2065_v32 }
  0x75   :  { %555 = vmatprep.mubr.bf16.mxu0 %v2070_v0  ;;  %715 = vmatprep.mubr.bf16.mxu1 %v2070_v0 }
  0x76   :  { %1097 = vperm.xlu1 %2031, %v795_v33   ;;  %1092 = vperm.xlu0 %2030, %v794_v34  }
  0x7a   :  { %1107 = vperm.xlu1 %2031, %v797_v35   ;;  %1102 = vperm.xlu0 %2030, %v796_v36  }
  0x7c   :  { %1878 = vmatmul.mubr.msk.bf16.gmra.mrb[56].mxu0 %vm276_vm2, %v2066_v37  ;;  %1894 = vmatmul.mubr.msk.bf16.gmra.mrb[56].mxu1 %vm276_vm2, %v2067_v38 }
  0x7d   :  { %565 = vmatprep.mubr.bf16.mxu0 %v2070_v0  ;;  %725 = vmatprep.mubr.bf16.mxu1 %v2070_v0 }
  0x7e   :  { %1117 = vperm.xlu1 %2031, %v799_v39   ;;  %1112 = vperm.xlu0 %2030, %v798_v40  }
  0x81   :  { %v803_v43 = vpop.permute.xlu0 %802  ;;  %v2461_v44 = vpop.permute.xlu1 %812 }
  0x84   :  { %1879 = vmatmul.mubr.msk.bf16.gmra.mrb[60].mxu0 %vm276_vm2, %v2068_v41  ;;  %1895 = vmatmul.mubr.msk.bf16.gmra.mrb[60].mxu1 %vm276_vm2, %v2069_v42 }
  0x85   :  { %v2465_v45 = vpop.permute.xlu0 %807  ;;  %v2467_v0 = vpop.permute.xlu1 %817 }
  0x89   :  { %v2469_v46 = vpop.permute.xlu0 %822  ;;  %v2471_v47 = vpop.permute.xlu1 %827 }
  0x8d   :  { %v2473_v48 = vpop.permute.xlu0 %832  ;;  %v2475_v49 = vpop.permute.xlu1 %837 }
  0x91   :  { %v2477_v50 = vpop.permute.xlu0 %842  ;;  %v2479_v51 = vpop.permute.xlu1 %847 }
  0x95   :  { %v2481_v52 = vpop.permute.xlu0 %852  ;;  %v2483_v53 = vpop.permute.xlu1 %857 }
  0x99   :  { %v2485_v54 = vpop.permute.xlu0 %862  ;;  %v2487_v55 = vpop.permute.xlu1 %867 }
  0x9d   :  { %v2489_v56 = vpop.permute.xlu0 %872  ;;  %v2491_v57 = vpop.permute.xlu1 %877 }
  0xa1   :  { %v2493_v58 = vpop.permute.xlu0 %882  ;;  %v2495_v59 = vpop.permute.xlu1 %887 }
  0xa5   :  { %v2497_v60 = vpop.permute.xlu0 %892  ;;  %v2499_v61 = vpop.permute.xlu1 %897 }
  0xa9   :  { %v2501_v62 = vpop.permute.xlu0 %902  ;;  %v2503_v63 = vpop.permute.xlu1 %907 }
  0xad   :  { %v2505_v1 = vpop.permute.xlu0 %912  ;;  %v2507_v2 = vpop.permute.xlu1 %917 }
  0xb1   :  { %v2509_v3 = vpop.permute.xlu0 %922  ;;  %v2511_v4 = vpop.permute.xlu1 %927 }
  0xb5   :  { %v2513_v5 = vpop.permute.xlu0 %932  ;;  %v2515_v7 = vpop.permute.xlu1 %937 }
  0xb9   :  { %v2517_v8 = vpop.permute.xlu0 %942  ;;  %v2519_v10 = vpop.permute.xlu1 %947 }
  0xbd   :  { %v2521_v11 = vpop.permute.xlu0 %952  ;;  %v2530_v17 = vpop.permute.xlu1 %957 }
  0xc1   :  { %v963_v18 = vpop.permute.xlu0 %962  ;;  %v968_v37 = vpop.permute.xlu1 %967 }
  0xdf   :  { %v417_v19 = vpop.f32.mrb[0].mxu0  ;;  %v577_v20 = vpop.f32.mrb[0].mxu1 }
  0xe0   :  { %v418_v21 = vadd.f32 %v417_v19, %v2526_v15  ;;  %v578_v22 = vadd.f32 %v577_v20, %v2526_v15  ;;  %v419_v23 = vpop.f32.mrb[1].mxu0  ;;  %v579_v24 = vpop.f32.mrb[1].mxu1 }
  0xe1   :  { %v420_v25 = vadd.f32 %v419_v23, %v2528_v16  ;;  %v580_v26 = vadd.f32 %v579_v24, %v2528_v16  ;;  %v421_v29 = vpop.f32.mrb[2].mxu0  ;;  %v581_v30 = vpop.f32.mrb[2].mxu1 }
  0xe2   :  { %v1120_v27 = vmul.f32 %v803_v43, %v418_v21  ;;  %v1184_v28 = vmul.f32 %v963_v18, %v578_v22  ;;  %v422_v33 = vadd.f32 %v421_v29, %v2526_v15  ;;  %v582_v34 = vadd.f32 %v581_v30, %v2526_v15  ;;  %v423_v35 = vpop.f32.mrb[3].mxu0  ;;  %v583_v36 = vpop.f32.mrb[3].mxu1 }
  0xe3   :  { %v1121_v31 = vmul.f32 %v803_v43, %v420_v25  ;;  %v1185_v32 = vmul.f32 %v963_v18, %v580_v26  ;;  %v424_v40 = vadd.f32 %v423_v35, %v2528_v16  ;;  %v584_v41 = vadd.f32 %v583_v36, %v2528_v16  ;;  %v973_v43 = vpop.permute.xlu0 %972 }
  0xe4   :  { %v1248_v38 = vmax.f32 %v1120_v27, 0.0  ;;  %v1312_v39 = vmax.f32 %v1184_v28, 0.0  ;;  %v1122_v9 = vmul.f32 %v2465_v45, %v422_v33  ;;  %v1186_v12 = vmul.f32 %v968_v37, %v582_v34 }
  0xe5   :  { %v1249_v42 = vmax.f32 %v1121_v31, 0.0  ;;  %v1313_v6 = vmax.f32 %v1185_v32, 0.0  ;;  %v1123_v13 = vmul.f32 %v2465_v45, %v424_v40  ;;  %v1187_v14 = vmul.f32 %v968_v37, %v584_v41 }
  0xe6   :  { %v1250_v20 = vmax.f32 %v1122_v9, 0.0  ;;  %v1314_v21 = vmax.f32 %v1186_v12, 0.0 }
  0xe7   :  { %v1960_v18 = vpack.c.bf16 %v1249_v42, %v1248_v38  ;;  %v1992_v19 = vpack.c.bf16 %v1313_v6, %v1312_v39  ;;  %v427_v22 = vpop.f32.mrb[4].mxu0  ;;  %v587_v23 = vpop.f32.mrb[4].mxu1  ;;  %v1251_v24 = vmax.f32 %v1123_v13, 0.0  ;;  %v1315_v25 = vmax.f32 %v1187_v14, 0.0 }
  0xe8   :  { %v428_v26 = vadd.f32 %v427_v22, %v2526_v15  ;;  %v588_v27 = vadd.f32 %v587_v23, %v2526_v15  ;;  %v429_v28 = vpop.f32.mrb[5].mxu0  ;;  %v589_v29 = vpop.f32.mrb[5].mxu1 }
  0xe9   :  { %1760 = vst [vmem:[%s2918_s4] sm:$0xff] %v1960_v18  ;;  %1792 = vst [vmem:[%s2918_s4 + $0x100] sm:$0xff] %v1992_v19  ;;  %v430_v45 = vadd.f32 %v429_v28, %v2528_v16  ;;  %v590_v30 = vadd.f32 %v589_v29, %v2528_v16  ;;  %v1961_v31 = vpack.c.bf16 %v1251_v24, %v1250_v20  ;;  %v431_v35 = vpop.f32.mrb[6].mxu0  ;;  %v591_v36 = vpop.f32.mrb[6].mxu1 }
  0xea   :  { %v1993_v32 = vpack.c.bf16 %v1315_v25, %v1314_v21  ;;  %v1124_v33 = vmul.f32 %v2461_v44, %v428_v26  ;;  %v1188_v34 = vmul.f32 %v973_v43, %v588_v27  ;;  %v432_v39 = vadd.f32 %v431_v35, %v2526_v15  ;;  %v433_v41 = vpop.f32.mrb[7].mxu0  ;;  %v593_v42 = vpop.f32.mrb[7].mxu1 }
  0xeb   :  { %v1125_v37 = vmul.f32 %v2461_v44, %v430_v45  ;;  %v1189_v38 = vmul.f32 %v973_v43, %v590_v30  ;;  %v592_v40 = vadd.f32 %v591_v36, %v2526_v15  ;;  %v978_v6 = vpop.permute.xlu1 %977  ;;  %1761 = vst [vmem:[%s2918_s4 + $0x8] sm:$0xff] %v1961_v31  ;;  %v434_v44 = vadd.f32 %v433_v41, %v2528_v16  ;;  %v983_v20 = vpop.permute.xlu0 %982 }
  0xec   :  { %1793 = vst [vmem:[%s2918_s4 + $0x108] sm:$0xff] %v1993_v32  ;;  %v1252_v9 = vmax.f32 %v1124_v33, 0.0  ;;  %v1316_v12 = vmax.f32 %v1188_v34, 0.0  ;;  %v594_v43 = vadd.f32 %v593_v42, %v2528_v16  ;;  %v1126_v18 = vmul.f32 %v2467_v0, %v432_v39 }
  0xed   :  { %v1253_v13 = vmax.f32 %v1125_v37, 0.0  ;;  %v1317_v14 = vmax.f32 %v1189_v38, 0.0  ;;  %v1190_v19 = vmul.f32 %v978_v6, %v592_v40  ;;  %v1127_v21 = vmul.f32 %v2467_v0, %v434_v44 }
  0xee   :  { %v1191_v22 = vmul.f32 %v978_v6, %v594_v43  ;;  %v1254_v25 = vmax.f32 %v1126_v18, 0.0 }
  0xef   :  { %v1962_v23 = vpack.c.bf16 %v1253_v13, %v1252_v9  ;;  %v1994_v24 = vpack.c.bf16 %v1317_v14, %v1316_v12  ;;  %v1318_v26 = vmax.f32 %v1190_v19, 0.0  ;;  %v437_v27 = vpop.f32.mrb[8].mxu0  ;;  %v597_v28 = vpop.f32.mrb[8].mxu1  ;;  %v1255_v29 = vmax.f32 %v1127_v21, 0.0 }
  0xf0   :  { %v1319_v45 = vmax.f32 %v1191_v22, 0.0  ;;  %v438_v30 = vadd.f32 %v437_v27, %v2526_v15  ;;  %v598_v31 = vadd.f32 %v597_v28, %v2526_v15  ;;  %v439_v32 = vpop.f32.mrb[9].mxu0  ;;  %v599_v33 = vpop.f32.mrb[9].mxu1 }
  0xf1   :  { %1762 = vst [vmem:[%s2918_s4 + $0x10] sm:$0xff] %v1962_v23  ;;  %1794 = vst [vmem:[%s2918_s4 + $0x110] sm:$0xff] %v1994_v24  ;;  %v440_v0 = vadd.f32 %v439_v32, %v2528_v16  ;;  %v600_v34 = vadd.f32 %v599_v33, %v2528_v16  ;;  %v1963_v35 = vpack.c.bf16 %v1255_v29, %v1254_v25  ;;  %v441_v39 = vpop.f32.mrb[10].mxu0  ;;  %v601_v40 = vpop.f32.mrb[10].mxu1 }
  0xf2   :  { %v1995_v36 = vpack.c.bf16 %v1319_v45, %v1318_v26  ;;  %v1128_v37 = vmul.f32 %v2469_v46, %v438_v30  ;;  %v1192_v38 = vmul.f32 %v983_v20, %v598_v31  ;;  %v442_v6 = vadd.f32 %v441_v39, %v2526_v15  ;;  %v443_v12 = vpop.f32.mrb[11].mxu0  ;;  %v603_v44 = vpop.f32.mrb[11].mxu1 }
  0xf3   :  { %v1129_v41 = vmul.f32 %v2469_v46, %v440_v0  ;;  %v1193_v42 = vmul.f32 %v983_v20, %v600_v34  ;;  %v602_v9 = vadd.f32 %v601_v40, %v2526_v15  ;;  %v988_v43 = vpop.permute.xlu1 %987  ;;  %1763 = vst [vmem:[%s2918_s4 + $0x18] sm:$0xff] %v1963_v35  ;;  %v444_v46 = vadd.f32 %v443_v12, %v2528_v16  ;;  %v993_v23 = vpop.permute.xlu0 %992 }
  0xf4   :  { %1795 = vst [vmem:[%s2918_s4 + $0x118] sm:$0xff] %v1995_v36  ;;  %v1256_v13 = vmax.f32 %v1128_v37, 0.0  ;;  %v1320_v14 = vmax.f32 %v1192_v38, 0.0  ;;  %v604_v18 = vadd.f32 %v603_v44, %v2528_v16  ;;  %v1130_v21 = vmul.f32 %v2471_v47, %v442_v6 }
  0xf5   :  { %v1257_v19 = vmax.f32 %v1129_v41, 0.0  ;;  %v1321_v20 = vmax.f32 %v1193_v42, 0.0  ;;  %v1194_v22 = vmul.f32 %v988_v43, %v602_v9  ;;  %v1131_v24 = vmul.f32 %v2471_v47, %v444_v46 }
  0xf6   :  { %v1195_v25 = vmul.f32 %v988_v43, %v604_v18  ;;  %v1258_v28 = vmax.f32 %v1130_v21, 0.0 }
  0xf7   :  { %v1964_v26 = vpack.c.bf16 %v1257_v19, %v1256_v13  ;;  %v1996_v27 = vpack.c.bf16 %v1321_v20, %v1320_v14  ;;  %v1322_v29 = vmax.f32 %v1194_v22, 0.0  ;;  %v447_v45 = vpop.f32.mrb[12].mxu0  ;;  %v607_v30 = vpop.f32.mrb[12].mxu1  ;;  %v1259_v31 = vmax.f32 %v1131_v24, 0.0 }
  0xf8   :  { %v1323_v32 = vmax.f32 %v1195_v25, 0.0  ;;  %v448_v33 = vadd.f32 %v447_v45, %v2526_v15  ;;  %v608_v0 = vadd.f32 %v607_v30, %v2526_v15  ;;  %v449_v34 = vpop.f32.mrb[13].mxu0  ;;  %v609_v35 = vpop.f32.mrb[13].mxu1 }
  0xf9   :  { %1764 = vst [vmem:[%s2918_s4 + $0x20] sm:$0xff] %v1964_v26  ;;  %1796 = vst [vmem:[%s2918_s4 + $0x120] sm:$0xff] %v1996_v27  ;;  %v450_v47 = vadd.f32 %v449_v34, %v2528_v16  ;;  %v610_v36 = vadd.f32 %v609_v35, %v2528_v16  ;;  %v1965_v37 = vpack.c.bf16 %v1259_v31, %v1258_v28  ;;  %v451_v41 = vpop.f32.mrb[14].mxu0  ;;  %v611_v42 = vpop.f32.mrb[14].mxu1 }
  0xfa   :  { %v1997_v38 = vpack.c.bf16 %v1323_v32, %v1322_v29  ;;  %v1132_v39 = vmul.f32 %v2473_v48, %v448_v33  ;;  %v1196_v40 = vmul.f32 %v993_v23, %v608_v0  ;;  %v452_v12 = vadd.f32 %v451_v41, %v2526_v15  ;;  %v453_v43 = vpop.f32.mrb[15].mxu0  ;;  %v613_v13 = vpop.f32.mrb[15].mxu1 }
  0xfb   :  { %v1133_v6 = vmul.f32 %v2473_v48, %v450_v47  ;;  %v1197_v9 = vmul.f32 %v993_v23, %v610_v36  ;;  %v612_v44 = vadd.f32 %v611_v42, %v2526_v15  ;;  %v998_v14 = vpop.permute.xlu1 %997  ;;  %1765 = vst [vmem:[%s2918_s4 + $0x28] sm:$0xff] %v1965_v37  ;;  %v454_v48 = vadd.f32 %v453_v43, %v2528_v16  ;;  %v1003_v24 = vpop.permute.xlu0 %1002 }
  0xfc   :  { %1797 = vst [vmem:[%s2918_s4 + $0x128] sm:$0xff] %v1997_v38  ;;  %v1260_v46 = vmax.f32 %v1132_v39, 0.0  ;;  %v1324_v18 = vmax.f32 %v1196_v40, 0.0  ;;  %v614_v19 = vadd.f32 %v613_v13, %v2528_v16  ;;  %v1134_v22 = vmul.f32 %v2475_v49, %v452_v12 }
  0xfd   :  { %v1261_v20 = vmax.f32 %v1133_v6, 0.0  ;;  %v1325_v21 = vmax.f32 %v1197_v9, 0.0  ;;  %v1198_v23 = vmul.f32 %v998_v14, %v612_v44  ;;  %v1135_v25 = vmul.f32 %v2475_v49, %v454_v48 }
  0xfe   :  { %v1199_v26 = vmul.f32 %v998_v14, %v614_v19  ;;  %v1262_v29 = vmax.f32 %v1134_v22, 0.0 }
  0xff   :  { %v1966_v27 = vpack.c.bf16 %v1261_v20, %v1260_v46  ;;  %v1998_v28 = vpack.c.bf16 %v1325_v21, %v1324_v18  ;;  %v1326_v45 = vmax.f32 %v1198_v23, 0.0  ;;  %v457_v30 = vpop.f32.mrb[16].mxu0  ;;  %v617_v31 = vpop.f32.mrb[16].mxu1  ;;  %v1263_v32 = vmax.f32 %v1135_v25, 0.0 }
 0x100   :  { %v1327_v33 = vmax.f32 %v1199_v26, 0.0  ;;  %v458_v0 = vadd.f32 %v457_v30, %v2526_v15  ;;  %v618_v34 = vadd.f32 %v617_v31, %v2526_v15  ;;  %v459_v35 = vpop.f32.mrb[17].mxu0  ;;  %v619_v47 = vpop.f32.mrb[17].mxu1 }
 0x101   :  { %1766 = vst [vmem:[%s2918_s4 + $0x30] sm:$0xff] %v1966_v27  ;;  %1798 = vst [vmem:[%s2918_s4 + $0x130] sm:$0xff] %v1998_v28  ;;  %v460_v49 = vadd.f32 %v459_v35, %v2528_v16  ;;  %v620_v36 = vadd.f32 %v619_v47, %v2528_v16  ;;  %v461_v37 = vpop.f32.mrb[18].mxu0  ;;  %v621_v38 = vpop.f32.mrb[18].mxu1  ;;  %v1967_v39 = vpack.c.bf16 %v1263_v32, %v1262_v29 }
 0x102   :  { %v1999_v40 = vpack.c.bf16 %v1327_v33, %v1326_v45  ;;  %v1136_v41 = vmul.f32 %v2477_v50, %v458_v0  ;;  %v1200_v42 = vmul.f32 %v1003_v24, %v618_v34  ;;  %v463_v6 = vpop.f32.mrb[19].mxu0  ;;  %v623_v9 = vpop.f32.mrb[19].mxu1  ;;  %v462_v43 = vadd.f32 %v461_v37, %v2526_v15 }
 0x103   :  { %v1137_v12 = vmul.f32 %v2477_v50, %v460_v49  ;;  %v1201_v44 = vmul.f32 %v1003_v24, %v620_v36  ;;  %v622_v13 = vadd.f32 %v621_v38, %v2526_v15  ;;  %v1008_v14 = vpop.permute.xlu1 %1007  ;;  %1767 = vst [vmem:[%s2918_s4 + $0x38] sm:$0xff] %v1967_v39  ;;  %v464_v48 = vadd.f32 %v463_v6, %v2528_v16  ;;  %v1013_v23 = vpop.permute.xlu0 %1012 }
 0x104   :  { %1799 = vst [vmem:[%s2918_s4 + $0x138] sm:$0xff] %v1999_v40  ;;  %v1264_v46 = vmax.f32 %v1136_v41, 0.0  ;;  %v1328_v18 = vmax.f32 %v1200_v42, 0.0  ;;  %v624_v50 = vadd.f32 %v623_v9, %v2528_v16  ;;  %v1138_v21 = vmul.f32 %v2479_v51, %v462_v43 }
 0x105   :  { %v1265_v19 = vmax.f32 %v1137_v12, 0.0  ;;  %v1329_v20 = vmax.f32 %v1201_v44, 0.0  ;;  %v1202_v22 = vmul.f32 %v1008_v14, %v622_v13  ;;  %v1139_v24 = vmul.f32 %v2479_v51, %v464_v48 }
 0x106   :  { %v1203_v25 = vmul.f32 %v1008_v14, %v624_v50  ;;  %v1266_v28 = vmax.f32 %v1138_v21, 0.0 }
 0x107   :  { %v1968_v26 = vpack.c.bf16 %v1265_v19, %v1264_v46  ;;  %v2000_v27 = vpack.c.bf16 %v1329_v20, %v1328_v18  ;;  %v1330_v29 = vmax.f32 %v1202_v22, 0.0  ;;  %v467_v45 = vpop.f32.mrb[20].mxu0  ;;  %v627_v30 = vpop.f32.mrb[20].mxu1  ;;  %v1267_v31 = vmax.f32 %v1139_v24, 0.0 }
 0x108   :  { %v1331_v32 = vmax.f32 %v1203_v25, 0.0  ;;  %v468_v33 = vadd.f32 %v467_v45, %v2526_v15  ;;  %v628_v0 = vadd.f32 %v627_v30, %v2526_v15  ;;  %v469_v34 = vpop.f32.mrb[21].mxu0  ;;  %v629_v35 = vpop.f32.mrb[21].mxu1 }
 0x109   :  { %1768 = vst [vmem:[%s2918_s4 + $0x40] sm:$0xff] %v1968_v26  ;;  %1800 = vst [vmem:[%s2918_s4 + $0x140] sm:$0xff] %v2000_v27  ;;  %v470_v51 = vadd.f32 %v469_v34, %v2528_v16  ;;  %v630_v47 = vadd.f32 %v629_v35, %v2528_v16  ;;  %v471_v49 = vpop.f32.mrb[22].mxu0  ;;  %v631_v36 = vpop.f32.mrb[22].mxu1  ;;  %v1969_v37 = vpack.c.bf16 %v1267_v31, %v1266_v28 }
 0x10a   :  { %v2001_v38 = vpack.c.bf16 %v1331_v32, %v1330_v29  ;;  %v1140_v39 = vmul.f32 %v2481_v52, %v468_v33  ;;  %v1204_v40 = vmul.f32 %v1013_v23, %v628_v0  ;;  %v473_v41 = vpop.f32.mrb[23].mxu0  ;;  %v633_v42 = vpop.f32.mrb[23].mxu1  ;;  %v472_v12 = vadd.f32 %v471_v49, %v2526_v15 }
 0x10b   :  { %v1141_v6 = vmul.f32 %v2481_v52, %v470_v51  ;;  %v1205_v9 = vmul.f32 %v1013_v23, %v630_v47  ;;  %v632_v44 = vadd.f32 %v631_v36, %v2526_v15  ;;  %v1018_v43 = vpop.permute.xlu1 %1017  ;;  %1769 = vst [vmem:[%s2918_s4 + $0x48] sm:$0xff] %v1969_v37  ;;  %v474_v46 = vadd.f32 %v473_v41, %v2528_v16  ;;  %v1023_v20 = vpop.permute.xlu0 %1022 }
 0x10c   :  { %1801 = vst [vmem:[%s2918_s4 + $0x148] sm:$0xff] %v2001_v38  ;;  %v1268_v13 = vmax.f32 %v1140_v39, 0.0  ;;  %v1332_v14 = vmax.f32 %v1204_v40, 0.0  ;;  %v634_v52 = vadd.f32 %v633_v42, %v2528_v16  ;;  %v1142_v50 = vmul.f32 %v2483_v53, %v472_v12 }
 0x10d   :  { %v1269_v18 = vmax.f32 %v1141_v6, 0.0  ;;  %v1333_v48 = vmax.f32 %v1205_v9, 0.0  ;;  %v1206_v19 = vmul.f32 %v1018_v43, %v632_v44  ;;  %v1143_v21 = vmul.f32 %v2483_v53, %v474_v46 }
 0x10e   :  { %v1207_v22 = vmul.f32 %v1018_v43, %v634_v52  ;;  %v1270_v25 = vmax.f32 %v1142_v50, 0.0 }
 0x10f   :  { %v1970_v23 = vpack.c.bf16 %v1269_v18, %v1268_v13  ;;  %v2002_v24 = vpack.c.bf16 %v1333_v48, %v1332_v14  ;;  %v1334_v26 = vmax.f32 %v1206_v19, 0.0  ;;  %v477_v27 = vpop.f32.mrb[24].mxu0  ;;  %v637_v28 = vpop.f32.mrb[24].mxu1  ;;  %v1271_v29 = vmax.f32 %v1143_v21, 0.0 }
 0x110   :  { %v1335_v45 = vmax.f32 %v1207_v22, 0.0  ;;  %v478_v30 = vadd.f32 %v477_v27, %v2526_v15  ;;  %v638_v31 = vadd.f32 %v637_v28, %v2526_v15  ;;  %v479_v32 = vpop.f32.mrb[25].mxu0  ;;  %v639_v33 = vpop.f32.mrb[25].mxu1 }
 0x111   :  { %1770 = vst [vmem:[%s2918_s4 + $0x50] sm:$0xff] %v1970_v23  ;;  %1802 = vst [vmem:[%s2918_s4 + $0x150] sm:$0xff] %v2002_v24  ;;  %v480_v53 = vadd.f32 %v479_v32, %v2528_v16  ;;  %v640_v0 = vadd.f32 %v639_v33, %v2528_v16  ;;  %v481_v34 = vpop.f32.mrb[26].mxu0  ;;  %v641_v35 = vpop.f32.mrb[26].mxu1  ;;  %v1971_v51 = vpack.c.bf16 %v1271_v29, %v1270_v25 }
 0x112   :  { %v2003_v47 = vpack.c.bf16 %v1335_v45, %v1334_v26  ;;  %v1144_v49 = vmul.f32 %v2485_v54, %v478_v30  ;;  %v1208_v36 = vmul.f32 %v1023_v20, %v638_v31  ;;  %v483_v37 = vpop.f32.mrb[27].mxu0  ;;  %v643_v38 = vpop.f32.mrb[27].mxu1  ;;  %v482_v41 = vadd.f32 %v481_v34, %v2526_v15 }
 0x113   :  { %v1145_v39 = vmul.f32 %v2485_v54, %v480_v53  ;;  %v1209_v40 = vmul.f32 %v1023_v20, %v640_v0  ;;  %v642_v42 = vadd.f32 %v641_v35, %v2526_v15  ;;  %v1028_v6 = vpop.permute.xlu1 %1027  ;;  %1771 = vst [vmem:[%s2918_s4 + $0x58] sm:$0xff] %v1971_v51  ;;  %v484_v44 = vadd.f32 %v483_v37, %v2528_v16  ;;  %v1033_v52 = vpop.permute.xlu0 %1032 }
 0x114   :  { %1803 = vst [vmem:[%s2918_s4 + $0x158] sm:$0xff] %v2003_v47  ;;  %v1272_v9 = vmax.f32 %v1144_v49, 0.0  ;;  %v1336_v12 = vmax.f32 %v1208_v36, 0.0  ;;  %v644_v54 = vadd.f32 %v643_v38, %v2528_v16  ;;  %v1146_v14 = vmul.f32 %v2487_v55, %v482_v41 }
 0x115   :  { %v1273_v43 = vmax.f32 %v1145_v39, 0.0  ;;  %v1337_v13 = vmax.f32 %v1209_v40, 0.0  ;;  %v1210_v46 = vmul.f32 %v1028_v6, %v642_v42  ;;  %v1147_v18 = vmul.f32 %v2487_v55, %v484_v44 }
 0x116   :  { %v1211_v48 = vmul.f32 %v1028_v6, %v644_v54  ;;  %v1274_v20 = vmax.f32 %v1146_v14, 0.0 }
 0x117   :  { %v1972_v50 = vpack.c.bf16 %v1273_v43, %v1272_v9  ;;  %v2004_v19 = vpack.c.bf16 %v1337_v13, %v1336_v12  ;;  %v1338_v21 = vmax.f32 %v1210_v46, 0.0  ;;  %v487_v22 = vpop.f32.mrb[28].mxu0  ;;  %v647_v23 = vpop.f32.mrb[28].mxu1  ;;  %v1275_v24 = vmax.f32 %v1147_v18, 0.0 }
 0x118   :  { %v1339_v25 = vmax.f32 %v1211_v48, 0.0  ;;  %v488_v26 = vadd.f32 %v487_v22, %v2526_v15  ;;  %v648_v27 = vadd.f32 %v647_v23, %v2526_v15  ;;  %v489_v28 = vpop.f32.mrb[29].mxu0  ;;  %v649_v29 = vpop.f32.mrb[29].mxu1 }
 0x119   :  { %1772 = vst [vmem:[%s2918_s4 + $0x60] sm:$0xff] %v1972_v50  ;;  %1804 = vst [vmem:[%s2918_s4 + $0x160] sm:$0xff] %v2004_v19  ;;  %v490_v55 = vadd.f32 %v489_v28, %v2528_v16  ;;  %v650_v45 = vadd.f32 %v649_v29, %v2528_v16  ;;  %v491_v30 = vpop.f32.mrb[30].mxu0  ;;  %v651_v31 = vpop.f32.mrb[30].mxu1  ;;  %v1973_v32 = vpack.c.bf16 %v1275_v24, %v1274_v20 }
 0x11a   :  { %v2005_v33 = vpack.c.bf16 %v1339_v25, %v1338_v21  ;;  %v1148_v53 = vmul.f32 %v2489_v56, %v488_v26  ;;  %v1212_v0 = vmul.f32 %v1033_v52, %v648_v27  ;;  %v493_v34 = vpop.f32.mrb[31].mxu0  ;;  %v653_v35 = vpop.f32.mrb[31].mxu1  ;;  %v492_v49 = vadd.f32 %v491_v30, %v2526_v15 }
 0x11b   :  { %v1149_v51 = vmul.f32 %v2489_v56, %v490_v55  ;;  %v1213_v47 = vmul.f32 %v1033_v52, %v650_v45  ;;  %v652_v36 = vadd.f32 %v651_v31, %v2526_v15  ;;  %v1038_v37 = vpop.permute.xlu1 %1037  ;;  %1773 = vst [vmem:[%s2918_s4 + $0x68] sm:$0xff] %v1973_v32  ;;  %v494_v40 = vadd.f32 %v493_v34, %v2528_v16  ;;  %v1043_v12 = vpop.permute.xlu0 %1042 }
 0x11c   :  { %1805 = vst [vmem:[%s2918_s4 + $0x168] sm:$0xff] %v2005_v33  ;;  %v1276_v38 = vmax.f32 %v1148_v53, 0.0  ;;  %v1340_v39 = vmax.f32 %v1212_v0, 0.0  ;;  %v654_v56 = vadd.f32 %v653_v35, %v2528_v16  ;;  %v1150_v6 = vmul.f32 %v2491_v57, %v492_v49 }
 0x11d   :  { %v1277_v41 = vmax.f32 %v1149_v51, 0.0  ;;  %v1341_v42 = vmax.f32 %v1213_v47, 0.0  ;;  %v1214_v9 = vmul.f32 %v1038_v37, %v652_v36  ;;  %v1151_v44 = vmul.f32 %v2491_v57, %v494_v40 }
 0x11e   :  { %v1215_v54 = vmul.f32 %v1038_v37, %v654_v56  ;;  %v1278_v14 = vmax.f32 %v1150_v6, 0.0 }
 0x11f   :  { %v1974_v43 = vpack.c.bf16 %v1277_v41, %v1276_v38  ;;  %v2006_v13 = vpack.c.bf16 %v1341_v42, %v1340_v39  ;;  %v1342_v46 = vmax.f32 %v1214_v9, 0.0  ;;  %v497_v52 = vpop.f32.mrb[32].mxu0  ;;  %v657_v18 = vpop.f32.mrb[32].mxu1  ;;  %v1279_v48 = vmax.f32 %v1151_v44, 0.0 }
 0x120   :  { %v1343_v50 = vmax.f32 %v1215_v54, 0.0  ;;  %v498_v19 = vadd.f32 %v497_v52, %v2526_v15  ;;  %v658_v20 = vadd.f32 %v657_v18, %v2526_v15  ;;  %v499_v21 = vpop.f32.mrb[33].mxu0  ;;  %v659_v22 = vpop.f32.mrb[33].mxu1 }
 0x121   :  { %1774 = vst [vmem:[%s2918_s4 + $0x70] sm:$0xff] %v1974_v43  ;;  %1806 = vst [vmem:[%s2918_s4 + $0x170] sm:$0xff] %v2006_v13  ;;  %v500_v57 = vadd.f32 %v499_v21, %v2528_v16  ;;  %v660_v23 = vadd.f32 %v659_v22, %v2528_v16  ;;  %v501_v24 = vpop.f32.mrb[34].mxu0  ;;  %v661_v25 = vpop.f32.mrb[34].mxu1  ;;  %v1975_v26 = vpack.c.bf16 %v1279_v48, %v1278_v14 }
 0x122   :  { %v2007_v27 = vpack.c.bf16 %v1343_v50, %v1342_v46  ;;  %v1152_v28 = vmul.f32 %v2493_v58, %v498_v19  ;;  %v1216_v29 = vmul.f32 %v1043_v12, %v658_v20  ;;  %v503_v55 = vpop.f32.mrb[35].mxu0  ;;  %v663_v45 = vpop.f32.mrb[35].mxu1  ;;  %v502_v32 = vadd.f32 %v501_v24, %v2526_v15 }
 0x123   :  { %v1153_v30 = vmul.f32 %v2493_v58, %v500_v57  ;;  %v1217_v31 = vmul.f32 %v1043_v12, %v660_v23  ;;  %v662_v33 = vadd.f32 %v661_v25, %v2526_v15  ;;  %v1048_v53 = vpop.permute.xlu1 %1047  ;;  %1775 = vst [vmem:[%s2918_s4 + $0x78] sm:$0xff] %v1975_v26  ;;  %v504_v35 = vadd.f32 %v503_v55, %v2528_v16  ;;  %v1053_v37 = vpop.permute.xlu0 %1052 }
 0x124   :  { %1807 = vst [vmem:[%s2918_s4 + $0x178] sm:$0xff] %v2007_v27  ;;  %v1280_v0 = vmax.f32 %v1152_v28, 0.0  ;;  %v1344_v34 = vmax.f32 %v1216_v29, 0.0  ;;  %v664_v58 = vadd.f32 %v663_v45, %v2528_v16  ;;  %v1154_v49 = vmul.f32 %v2495_v59, %v502_v32 }
 0x125   :  { %v1281_v51 = vmax.f32 %v1153_v30, 0.0  ;;  %v1345_v47 = vmax.f32 %v1217_v31, 0.0  ;;  %v1218_v36 = vmul.f32 %v1048_v53, %v662_v33  ;;  %v1155_v38 = vmul.f32 %v2495_v59, %v504_v35 }
 0x126   :  { %v1219_v39 = vmul.f32 %v1048_v53, %v664_v58  ;;  %v1282_v41 = vmax.f32 %v1154_v49, 0.0 }
 0x127   :  { %v1976_v40 = vpack.c.bf16 %v1281_v51, %v1280_v0  ;;  %v2008_v56 = vpack.c.bf16 %v1345_v47, %v1344_v34  ;;  %v1346_v42 = vmax.f32 %v1218_v36, 0.0  ;;  %v507_v6 = vpop.f32.mrb[36].mxu0  ;;  %v667_v9 = vpop.f32.mrb[36].mxu1  ;;  %v1283_v12 = vmax.f32 %v1155_v38, 0.0 }
 0x128   :  { %v1347_v44 = vmax.f32 %v1219_v39, 0.0  ;;  %v508_v54 = vadd.f32 %v507_v6, %v2526_v15  ;;  %v668_v43 = vadd.f32 %v667_v9, %v2526_v15  ;;  %v509_v13 = vpop.f32.mrb[37].mxu0  ;;  %v669_v14 = vpop.f32.mrb[37].mxu1 }
 0x129   :  { %1776 = vst [vmem:[%s2918_s4 + $0x80] sm:$0xff] %v1976_v40  ;;  %1808 = vst [vmem:[%s2918_s4 + $0x180] sm:$0xff] %v2008_v56  ;;  %v510_v59 = vadd.f32 %v509_v13, %v2528_v16  ;;  %v670_v46 = vadd.f32 %v669_v14, %v2528_v16  ;;  %v511_v52 = vpop.f32.mrb[38].mxu0  ;;  %v671_v18 = vpop.f32.mrb[38].mxu1  ;;  %v1977_v48 = vpack.c.bf16 %v1283_v12, %v1282_v41 }
 0x12a   :  { %v2009_v50 = vpack.c.bf16 %v1347_v44, %v1346_v42  ;;  %v1156_v19 = vmul.f32 %v2497_v60, %v508_v54  ;;  %v1220_v20 = vmul.f32 %v1053_v37, %v668_v43  ;;  %v513_v21 = vpop.f32.mrb[39].mxu0  ;;  %v673_v22 = vpop.f32.mrb[39].mxu1  ;;  %v512_v24 = vadd.f32 %v511_v52, %v2526_v15 }
 0x12b   :  { %v1157_v57 = vmul.f32 %v2497_v60, %v510_v59  ;;  %v1221_v23 = vmul.f32 %v1053_v37, %v670_v46  ;;  %v672_v25 = vadd.f32 %v671_v18, %v2526_v15  ;;  %v1058_v26 = vpop.permute.xlu1 %1057  ;;  %1777 = vst [vmem:[%s2918_s4 + $0x88] sm:$0xff] %v1977_v48  ;;  %v514_v29 = vadd.f32 %v513_v21, %v2528_v16  ;;  %v1063_v32 = vpop.permute.xlu0 %1062 }
 0x12c   :  { %1809 = vst [vmem:[%s2918_s4 + $0x188] sm:$0xff] %v2009_v50  ;;  %v1284_v27 = vmax.f32 %v1156_v19, 0.0  ;;  %v1348_v28 = vmax.f32 %v1220_v20, 0.0  ;;  %v674_v60 = vadd.f32 %v673_v22, %v2528_v16  ;;  %v1158_v30 = vmul.f32 %v2499_v61, %v512_v24 }
 0x12d   :  { %v1285_v55 = vmax.f32 %v1157_v57, 0.0  ;;  %v1349_v45 = vmax.f32 %v1221_v23, 0.0  ;;  %v1222_v31 = vmul.f32 %v1058_v26, %v672_v25  ;;  %v1159_v33 = vmul.f32 %v2499_v61, %v514_v29 }
 0x12e   :  { %v1223_v53 = vmul.f32 %v1058_v26, %v674_v60  ;;  %v1286_v35 = vmax.f32 %v1158_v30, 0.0 }
 0x12f   :  { %v1978_v0 = vpack.c.bf16 %v1285_v55, %v1284_v27  ;;  %v2010_v34 = vpack.c.bf16 %v1349_v45, %v1348_v28  ;;  %v1350_v58 = vmax.f32 %v1222_v31, 0.0  ;;  %v517_v51 = vpop.f32.mrb[40].mxu0  ;;  %v677_v47 = vpop.f32.mrb[40].mxu1  ;;  %v1287_v49 = vmax.f32 %v1159_v33, 0.0 }
 0x130   :  { %v1351_v36 = vmax.f32 %v1223_v53, 0.0  ;;  %v518_v37 = vadd.f32 %v517_v51, %v2526_v15  ;;  %v678_v38 = vadd.f32 %v677_v47, %v2526_v15  ;;  %v519_v39 = vpop.f32.mrb[41].mxu0  ;;  %v679_v40 = vpop.f32.mrb[41].mxu1 }
 0x131   :  { %1778 = vst [vmem:[%s2918_s4 + $0x90] sm:$0xff] %v1978_v0  ;;  %1810 = vst [vmem:[%s2918_s4 + $0x190] sm:$0xff] %v2010_v34  ;;  %v520_v61 = vadd.f32 %v519_v39, %v2528_v16  ;;  %v680_v56 = vadd.f32 %v679_v40, %v2528_v16  ;;  %v521_v41 = vpop.f32.mrb[42].mxu0  ;;  %v681_v42 = vpop.f32.mrb[42].mxu1  ;;  %v1979_v6 = vpack.c.bf16 %v1287_v49, %v1286_v35 }
 0x132   :  { %v2011_v9 = vpack.c.bf16 %v1351_v36, %v1350_v58  ;;  %v1160_v12 = vmul.f32 %v2501_v62, %v518_v37  ;;  %v1224_v44 = vmul.f32 %v1063_v32, %v678_v38  ;;  %v523_v54 = vpop.f32.mrb[43].mxu0  ;;  %v683_v43 = vpop.f32.mrb[43].mxu1  ;;  %v522_v59 = vadd.f32 %v521_v41, %v2526_v15 }
 0x133   :  { %v1161_v13 = vmul.f32 %v2501_v62, %v520_v61  ;;  %v1225_v14 = vmul.f32 %v1063_v32, %v680_v56  ;;  %v682_v46 = vadd.f32 %v681_v42, %v2526_v15  ;;  %v1068_v52 = vpop.permute.xlu1 %1067  ;;  %1779 = vst [vmem:[%s2918_s4 + $0x98] sm:$0xff] %v1979_v6  ;;  %v524_v50 = vadd.f32 %v523_v54, %v2528_v16  ;;  %v1073_v57 = vpop.permute.xlu0 %1072 }
 0x134   :  { %1811 = vst [vmem:[%s2918_s4 + $0x198] sm:$0xff] %v2011_v9  ;;  %v1288_v18 = vmax.f32 %v1160_v12, 0.0  ;;  %v1352_v48 = vmax.f32 %v1224_v44, 0.0  ;;  %v684_v62 = vadd.f32 %v683_v43, %v2528_v16  ;;  %v1162_v21 = vmul.f32 %v2503_v63, %v522_v59 }
 0x135   :  { %v1289_v19 = vmax.f32 %v1161_v13, 0.0  ;;  %v1353_v20 = vmax.f32 %v1225_v14, 0.0  ;;  %v1226_v22 = vmul.f32 %v1068_v52, %v682_v46  ;;  %v1163_v23 = vmul.f32 %v2503_v63, %v524_v50 }
 0x136   :  { %v1227_v24 = vmul.f32 %v1068_v52, %v684_v62  ;;  %v1290_v27 = vmax.f32 %v1162_v21, 0.0 }
 0x137   :  { %v1980_v25 = vpack.c.bf16 %v1289_v19, %v1288_v18  ;;  %v2012_v26 = vpack.c.bf16 %v1353_v20, %v1352_v48  ;;  %v1354_v28 = vmax.f32 %v1226_v22, 0.0  ;;  %v527_v29 = vpop.f32.mrb[44].mxu0  ;;  %v687_v60 = vpop.f32.mrb[44].mxu1  ;;  %v1291_v55 = vmax.f32 %v1163_v23, 0.0 }
 0x138   :  { %v1355_v45 = vmax.f32 %v1227_v24, 0.0  ;;  %v528_v30 = vadd.f32 %v527_v29, %v2526_v15  ;;  %v688_v31 = vadd.f32 %v687_v60, %v2526_v15  ;;  %v529_v32 = vpop.f32.mrb[45].mxu0  ;;  %v689_v33 = vpop.f32.mrb[45].mxu1 }
 0x139   :  { %1780 = vst [vmem:[%s2918_s4 + $0xa0] sm:$0xff] %v1980_v25  ;;  %1812 = vst [vmem:[%s2918_s4 + $0x1a0] sm:$0xff] %v2012_v26  ;;  %v530_v63 = vadd.f32 %v529_v32, %v2528_v16  ;;  %v690_v53 = vadd.f32 %v689_v33, %v2528_v16  ;;  %v531_v0 = vpop.f32.mrb[46].mxu0  ;;  %v691_v34 = vpop.f32.mrb[46].mxu1  ;;  %v1981_v35 = vpack.c.bf16 %v1291_v55, %v1290_v27 }
 0x13a   :  { %v2013_v58 = vpack.c.bf16 %v1355_v45, %v1354_v28  ;;  %v1164_v51 = vmul.f32 %v2505_v1, %v528_v30  ;;  %v1228_v47 = vmul.f32 %v1073_v57, %v688_v31  ;;  %v533_v49 = vpop.f32.mrb[47].mxu0  ;;  %v693_v36 = vpop.f32.mrb[47].mxu1  ;;  %v532_v39 = vadd.f32 %v531_v0, %v2526_v15 }
 0x13b   :  { %v1165_v37 = vmul.f32 %v2505_v1, %v530_v63  ;;  %v1229_v38 = vmul.f32 %v1073_v57, %v690_v53  ;;  %v692_v40 = vadd.f32 %v691_v34, %v2526_v15  ;;  %v1078_v61 = vpop.permute.xlu1 %1077  ;;  %1781 = vst [vmem:[%s2918_s4 + $0xa8] sm:$0xff] %v1981_v35  ;;  %v534_v42 = vadd.f32 %v533_v49, %v2528_v16  ;;  %v1083_v54 = vpop.permute.xlu0 %1082 }
 0x13c   :  { %1813 = vst [vmem:[%s2918_s4 + $0x1a8] sm:$0xff] %v2013_v58  ;;  %v1292_v56 = vmax.f32 %v1164_v51, 0.0  ;;  %v1356_v41 = vmax.f32 %v1228_v47, 0.0  ;;  %v694_v1 = vadd.f32 %v693_v36, %v2528_v16  ;;  %v1166_v12 = vmul.f32 %v2507_v2, %v532_v39 }
 0x13d   :  { %v1293_v6 = vmax.f32 %v1165_v37, 0.0  ;;  %v1357_v9 = vmax.f32 %v1229_v38, 0.0  ;;  %v1230_v44 = vmul.f32 %v1078_v61, %v692_v40  ;;  %v1167_v43 = vmul.f32 %v2507_v2, %v534_v42 }
 0x13e   :  { %v1231_v13 = vmul.f32 %v1078_v61, %v694_v1  ;;  %v1294_v46 = vmax.f32 %v1166_v12, 0.0 }
 0x13f   :  { %v1982_v14 = vpack.c.bf16 %v1293_v6, %v1292_v56  ;;  %v2014_v59 = vpack.c.bf16 %v1357_v9, %v1356_v41  ;;  %v1358_v52 = vmax.f32 %v1230_v44, 0.0  ;;  %v537_v18 = vpop.f32.mrb[48].mxu0  ;;  %v697_v48 = vpop.f32.mrb[48].mxu1  ;;  %v1295_v50 = vmax.f32 %v1167_v43, 0.0 }
 0x140   :  { %v1359_v62 = vmax.f32 %v1231_v13, 0.0  ;;  %v538_v19 = vadd.f32 %v537_v18, %v2526_v15  ;;  %v698_v20 = vadd.f32 %v697_v48, %v2526_v15  ;;  %v539_v21 = vpop.f32.mrb[49].mxu0  ;;  %v699_v22 = vpop.f32.mrb[49].mxu1 }
 0x141   :  { %1782 = vst [vmem:[%s2918_s4 + $0xb0] sm:$0xff] %v1982_v14  ;;  %1814 = vst [vmem:[%s2918_s4 + $0x1b0] sm:$0xff] %v2014_v59  ;;  %v540_v2 = vadd.f32 %v539_v21, %v2528_v16  ;;  %v700_v57 = vadd.f32 %v699_v22, %v2528_v16  ;;  %v541_v23 = vpop.f32.mrb[50].mxu0  ;;  %v701_v24 = vpop.f32.mrb[50].mxu1  ;;  %v1983_v25 = vpack.c.bf16 %v1295_v50, %v1294_v46 }
 0x142   :  { %v2015_v26 = vpack.c.bf16 %v1359_v62, %v1358_v52  ;;  %v1168_v27 = vmul.f32 %v2509_v3, %v538_v19  ;;  %v1232_v28 = vmul.f32 %v1083_v54, %v698_v20  ;;  %v543_v29 = vpop.f32.mrb[51].mxu0  ;;  %v703_v60 = vpop.f32.mrb[51].mxu1  ;;  %v542_v30 = vadd.f32 %v541_v23, %v2526_v15 }
 0x143   :  { %v1169_v55 = vmul.f32 %v2509_v3, %v540_v2  ;;  %v1233_v45 = vmul.f32 %v1083_v54, %v700_v57  ;;  %v702_v31 = vadd.f32 %v701_v24, %v2526_v15  ;;  %v1088_v32 = vpop.permute.xlu1 %1087  ;;  %1783 = vst [vmem:[%s2918_s4 + $0xb8] sm:$0xff] %v1983_v25  ;;  %v544_v53 = vadd.f32 %v543_v29, %v2528_v16  ;;  %v1093_v51 = vpop.permute.xlu0 %1092 }
 0x144   :  { %1815 = vst [vmem:[%s2918_s4 + $0x1b8] sm:$0xff] %v2015_v26  ;;  %v1296_v33 = vmax.f32 %v1168_v27, 0.0  ;;  %v1360_v63 = vmax.f32 %v1232_v28, 0.0  ;;  %v704_v3 = vadd.f32 %v703_v60, %v2528_v16  ;;  %v1170_v35 = vmul.f32 %v2511_v4, %v542_v30 }
 0x145   :  { %v1297_v0 = vmax.f32 %v1169_v55, 0.0  ;;  %v1361_v34 = vmax.f32 %v1233_v45, 0.0  ;;  %v1234_v58 = vmul.f32 %v1088_v32, %v702_v31  ;;  %v1171_v47 = vmul.f32 %v2511_v4, %v544_v53 }
 0x146   :  { %v1235_v49 = vmul.f32 %v1088_v32, %v704_v3  ;;  %v1298_v38 = vmax.f32 %v1170_v35, 0.0 }
 0x147   :  { %v1984_v36 = vpack.c.bf16 %v1297_v0, %v1296_v33  ;;  %v2016_v37 = vpack.c.bf16 %v1361_v34, %v1360_v63  ;;  %v1362_v39 = vmax.f32 %v1234_v58, 0.0  ;;  %v547_v40 = vpop.f32.mrb[52].mxu0  ;;  %v707_v61 = vpop.f32.mrb[52].mxu1  ;;  %v1299_v56 = vmax.f32 %v1171_v47, 0.0 }
 0x148   :  { %v1363_v41 = vmax.f32 %v1235_v49, 0.0  ;;  %v548_v42 = vadd.f32 %v547_v40, %v2526_v15  ;;  %v708_v1 = vadd.f32 %v707_v61, %v2526_v15  ;;  %v549_v6 = vpop.f32.mrb[53].mxu0  ;;  %v709_v9 = vpop.f32.mrb[53].mxu1 }
 0x149   :  { %1784 = vst [vmem:[%s2918_s4 + $0xc0] sm:$0xff] %v1984_v36  ;;  %1816 = vst [vmem:[%s2918_s4 + $0x1c0] sm:$0xff] %v2016_v37  ;;  %v550_v4 = vadd.f32 %v549_v6, %v2528_v16  ;;  %v710_v12 = vadd.f32 %v709_v9, %v2528_v16  ;;  %v551_v44 = vpop.f32.mrb[54].mxu0  ;;  %v711_v54 = vpop.f32.mrb[54].mxu1  ;;  %v1985_v43 = vpack.c.bf16 %v1299_v56, %v1298_v38 }
 0x14a   :  { %v2017_v13 = vpack.c.bf16 %v1363_v41, %v1362_v39  ;;  %v1172_v14 = vmul.f32 %v2513_v5, %v548_v42  ;;  %v1236_v59 = vmul.f32 %v1093_v51, %v708_v1  ;;  %v553_v46 = vpop.f32.mrb[55].mxu0  ;;  %v713_v52 = vpop.f32.mrb[55].mxu1  ;;  %v552_v50 = vadd.f32 %v551_v44, %v2526_v15 }
 0x14b   :  { %v1173_v18 = vmul.f32 %v2513_v5, %v550_v4  ;;  %v1237_v48 = vmul.f32 %v1093_v51, %v710_v12  ;;  %v712_v62 = vadd.f32 %v711_v54, %v2526_v15  ;;  %v1098_v19 = vpop.permute.xlu1 %1097  ;;  %1785 = vst [vmem:[%s2918_s4 + $0xc8] sm:$0xff] %v1985_v43  ;;  %v554_v22 = vadd.f32 %v553_v46, %v2528_v16  ;;  %v1103_v25 = vpop.permute.xlu0 %1102 }
 0x14c   :  { %1817 = vst [vmem:[%s2918_s4 + $0x1c8] sm:$0xff] %v2017_v13  ;;  %v1300_v20 = vmax.f32 %v1172_v14, 0.0  ;;  %v1364_v21 = vmax.f32 %v1236_v59, 0.0  ;;  %v714_v5 = vadd.f32 %v713_v52, %v2528_v16  ;;  %v1174_v23 = vmul.f32 %v2515_v7, %v552_v50 }
 0x14d   :  { %v1301_v2 = vmax.f32 %v1173_v18, 0.0  ;;  %v1365_v57 = vmax.f32 %v1237_v48, 0.0  ;;  %v1238_v24 = vmul.f32 %v1098_v19, %v712_v62  ;;  %v1175_v26 = vmul.f32 %v2515_v7, %v554_v22 }
 0x14e   :  { %v1239_v27 = vmul.f32 %v1098_v19, %v714_v5  ;;  %v1302_v60 = vmax.f32 %v1174_v23, 0.0 }
 0x14f   :  { %v1986_v28 = vpack.c.bf16 %v1301_v2, %v1300_v20  ;;  %v2018_v29 = vpack.c.bf16 %v1365_v57, %v1364_v21  ;;  %v1366_v55 = vmax.f32 %v1238_v24, 0.0  ;;  %v557_v45 = vpop.f32.mrb[56].mxu0  ;;  %v717_v30 = vpop.f32.mrb[56].mxu1  ;;  %v1303_v31 = vmax.f32 %v1175_v26, 0.0 }
 0x150   :  { %v1367_v32 = vmax.f32 %v1239_v27, 0.0  ;;  %v558_v33 = vadd.f32 %v557_v45, %v2526_v15  ;;  %v718_v63 = vadd.f32 %v717_v30, %v2526_v15  ;;  %v559_v53 = vpop.f32.mrb[57].mxu0  ;;  %v719_v3 = vpop.f32.mrb[57].mxu1 }
 0x151   :  { %1786 = vst [vmem:[%s2918_s4 + $0xd0] sm:$0xff] %v1986_v28  ;;  %1818 = vst [vmem:[%s2918_s4 + $0x1d0] sm:$0xff] %v2018_v29  ;;  %v560_v7 = vadd.f32 %v559_v53, %v2528_v16  ;;  %v720_v0 = vadd.f32 %v719_v3, %v2528_v16  ;;  %v561_v34 = vpop.f32.mrb[58].mxu0  ;;  %v721_v35 = vpop.f32.mrb[58].mxu1  ;;  %v1987_v58 = vpack.c.bf16 %v1303_v31, %v1302_v60 }
 0x152   :  { %v2019_v51 = vpack.c.bf16 %v1367_v32, %v1366_v55  ;;  %v1176_v47 = vmul.f32 %v2517_v8, %v558_v33  ;;  %v1240_v49 = vmul.f32 %v1103_v25, %v718_v63  ;;  %v563_v36 = vpop.f32.mrb[59].mxu0  ;;  %v723_v37 = vpop.f32.mrb[59].mxu1  ;;  %v562_v40 = vadd.f32 %v561_v34, %v2526_v15 }
 0x153   :  { %v1177_v38 = vmul.f32 %v2517_v8, %v560_v7  ;;  %v1241_v39 = vmul.f32 %v1103_v25, %v720_v0  ;;  %v722_v61 = vadd.f32 %v721_v35, %v2526_v15  ;;  %v1108_v56 = vpop.permute.xlu1 %1107  ;;  %1787 = vst [vmem:[%s2918_s4 + $0xd8] sm:$0xff] %v1987_v58  ;;  %v564_v1 = vadd.f32 %v563_v36, %v2528_v16  ;;  %v1113_v44 = vpop.permute.xlu0 %1112 }
 0x154   :  { %1819 = vst [vmem:[%s2918_s4 + $0x1d8] sm:$0xff] %v2019_v51  ;;  %v1304_v41 = vmax.f32 %v1176_v47, 0.0  ;;  %v1368_v42 = vmax.f32 %v1240_v49, 0.0  ;;  %v724_v8 = vadd.f32 %v723_v37, %v2528_v16  ;;  %v1178_v4 = vmul.f32 %v2519_v10, %v562_v40 }
 0x155   :  { %v1305_v6 = vmax.f32 %v1177_v38, 0.0  ;;  %v1369_v9 = vmax.f32 %v1241_v39, 0.0  ;;  %v1242_v12 = vmul.f32 %v1108_v56, %v722_v61  ;;  %v1179_v54 = vmul.f32 %v2519_v10, %v564_v1 }
 0x156   :  { %v1243_v43 = vmul.f32 %v1108_v56, %v724_v8  ;;  %v1306_v59 = vmax.f32 %v1178_v4, 0.0 }
 0x157   :  { %v1988_v13 = vpack.c.bf16 %v1305_v6, %v1304_v41  ;;  %v2020_v14 = vpack.c.bf16 %v1369_v9, %v1368_v42  ;;  %v1370_v46 = vmax.f32 %v1242_v12, 0.0  ;;  %v567_v52 = vpop.f32.mrb[60].mxu0  ;;  %v727_v18 = vpop.f32.mrb[60].mxu1  ;;  %v1307_v48 = vmax.f32 %v1179_v54, 0.0 }
 0x158   :  { %v1371_v50 = vmax.f32 %v1243_v43, 0.0  ;;  %v568_v62 = vadd.f32 %v567_v52, %v2526_v15  ;;  %v728_v19 = vadd.f32 %v727_v18, %v2526_v15  ;;  %v569_v20 = vpop.f32.mrb[61].mxu0  ;;  %v729_v21 = vpop.f32.mrb[61].mxu1 }
 0x159   :  { %1788 = vst [vmem:[%s2918_s4 + $0xe0] sm:$0xff] %v1988_v13  ;;  %1820 = vst [vmem:[%s2918_s4 + $0x1e0] sm:$0xff] %v2020_v14  ;;  %v570_v10 = vadd.f32 %v569_v20, %v2528_v16  ;;  %v730_v22 = vadd.f32 %v729_v21, %v2528_v16  ;;  %v571_v5 = vpop.f32.mrb[62].mxu0  ;;  %v731_v2 = vpop.f32.mrb[62].mxu1  ;;  %v1989_v57 = vpack.c.bf16 %v1307_v48, %v1306_v59 }
 0x15a   :  { %v2021_v23 = vpack.c.bf16 %v1371_v50, %v1370_v46  ;;  %v1180_v24 = vmul.f32 %v2521_v11, %v568_v62  ;;  %v1244_v25 = vmul.f32 %v1113_v44, %v728_v19  ;;  %v573_v26 = vpop.f32.mrb[63].mxu0  ;;  %v733_v27 = vpop.f32.mrb[63].mxu1  ;;  %v572_v60 = vadd.f32 %v571_v5, %v2526_v15 }
 0x15b   :  { %v1181_v28 = vmul.f32 %v2521_v11, %v570_v10  ;;  %v1245_v29 = vmul.f32 %v1113_v44, %v730_v22  ;;  %v732_v55 = vadd.f32 %v731_v2, %v2526_v15  ;;  %v1118_v45 = vpop.permute.xlu1 %1117  ;;  %1789 = vst [vmem:[%s2918_s4 + $0xe8] sm:$0xff] %v1989_v57  ;;  %v574_v32 = vadd.f32 %v573_v26, %v2528_v16 }
 0x15c   :  { %1821 = vst [vmem:[%s2918_s4 + $0x1e8] sm:$0xff] %v2021_v23  ;;  %v1308_v30 = vmax.f32 %v1180_v24, 0.0  ;;  %v1372_v31 = vmax.f32 %v1244_v25, 0.0  ;;  %v734_v11 = vadd.f32 %v733_v27, %v2528_v16  ;;  %v1182_v53 = vmul.f32 %v2530_v17, %v572_v60 }
 0x15d   :  { %v1309_v33 = vmax.f32 %v1181_v28, 0.0  ;;  %v1373_v63 = vmax.f32 %v1245_v29, 0.0  ;;  %v1246_v15 = vmul.f32 %v1118_v45, %v732_v55  ;;  %v1183_v3 = vmul.f32 %v2530_v17, %v574_v32 }
 0x15e   :  { %v1247_v7 = vmul.f32 %v1118_v45, %v734_v11  ;;  %v1310_v35 = vmax.f32 %v1182_v53, 0.0 }
 0x15f   :  { %v1990_v0 = vpack.c.bf16 %v1309_v33, %v1308_v30  ;;  %v2022_v34 = vpack.c.bf16 %v1373_v63, %v1372_v31  ;;  %v1374_v58 = vmax.f32 %v1246_v15, 0.0  ;;  %v1311_v51 = vmax.f32 %v1183_v3, 0.0 }
 0x160   :  { %v1375_v47 = vmax.f32 %v1247_v7, 0.0 }
 0x161   :  { %1790 = vst [vmem:[%s2918_s4 + $0xf0] sm:$0xff] %v1990_v0  ;;  %1822 = vst [vmem:[%s2918_s4 + $0x1f0] sm:$0xff] %v2022_v34  ;;  %v1991_v16 = vpack.c.bf16 %v1311_v51, %v1310_v35 }
 0x162   :  { %v2023_v49 = vpack.c.bf16 %v1375_v47, %v1374_v58 }
 0x163   :  { %1791 = vst [vmem:[%s2918_s4 + $0xf8] sm:$0xff] %v1991_v16 }
 0x164   :  { %1823 = vst [vmem:[%s2918_s4 + $0x1f8] sm:$0xff] %v2023_v49 }

// kernel: _lambda_.4
= control target key start
LH: loop header
LB: loop body
LE: loop exit
PB: predicated region body
PF: predicated region fallthrough
CT: control target
= control target key end

     0   :  { %vm3399_vm0 = vcmask 1043456   ;;  %vm3377_vm1 = vcmask 64512   ;;  %s9280_s1 = inlined_call_operand.vmem [shape: bf16[1800,512], index: 1, kind: input, shape index: {}]   ;;  %s9281_s0 = inlined_call_operand.vmem [shape: bf16[112,1800], index: 0, kind: input, shape index: {}]   ;;  %s9282_s3 = inlined_call_operand.vmem [shape: f32[112,1], index: 3, kind: input, shape index: {}]   ;;  %s9283_s2 = inlined_call_operand.vmem [shape: f32[1,512], index: 2, kind: input, shape index: {}]   ;;  %s9284_s4 = inlined_call_operand.vmem [shape: bf16[112,512], index: 4, kind: output, shape index: {}]  }
   0x1   :  { %v6536_v0 = vld [vmem:[%s9280_s1 + $0x4] ss:$16 sps:$4 sm:$0xff]   ;;  %v6538_v1 = vld [vmem:[%s9280_s1 + $0xc] ss:$16 sps:$4 sm:$0xff]   ;;  %v6540_v2 = vld [vmem:[%s9280_s1] ss:$16 sps:$4 sm:$0xff]  }
   0x2   :  { %3412 = vmatprep.subr.bf16.mxu0 %v6536_v0  ;;  %v6541_v3 = vld [vmem:[%s9280_s1 + $0x8] ss:$16 sps:$4 sm:$0xff]   ;;  %4236 = vmatprep.subr.bf16.mxu1 %v6538_v1  ;;  %v6542_v4 = vld [vmem:[%s9280_s1 + $0x24] ss:$16 sps:$4 sm:$0xff]   ;;  %v6544_v5 = vld [vmem:[%s9280_s1 + $0x2c] ss:$16 sps:$4 sm:$0xff]  }
   0x3   :  { %3413 = vmatpush1.bf16.msra.mxu0 %v6540_v2  ;;  %4237 = vmatpush1.bf16.msra.mxu1 %v6541_v3  ;;  %v6546_v6 = vld [vmem:[%s9280_s1 + $0x20] ss:$16 sps:$4 sm:$0xff]   ;;  %v6547_v7 = vld [vmem:[%s9280_s1 + $0x28] ss:$16 sps:$4 sm:$0xff]   ;;  %v6548_v8 = vld [vmem:[%s9280_s1 + $0x44] ss:$16 sps:$4 sm:$0xff]  }
   0x4   :  { %3414 = vmatprep.subr.bf16.mxu0 %v6542_v4  ;;  %4238 = vmatprep.subr.bf16.mxu1 %v6544_v5  ;;  %v6550_v9 = vld [vmem:[%s9280_s1 + $0x4c] ss:$16 sps:$4 sm:$0xff]   ;;  %v6552_v10 = vld [vmem:[%s9280_s1 + $0x40] ss:$16 sps:$4 sm:$0xff]   ;;  %v6553_v11 = vld [vmem:[%s9280_s1 + $0x48] ss:$16 sps:$4 sm:$0xff]  }
   0x5   :  { %v6554_v12 = vld [vmem:[%s9280_s1 + $0x64] ss:$16 sps:$4 sm:$0xff]   ;;  %v6556_v13 = vld [vmem:[%s9280_s1 + $0x6c] ss:$16 sps:$4 sm:$0xff]   ;;  %v6558_v14 = vld [vmem:[%s9280_s1 + $0x60] ss:$16 sps:$4 sm:$0xff]  }
   0x6   :  { %v6559_v15 = vld [vmem:[%s9280_s1 + $0x68] ss:$16 sps:$4 sm:$0xff]   ;;  %v6560_v16 = vld [vmem:[%s9280_s1 + $0x84] ss:$16 sps:$4 sm:$0xff]   ;;  %v6562_v17 = vld [vmem:[%s9280_s1 + $0x8c] ss:$16 sps:$4 sm:$0xff]  }
   0x7   :  { %3415 = vmatpush1.bf16.msra.mxu0 %v6546_v6  ;;  %4239 = vmatpush1.bf16.msra.mxu1 %v6547_v7  ;;  %v6564_v18 = vld [vmem:[%s9280_s1 + $0x80] ss:$16 sps:$4 sm:$0xff]   ;;  %v6565_v19 = vld [vmem:[%s9280_s1 + $0x88] ss:$16 sps:$4 sm:$0xff]   ;;  %v6566_v20 = vld [vmem:[%s9280_s1 + $0xa4] ss:$16 sps:$4 sm:$0xff]  }
   0x8   :  { %3416 = vmatprep.subr.bf16.mxu0 %v6548_v8  ;;  %4240 = vmatprep.subr.bf16.mxu1 %v6550_v9  ;;  %v6568_v21 = vld [vmem:[%s9280_s1 + $0xac] ss:$16 sps:$4 sm:$0xff]   ;;  %v6570_v22 = vld [vmem:[%s9280_s1 + $0xa0] ss:$16 sps:$4 sm:$0xff]   ;;  %v6571_v23 = vld [vmem:[%s9280_s1 + $0xa8] ss:$16 sps:$4 sm:$0xff]  }
   0x9   :  { %v6572_v24 = vld [vmem:[%s9280_s1 + $0xc4] ss:$16 sps:$4 sm:$0xff]   ;;  %v6574_v25 = vld [vmem:[%s9280_s1 + $0xcc] ss:$16 sps:$4 sm:$0xff]   ;;  %v6576_v26 = vld [vmem:[%s9280_s1 + $0xc0] ss:$16 sps:$4 sm:$0xff]  }
   0xa   :  { %v6577_v27 = vld [vmem:[%s9280_s1 + $0xc8] ss:$16 sps:$4 sm:$0xff]   ;;  %v6578_v28 = vld [vmem:[%s9280_s1 + $0xe4] ss:$16 sps:$4 sm:$0xff]   ;;  %v6580_v29 = vld [vmem:[%s9280_s1 + $0xec] ss:$16 sps:$4 sm:$0xff]  }
   0xb   :  { %3417 = vmatpush1.bf16.msra.mxu0 %v6552_v10  ;;  %4241 = vmatpush1.bf16.msra.mxu1 %v6553_v11  ;;  %v6582_v30 = vld [vmem:[%s9280_s1 + $0xe0] ss:$16 sps:$4 sm:$0xff]   ;;  %v6583_v31 = vld [vmem:[%s9280_s1 + $0xe8] ss:$16 sps:$4 sm:$0xff]   ;;  %v6584_v32 = vld [vmem:[%s9280_s1 + $0x104] ss:$16 sps:$4 sm:$0xff]  }
   0xc   :  { %3418 = vmatprep.subr.bf16.mxu0 %v6554_v12  ;;  %4242 = vmatprep.subr.bf16.mxu1 %v6556_v13  ;;  %v6586_v33 = vld [vmem:[%s9280_s1 + $0x10c] ss:$16 sps:$4 sm:$0xff]   ;;  %v6588_v34 = vld [vmem:[%s9280_s1 + $0x100] ss:$16 sps:$4 sm:$0xff]   ;;  %v6589_v35 = vld [vmem:[%s9280_s1 + $0x108] ss:$16 sps:$4 sm:$0xff]  }
   0xd   :  { %v6590_v36 = vld [vmem:[%s9280_s1 + $0x124] ss:$16 sps:$4 sm:$0xff]   ;;  %v6592_v37 = vld [vmem:[%s9280_s1 + $0x12c] ss:$16 sps:$4 sm:$0xff]   ;;  %v6594_v38 = vld [vmem:[%s9280_s1 + $0x120] ss:$16 sps:$4 sm:$0xff]  }
   0xe   :  { %v6595_v39 = vld [vmem:[%s9280_s1 + $0x128] ss:$16 sps:$4 sm:$0xff]   ;;  %v6596_v40 = vld [vmem:[%s9280_s1 + $0x144] ss:$16 sps:$4 sm:$0xff]   ;;  %v6598_v41 = vld [vmem:[%s9280_s1 + $0x14c] ss:$16 sps:$4 sm:$0xff]  }
   0xf   :  { %3419 = vmatpush1.bf16.msra.mxu0 %v6558_v14  ;;  %4243 = vmatpush1.bf16.msra.mxu1 %v6559_v15  ;;  %v6600_v42 = vld [vmem:[%s9280_s1 + $0x140] ss:$16 sps:$4 sm:$0xff]   ;;  %v6601_v43 = vld [vmem:[%s9280_s1 + $0x148] ss:$16 sps:$4 sm:$0xff]   ;;  %v6602_v44 = vld [vmem:[%s9280_s1 + $0x164] ss:$16 sps:$4 sm:$0xff]  }
  0x10   :  { %3420 = vmatprep.subr.bf16.mxu0 %v6560_v16  ;;  %4244 = vmatprep.subr.bf16.mxu1 %v6562_v17  ;;  %v6604_v45 = vld [vmem:[%s9280_s1 + $0x16c] ss:$16 sps:$4 sm:$0xff]   ;;  %v6606_v46 = vld [vmem:[%s9280_s1 + $0x160] ss:$16 sps:$4 sm:$0xff]   ;;  %v6607_v47 = vld [vmem:[%s9280_s1 + $0x168] ss:$16 sps:$4 sm:$0xff]  }
  0x11   :  { %v6634_v48 = vld [vmem:[%s9281_s0 + $0x4] ss:$60 sps:$4 sm:$0xff]   ;;  %v6610_v50 = vld [vmem:[%s9280_s1 + $0x18c] ss:$16 sps:$4 sm:$0xff]   ;;  %v6613_v52 = vld [vmem:[%s9280_s1 + $0x188] ss:$16 sps:$4 sm:$0xff]  }
  0x12   :  { %v6608_v49 = vld [vmem:[%s9280_s1 + $0x184] ss:$16 sps:$4 sm:$0xff]   ;;  %3444 = vmatprep.mubr.bf16.mxu0 %v6634_v48  ;;  %4268 = vmatprep.mubr.bf16.mxu1 %v6634_v48  ;;  %v6612_v51 = vld [vmem:[%s9280_s1 + $0x180] ss:$16 sps:$4 sm:$0xff]   ;;  %v6616_v54 = vld [vmem:[%s9280_s1 + $0x1ac] ss:$16 sps:$4 sm:$0xff]  }
  0x13   :  { %3421 = vmatpush1.bf16.msra.mxu0 %v6564_v18  ;;  %4245 = vmatpush1.bf16.msra.mxu1 %v6565_v19  ;;  %v6614_v53 = vld [vmem:[%s9280_s1 + $0x1a4] ss:$16 sps:$4 sm:$0xff]   ;;  %v6618_v55 = vld [vmem:[%s9280_s1 + $0x1a0] ss:$16 sps:$4 sm:$0xff]   ;;  %v6619_v56 = vld [vmem:[%s9280_s1 + $0x1a8] ss:$16 sps:$4 sm:$0xff]  }
  0x14   :  { %3422 = vmatprep.subr.bf16.mxu0 %v6566_v20  ;;  %4246 = vmatprep.subr.bf16.mxu1 %v6568_v21  ;;  %v6620_v57 = vld [vmem:[%s9280_s1 + $0x1c4] ss:$16 sps:$4 sm:$0xff]   ;;  %v6622_v58 = vld [vmem:[%s9280_s1 + $0x1cc] ss:$16 sps:$4 sm:$0xff]   ;;  %v6624_v59 = vld [vmem:[%s9280_s1 + $0x1c0] ss:$16 sps:$4 sm:$0xff]  }
  0x15   :  { %v6625_v60 = vld [vmem:[%s9280_s1 + $0x1c8] ss:$16 sps:$4 sm:$0xff]   ;;  %v6626_v61 = vld [vmem:[%s9280_s1 + $0x1e4] ss:$16 sps:$4 sm:$0xff]   ;;  %v6628_v62 = vld [vmem:[%s9280_s1 + $0x1ec] ss:$16 sps:$4 sm:$0xff]  }
  0x16   :  { %v6630_v63 = vld [vmem:[%s9280_s1 + $0x1e0] ss:$16 sps:$4 sm:$0xff]   ;;  %v6631_v0 = vld [vmem:[%s9280_s1 + $0x1e8] ss:$16 sps:$4 sm:$0xff]   ;;  %v6637_v1 = vld [vmem:[%s9280_s1 + $0x204] ss:$16 sps:$4 sm:$0xff]  }
  0x17   :  { %3423 = vmatpush1.bf16.msra.mxu0 %v6570_v22  ;;  %4247 = vmatpush1.bf16.msra.mxu1 %v6571_v23  ;;  %v6640_v2 = vld [vmem:[%s9280_s1 + $0x20c] ss:$16 sps:$4 sm:$0xff]   ;;  %v6635_v4 = vld [vmem:[%s9280_s1 + $0x200] ss:$16 sps:$4 sm:$0xff]   ;;  %v6638_v5 = vld [vmem:[%s9280_s1 + $0x208] ss:$16 sps:$4 sm:$0xff]  }
  0x18   :  { %3424 = vmatprep.subr.bf16.mxu0 %v6572_v24  ;;  %4248 = vmatprep.subr.bf16.mxu1 %v6574_v25  ;;  %v6632_v3 = vld [vmem:[%s9281_s0] ss:$60 sps:$4 sm:$0xff]   ;;  %v6643_v6 = vld [vmem:[%s9280_s1 + $0x224] ss:$16 sps:$4 sm:$0xff]   ;;  %v6644_v10 = vld [vmem:[%s9280_s1 + $0x228] ss:$16 sps:$4 sm:$0xff]  }
  0x19   :  { %v6646_v7 = vld [vmem:[%s9280_s1 + $0x22c] ss:$16 sps:$4 sm:$0xff]   ;;  %v6641_v9 = vld [vmem:[%s9280_s1 + $0x220] ss:$16 sps:$4 sm:$0xff]   ;;  %v6649_v11 = vld [vmem:[%s9280_s1 + $0x244] ss:$16 sps:$4 sm:$0xff]  }
  0x1a   :  { %v6659_v8 = vld [vmem:[%s9281_s0 + $0x7c] ss:$60 sps:$4 sm:$0xff]   ;;  %v6647_v13 = vld [vmem:[%s9280_s1 + $0x240] ss:$16 sps:$4 sm:$0xff]   ;;  %v6655_v16 = vld [vmem:[%s9280_s1 + $0x264] ss:$16 sps:$4 sm:$0xff]  }
  0x1b   :  { %3425 = vmatpush1.bf16.msra.mxu0 %v6576_v26  ;;  %4249 = vmatpush1.bf16.msra.mxu1 %v6577_v27  ;;  %v6652_v12 = vld [vmem:[%s9280_s1 + $0x24c] ss:$16 sps:$4 sm:$0xff]   ;;  %v6650_v14 = vld [vmem:[%s9280_s1 + $0x248] ss:$16 sps:$4 sm:$0xff]   ;;  %v6674_v18 = vld [vmem:[%s9281_s0 + $0xf4] ss:$60 sps:$4 sm:$0xff]  }
  0x1c   :  { %3426 = vmatprep.subr.bf16.mxu0 %v6578_v28  ;;  %4250 = vmatprep.subr.bf16.mxu1 %v6580_v29  ;;  %v6667_v15 = vld [vmem:[%s9281_s0 + $0x78] ss:$60 sps:$4 sm:$0xff]   ;;  %v6658_v17 = vld [vmem:[%s9280_s1 + $0x26c] ss:$16 sps:$4 sm:$0xff]   ;;  %v6653_v19 = vld [vmem:[%s9280_s1 + $0x260] ss:$16 sps:$4 sm:$0xff]  }
  0x1d   :  { %v6656_v20 = vld [vmem:[%s9280_s1 + $0x268] ss:$16 sps:$4 sm:$0xff]   ;;  %v6663_v21 = vld [vmem:[%s9280_s1 + $0x284] ss:$16 sps:$4 sm:$0xff]   ;;  %v6666_v22 = vld [vmem:[%s9280_s1 + $0x28c] ss:$16 sps:$4 sm:$0xff]  }
  0x1e   :  { %v6661_v23 = vld [vmem:[%s9280_s1 + $0x280] ss:$16 sps:$4 sm:$0xff]   ;;  %v6664_v24 = vld [vmem:[%s9280_s1 + $0x288] ss:$16 sps:$4 sm:$0xff]   ;;  %v6670_v26 = vld [vmem:[%s9280_s1 + $0x2a4] ss:$16 sps:$4 sm:$0xff]  }
  0x1f   :  { %3427 = vmatpush1.bf16.msra.mxu0 %v6582_v30  ;;  %4251 = vmatpush1.bf16.msra.mxu1 %v6583_v31  ;;  %v6682_v25 = vld [vmem:[%s9281_s0 + $0xf0] ss:$60 sps:$4 sm:$0xff]   ;;  %v6671_v30 = vld [vmem:[%s9280_s1 + $0x2a8] ss:$16 sps:$4 sm:$0xff]   ;;  %v6678_v31 = vld [vmem:[%s9280_s1 + $0x2c4] ss:$16 sps:$4 sm:$0xff]  }
  0x20   :  { %3428 = vmatprep.subr.bf16.mxu0 %v6584_v32  ;;  %4252 = vmatprep.subr.bf16.mxu1 %v6586_v33  ;;  %v6673_v27 = vld [vmem:[%s9280_s1 + $0x2ac] ss:$16 sps:$4 sm:$0xff]   ;;  %v6668_v29 = vld [vmem:[%s9280_s1 + $0x2a0] ss:$16 sps:$4 sm:$0xff]  }
  0x21   :  { %v6689_v28 = vld [vmem:[%s9281_s0 + $0x16c] ss:$60 sps:$4 sm:$0xff]   ;;  %v6676_v33 = vld [vmem:[%s9280_s1 + $0x2c0] ss:$16 sps:$4 sm:$0xff]   ;;  %v6719_v48 = vld [vmem:[%s9281_s0 + $0x25c] ss:$60 sps:$4 sm:$0xff]  }
  0x22   :  { %v6681_v32 = vld [vmem:[%s9280_s1 + $0x2cc] ss:$16 sps:$4 sm:$0xff]  }
  0x23   :  { %3429 = vmatpush1.bf16.msra.mxu0 %v6588_v34  ;;  %4253 = vmatpush1.bf16.msra.mxu1 %v6589_v35  ;;  %v6679_v34 = vld [vmem:[%s9280_s1 + $0x2c8] ss:$16 sps:$4 sm:$0xff]  }
  0x24   :  { %3430 = vmatprep.subr.bf16.mxu0 %v6590_v36  ;;  %4254 = vmatprep.subr.bf16.mxu1 %v6592_v37  ;;  %v6697_v35 = vld [vmem:[%s9281_s0 + $0x168] ss:$60 sps:$4 sm:$0xff]   ;;  %v6688_v37 = vld [vmem:[%s9280_s1 + $0x2ec] ss:$16 sps:$4 sm:$0xff]  }
  0x25   :  { %v6685_v36 = vld [vmem:[%s9280_s1 + $0x2e4] ss:$16 sps:$4 sm:$0xff]  }
  0x27   :  { %3431 = vmatpush1.bf16.msra.mxu0 %v6594_v38  ;;  %4255 = vmatpush1.bf16.msra.mxu1 %v6595_v39  ;;  %v6704_v38 = vld [vmem:[%s9281_s0 + $0x1e4] ss:$60 sps:$4 sm:$0xff]  }
  0x28   :  { %3432 = vmatprep.subr.bf16.mxu0 %v6596_v40  ;;  %4256 = vmatprep.subr.bf16.mxu1 %v6598_v41  ;;  %v6683_v39 = vld [vmem:[%s9280_s1 + $0x2e0] ss:$16 sps:$4 sm:$0xff]   ;;  %v6686_v40 = vld [vmem:[%s9280_s1 + $0x2e8] ss:$16 sps:$4 sm:$0xff]   ;;  %v6693_v41 = vld [vmem:[%s9280_s1 + $0x304] ss:$16 sps:$4 sm:$0xff]  }
  0x2b   :  { %3433 = vmatpush1.bf16.msra.mxu0 %v6600_v42  ;;  %4257 = vmatpush1.bf16.msra.mxu1 %v6601_v43  ;;  %v6696_v42 = vld [vmem:[%s9280_s1 + $0x30c] ss:$16 sps:$4 sm:$0xff]   ;;  %v6691_v43 = vld [vmem:[%s9280_s1 + $0x300] ss:$16 sps:$4 sm:$0xff]  }
  0x2c   :  { %3434 = vmatprep.subr.bf16.mxu0 %v6602_v44  ;;  %4258 = vmatprep.subr.bf16.mxu1 %v6604_v45  ;;  %v6694_v44 = vld [vmem:[%s9280_s1 + $0x308] ss:$16 sps:$4 sm:$0xff]   ;;  %v6712_v45 = vld [vmem:[%s9281_s0 + $0x1e0] ss:$60 sps:$4 sm:$0xff]  }
  0x2f   :  { %3435 = vmatpush1.bf16.msra.mxu0 %v6606_v46  ;;  %4259 = vmatpush1.bf16.msra.mxu1 %v6607_v47  ;;  %v6700_v46 = vld [vmem:[%s9280_s1 + $0x324] ss:$16 sps:$4 sm:$0xff]   ;;  %v6703_v47 = vld [vmem:[%s9280_s1 + $0x32c] ss:$16 sps:$4 sm:$0xff]  }
  0x30   :  { %3436 = vmatprep.subr.bf16.mxu0 %v6608_v49  ;;  %4260 = vmatprep.subr.bf16.mxu1 %v6610_v50  ;;  %v6698_v49 = vld [vmem:[%s9280_s1 + $0x320] ss:$16 sps:$4 sm:$0xff]   ;;  %v6701_v50 = vld [vmem:[%s9280_s1 + $0x328] ss:$16 sps:$4 sm:$0xff]  }
  0x33   :  { %3437 = vmatpush1.bf16.msra.mxu0 %v6612_v51  ;;  %4261 = vmatpush1.bf16.msra.mxu1 %v6613_v52  ;;  %v6708_v51 = vld [vmem:[%s9280_s1 + $0x344] ss:$16 sps:$4 sm:$0xff]   ;;  %v6711_v52 = vld [vmem:[%s9280_s1 + $0x34c] ss:$16 sps:$4 sm:$0xff]  }
  0x34   :  { %3438 = vmatprep.subr.bf16.mxu0 %v6614_v53  ;;  %4262 = vmatprep.subr.bf16.mxu1 %v6616_v54  ;;  %v6706_v53 = vld [vmem:[%s9280_s1 + $0x340] ss:$16 sps:$4 sm:$0xff]   ;;  %v6709_v54 = vld [vmem:[%s9280_s1 + $0x348] ss:$16 sps:$4 sm:$0xff]  }
  0x37   :  { %3439 = vmatpush1.bf16.msra.mxu0 %v6618_v55  ;;  %4263 = vmatpush1.bf16.msra.mxu1 %v6619_v56  ;;  %v6727_v55 = vld [vmem:[%s9281_s0 + $0x258] ss:$60 sps:$4 sm:$0xff]  }
  0x38   :  { %3440 = vmatprep.subr.bf16.mxu0 %v6620_v57  ;;  %4264 = vmatprep.subr.bf16.mxu1 %v6622_v58  ;;  %v6715_v56 = vld [vmem:[%s9280_s1 + $0x364] ss:$16 sps:$4 sm:$0xff]   ;;  %v6718_v57 = vld [vmem:[%s9280_s1 + $0x36c] ss:$16 sps:$4 sm:$0xff]  }
  0x39   :  { %v6734_v58 = vld [vmem:[%s9281_s0 + $0x2d4] ss:$60 sps:$4 sm:$0xff]  }
  0x3b   :  { %3441 = vmatpush1.bf16.msra.mxu0 %v6624_v59  ;;  %4265 = vmatpush1.bf16.msra.mxu1 %v6625_v60  ;;  %v6713_v59 = vld [vmem:[%s9280_s1 + $0x360] ss:$16 sps:$4 sm:$0xff]   ;;  %v6716_v60 = vld [vmem:[%s9280_s1 + $0x368] ss:$16 sps:$4 sm:$0xff]  }
  0x3c   :  { %3442 = vmatprep.subr.bf16.mxu0 %v6626_v61  ;;  %4266 = vmatprep.subr.bf16.mxu1 %v6628_v62  ;;  %v6723_v61 = vld [vmem:[%s9280_s1 + $0x384] ss:$16 sps:$4 sm:$0xff]   ;;  %v6726_v62 = vld [vmem:[%s9280_s1 + $0x38c] ss:$16 sps:$4 sm:$0xff]  }
  0x3f   :  { %3443 = vmatpush1.bf16.msra.mxu0 %v6630_v63  ;;  %4267 = vmatpush1.bf16.msra.mxu1 %v6631_v0  ;;  %v6721_v63 = vld [vmem:[%s9280_s1 + $0x380] ss:$16 sps:$4 sm:$0xff]   ;;  %v6724_v0 = vld [vmem:[%s9280_s1 + $0x388] ss:$16 sps:$4 sm:$0xff]  }
  0x40   :  { %3515 = vmatprep.subr.bf16.mxu0 %v6637_v1  ;;  %4339 = vmatprep.subr.bf16.mxu1 %v6640_v2  ;;  %v6742_v1 = vld [vmem:[%s9281_s0 + $0x2d0] ss:$60 sps:$4 sm:$0xff]   ;;  %v6730_v2 = vld [vmem:[%s9280_s1 + $0x3a4] ss:$16 sps:$4 sm:$0xff]  }
  0x42   :  { %3445 = vmatmul.mubr.bf16.vlgmr.msra.gmra.mrb[0].mxu0 %v6632_v3  ;;  %4269 = vmatmul.mubr.bf16.vlgmr.msra.gmra.mrb[0].mxu1 %v6632_v3  ;;  %v6733_v3 = vld [vmem:[%s9280_s1 + $0x3ac] ss:$16 sps:$4 sm:$0xff]  }
  0x43   :  { %3516 = vmatpush1.bf16.msra.mxu0 %v6635_v4  ;;  %4340 = vmatpush1.bf16.msra.mxu1 %v6638_v5  ;;  %v6751_v4 = vld [vmem:[%s9281_s0 + $0xc] ss:$60 sps:$4 sm:$0xff]   ;;  %v6728_v5 = vld [vmem:[%s9280_s1 + $0x3a0] ss:$16 sps:$4 sm:$0xff]  }
  0x44   :  { %3517 = vmatprep.subr.bf16.mxu0 %v6643_v6  ;;  %4341 = vmatprep.subr.bf16.mxu1 %v6646_v7  ;;  %v6731_v6 = vld [vmem:[%s9280_s1 + $0x3a8] ss:$16 sps:$4 sm:$0xff]   ;;  %v6738_v7 = vld [vmem:[%s9280_s1 + $0x3c4] ss:$16 sps:$4 sm:$0xff]  }
  0x45   :  { %3454 = vmatprep.mubr.bf16.mxu0 %v6659_v8  ;;  %4278 = vmatprep.mubr.bf16.mxu1 %v6659_v8  ;;  %v6741_v8 = vld [vmem:[%s9280_s1 + $0x3cc] ss:$16 sps:$4 sm:$0xff]  }
  0x47   :  { %3518 = vmatpush1.bf16.msra.mxu0 %v6641_v9  ;;  %4342 = vmatpush1.bf16.msra.mxu1 %v6644_v10  ;;  %v6736_v9 = vld [vmem:[%s9280_s1 + $0x3c0] ss:$16 sps:$4 sm:$0xff]   ;;  %v6739_v10 = vld [vmem:[%s9280_s1 + $0x3c8] ss:$16 sps:$4 sm:$0xff]  }
  0x48   :  { %3519 = vmatprep.subr.bf16.mxu0 %v6649_v11  ;;  %4343 = vmatprep.subr.bf16.mxu1 %v6652_v12  ;;  %v6745_v11 = vld [vmem:[%s9280_s1 + $0x3e4] ss:$16 sps:$4 sm:$0xff]   ;;  %v6748_v12 = vld [vmem:[%s9280_s1 + $0x3ec] ss:$16 sps:$4 sm:$0xff]  }
  0x4a   :  { %3455 = vmatmul.mubr.bf16.gmra.mrb[4].mxu0 %v6667_v15  ;;  %4279 = vmatmul.mubr.bf16.gmra.mrb[4].mxu1 %v6667_v15  ;;  %v6754_v15 = vld [vmem:[%s9280_s1 + $0x404] ss:$16 sps:$4 sm:$0xff]  }
  0x4b   :  { %3520 = vmatpush1.bf16.msra.mxu0 %v6647_v13  ;;  %4344 = vmatpush1.bf16.msra.mxu1 %v6650_v14  ;;  %v6743_v13 = vld [vmem:[%s9280_s1 + $0x3e0] ss:$16 sps:$4 sm:$0xff]   ;;  %v6746_v14 = vld [vmem:[%s9280_s1 + $0x3e8] ss:$16 sps:$4 sm:$0xff]  }
  0x4c   :  { %3521 = vmatprep.subr.bf16.mxu0 %v6655_v16  ;;  %4345 = vmatprep.subr.bf16.mxu1 %v6658_v17  ;;  %v6757_v16 = vld [vmem:[%s9280_s1 + $0x40c] ss:$16 sps:$4 sm:$0xff]   ;;  %v6749_v17 = vld [vmem:[%s9281_s0 + $0x8] ss:$60 sps:$4 sm:$0xff]  }
  0x4d   :  { %3464 = vmatprep.mubr.bf16.mxu0 %v6674_v18  ;;  %4288 = vmatprep.mubr.bf16.mxu1 %v6674_v18  ;;  %v6752_v18 = vld [vmem:[%s9280_s1 + $0x400] ss:$16 sps:$4 sm:$0xff]  }
  0x4f   :  { %3522 = vmatpush1.bf16.msra.mxu0 %v6653_v19  ;;  %4346 = vmatpush1.bf16.msra.mxu1 %v6656_v20  ;;  %v6755_v19 = vld [vmem:[%s9280_s1 + $0x408] ss:$16 sps:$4 sm:$0xff]   ;;  %v6760_v20 = vld [vmem:[%s9280_s1 + $0x424] ss:$16 sps:$4 sm:$0xff]  }
  0x50   :  { %3523 = vmatprep.subr.bf16.mxu0 %v6663_v21  ;;  %4347 = vmatprep.subr.bf16.mxu1 %v6666_v22  ;;  %v6763_v21 = vld [vmem:[%s9280_s1 + $0x42c] ss:$16 sps:$4 sm:$0xff]   ;;  %v6776_v22 = vld [vmem:[%s9281_s0 + $0x84] ss:$60 sps:$4 sm:$0xff]  }
  0x52   :  { %3465 = vmatmul.mubr.bf16.gmra.mrb[8].mxu0 %v6682_v25  ;;  %4289 = vmatmul.mubr.bf16.gmra.mrb[8].mxu1 %v6682_v25  ;;  %v6766_v25 = vld [vmem:[%s9280_s1 + $0x444] ss:$16 sps:$4 sm:$0xff]  }
  0x53   :  { %3524 = vmatpush1.bf16.msra.mxu0 %v6661_v23  ;;  %4348 = vmatpush1.bf16.msra.mxu1 %v6664_v24  ;;  %v6758_v23 = vld [vmem:[%s9280_s1 + $0x420] ss:$16 sps:$4 sm:$0xff]   ;;  %v6761_v24 = vld [vmem:[%s9280_s1 + $0x428] ss:$16 sps:$4 sm:$0xff]  }
  0x54   :  { %3525 = vmatprep.subr.bf16.mxu0 %v6670_v26  ;;  %4349 = vmatprep.subr.bf16.mxu1 %v6673_v27  ;;  %v6769_v26 = vld [vmem:[%s9280_s1 + $0x44c] ss:$16 sps:$4 sm:$0xff]   ;;  %v6764_v27 = vld [vmem:[%s9280_s1 + $0x440] ss:$16 sps:$4 sm:$0xff]  }
  0x55   :  { %3474 = vmatprep.mubr.bf16.mxu0 %v6689_v28  ;;  %4298 = vmatprep.mubr.bf16.mxu1 %v6689_v28  ;;  %v6784_v28 = vld [vmem:[%s9281_s0 + $0x80] ss:$60 sps:$4 sm:$0xff]  }
  0x57   :  { %3526 = vmatpush1.bf16.msra.mxu0 %v6668_v29  ;;  %4350 = vmatpush1.bf16.msra.mxu1 %v6671_v30  ;;  %v6767_v29 = vld [vmem:[%s9280_s1 + $0x448] ss:$16 sps:$4 sm:$0xff]   ;;  %v6772_v30 = vld [vmem:[%s9280_s1 + $0x464] ss:$16 sps:$4 sm:$0xff]  }
  0x58   :  { %3527 = vmatprep.subr.bf16.mxu0 %v6678_v31  ;;  %4351 = vmatprep.subr.bf16.mxu1 %v6681_v32  ;;  %v6775_v31 = vld [vmem:[%s9280_s1 + $0x46c] ss:$16 sps:$4 sm:$0xff]  }
  0x59   :  { %v6791_v32 = vld [vmem:[%s9281_s0 + $0xfc] ss:$60 sps:$4 sm:$0xff]  }
  0x5a   :  { %3475 = vmatmul.mubr.bf16.gmra.mrb[12].mxu0 %v6697_v35  ;;  %4299 = vmatmul.mubr.bf16.gmra.mrb[12].mxu1 %v6697_v35  ;;  %v6780_v35 = vld [vmem:[%s9280_s1 + $0x484] ss:$16 sps:$4 sm:$0xff]  }
  0x5b   :  { %3528 = vmatpush1.bf16.msra.mxu0 %v6676_v33  ;;  %4352 = vmatpush1.bf16.msra.mxu1 %v6679_v34  ;;  %v6770_v33 = vld [vmem:[%s9280_s1 + $0x460] ss:$16 sps:$4 sm:$0xff]   ;;  %v6773_v34 = vld [vmem:[%s9280_s1 + $0x468] ss:$16 sps:$4 sm:$0xff]  }
  0x5c   :  { %3529 = vmatprep.subr.bf16.mxu0 %v6685_v36  ;;  %4353 = vmatprep.subr.bf16.mxu1 %v6688_v37  ;;  %v6783_v36 = vld [vmem:[%s9280_s1 + $0x48c] ss:$16 sps:$4 sm:$0xff]   ;;  %v6778_v37 = vld [vmem:[%s9280_s1 + $0x480] ss:$16 sps:$4 sm:$0xff]  }
  0x5d   :  { %3484 = vmatprep.mubr.bf16.mxu0 %v6704_v38  ;;  %4308 = vmatprep.mubr.bf16.mxu1 %v6704_v38  ;;  %v6781_v38 = vld [vmem:[%s9280_s1 + $0x488] ss:$16 sps:$4 sm:$0xff]  }
  0x5f   :  { %3530 = vmatpush1.bf16.msra.mxu0 %v6683_v39  ;;  %4354 = vmatpush1.bf16.msra.mxu1 %v6686_v40  ;;  %v6799_v39 = vld [vmem:[%s9281_s0 + $0xf8] ss:$60 sps:$4 sm:$0xff]  }
  0x60   :  { %3531 = vmatprep.subr.bf16.mxu0 %v6693_v41  ;;  %4355 = vmatprep.subr.bf16.mxu1 %v6696_v42  ;;  %v6787_v40 = vld [vmem:[%s9280_s1 + $0x4a4] ss:$16 sps:$4 sm:$0xff]   ;;  %v6790_v41 = vld [vmem:[%s9280_s1 + $0x4ac] ss:$16 sps:$4 sm:$0xff]  }
  0x61   :  { %v6806_v42 = vld [vmem:[%s9281_s0 + $0x174] ss:$60 sps:$4 sm:$0xff]  }
  0x62   :  { %3485 = vmatmul.mubr.bf16.gmra.mrb[16].mxu0 %v6712_v45  ;;  %4309 = vmatmul.mubr.bf16.gmra.mrb[16].mxu1 %v6712_v45  ;;  %v6795_v45 = vld [vmem:[%s9280_s1 + $0x4c4] ss:$16 sps:$4 sm:$0xff]  }
  0x63   :  { %3532 = vmatpush1.bf16.msra.mxu0 %v6691_v43  ;;  %4356 = vmatpush1.bf16.msra.mxu1 %v6694_v44  ;;  %v6785_v43 = vld [vmem:[%s9280_s1 + $0x4a0] ss:$16 sps:$4 sm:$0xff]   ;;  %v6788_v44 = vld [vmem:[%s9280_s1 + $0x4a8] ss:$16 sps:$4 sm:$0xff]  }
  0x64   :  { %3533 = vmatprep.subr.bf16.mxu0 %v6700_v46  ;;  %4357 = vmatprep.subr.bf16.mxu1 %v6703_v47  ;;  %v6798_v46 = vld [vmem:[%s9280_s1 + $0x4cc] ss:$16 sps:$4 sm:$0xff]   ;;  %v6793_v47 = vld [vmem:[%s9280_s1 + $0x4c0] ss:$16 sps:$4 sm:$0xff]  }
  0x65   :  { %3494 = vmatprep.mubr.bf16.mxu0 %v6719_v48  ;;  %4318 = vmatprep.mubr.bf16.mxu1 %v6719_v48  ;;  %v6796_v48 = vld [vmem:[%s9280_s1 + $0x4c8] ss:$16 sps:$4 sm:$0xff]  }
  0x67   :  { %3534 = vmatpush1.bf16.msra.mxu0 %v6698_v49  ;;  %4358 = vmatpush1.bf16.msra.mxu1 %v6701_v50  ;;  %v6814_v49 = vld [vmem:[%s9281_s0 + $0x170] ss:$60 sps:$4 sm:$0xff]   ;;  %v6802_v50 = vld [vmem:[%s9280_s1 + $0x4e4] ss:$16 sps:$4 sm:$0xff]  }
  0x68   :  { %3535 = vmatprep.subr.bf16.mxu0 %v6708_v51  ;;  %4359 = vmatprep.subr.bf16.mxu1 %v6711_v52  ;;  %v6805_v51 = vld [vmem:[%s9280_s1 + $0x4ec] ss:$16 sps:$4 sm:$0xff]  }
  0x69   :  { %v6821_v52 = vld [vmem:[%s9281_s0 + $0x1ec] ss:$60 sps:$4 sm:$0xff]  }
  0x6a   :  { %3495 = vmatmul.mubr.bf16.gmra.mrb[20].mxu0 %v6727_v55  ;;  %4319 = vmatmul.mubr.bf16.gmra.mrb[20].mxu1 %v6727_v55  ;;  %v6810_v55 = vld [vmem:[%s9280_s1 + $0x504] ss:$16 sps:$4 sm:$0xff]  }
  0x6b   :  { %3536 = vmatpush1.bf16.msra.mxu0 %v6706_v53  ;;  %4360 = vmatpush1.bf16.msra.mxu1 %v6709_v54  ;;  %v6800_v53 = vld [vmem:[%s9280_s1 + $0x4e0] ss:$16 sps:$4 sm:$0xff]   ;;  %v6803_v54 = vld [vmem:[%s9280_s1 + $0x4e8] ss:$16 sps:$4 sm:$0xff]  }
  0x6c   :  { %3537 = vmatprep.subr.bf16.mxu0 %v6715_v56  ;;  %4361 = vmatprep.subr.bf16.mxu1 %v6718_v57  ;;  %v6813_v56 = vld [vmem:[%s9280_s1 + $0x50c] ss:$16 sps:$4 sm:$0xff]   ;;  %v6808_v57 = vld [vmem:[%s9280_s1 + $0x500] ss:$16 sps:$4 sm:$0xff]  }
  0x6d   :  { %3504 = vmatprep.mubr.bf16.mxu0 %v6734_v58  ;;  %4328 = vmatprep.mubr.bf16.mxu1 %v6734_v58  ;;  %v6829_v58 = vld [vmem:[%s9281_s0 + $0x1e8] ss:$60 sps:$4 sm:$0xff]  }
  0x6f   :  { %3538 = vmatpush1.bf16.msra.mxu0 %v6713_v59  ;;  %4362 = vmatpush1.bf16.msra.mxu1 %v6716_v60  ;;  %v6811_v59 = vld [vmem:[%s9280_s1 + $0x508] ss:$16 sps:$4 sm:$0xff]   ;;  %v6817_v60 = vld [vmem:[%s9280_s1 + $0x524] ss:$16 sps:$4 sm:$0xff]  }
  0x70   :  { %3539 = vmatprep.subr.bf16.mxu0 %v6723_v61  ;;  %4363 = vmatprep.subr.bf16.mxu1 %v6726_v62  ;;  %v6820_v61 = vld [vmem:[%s9280_s1 + $0x52c] ss:$16 sps:$4 sm:$0xff]   ;;  %v6836_v62 = vld [vmem:[%s9281_s0 + $0x264] ss:$60 sps:$4 sm:$0xff]  }
  0x72   :  { %3505 = vmatmul.mubr.bf16.gmra.mrb[24].mxu0 %v6742_v1  ;;  %4329 = vmatmul.mubr.bf16.gmra.mrb[24].mxu1 %v6742_v1  ;;  %v6825_v1 = vld [vmem:[%s9280_s1 + $0x544] ss:$16 sps:$4 sm:$0xff]  }
  0x73   :  { %3540 = vmatpush1.bf16.msra.mxu0 %v6721_v63  ;;  %4364 = vmatpush1.bf16.msra.mxu1 %v6724_v0  ;;  %v6815_v63 = vld [vmem:[%s9280_s1 + $0x520] ss:$16 sps:$4 sm:$0xff]   ;;  %v6818_v0 = vld [vmem:[%s9280_s1 + $0x528] ss:$16 sps:$4 sm:$0xff]  }
  0x74   :  { %3541 = vmatprep.subr.bf16.mxu0 %v6730_v2  ;;  %4365 = vmatprep.subr.bf16.mxu1 %v6733_v3  ;;  %v6828_v2 = vld [vmem:[%s9280_s1 + $0x54c] ss:$16 sps:$4 sm:$0xff]   ;;  %v6823_v3 = vld [vmem:[%s9280_s1 + $0x540] ss:$16 sps:$4 sm:$0xff]  }
  0x75   :  { %3547 = vmatprep.mubr.bf16.mxu0 %v6751_v4  ;;  %4371 = vmatprep.mubr.bf16.mxu1 %v6751_v4  ;;  %v6844_v4 = vld [vmem:[%s9281_s0 + $0x260] ss:$60 sps:$4 sm:$0xff]  }
  0x77   :  { %3542 = vmatpush1.bf16.msra.mxu0 %v6728_v5  ;;  %4366 = vmatpush1.bf16.msra.mxu1 %v6731_v6  ;;  %v6826_v5 = vld [vmem:[%s9280_s1 + $0x548] ss:$16 sps:$4 sm:$0xff]   ;;  %v6832_v6 = vld [vmem:[%s9280_s1 + $0x564] ss:$16 sps:$4 sm:$0xff]  }
  0x78   :  { %3543 = vmatprep.subr.bf16.mxu0 %v6738_v7  ;;  %4367 = vmatprep.subr.bf16.mxu1 %v6741_v8  ;;  %v6835_v7 = vld [vmem:[%s9280_s1 + $0x56c] ss:$16 sps:$4 sm:$0xff]  }
  0x79   :  { %v6851_v8 = vld [vmem:[%s9281_s0 + $0x2dc] ss:$60 sps:$4 sm:$0xff]  }
  0x7b   :  { %3544 = vmatpush1.bf16.msra.mxu0 %v6736_v9  ;;  %4368 = vmatpush1.bf16.msra.mxu1 %v6739_v10  ;;  %v6830_v9 = vld [vmem:[%s9280_s1 + $0x560] ss:$16 sps:$4 sm:$0xff]   ;;  %v6833_v10 = vld [vmem:[%s9280_s1 + $0x568] ss:$16 sps:$4 sm:$0xff]  }
  0x7c   :  { %3545 = vmatprep.subr.bf16.mxu0 %v6745_v11  ;;  %4369 = vmatprep.subr.bf16.mxu1 %v6748_v12  ;;  %v6840_v11 = vld [vmem:[%s9280_s1 + $0x584] ss:$16 sps:$4 sm:$0xff]   ;;  %v6843_v12 = vld [vmem:[%s9280_s1 + $0x58c] ss:$16 sps:$4 sm:$0xff]  }
  0x7f   :  { %3546 = vmatpush1.bf16.msra.mxu0 %v6743_v13  ;;  %4370 = vmatpush1.bf16.msra.mxu1 %v6746_v14  ;;  %v6838_v13 = vld [vmem:[%s9280_s1 + $0x580] ss:$16 sps:$4 sm:$0xff]   ;;  %v6841_v14 = vld [vmem:[%s9280_s1 + $0x588] ss:$16 sps:$4 sm:$0xff]  }
  0x80   :  { %3618 = vmatprep.subr.bf16.mxu0 %v6754_v15  ;;  %4442 = vmatprep.subr.bf16.mxu1 %v6757_v16  ;;  %v6859_v15 = vld [vmem:[%s9281_s0 + $0x2d8] ss:$60 sps:$4 sm:$0xff]  }
  0x81   :  { %v6847_v16 = vld [vmem:[%s9280_s1 + $0x5a4] ss:$16 sps:$4 sm:$0xff]  }
  0x82   :  { %3548 = vmatmul.mubr.bf16.vlgmr.msra.gmra.mrb[0].mxu0 %v6749_v17  ;;  %4372 = vmatmul.mubr.bf16.vlgmr.msra.gmra.mrb[0].mxu1 %v6749_v17  ;;  %v6850_v17 = vld [vmem:[%s9280_s1 + $0x5ac] ss:$16 sps:$4 sm:$0xff]  }
  0x83   :  { %3619 = vmatpush1.bf16.msra.mxu0 %v6752_v18  ;;  %4443 = vmatpush1.bf16.msra.mxu1 %v6755_v19  ;;  %v6868_v18 = vld [vmem:[%s9281_s0 + $0x14] ss:$60 sps:$4 sm:$0xff]  }
  0x84   :  { %3620 = vmatprep.subr.bf16.mxu0 %v6760_v20  ;;  %4444 = vmatprep.subr.bf16.mxu1 %v6763_v21  ;;  %v6845_v19 = vld [vmem:[%s9280_s1 + $0x5a0] ss:$16 sps:$4 sm:$0xff]   ;;  %v6848_v20 = vld [vmem:[%s9280_s1 + $0x5a8] ss:$16 sps:$4 sm:$0xff]   ;;  %v6855_v21 = vld [vmem:[%s9280_s1 + $0x5c4] ss:$16 sps:$4 sm:$0xff]  }
  0x85   :  { %3557 = vmatprep.mubr.bf16.mxu0 %v6776_v22  ;;  %4381 = vmatprep.mubr.bf16.mxu1 %v6776_v22  ;;  %v6858_v22 = vld [vmem:[%s9280_s1 + $0x5cc] ss:$16 sps:$4 sm:$0xff]  }
  0x87   :  { %3621 = vmatpush1.bf16.msra.mxu0 %v6758_v23  ;;  %4445 = vmatpush1.bf16.msra.mxu1 %v6761_v24  ;;  %v6853_v23 = vld [vmem:[%s9280_s1 + $0x5c0] ss:$16 sps:$4 sm:$0xff]   ;;  %v6856_v24 = vld [vmem:[%s9280_s1 + $0x5c8] ss:$16 sps:$4 sm:$0xff]  }
  0x88   :  { %3622 = vmatprep.subr.bf16.mxu0 %v6766_v25  ;;  %4446 = vmatprep.subr.bf16.mxu1 %v6769_v26  ;;  %v6862_v25 = vld [vmem:[%s9280_s1 + $0x5e4] ss:$16 sps:$4 sm:$0xff]   ;;  %v6865_v26 = vld [vmem:[%s9280_s1 + $0x5ec] ss:$16 sps:$4 sm:$0xff]  }
  0x8a   :  { %3558 = vmatmul.mubr.bf16.gmra.mrb[4].mxu0 %v6784_v28  ;;  %4382 = vmatmul.mubr.bf16.gmra.mrb[4].mxu1 %v6784_v28  ;;  %v6863_v28 = vld [vmem:[%s9280_s1 + $0x5e8] ss:$16 sps:$4 sm:$0xff]  }
  0x8b   :  { %3623 = vmatpush1.bf16.msra.mxu0 %v6764_v27  ;;  %4447 = vmatpush1.bf16.msra.mxu1 %v6767_v29  ;;  %v6860_v27 = vld [vmem:[%s9280_s1 + $0x5e0] ss:$16 sps:$4 sm:$0xff]   ;;  %v6871_v29 = vld [vmem:[%s9280_s1 + $0x604] ss:$16 sps:$4 sm:$0xff]  }
  0x8c   :  { %3624 = vmatprep.subr.bf16.mxu0 %v6772_v30  ;;  %4448 = vmatprep.subr.bf16.mxu1 %v6775_v31  ;;  %v6874_v30 = vld [vmem:[%s9280_s1 + $0x60c] ss:$16 sps:$4 sm:$0xff]  }
  0x8d   :  { %3567 = vmatprep.mubr.bf16.mxu0 %v6791_v32  ;;  %4391 = vmatprep.mubr.bf16.mxu1 %v6791_v32  ;;  %v6866_v31 = vld [vmem:[%s9281_s0 + $0x10] ss:$60 sps:$4 sm:$0xff]  }
  0x8e   :  { %v6869_v32 = vld [vmem:[%s9280_s1 + $0x600] ss:$16 sps:$4 sm:$0xff]  }
  0x8f   :  { %3625 = vmatpush1.bf16.msra.mxu0 %v6770_v33  ;;  %4449 = vmatpush1.bf16.msra.mxu1 %v6773_v34  ;;  %v6872_v33 = vld [vmem:[%s9280_s1 + $0x608] ss:$16 sps:$4 sm:$0xff]   ;;  %v6877_v34 = vld [vmem:[%s9280_s1 + $0x624] ss:$16 sps:$4 sm:$0xff]  }
  0x90   :  { %3626 = vmatprep.subr.bf16.mxu0 %v6780_v35  ;;  %4450 = vmatprep.subr.bf16.mxu1 %v6783_v36  ;;  %v6880_v35 = vld [vmem:[%s9280_s1 + $0x62c] ss:$16 sps:$4 sm:$0xff]  }
  0x91   :  { %v6893_v36 = vld [vmem:[%s9281_s0 + $0x8c] ss:$60 sps:$4 sm:$0xff]  }
  0x92   :  { %3568 = vmatmul.mubr.bf16.gmra.mrb[8].mxu0 %v6799_v39  ;;  %4392 = vmatmul.mubr.bf16.gmra.mrb[8].mxu1 %v6799_v39  ;;  %v6883_v39 = vld [vmem:[%s9280_s1 + $0x644] ss:$16 sps:$4 sm:$0xff]  }
  0x93   :  { %3627 = vmatpush1.bf16.msra.mxu0 %v6778_v37  ;;  %4451 = vmatpush1.bf16.msra.mxu1 %v6781_v38  ;;  %v6875_v37 = vld [vmem:[%s9280_s1 + $0x620] ss:$16 sps:$4 sm:$0xff]   ;;  %v6878_v38 = vld [vmem:[%s9280_s1 + $0x628] ss:$16 sps:$4 sm:$0xff]  }
  0x94   :  { %3628 = vmatprep.subr.bf16.mxu0 %v6787_v40  ;;  %4452 = vmatprep.subr.bf16.mxu1 %v6790_v41  ;;  %v6886_v40 = vld [vmem:[%s9280_s1 + $0x64c] ss:$16 sps:$4 sm:$0xff]   ;;  %v6881_v41 = vld [vmem:[%s9280_s1 + $0x640] ss:$16 sps:$4 sm:$0xff]  }
  0x95   :  { %3577 = vmatprep.mubr.bf16.mxu0 %v6806_v42  ;;  %4401 = vmatprep.mubr.bf16.mxu1 %v6806_v42  ;;  %v6884_v42 = vld [vmem:[%s9280_s1 + $0x648] ss:$16 sps:$4 sm:$0xff]  }
  0x97   :  { %3629 = vmatpush1.bf16.msra.mxu0 %v6785_v43  ;;  %4453 = vmatpush1.bf16.msra.mxu1 %v6788_v44  ;;  %v6901_v43 = vld [vmem:[%s9281_s0 + $0x88] ss:$60 sps:$4 sm:$0xff]  }
  0x98   :  { %3630 = vmatprep.subr.bf16.mxu0 %v6795_v45  ;;  %4454 = vmatprep.subr.bf16.mxu1 %v6798_v46  ;;  %v6889_v44 = vld [vmem:[%s9280_s1 + $0x664] ss:$16 sps:$4 sm:$0xff]   ;;  %v6892_v45 = vld [vmem:[%s9280_s1 + $0x66c] ss:$16 sps:$4 sm:$0xff]  }
  0x99   :  { %v6908_v46 = vld [vmem:[%s9281_s0 + $0x104] ss:$60 sps:$4 sm:$0xff]  }
  0x9a   :  { %3578 = vmatmul.mubr.bf16.gmra.mrb[12].mxu0 %v6814_v49  ;;  %4402 = vmatmul.mubr.bf16.gmra.mrb[12].mxu1 %v6814_v49  ;;  %v6897_v49 = vld [vmem:[%s9280_s1 + $0x684] ss:$16 sps:$4 sm:$0xff]  }
  0x9b   :  { %3631 = vmatpush1.bf16.msra.mxu0 %v6793_v47  ;;  %4455 = vmatpush1.bf16.msra.mxu1 %v6796_v48  ;;  %v6887_v47 = vld [vmem:[%s9280_s1 + $0x660] ss:$16 sps:$4 sm:$0xff]   ;;  %v6890_v48 = vld [vmem:[%s9280_s1 + $0x668] ss:$16 sps:$4 sm:$0xff]  }
  0x9c   :  { %3632 = vmatprep.subr.bf16.mxu0 %v6802_v50  ;;  %4456 = vmatprep.subr.bf16.mxu1 %v6805_v51  ;;  %v6900_v50 = vld [vmem:[%s9280_s1 + $0x68c] ss:$16 sps:$4 sm:$0xff]   ;;  %v6895_v51 = vld [vmem:[%s9280_s1 + $0x680] ss:$16 sps:$4 sm:$0xff]  }
  0x9d   :  { %3587 = vmatprep.mubr.bf16.mxu0 %v6821_v52  ;;  %4411 = vmatprep.mubr.bf16.mxu1 %v6821_v52  ;;  %v6898_v52 = vld [vmem:[%s9280_s1 + $0x688] ss:$16 sps:$4 sm:$0xff]  }
  0x9f   :  { %3633 = vmatpush1.bf16.msra.mxu0 %v6800_v53  ;;  %4457 = vmatpush1.bf16.msra.mxu1 %v6803_v54  ;;  %v6916_v53 = vld [vmem:[%s9281_s0 + $0x100] ss:$60 sps:$4 sm:$0xff]   ;;  %v6904_v54 = vld [vmem:[%s9280_s1 + $0x6a4] ss:$16 sps:$4 sm:$0xff]  }
  0xa0   :  { %3634 = vmatprep.subr.bf16.mxu0 %v6810_v55  ;;  %4458 = vmatprep.subr.bf16.mxu1 %v6813_v56  ;;  %v6907_v55 = vld [vmem:[%s9280_s1 + $0x6ac] ss:$16 sps:$4 sm:$0xff]  }
  0xa1   :  { %v6923_v56 = vld [vmem:[%s9281_s0 + $0x17c] ss:$60 sps:$4 sm:$0xff]  }
  0xa2   :  { %3588 = vmatmul.mubr.bf16.gmra.mrb[16].mxu0 %v6829_v58  ;;  %4412 = vmatmul.mubr.bf16.gmra.mrb[16].mxu1 %v6829_v58  ;;  %v6905_v58 = vld [vmem:[%s9280_s1 + $0x6a8] ss:$16 sps:$4 sm:$0xff]  }
  0xa3   :  { %3635 = vmatpush1.bf16.msra.mxu0 %v6808_v57  ;;  %4459 = vmatpush1.bf16.msra.mxu1 %v6811_v59  ;;  %v6902_v57 = vld [vmem:[%s9280_s1 + $0x6a0] ss:$16 sps:$4 sm:$0xff]   ;;  %v6912_v59 = vld [vmem:[%s9280_s1 + $0x6c4] ss:$16 sps:$4 sm:$0xff]  }
  0xa4   :  { %3636 = vmatprep.subr.bf16.mxu0 %v6817_v60  ;;  %4460 = vmatprep.subr.bf16.mxu1 %v6820_v61  ;;  %v6915_v60 = vld [vmem:[%s9280_s1 + $0x6cc] ss:$16 sps:$4 sm:$0xff]   ;;  %v6910_v61 = vld [vmem:[%s9280_s1 + $0x6c0] ss:$16 sps:$4 sm:$0xff]  }
  0xa5   :  { %3597 = vmatprep.mubr.bf16.mxu0 %v6836_v62  ;;  %4421 = vmatprep.mubr.bf16.mxu1 %v6836_v62  ;;  %v6913_v62 = vld [vmem:[%s9280_s1 + $0x6c8] ss:$16 sps:$4 sm:$0xff]  }
  0xa7   :  { %3637 = vmatpush1.bf16.msra.mxu0 %v6815_v63  ;;  %4461 = vmatpush1.bf16.msra.mxu1 %v6818_v0  ;;  %v6931_v63 = vld [vmem:[%s9281_s0 + $0x178] ss:$60 sps:$4 sm:$0xff]  }
  0xa8   :  { %3638 = vmatprep.subr.bf16.mxu0 %v6825_v1  ;;  %4462 = vmatprep.subr.bf16.mxu1 %v6828_v2  ;;  %v6919_v0 = vld [vmem:[%s9280_s1 + $0x6e4] ss:$16 sps:$4 sm:$0xff]   ;;  %v6922_v1 = vld [vmem:[%s9280_s1 + $0x6ec] ss:$16 sps:$4 sm:$0xff]  }
  0xa9   :  { %v6938_v2 = vld [vmem:[%s9281_s0 + $0x1f4] ss:$60 sps:$4 sm:$0xff]  }
  0xaa   :  { %3598 = vmatmul.mubr.bf16.gmra.mrb[20].mxu0 %v6844_v4  ;;  %4422 = vmatmul.mubr.bf16.gmra.mrb[20].mxu1 %v6844_v4  ;;  %v6920_v4 = vld [vmem:[%s9280_s1 + $0x6e8] ss:$16 sps:$4 sm:$0xff]  }
  0xab   :  { %3639 = vmatpush1.bf16.msra.mxu0 %v6823_v3  ;;  %4463 = vmatpush1.bf16.msra.mxu1 %v6826_v5  ;;  %v6917_v3 = vld [vmem:[%s9280_s1 + $0x6e0] ss:$16 sps:$4 sm:$0xff]   ;;  %v6927_v5 = vld [vmem:[%s9280_s1 + $0x704] ss:$16 sps:$4 sm:$0xff]  }
  0xac   :  { %3640 = vmatprep.subr.bf16.mxu0 %v6832_v6  ;;  %4464 = vmatprep.subr.bf16.mxu1 %v6835_v7  ;;  %v6930_v6 = vld [vmem:[%s9280_s1 + $0x70c] ss:$16 sps:$4 sm:$0xff]   ;;  %v6925_v7 = vld [vmem:[%s9280_s1 + $0x700] ss:$16 sps:$4 sm:$0xff]  }
  0xad   :  { %3607 = vmatprep.mubr.bf16.mxu0 %v6851_v8  ;;  %4431 = vmatprep.mubr.bf16.mxu1 %v6851_v8  ;;  %v6928_v8 = vld [vmem:[%s9280_s1 + $0x708] ss:$16 sps:$4 sm:$0xff]  }
  0xaf   :  { %3641 = vmatpush1.bf16.msra.mxu0 %v6830_v9  ;;  %4465 = vmatpush1.bf16.msra.mxu1 %v6833_v10  ;;  %v6946_v9 = vld [vmem:[%s9281_s0 + $0x1f0] ss:$60 sps:$4 sm:$0xff]   ;;  %v6934_v10 = vld [vmem:[%s9280_s1 + $0x724] ss:$16 sps:$4 sm:$0xff]  }
  0xb0   :  { %3642 = vmatprep.subr.bf16.mxu0 %v6840_v11  ;;  %4466 = vmatprep.subr.bf16.mxu1 %v6843_v12  ;;  %v6937_v11 = vld [vmem:[%s9280_s1 + $0x72c] ss:$16 sps:$4 sm:$0xff]  }
  0xb1   :  { %v6953_v12 = vld [vmem:[%s9281_s0 + $0x26c] ss:$60 sps:$4 sm:$0xff]  }
  0xb2   :  { %3608 = vmatmul.mubr.bf16.gmra.mrb[24].mxu0 %v6859_v15  ;;  %4432 = vmatmul.mubr.bf16.gmra.mrb[24].mxu1 %v6859_v15  ;;  %v6942_v15 = vld [vmem:[%s9280_s1 + $0x744] ss:$16 sps:$4 sm:$0xff]  }
  0xb3   :  { %3643 = vmatpush1.bf16.msra.mxu0 %v6838_v13  ;;  %4467 = vmatpush1.bf16.msra.mxu1 %v6841_v14  ;;  %v6932_v13 = vld [vmem:[%s9280_s1 + $0x720] ss:$16 sps:$4 sm:$0xff]   ;;  %v6935_v14 = vld [vmem:[%s9280_s1 + $0x728] ss:$16 sps:$4 sm:$0xff]  }
  0xb4   :  { %3644 = vmatprep.subr.bf16.mxu0 %v6847_v16  ;;  %4468 = vmatprep.subr.bf16.mxu1 %v6850_v17  ;;  %v6945_v16 = vld [vmem:[%s9280_s1 + $0x74c] ss:$16 sps:$4 sm:$0xff]   ;;  %v6940_v17 = vld [vmem:[%s9280_s1 + $0x740] ss:$16 sps:$4 sm:$0xff]  }
  0xb5   :  { %3650 = vmatprep.mubr.bf16.mxu0 %v6868_v18  ;;  %4474 = vmatprep.mubr.bf16.mxu1 %v6868_v18  ;;  %v6961_v18 = vld [vmem:[%s9281_s0 + $0x268] ss:$60 sps:$4 sm:$0xff]  }
  0xb7   :  { %3645 = vmatpush1.bf16.msra.mxu0 %v6845_v19  ;;  %4469 = vmatpush1.bf16.msra.mxu1 %v6848_v20  ;;  %v6943_v19 = vld [vmem:[%s9280_s1 + $0x748] ss:$16 sps:$4 sm:$0xff]   ;;  %v6949_v20 = vld [vmem:[%s9280_s1 + $0x764] ss:$16 sps:$4 sm:$0xff]  }
  0xb8   :  { %3646 = vmatprep.subr.bf16.mxu0 %v6855_v21  ;;  %4470 = vmatprep.subr.bf16.mxu1 %v6858_v22  ;;  %v6952_v21 = vld [vmem:[%s9280_s1 + $0x76c] ss:$16 sps:$4 sm:$0xff]   ;;  %v6968_v22 = vld [vmem:[%s9281_s0 + $0x2e4] ss:$60 sps:$4 sm:$0xff]  }
  0xbb   :  { %3647 = vmatpush1.bf16.msra.mxu0 %v6853_v23  ;;  %4471 = vmatpush1.bf16.msra.mxu1 %v6856_v24  ;;  %v6947_v23 = vld [vmem:[%s9280_s1 + $0x760] ss:$16 sps:$4 sm:$0xff]   ;;  %v6950_v24 = vld [vmem:[%s9280_s1 + $0x768] ss:$16 sps:$4 sm:$0xff]  }
  0xbc   :  { %3648 = vmatprep.subr.bf16.mxu0 %v6862_v25  ;;  %4472 = vmatprep.subr.bf16.mxu1 %v6865_v26  ;;  %v6957_v25 = vld [vmem:[%s9280_s1 + $0x784] ss:$16 sps:$4 sm:$0xff]   ;;  %v6960_v26 = vld [vmem:[%s9280_s1 + $0x78c] ss:$16 sps:$4 sm:$0xff]  }
  0xbf   :  { %3649 = vmatpush1.bf16.msra.mxu0 %v6860_v27  ;;  %4473 = vmatpush1.bf16.msra.mxu1 %v6863_v28  ;;  %v6955_v27 = vld [vmem:[%s9280_s1 + $0x780] ss:$16 sps:$4 sm:$0xff]  }
  0xc0   :  { %3721 = vmatprep.subr.bf16.mxu0 %v6871_v29  ;;  %4545 = vmatprep.subr.bf16.mxu1 %v6874_v30  ;;  %v6976_v28 = vld [vmem:[%s9281_s0 + $0x2e0] ss:$60 sps:$4 sm:$0xff]   ;;  %v6958_v29 = vld [vmem:[%s9280_s1 + $0x788] ss:$16 sps:$4 sm:$0xff]   ;;  %v6964_v30 = vld [vmem:[%s9280_s1 + $0x7a4] ss:$16 sps:$4 sm:$0xff]  }
  0xc2   :  { %3651 = vmatmul.mubr.bf16.vlgmr.msra.gmra.mrb[0].mxu0 %v6866_v31  ;;  %4475 = vmatmul.mubr.bf16.vlgmr.msra.gmra.mrb[0].mxu1 %v6866_v31  ;;  %v6967_v31 = vld [vmem:[%s9280_s1 + $0x7ac] ss:$16 sps:$4 sm:$0xff]  }
  0xc3   :  { %3722 = vmatpush1.bf16.msra.mxu0 %v6869_v32  ;;  %4546 = vmatpush1.bf16.msra.mxu1 %v6872_v33  ;;  %v6985_v32 = vld [vmem:[%s9281_s0 + $0x1c] ss:$60 sps:$4 sm:$0xff]   ;;  %v6962_v33 = vld [vmem:[%s9280_s1 + $0x7a0] ss:$16 sps:$4 sm:$0xff]  }
  0xc4   :  { %3723 = vmatprep.subr.bf16.mxu0 %v6877_v34  ;;  %4547 = vmatprep.subr.bf16.mxu1 %v6880_v35  ;;  %v6965_v34 = vld [vmem:[%s9280_s1 + $0x7a8] ss:$16 sps:$4 sm:$0xff]   ;;  %v6972_v35 = vld [vmem:[%s9280_s1 + $0x7c4] ss:$16 sps:$4 sm:$0xff]  }
  0xc5   :  { %3660 = vmatprep.mubr.bf16.mxu0 %v6893_v36  ;;  %4484 = vmatprep.mubr.bf16.mxu1 %v6893_v36  ;;  %v6975_v36 = vld [vmem:[%s9280_s1 + $0x7cc] ss:$16 sps:$4 sm:$0xff]  }
  0xc7   :  { %3724 = vmatpush1.bf16.msra.mxu0 %v6875_v37  ;;  %4548 = vmatpush1.bf16.msra.mxu1 %v6878_v38  ;;  %v6970_v37 = vld [vmem:[%s9280_s1 + $0x7c0] ss:$16 sps:$4 sm:$0xff]   ;;  %v6973_v38 = vld [vmem:[%s9280_s1 + $0x7c8] ss:$16 sps:$4 sm:$0xff]  }
  0xc8   :  { %3725 = vmatprep.subr.bf16.mxu0 %v6883_v39  ;;  %4549 = vmatprep.subr.bf16.mxu1 %v6886_v40  ;;  %v6979_v39 = vld [vmem:[%s9280_s1 + $0x7e4] ss:$16 sps:$4 sm:$0xff]   ;;  %v6982_v40 = vld [vmem:[%s9280_s1 + $0x7ec] ss:$16 sps:$4 sm:$0xff]  }
  0xca   :  { %3661 = vmatmul.mubr.bf16.gmra.mrb[4].mxu0 %v6901_v43  ;;  %4485 = vmatmul.mubr.bf16.gmra.mrb[4].mxu1 %v6901_v43  ;;  %v6988_v43 = vld [vmem:[%s9280_s1 + $0x804] ss:$16 sps:$4 sm:$0xff]  }
  0xcb   :  { %3726 = vmatpush1.bf16.msra.mxu0 %v6881_v41  ;;  %4550 = vmatpush1.bf16.msra.mxu1 %v6884_v42  ;;  %v6977_v41 = vld [vmem:[%s9280_s1 + $0x7e0] ss:$16 sps:$4 sm:$0xff]   ;;  %v6980_v42 = vld [vmem:[%s9280_s1 + $0x7e8] ss:$16 sps:$4 sm:$0xff]  }
  0xcc   :  { %3727 = vmatprep.subr.bf16.mxu0 %v6889_v44  ;;  %4551 = vmatprep.subr.bf16.mxu1 %v6892_v45  ;;  %v6991_v44 = vld [vmem:[%s9280_s1 + $0x80c] ss:$16 sps:$4 sm:$0xff]   ;;  %v6983_v45 = vld [vmem:[%s9281_s0 + $0x18] ss:$60 sps:$4 sm:$0xff]  }
  0xcd   :  { %3670 = vmatprep.mubr.bf16.mxu0 %v6908_v46  ;;  %4494 = vmatprep.mubr.bf16.mxu1 %v6908_v46  ;;  %v6986_v46 = vld [vmem:[%s9280_s1 + $0x800] ss:$16 sps:$4 sm:$0xff]  }
  0xcf   :  { %3728 = vmatpush1.bf16.msra.mxu0 %v6887_v47  ;;  %4552 = vmatpush1.bf16.msra.mxu1 %v6890_v48  ;;  %v6989_v47 = vld [vmem:[%s9280_s1 + $0x808] ss:$16 sps:$4 sm:$0xff]   ;;  %v6994_v48 = vld [vmem:[%s9280_s1 + $0x824] ss:$16 sps:$4 sm:$0xff]  }
  0xd0   :  { %3729 = vmatprep.subr.bf16.mxu0 %v6897_v49  ;;  %4553 = vmatprep.subr.bf16.mxu1 %v6900_v50  ;;  %v6997_v49 = vld [vmem:[%s9280_s1 + $0x82c] ss:$16 sps:$4 sm:$0xff]   ;;  %v7010_v50 = vld [vmem:[%s9281_s0 + $0x94] ss:$60 sps:$4 sm:$0xff]  }
  0xd2   :  { %3671 = vmatmul.mubr.bf16.gmra.mrb[8].mxu0 %v6916_v53  ;;  %4495 = vmatmul.mubr.bf16.gmra.mrb[8].mxu1 %v6916_v53  ;;  %v7000_v53 = vld [vmem:[%s9280_s1 + $0x844] ss:$16 sps:$4 sm:$0xff]  }
  0xd3   :  { %3730 = vmatpush1.bf16.msra.mxu0 %v6895_v51  ;;  %4554 = vmatpush1.bf16.msra.mxu1 %v6898_v52  ;;  %v6992_v51 = vld [vmem:[%s9280_s1 + $0x820] ss:$16 sps:$4 sm:$0xff]   ;;  %v6995_v52 = vld [vmem:[%s9280_s1 + $0x828] ss:$16 sps:$4 sm:$0xff]  }
  0xd4   :  { %3731 = vmatprep.subr.bf16.mxu0 %v6904_v54  ;;  %4555 = vmatprep.subr.bf16.mxu1 %v6907_v55  ;;  %v7003_v54 = vld [vmem:[%s9280_s1 + $0x84c] ss:$16 sps:$4 sm:$0xff]   ;;  %v6998_v55 = vld [vmem:[%s9280_s1 + $0x840] ss:$16 sps:$4 sm:$0xff]  }
  0xd5   :  { %3680 = vmatprep.mubr.bf16.mxu0 %v6923_v56  ;;  %4504 = vmatprep.mubr.bf16.mxu1 %v6923_v56  ;;  %v7018_v56 = vld [vmem:[%s9281_s0 + $0x90] ss:$60 sps:$4 sm:$0xff]  }
  0xd7   :  { %3732 = vmatpush1.bf16.msra.mxu0 %v6902_v57  ;;  %4556 = vmatpush1.bf16.msra.mxu1 %v6905_v58  ;;  %v7001_v57 = vld [vmem:[%s9280_s1 + $0x848] ss:$16 sps:$4 sm:$0xff]   ;;  %v7006_v58 = vld [vmem:[%s9280_s1 + $0x864] ss:$16 sps:$4 sm:$0xff]  }
  0xd8   :  { %3733 = vmatprep.subr.bf16.mxu0 %v6912_v59  ;;  %4557 = vmatprep.subr.bf16.mxu1 %v6915_v60  ;;  %v7009_v59 = vld [vmem:[%s9280_s1 + $0x86c] ss:$16 sps:$4 sm:$0xff]  }
  0xd9   :  { %v7025_v60 = vld [vmem:[%s9281_s0 + $0x10c] ss:$60 sps:$4 sm:$0xff]  }
  0xda   :  { %3681 = vmatmul.mubr.bf16.gmra.mrb[12].mxu0 %v6931_v63  ;;  %4505 = vmatmul.mubr.bf16.gmra.mrb[12].mxu1 %v6931_v63  ;;  %v7014_v63 = vld [vmem:[%s9280_s1 + $0x884] ss:$16 sps:$4 sm:$0xff]  }
  0xdb   :  { %3734 = vmatpush1.bf16.msra.mxu0 %v6910_v61  ;;  %4558 = vmatpush1.bf16.msra.mxu1 %v6913_v62  ;;  %v7004_v61 = vld [vmem:[%s9280_s1 + $0x860] ss:$16 sps:$4 sm:$0xff]   ;;  %v7007_v62 = vld [vmem:[%s9280_s1 + $0x868] ss:$16 sps:$4 sm:$0xff]  }
  0xdc   :  { %3735 = vmatprep.subr.bf16.mxu0 %v6919_v0  ;;  %4559 = vmatprep.subr.bf16.mxu1 %v6922_v1  ;;  %v7017_v0 = vld [vmem:[%s9280_s1 + $0x88c] ss:$16 sps:$4 sm:$0xff]   ;;  %v7012_v1 = vld [vmem:[%s9280_s1 + $0x880] ss:$16 sps:$4 sm:$0xff]  }
  0xdd   :  { %3690 = vmatprep.mubr.bf16.mxu0 %v6938_v2  ;;  %4514 = vmatprep.mubr.bf16.mxu1 %v6938_v2  ;;  %v7033_v2 = vld [vmem:[%s9281_s0 + $0x108] ss:$60 sps:$4 sm:$0xff]  }
  0xdf   :  { %3736 = vmatpush1.bf16.msra.mxu0 %v6917_v3  ;;  %4560 = vmatpush1.bf16.msra.mxu1 %v6920_v4  ;;  %v7015_v3 = vld [vmem:[%s9280_s1 + $0x888] ss:$16 sps:$4 sm:$0xff]   ;;  %v7021_v4 = vld [vmem:[%s9280_s1 + $0x8a4] ss:$16 sps:$4 sm:$0xff]  }
  0xe0   :  { %3737 = vmatprep.subr.bf16.mxu0 %v6927_v5  ;;  %4561 = vmatprep.subr.bf16.mxu1 %v6930_v6  ;;  %v7024_v5 = vld [vmem:[%s9280_s1 + $0x8ac] ss:$16 sps:$4 sm:$0xff]   ;;  %v7040_v6 = vld [vmem:[%s9281_s0 + $0x184] ss:$60 sps:$4 sm:$0xff]  }
  0xe2   :  { %3691 = vmatmul.mubr.bf16.gmra.mrb[16].mxu0 %v6946_v9  ;;  %4515 = vmatmul.mubr.bf16.gmra.mrb[16].mxu1 %v6946_v9  ;;  %v7029_v9 = vld [vmem:[%s9280_s1 + $0x8c4] ss:$16 sps:$4 sm:$0xff]  }
  0xe3   :  { %3738 = vmatpush1.bf16.msra.mxu0 %v6925_v7  ;;  %4562 = vmatpush1.bf16.msra.mxu1 %v6928_v8  ;;  %v7019_v7 = vld [vmem:[%s9280_s1 + $0x8a0] ss:$16 sps:$4 sm:$0xff]   ;;  %v7022_v8 = vld [vmem:[%s9280_s1 + $0x8a8] ss:$16 sps:$4 sm:$0xff]  }
  0xe4   :  { %3739 = vmatprep.subr.bf16.mxu0 %v6934_v10  ;;  %4563 = vmatprep.subr.bf16.mxu1 %v6937_v11  ;;  %v7032_v10 = vld [vmem:[%s9280_s1 + $0x8cc] ss:$16 sps:$4 sm:$0xff]   ;;  %v7027_v11 = vld [vmem:[%s9280_s1 + $0x8c0] ss:$16 sps:$4 sm:$0xff]  }
  0xe5   :  { %3700 = vmatprep.mubr.bf16.mxu0 %v6953_v12  ;;  %4524 = vmatprep.mubr.bf16.mxu1 %v6953_v12  ;;  %v7030_v12 = vld [vmem:[%s9280_s1 + $0x8c8] ss:$16 sps:$4 sm:$0xff]  }
  0xe7   :  { %3740 = vmatpush1.bf16.msra.mxu0 %v6932_v13  ;;  %4564 = vmatpush1.bf16.msra.mxu1 %v6935_v14  ;;  %v7048_v13 = vld [vmem:[%s9281_s0 + $0x180] ss:$60 sps:$4 sm:$0xff]   ;;  %v7036_v14 = vld [vmem:[%s9280_s1 + $0x8e4] ss:$16 sps:$4 sm:$0xff]  }
  0xe8   :  { %3741 = vmatprep.subr.bf16.mxu0 %v6942_v15  ;;  %4565 = vmatprep.subr.bf16.mxu1 %v6945_v16  ;;  %v7039_v15 = vld [vmem:[%s9280_s1 + $0x8ec] ss:$16 sps:$4 sm:$0xff]  }
  0xe9   :  { %v7055_v16 = vld [vmem:[%s9281_s0 + $0x1fc] ss:$60 sps:$4 sm:$0xff]  }
  0xea   :  { %3701 = vmatmul.mubr.bf16.gmra.mrb[20].mxu0 %v6961_v18  ;;  %4525 = vmatmul.mubr.bf16.gmra.mrb[20].mxu1 %v6961_v18  ;;  %v7037_v18 = vld [vmem:[%s9280_s1 + $0x8e8] ss:$16 sps:$4 sm:$0xff]  }
  0xeb   :  { %3742 = vmatpush1.bf16.msra.mxu0 %v6940_v17  ;;  %4566 = vmatpush1.bf16.msra.mxu1 %v6943_v19  ;;  %v7034_v17 = vld [vmem:[%s9280_s1 + $0x8e0] ss:$16 sps:$4 sm:$0xff]   ;;  %v7044_v19 = vld [vmem:[%s9280_s1 + $0x904] ss:$16 sps:$4 sm:$0xff]  }
  0xec   :  { %3743 = vmatprep.subr.bf16.mxu0 %v6949_v20  ;;  %4567 = vmatprep.subr.bf16.mxu1 %v6952_v21  ;;  %v7047_v20 = vld [vmem:[%s9280_s1 + $0x90c] ss:$16 sps:$4 sm:$0xff]   ;;  %v7042_v21 = vld [vmem:[%s9280_s1 + $0x900] ss:$16 sps:$4 sm:$0xff]  }
  0xed   :  { %3710 = vmatprep.mubr.bf16.mxu0 %v6968_v22  ;;  %4534 = vmatprep.mubr.bf16.mxu1 %v6968_v22  ;;  %v7045_v22 = vld [vmem:[%s9280_s1 + $0x908] ss:$16 sps:$4 sm:$0xff]  }
  0xef   :  { %3744 = vmatpush1.bf16.msra.mxu0 %v6947_v23  ;;  %4568 = vmatpush1.bf16.msra.mxu1 %v6950_v24  ;;  %v7063_v23 = vld [vmem:[%s9281_s0 + $0x1f8] ss:$60 sps:$4 sm:$0xff]  }
  0xf0   :  { %3745 = vmatprep.subr.bf16.mxu0 %v6957_v25  ;;  %4569 = vmatprep.subr.bf16.mxu1 %v6960_v26  ;;  %v7051_v24 = vld [vmem:[%s9280_s1 + $0x924] ss:$16 sps:$4 sm:$0xff]   ;;  %v7054_v25 = vld [vmem:[%s9280_s1 + $0x92c] ss:$16 sps:$4 sm:$0xff]  }
  0xf1   :  { %v7070_v26 = vld [vmem:[%s9281_s0 + $0x274] ss:$60 sps:$4 sm:$0xff]  }
  0xf2   :  { %3711 = vmatmul.mubr.bf16.gmra.mrb[24].mxu0 %v6976_v28  ;;  %4535 = vmatmul.mubr.bf16.gmra.mrb[24].mxu1 %v6976_v28  ;;  %v7052_v28 = vld [vmem:[%s9280_s1 + $0x928] ss:$16 sps:$4 sm:$0xff]  }
  0xf3   :  { %3746 = vmatpush1.bf16.msra.mxu0 %v6955_v27  ;;  %4570 = vmatpush1.bf16.msra.mxu1 %v6958_v29  ;;  %v7049_v27 = vld [vmem:[%s9280_s1 + $0x920] ss:$16 sps:$4 sm:$0xff]   ;;  %v7059_v29 = vld [vmem:[%s9280_s1 + $0x944] ss:$16 sps:$4 sm:$0xff]  }
  0xf4   :  { %3747 = vmatprep.subr.bf16.mxu0 %v6964_v30  ;;  %4571 = vmatprep.subr.bf16.mxu1 %v6967_v31  ;;  %v7062_v30 = vld [vmem:[%s9280_s1 + $0x94c] ss:$16 sps:$4 sm:$0xff]   ;;  %v7057_v31 = vld [vmem:[%s9280_s1 + $0x940] ss:$16 sps:$4 sm:$0xff]  }
  0xf5   :  { %3753 = vmatprep.mubr.bf16.mxu0 %v6985_v32  ;;  %4577 = vmatprep.mubr.bf16.mxu1 %v6985_v32  ;;  %v7060_v32 = vld [vmem:[%s9280_s1 + $0x948] ss:$16 sps:$4 sm:$0xff]  }
  0xf7   :  { %3748 = vmatpush1.bf16.msra.mxu0 %v6962_v33  ;;  %4572 = vmatpush1.bf16.msra.mxu1 %v6965_v34  ;;  %v7078_v33 = vld [vmem:[%s9281_s0 + $0x270] ss:$60 sps:$4 sm:$0xff]   ;;  %v7066_v34 = vld [vmem:[%s9280_s1 + $0x964] ss:$16 sps:$4 sm:$0xff]  }
  0xf8   :  { %3749 = vmatprep.subr.bf16.mxu0 %v6972_v35  ;;  %4573 = vmatprep.subr.bf16.mxu1 %v6975_v36  ;;  %v7069_v35 = vld [vmem:[%s9280_s1 + $0x96c] ss:$16 sps:$4 sm:$0xff]  }
  0xf9   :  { %v7085_v36 = vld [vmem:[%s9281_s0 + $0x2ec] ss:$60 sps:$4 sm:$0xff]  }
  0xfb   :  { %3750 = vmatpush1.bf16.msra.mxu0 %v6970_v37  ;;  %4574 = vmatpush1.bf16.msra.mxu1 %v6973_v38  ;;  %v7064_v37 = vld [vmem:[%s9280_s1 + $0x960] ss:$16 sps:$4 sm:$0xff]   ;;  %v7067_v38 = vld [vmem:[%s9280_s1 + $0x968] ss:$16 sps:$4 sm:$0xff]  }
  0xfc   :  { %3751 = vmatprep.subr.bf16.mxu0 %v6979_v39  ;;  %4575 = vmatprep.subr.bf16.mxu1 %v6982_v40  ;;  %v7074_v39 = vld [vmem:[%s9280_s1 + $0x984] ss:$16 sps:$4 sm:$0xff]   ;;  %v7077_v40 = vld [vmem:[%s9280_s1 + $0x98c] ss:$16 sps:$4 sm:$0xff]  }
  0xff   :  { %3752 = vmatpush1.bf16.msra.mxu0 %v6977_v41  ;;  %4576 = vmatpush1.bf16.msra.mxu1 %v6980_v42  ;;  %v7072_v41 = vld [vmem:[%s9280_s1 + $0x980] ss:$16 sps:$4 sm:$0xff]   ;;  %v7075_v42 = vld [vmem:[%s9280_s1 + $0x988] ss:$16 sps:$4 sm:$0xff]  }
 0x100   :  { %3824 = vmatprep.subr.bf16.mxu0 %v6988_v43  ;;  %4648 = vmatprep.subr.bf16.mxu1 %v6991_v44  ;;  %v7093_v43 = vld [vmem:[%s9281_s0 + $0x2e8] ss:$60 sps:$4 sm:$0xff]  }
 0x101   :  { %v7081_v44 = vld [vmem:[%s9280_s1 + $0x9a4] ss:$16 sps:$4 sm:$0xff]  }
 0x102   :  { %3754 = vmatmul.mubr.bf16.vlgmr.msra.gmra.mrb[0].mxu0 %v6983_v45  ;;  %4578 = vmatmul.mubr.bf16.vlgmr.msra.gmra.mrb[0].mxu1 %v6983_v45  ;;  %v7084_v45 = vld [vmem:[%s9280_s1 + $0x9ac] ss:$16 sps:$4 sm:$0xff]  }
 0x103   :  { %3825 = vmatpush1.bf16.msra.mxu0 %v6986_v46  ;;  %4649 = vmatpush1.bf16.msra.mxu1 %v6989_v47  ;;  %v7102_v46 = vld [vmem:[%s9281_s0 + $0x24] ss:$60 sps:$4 sm:$0xff]  }
 0x104   :  { %3826 = vmatprep.subr.bf16.mxu0 %v6994_v48  ;;  %4650 = vmatprep.subr.bf16.mxu1 %v6997_v49  ;;  %v7079_v47 = vld [vmem:[%s9280_s1 + $0x9a0] ss:$16 sps:$4 sm:$0xff]   ;;  %v7082_v48 = vld [vmem:[%s9280_s1 + $0x9a8] ss:$16 sps:$4 sm:$0xff]   ;;  %v7089_v49 = vld [vmem:[%s9280_s1 + $0x9c4] ss:$16 sps:$4 sm:$0xff]  }
 0x105   :  { %3763 = vmatprep.mubr.bf16.mxu0 %v7010_v50  ;;  %4587 = vmatprep.mubr.bf16.mxu1 %v7010_v50  ;;  %v7092_v50 = vld [vmem:[%s9280_s1 + $0x9cc] ss:$16 sps:$4 sm:$0xff]  }
 0x107   :  { %3827 = vmatpush1.bf16.msra.mxu0 %v6992_v51  ;;  %4651 = vmatpush1.bf16.msra.mxu1 %v6995_v52  ;;  %v7087_v51 = vld [vmem:[%s9280_s1 + $0x9c0] ss:$16 sps:$4 sm:$0xff]   ;;  %v7090_v52 = vld [vmem:[%s9280_s1 + $0x9c8] ss:$16 sps:$4 sm:$0xff]  }
 0x108   :  { %3828 = vmatprep.subr.bf16.mxu0 %v7000_v53  ;;  %4652 = vmatprep.subr.bf16.mxu1 %v7003_v54  ;;  %v7096_v53 = vld [vmem:[%s9280_s1 + $0x9e4] ss:$16 sps:$4 sm:$0xff]   ;;  %v7099_v54 = vld [vmem:[%s9280_s1 + $0x9ec] ss:$16 sps:$4 sm:$0xff]  }
 0x10a   :  { %3764 = vmatmul.mubr.bf16.gmra.mrb[4].mxu0 %v7018_v56  ;;  %4588 = vmatmul.mubr.bf16.gmra.mrb[4].mxu1 %v7018_v56  ;;  %v7097_v56 = vld [vmem:[%s9280_s1 + $0x9e8] ss:$16 sps:$4 sm:$0xff]  }
 0x10b   :  { %3829 = vmatpush1.bf16.msra.mxu0 %v6998_v55  ;;  %4653 = vmatpush1.bf16.msra.mxu1 %v7001_v57  ;;  %v7094_v55 = vld [vmem:[%s9280_s1 + $0x9e0] ss:$16 sps:$4 sm:$0xff]   ;;  %v7105_v57 = vld [vmem:[%s9280_s1 + $0xa04] ss:$16 sps:$4 sm:$0xff]  }
 0x10c   :  { %3830 = vmatprep.subr.bf16.mxu0 %v7006_v58  ;;  %4654 = vmatprep.subr.bf16.mxu1 %v7009_v59  ;;  %v7108_v58 = vld [vmem:[%s9280_s1 + $0xa0c] ss:$16 sps:$4 sm:$0xff]  }
 0x10d   :  { %3773 = vmatprep.mubr.bf16.mxu0 %v7025_v60  ;;  %4597 = vmatprep.mubr.bf16.mxu1 %v7025_v60  ;;  %v7100_v59 = vld [vmem:[%s9281_s0 + $0x20] ss:$60 sps:$4 sm:$0xff]  }
 0x10e   :  { %v7103_v60 = vld [vmem:[%s9280_s1 + $0xa00] ss:$16 sps:$4 sm:$0xff]  }
 0x10f   :  { %3831 = vmatpush1.bf16.msra.mxu0 %v7004_v61  ;;  %4655 = vmatpush1.bf16.msra.mxu1 %v7007_v62  ;;  %v7106_v61 = vld [vmem:[%s9280_s1 + $0xa08] ss:$16 sps:$4 sm:$0xff]   ;;  %v7111_v62 = vld [vmem:[%s9280_s1 + $0xa24] ss:$16 sps:$4 sm:$0xff]  }
 0x110   :  { %3832 = vmatprep.subr.bf16.mxu0 %v7014_v63  ;;  %4656 = vmatprep.subr.bf16.mxu1 %v7017_v0  ;;  %v7114_v63 = vld [vmem:[%s9280_s1 + $0xa2c] ss:$16 sps:$4 sm:$0xff]  }
 0x111   :  { %v7127_v0 = vld [vmem:[%s9281_s0 + $0x9c] ss:$60 sps:$4 sm:$0xff]  }
 0x112   :  { %3774 = vmatmul.mubr.bf16.gmra.mrb[8].mxu0 %v7033_v2  ;;  %4598 = vmatmul.mubr.bf16.gmra.mrb[8].mxu1 %v7033_v2  ;;  %v7112_v2 = vld [vmem:[%s9280_s1 + $0xa28] ss:$16 sps:$4 sm:$0xff]  }
 0x113   :  { %3833 = vmatpush1.bf16.msra.mxu0 %v7012_v1  ;;  %4657 = vmatpush1.bf16.msra.mxu1 %v7015_v3  ;;  %v7109_v1 = vld [vmem:[%s9280_s1 + $0xa20] ss:$16 sps:$4 sm:$0xff]   ;;  %v7117_v3 = vld [vmem:[%s9280_s1 + $0xa44] ss:$16 sps:$4 sm:$0xff]  }
 0x114   :  { %3834 = vmatprep.subr.bf16.mxu0 %v7021_v4  ;;  %4658 = vmatprep.subr.bf16.mxu1 %v7024_v5  ;;  %v7120_v4 = vld [vmem:[%s9280_s1 + $0xa4c] ss:$16 sps:$4 sm:$0xff]   ;;  %v7115_v5 = vld [vmem:[%s9280_s1 + $0xa40] ss:$16 sps:$4 sm:$0xff]  }
 0x115   :  { %3783 = vmatprep.mubr.bf16.mxu0 %v7040_v6  ;;  %4607 = vmatprep.mubr.bf16.mxu1 %v7040_v6  ;;  %v7118_v6 = vld [vmem:[%s9280_s1 + $0xa48] ss:$16 sps:$4 sm:$0xff]  }
 0x117   :  { %3835 = vmatpush1.bf16.msra.mxu0 %v7019_v7  ;;  %4659 = vmatpush1.bf16.msra.mxu1 %v7022_v8  ;;  %v7135_v7 = vld [vmem:[%s9281_s0 + $0x98] ss:$60 sps:$4 sm:$0xff]  }
 0x118   :  { %3836 = vmatprep.subr.bf16.mxu0 %v7029_v9  ;;  %4660 = vmatprep.subr.bf16.mxu1 %v7032_v10  ;;  %v7123_v8 = vld [vmem:[%s9280_s1 + $0xa64] ss:$16 sps:$4 sm:$0xff]   ;;  %v7126_v9 = vld [vmem:[%s9280_s1 + $0xa6c] ss:$16 sps:$4 sm:$0xff]  }
 0x119   :  { %v7142_v10 = vld [vmem:[%s9281_s0 + $0x114] ss:$60 sps:$4 sm:$0xff]  }
 0x11a   :  { %3784 = vmatmul.mubr.bf16.gmra.mrb[12].mxu0 %v7048_v13  ;;  %4608 = vmatmul.mubr.bf16.gmra.mrb[12].mxu1 %v7048_v13  ;;  %v7131_v13 = vld [vmem:[%s9280_s1 + $0xa84] ss:$16 sps:$4 sm:$0xff]  }
 0x11b   :  { %3837 = vmatpush1.bf16.msra.mxu0 %v7027_v11  ;;  %4661 = vmatpush1.bf16.msra.mxu1 %v7030_v12  ;;  %v7121_v11 = vld [vmem:[%s9280_s1 + $0xa60] ss:$16 sps:$4 sm:$0xff]   ;;  %v7124_v12 = vld [vmem:[%s9280_s1 + $0xa68] ss:$16 sps:$4 sm:$0xff]  }
 0x11c   :  { %3838 = vmatprep.subr.bf16.mxu0 %v7036_v14  ;;  %4662 = vmatprep.subr.bf16.mxu1 %v7039_v15  ;;  %v7134_v14 = vld [vmem:[%s9280_s1 + $0xa8c] ss:$16 sps:$4 sm:$0xff]   ;;  %v7129_v15 = vld [vmem:[%s9280_s1 + $0xa80] ss:$16 sps:$4 sm:$0xff]  }
 0x11d   :  { %3793 = vmatprep.mubr.bf16.mxu0 %v7055_v16  ;;  %4617 = vmatprep.mubr.bf16.mxu1 %v7055_v16  ;;  %v7132_v16 = vld [vmem:[%s9280_s1 + $0xa88] ss:$16 sps:$4 sm:$0xff]  }
 0x11f   :  { %3839 = vmatpush1.bf16.msra.mxu0 %v7034_v17  ;;  %4663 = vmatpush1.bf16.msra.mxu1 %v7037_v18  ;;  %v7150_v17 = vld [vmem:[%s9281_s0 + $0x110] ss:$60 sps:$4 sm:$0xff]   ;;  %v7138_v18 = vld [vmem:[%s9280_s1 + $0xaa4] ss:$16 sps:$4 sm:$0xff]  }
 0x120   :  { %3840 = vmatprep.subr.bf16.mxu0 %v7044_v19  ;;  %4664 = vmatprep.subr.bf16.mxu1 %v7047_v20  ;;  %v7141_v19 = vld [vmem:[%s9280_s1 + $0xaac] ss:$16 sps:$4 sm:$0xff]  }
 0x121   :  { %v7157_v20 = vld [vmem:[%s9281_s0 + $0x18c] ss:$60 sps:$4 sm:$0xff]  }
 0x122   :  { %3794 = vmatmul.mubr.bf16.gmra.mrb[16].mxu0 %v7063_v23  ;;  %4618 = vmatmul.mubr.bf16.gmra.mrb[16].mxu1 %v7063_v23  ;;  %v7146_v23 = vld [vmem:[%s9280_s1 + $0xac4] ss:$16 sps:$4 sm:$0xff]  }
 0x123   :  { %3841 = vmatpush1.bf16.msra.mxu0 %v7042_v21  ;;  %4665 = vmatpush1.bf16.msra.mxu1 %v7045_v22  ;;  %v7136_v21 = vld [vmem:[%s9280_s1 + $0xaa0] ss:$16 sps:$4 sm:$0xff]   ;;  %v7139_v22 = vld [vmem:[%s9280_s1 + $0xaa8] ss:$16 sps:$4 sm:$0xff]  }
 0x124   :  { %3842 = vmatprep.subr.bf16.mxu0 %v7051_v24  ;;  %4666 = vmatprep.subr.bf16.mxu1 %v7054_v25  ;;  %v7149_v24 = vld [vmem:[%s9280_s1 + $0xacc] ss:$16 sps:$4 sm:$0xff]   ;;  %v7144_v25 = vld [vmem:[%s9280_s1 + $0xac0] ss:$16 sps:$4 sm:$0xff]  }
 0x125   :  { %3803 = vmatprep.mubr.bf16.mxu0 %v7070_v26  ;;  %4627 = vmatprep.mubr.bf16.mxu1 %v7070_v26  ;;  %v7147_v26 = vld [vmem:[%s9280_s1 + $0xac8] ss:$16 sps:$4 sm:$0xff]  }
 0x127   :  { %3843 = vmatpush1.bf16.msra.mxu0 %v7049_v27  ;;  %4667 = vmatpush1.bf16.msra.mxu1 %v7052_v28  ;;  %v7165_v27 = vld [vmem:[%s9281_s0 + $0x188] ss:$60 sps:$4 sm:$0xff]  }
 0x128   :  { %3844 = vmatprep.subr.bf16.mxu0 %v7059_v29  ;;  %4668 = vmatprep.subr.bf16.mxu1 %v7062_v30  ;;  %v7153_v28 = vld [vmem:[%s9280_s1 + $0xae4] ss:$16 sps:$4 sm:$0xff]   ;;  %v7156_v29 = vld [vmem:[%s9280_s1 + $0xaec] ss:$16 sps:$4 sm:$0xff]  }
 0x129   :  { %v7172_v30 = vld [vmem:[%s9281_s0 + $0x204] ss:$60 sps:$4 sm:$0xff]  }
 0x12a   :  { %3804 = vmatmul.mubr.bf16.gmra.mrb[20].mxu0 %v7078_v33  ;;  %4628 = vmatmul.mubr.bf16.gmra.mrb[20].mxu1 %v7078_v33  ;;  %v7161_v33 = vld [vmem:[%s9280_s1 + $0xb04] ss:$16 sps:$4 sm:$0xff]  }
 0x12b   :  { %3845 = vmatpush1.bf16.msra.mxu0 %v7057_v31  ;;  %4669 = vmatpush1.bf16.msra.mxu1 %v7060_v32  ;;  %v7151_v31 = vld [vmem:[%s9280_s1 + $0xae0] ss:$16 sps:$4 sm:$0xff]   ;;  %v7154_v32 = vld [vmem:[%s9280_s1 + $0xae8] ss:$16 sps:$4 sm:$0xff]  }
 0x12c   :  { %3846 = vmatprep.subr.bf16.mxu0 %v7066_v34  ;;  %4670 = vmatprep.subr.bf16.mxu1 %v7069_v35  ;;  %v7164_v34 = vld [vmem:[%s9280_s1 + $0xb0c] ss:$16 sps:$4 sm:$0xff]   ;;  %v7159_v35 = vld [vmem:[%s9280_s1 + $0xb00] ss:$16 sps:$4 sm:$0xff]  }
 0x12d   :  { %3813 = vmatprep.mubr.bf16.mxu0 %v7085_v36  ;;  %4637 = vmatprep.mubr.bf16.mxu1 %v7085_v36  ;;  %v7162_v36 = vld [vmem:[%s9280_s1 + $0xb08] ss:$16 sps:$4 sm:$0xff]  }
 0x12f   :  { %3847 = vmatpush1.bf16.msra.mxu0 %v7064_v37  ;;  %4671 = vmatpush1.bf16.msra.mxu1 %v7067_v38  ;;  %v7180_v37 = vld [vmem:[%s9281_s0 + $0x200] ss:$60 sps:$4 sm:$0xff]   ;;  %v7168_v38 = vld [vmem:[%s9280_s1 + $0xb24] ss:$16 sps:$4 sm:$0xff]  }
 0x130   :  { %3848 = vmatprep.subr.bf16.mxu0 %v7074_v39  ;;  %4672 = vmatprep.subr.bf16.mxu1 %v7077_v40  ;;  %v7171_v39 = vld [vmem:[%s9280_s1 + $0xb2c] ss:$16 sps:$4 sm:$0xff]  }
 0x131   :  { %v7187_v40 = vld [vmem:[%s9281_s0 + $0x27c] ss:$60 sps:$4 sm:$0xff]  }
 0x132   :  { %3814 = vmatmul.mubr.bf16.gmra.mrb[24].mxu0 %v7093_v43  ;;  %4638 = vmatmul.mubr.bf16.gmra.mrb[24].mxu1 %v7093_v43  ;;  %v7176_v43 = vld [vmem:[%s9280_s1 + $0xb44] ss:$16 sps:$4 sm:$0xff]  }
 0x133   :  { %3849 = vmatpush1.bf16.msra.mxu0 %v7072_v41  ;;  %4673 = vmatpush1.bf16.msra.mxu1 %v7075_v42  ;;  %v7166_v41 = vld [vmem:[%s9280_s1 + $0xb20] ss:$16 sps:$4 sm:$0xff]   ;;  %v7169_v42 = vld [vmem:[%s9280_s1 + $0xb28] ss:$16 sps:$4 sm:$0xff]  }
 0x134   :  { %3850 = vmatprep.subr.bf16.mxu0 %v7081_v44  ;;  %4674 = vmatprep.subr.bf16.mxu1 %v7084_v45  ;;  %v7179_v44 = vld [vmem:[%s9280_s1 + $0xb4c] ss:$16 sps:$4 sm:$0xff]   ;;  %v7195_v45 = vld [vmem:[%s9281_s0 + $0x278] ss:$60 sps:$4 sm:$0xff]  }
 0x135   :  { %3856 = vmatprep.mubr.bf16.mxu0 %v7102_v46  ;;  %4680 = vmatprep.mubr.bf16.mxu1 %v7102_v46  ;;  %v7174_v46 = vld [vmem:[%s9280_s1 + $0xb40] ss:$16 sps:$4 sm:$0xff]  }
 0x137   :  { %3851 = vmatpush1.bf16.msra.mxu0 %v7079_v47  ;;  %4675 = vmatpush1.bf16.msra.mxu1 %v7082_v48  ;;  %v7177_v47 = vld [vmem:[%s9280_s1 + $0xb48] ss:$16 sps:$4 sm:$0xff]   ;;  %v7183_v48 = vld [vmem:[%s9280_s1 + $0xb64] ss:$16 sps:$4 sm:$0xff]  }
 0x138   :  { %3852 = vmatprep.subr.bf16.mxu0 %v7089_v49  ;;  %4676 = vmatprep.subr.bf16.mxu1 %v7092_v50  ;;  %v7186_v49 = vld [vmem:[%s9280_s1 + $0xb6c] ss:$16 sps:$4 sm:$0xff]   ;;  %v7181_v50 = vld [vmem:[%s9280_s1 + $0xb60] ss:$16 sps:$4 sm:$0xff]  }
 0x13b   :  { %3853 = vmatpush1.bf16.msra.mxu0 %v7087_v51  ;;  %4677 = vmatpush1.bf16.msra.mxu1 %v7090_v52  ;;  %v7202_v51 = vld [vmem:[%s9281_s0 + $0x2f4] ss:$60 sps:$4 sm:$0xff]   ;;  %v7184_v52 = vld [vmem:[%s9280_s1 + $0xb68] ss:$16 sps:$4 sm:$0xff]  }
 0x13c   :  { %3854 = vmatprep.subr.bf16.mxu0 %v7096_v53  ;;  %4678 = vmatprep.subr.bf16.mxu1 %v7099_v54  ;;  %v7191_v53 = vld [vmem:[%s9280_s1 + $0xb84] ss:$16 sps:$4 sm:$0xff]   ;;  %v7194_v54 = vld [vmem:[%s9280_s1 + $0xb8c] ss:$16 sps:$4 sm:$0xff]  }
 0x13f   :  { %3855 = vmatpush1.bf16.msra.mxu0 %v7094_v55  ;;  %4679 = vmatpush1.bf16.msra.mxu1 %v7097_v56  ;;  %v7210_v55 = vld [vmem:[%s9281_s0 + $0x2f0] ss:$60 sps:$4 sm:$0xff]  }
 0x140   :  { %3927 = vmatprep.subr.bf16.mxu0 %v7105_v57  ;;  %4751 = vmatprep.subr.bf16.mxu1 %v7108_v58  ;;  %v7189_v56 = vld [vmem:[%s9280_s1 + $0xb80] ss:$16 sps:$4 sm:$0xff]   ;;  %v7192_v57 = vld [vmem:[%s9280_s1 + $0xb88] ss:$16 sps:$4 sm:$0xff]   ;;  %v7198_v58 = vld [vmem:[%s9280_s1 + $0xba4] ss:$16 sps:$4 sm:$0xff]  }
 0x142   :  { %3857 = vmatmul.mubr.bf16.vlgmr.msra.gmra.mrb[0].mxu0 %v7100_v59  ;;  %4681 = vmatmul.mubr.bf16.vlgmr.msra.gmra.mrb[0].mxu1 %v7100_v59  ;;  %v7201_v59 = vld [vmem:[%s9280_s1 + $0xbac] ss:$16 sps:$4 sm:$0xff]  }
 0x143   :  { %3928 = vmatpush1.bf16.msra.mxu0 %v7103_v60  ;;  %4752 = vmatpush1.bf16.msra.mxu1 %v7106_v61  ;;  %v7219_v60 = vld [vmem:[%s9281_s0 + $0x2c] ss:$60 sps:$4 sm:$0xff]   ;;  %v7196_v61 = vld [vmem:[%s9280_s1 + $0xba0] ss:$16 sps:$4 sm:$0xff]  }
 0x144   :  { %3929 = vmatprep.subr.bf16.mxu0 %v7111_v62  ;;  %4753 = vmatprep.subr.bf16.mxu1 %v7114_v63  ;;  %v7199_v62 = vld [vmem:[%s9280_s1 + $0xba8] ss:$16 sps:$4 sm:$0xff]   ;;  %v7206_v63 = vld [vmem:[%s9280_s1 + $0xbc4] ss:$16 sps:$4 sm:$0xff]  }
 0x145   :  { %3866 = vmatprep.mubr.bf16.mxu0 %v7127_v0  ;;  %4690 = vmatprep.mubr.bf16.mxu1 %v7127_v0  ;;  %v7209_v0 = vld [vmem:[%s9280_s1 + $0xbcc] ss:$16 sps:$4 sm:$0xff]  }
 0x147   :  { %3930 = vmatpush1.bf16.msra.mxu0 %v7109_v1  ;;  %4754 = vmatpush1.bf16.msra.mxu1 %v7112_v2  ;;  %v7366_v1 = vmov 0   ;;  %v7204_v2 = vld [vmem:[%s9280_s1 + $0xbc0] ss:$16 sps:$4 sm:$0xff]  }
 0x148   :  { %3931 = vmatprep.subr.bf16.mxu0 %v7117_v3  ;;  %4755 = vmatprep.subr.bf16.mxu1 %v7120_v4  ;;  %v7207_v3 = vld [vmem:[%s9280_s1 + $0xbc8] ss:$16 sps:$4 sm:$0xff]   ;;  %v7213_v4 = vld [vmem:[%s9280_s1 + $0xbe4] ss:$16 sps:$4 sm:$0xff]  }
 0x149   :  { %6534 = vset.pattern.permute.xlu0 %v7366_v1  ;;  %6535 = vset.pattern.permute.xlu1 %v7366_v1 }
 0x14a   :  { %3867 = vmatmul.mubr.bf16.gmra.mrb[4].mxu0 %v7135_v7  ;;  %4691 = vmatmul.mubr.bf16.gmra.mrb[4].mxu1 %v7135_v7  ;;  %v7214_v7 = vld [vmem:[%s9280_s1 + $0xbe8] ss:$16 sps:$4 sm:$0xff]  }
 0x14b   :  { %3932 = vmatpush1.bf16.msra.mxu0 %v7115_v5  ;;  %4756 = vmatpush1.bf16.msra.mxu1 %v7118_v6  ;;  %v7216_v5 = vld [vmem:[%s9280_s1 + $0xbec] ss:$16 sps:$4 sm:$0xff]   ;;  %v7211_v6 = vld [vmem:[%s9280_s1 + $0xbe0] ss:$16 sps:$4 sm:$0xff]  }
 0x14c   :  { %3933 = vmatprep.subr.bf16.mxu0 %v7123_v8  ;;  %4757 = vmatprep.subr.bf16.mxu1 %v7126_v9  ;;  %v7222_v8 = vld [vmem:[%s9280_s1 + $0xc04] ss:$16 sps:$4 sm:$0xff]   ;;  %v7225_v9 = vld [vmem:[%s9280_s1 + $0xc0c] ss:$16 sps:$4 sm:$0xff]  }
 0x14d   :  { %3876 = vmatprep.mubr.bf16.mxu0 %v7142_v10  ;;  %4700 = vmatprep.mubr.bf16.mxu1 %v7142_v10  ;;  %v7217_v10 = vld [vmem:[%s9281_s0 + $0x28] ss:$60 sps:$4 sm:$0xff]  }
 0x14f   :  { %3934 = vmatpush1.bf16.msra.mxu0 %v7121_v11  ;;  %4758 = vmatpush1.bf16.msra.mxu1 %v7124_v12  ;;  %v7220_v11 = vld [vmem:[%s9280_s1 + $0xc00] ss:$16 sps:$4 sm:$0xff]   ;;  %v7223_v12 = vld [vmem:[%s9280_s1 + $0xc08] ss:$16 sps:$4 sm:$0xff]  }
 0x150   :  { %3935 = vmatprep.subr.bf16.mxu0 %v7131_v13  ;;  %4759 = vmatprep.subr.bf16.mxu1 %v7134_v14  ;;  %v7228_v13 = vld [vmem:[%s9280_s1 + $0xc24] ss:$16 sps:$4 sm:$0xff]   ;;  %v7231_v14 = vld [vmem:[%s9280_s1 + $0xc2c] ss:$16 sps:$4 sm:$0xff]  }
 0x152   :  { %3877 = vmatmul.mubr.bf16.gmra.mrb[8].mxu0 %v7150_v17  ;;  %4701 = vmatmul.mubr.bf16.gmra.mrb[8].mxu1 %v7150_v17  ;;  %v7229_v17 = vld [vmem:[%s9280_s1 + $0xc28] ss:$16 sps:$4 sm:$0xff]  }
 0x153   :  { %3936 = vmatpush1.bf16.msra.mxu0 %v7129_v15  ;;  %4760 = vmatpush1.bf16.msra.mxu1 %v7132_v16  ;;  %v7244_v15 = vld [vmem:[%s9281_s0 + $0xa4] ss:$60 sps:$4 sm:$0xff]  }
 0x154   :  { %3937 = vmatprep.subr.bf16.mxu0 %v7138_v18  ;;  %4761 = vmatprep.subr.bf16.mxu1 %v7141_v19  ;;  %v7226_v16 = vld [vmem:[%s9280_s1 + $0xc20] ss:$16 sps:$4 sm:$0xff]   ;;  %v7234_v18 = vld [vmem:[%s9280_s1 + $0xc44] ss:$16 sps:$4 sm:$0xff]   ;;  %v7237_v19 = vld [vmem:[%s9280_s1 + $0xc4c] ss:$16 sps:$4 sm:$0xff]  }
 0x155   :  { %3886 = vmatprep.mubr.bf16.mxu0 %v7157_v20  ;;  %4710 = vmatprep.mubr.bf16.mxu1 %v7157_v20  ;;  %v7246_v20 = vld [vmem:[%s9281_s0 + $0xa0] ss:$60 sps:$4 sm:$0xff]  }
 0x157   :  { %3938 = vmatpush1.bf16.msra.mxu0 %v7136_v21  ;;  %4762 = vmatpush1.bf16.msra.mxu1 %v7139_v22  ;;  %v7232_v21 = vld [vmem:[%s9280_s1 + $0xc40] ss:$16 sps:$4 sm:$0xff]   ;;  %v7235_v22 = vld [vmem:[%s9280_s1 + $0xc48] ss:$16 sps:$4 sm:$0xff]  }
 0x158   :  { %3939 = vmatprep.subr.bf16.mxu0 %v7146_v23  ;;  %4763 = vmatprep.subr.bf16.mxu1 %v7149_v24  ;;  %v7240_v23 = vld [vmem:[%s9280_s1 + $0xc64] ss:$16 sps:$4 sm:$0xff]   ;;  %v7243_v24 = vld [vmem:[%s9280_s1 + $0xc6c] ss:$16 sps:$4 sm:$0xff]  }
 0x15a   :  { %3887 = vmatmul.mubr.bf16.gmra.mrb[12].mxu0 %v7165_v27  ;;  %4711 = vmatmul.mubr.bf16.gmra.mrb[12].mxu1 %v7165_v27  ;;  %v7241_v27 = vld [vmem:[%s9280_s1 + $0xc68] ss:$16 sps:$4 sm:$0xff]  }
 0x15b   :  { %3940 = vmatpush1.bf16.msra.mxu0 %v7144_v25  ;;  %4764 = vmatpush1.bf16.msra.mxu1 %v7147_v26  ;;  %v7259_v25 = vld [vmem:[%s9281_s0 + $0x11c] ss:$60 sps:$4 sm:$0xff]   ;;  %v7238_v26 = vld [vmem:[%s9280_s1 + $0xc60] ss:$16 sps:$4 sm:$0xff]  }
 0x15c   :  { %3941 = vmatprep.subr.bf16.mxu0 %v7153_v28  ;;  %4765 = vmatprep.subr.bf16.mxu1 %v7156_v29  ;;  %v7249_v28 = vld [vmem:[%s9280_s1 + $0xc84] ss:$16 sps:$4 sm:$0xff]   ;;  %v7252_v29 = vld [vmem:[%s9280_s1 + $0xc8c] ss:$16 sps:$4 sm:$0xff]  }
 0x15d   :  { %3896 = vmatprep.mubr.bf16.mxu0 %v7172_v30  ;;  %4720 = vmatprep.mubr.bf16.mxu1 %v7172_v30  ;;  %v7261_v30 = vld [vmem:[%s9281_s0 + $0x118] ss:$60 sps:$4 sm:$0xff]  }
 0x15f   :  { %3942 = vmatpush1.bf16.msra.mxu0 %v7151_v31  ;;  %4766 = vmatpush1.bf16.msra.mxu1 %v7154_v32  ;;  %v7247_v31 = vld [vmem:[%s9280_s1 + $0xc80] ss:$16 sps:$4 sm:$0xff]   ;;  %v7250_v32 = vld [vmem:[%s9280_s1 + $0xc88] ss:$16 sps:$4 sm:$0xff]  }
 0x160   :  { %3943 = vmatprep.subr.bf16.mxu0 %v7161_v33  ;;  %4767 = vmatprep.subr.bf16.mxu1 %v7164_v34  ;;  %v7255_v33 = vld [vmem:[%s9280_s1 + $0xca4] ss:$16 sps:$4 sm:$0xff]   ;;  %v7258_v34 = vld [vmem:[%s9280_s1 + $0xcac] ss:$16 sps:$4 sm:$0xff]  }
 0x162   :  { %3897 = vmatmul.mubr.bf16.gmra.mrb[16].mxu0 %v7180_v37  ;;  %4721 = vmatmul.mubr.bf16.gmra.mrb[16].mxu1 %v7180_v37  ;;  %v7256_v37 = vld [vmem:[%s9280_s1 + $0xca8] ss:$16 sps:$4 sm:$0xff]  }
 0x163   :  { %3944 = vmatpush1.bf16.msra.mxu0 %v7159_v35  ;;  %4768 = vmatpush1.bf16.msra.mxu1 %v7162_v36  ;;  %v7274_v35 = vld [vmem:[%s9281_s0 + $0x194] ss:$60 sps:$4 sm:$0xff]  }
 0x164   :  { %3945 = vmatprep.subr.bf16.mxu0 %v7168_v38  ;;  %4769 = vmatprep.subr.bf16.mxu1 %v7171_v39  ;;  %v7253_v36 = vld [vmem:[%s9280_s1 + $0xca0] ss:$16 sps:$4 sm:$0xff]   ;;  %v7264_v38 = vld [vmem:[%s9280_s1 + $0xcc4] ss:$16 sps:$4 sm:$0xff]   ;;  %v7267_v39 = vld [vmem:[%s9280_s1 + $0xccc] ss:$16 sps:$4 sm:$0xff]  }
 0x165   :  { %3906 = vmatprep.mubr.bf16.mxu0 %v7187_v40  ;;  %4730 = vmatprep.mubr.bf16.mxu1 %v7187_v40  ;;  %v7276_v40 = vld [vmem:[%s9281_s0 + $0x190] ss:$60 sps:$4 sm:$0xff]  }
 0x167   :  { %3946 = vmatpush1.bf16.msra.mxu0 %v7166_v41  ;;  %4770 = vmatpush1.bf16.msra.mxu1 %v7169_v42  ;;  %v7262_v41 = vld [vmem:[%s9280_s1 + $0xcc0] ss:$16 sps:$4 sm:$0xff]   ;;  %v7265_v42 = vld [vmem:[%s9280_s1 + $0xcc8] ss:$16 sps:$4 sm:$0xff]  }
 0x168   :  { %3947 = vmatprep.subr.bf16.mxu0 %v7176_v43  ;;  %4771 = vmatprep.subr.bf16.mxu1 %v7179_v44  ;;  %v7270_v43 = vld [vmem:[%s9280_s1 + $0xce4] ss:$16 sps:$4 sm:$0xff]   ;;  %v7273_v44 = vld [vmem:[%s9280_s1 + $0xcec] ss:$16 sps:$4 sm:$0xff]  }
 0x16a   :  { %3907 = vmatmul.mubr.bf16.gmra.mrb[20].mxu0 %v7195_v45  ;;  %4731 = vmatmul.mubr.bf16.gmra.mrb[20].mxu1 %v7195_v45  ;;  %v7289_v45 = vld [vmem:[%s9281_s0 + $0x20c] ss:$60 sps:$4 sm:$0xff]  }
 0x16b   :  { %3948 = vmatpush1.bf16.msra.mxu0 %v7174_v46  ;;  %4772 = vmatpush1.bf16.msra.mxu1 %v7177_v47  ;;  %v7268_v46 = vld [vmem:[%s9280_s1 + $0xce0] ss:$16 sps:$4 sm:$0xff]   ;;  %v7271_v47 = vld [vmem:[%s9280_s1 + $0xce8] ss:$16 sps:$4 sm:$0xff]  }
 0x16c   :  { %3949 = vmatprep.subr.bf16.mxu0 %v7183_v48  ;;  %4773 = vmatprep.subr.bf16.mxu1 %v7186_v49  ;;  %v7279_v48 = vld [vmem:[%s9280_s1 + $0xd04] ss:$16 sps:$4 sm:$0xff]   ;;  %v7282_v49 = vld [vmem:[%s9280_s1 + $0xd0c] ss:$16 sps:$4 sm:$0xff]  }
 0x16d   :  { %3916 = vmatprep.mubr.bf16.mxu0 %v7202_v51  ;;  %4740 = vmatprep.mubr.bf16.mxu1 %v7202_v51  ;;  %v7277_v51 = vld [vmem:[%s9280_s1 + $0xd00] ss:$16 sps:$4 sm:$0xff]  }
 0x16f   :  { %3950 = vmatpush1.bf16.msra.mxu0 %v7181_v50  ;;  %4774 = vmatpush1.bf16.msra.mxu1 %v7184_v52  ;;  %v7291_v50 = vld [vmem:[%s9281_s0 + $0x208] ss:$60 sps:$4 sm:$0xff]  }
 0x170   :  { %3951 = vmatprep.subr.bf16.mxu0 %v7191_v53  ;;  %4775 = vmatprep.subr.bf16.mxu1 %v7194_v54  ;;  %v7280_v52 = vld [vmem:[%s9280_s1 + $0xd08] ss:$16 sps:$4 sm:$0xff]   ;;  %v7285_v53 = vld [vmem:[%s9280_s1 + $0xd24] ss:$16 sps:$4 sm:$0xff]   ;;  %v7288_v54 = vld [vmem:[%s9280_s1 + $0xd2c] ss:$16 sps:$4 sm:$0xff]  }
 0x172   :  { %3917 = vmatmul.mubr.bf16.gmra.mrb[24].mxu0 %v7210_v55  ;;  %4741 = vmatmul.mubr.bf16.gmra.mrb[24].mxu1 %v7210_v55  ;;  %v7304_v55 = vld [vmem:[%s9281_s0 + $0x284] ss:$60 sps:$4 sm:$0xff]  }
 0x173   :  { %3952 = vmatpush1.bf16.msra.mxu0 %v7189_v56  ;;  %4776 = vmatpush1.bf16.msra.mxu1 %v7192_v57  ;;  %v7283_v56 = vld [vmem:[%s9280_s1 + $0xd20] ss:$16 sps:$4 sm:$0xff]   ;;  %v7286_v57 = vld [vmem:[%s9280_s1 + $0xd28] ss:$16 sps:$4 sm:$0xff]  }
 0x174   :  { %3953 = vmatprep.subr.bf16.mxu0 %v7198_v58  ;;  %4777 = vmatprep.subr.bf16.mxu1 %v7201_v59  ;;  %v7294_v58 = vld [vmem:[%s9280_s1 + $0xd44] ss:$16 sps:$4 sm:$0xff]   ;;  %v7297_v59 = vld [vmem:[%s9280_s1 + $0xd4c] ss:$16 sps:$4 sm:$0xff]  }
 0x175   :  { %3959 = vmatprep.mubr.bf16.mxu0 %v7219_v60  ;;  %4783 = vmatprep.mubr.bf16.mxu1 %v7219_v60  ;;  %v7306_v60 = vld [vmem:[%s9281_s0 + $0x280] ss:$60 sps:$4 sm:$0xff]  }
 0x177   :  { %3954 = vmatpush1.bf16.msra.mxu0 %v7196_v61  ;;  %4778 = vmatpush1.bf16.msra.mxu1 %v7199_v62  ;;  %v7292_v61 = vld [vmem:[%s9280_s1 + $0xd40] ss:$16 sps:$4 sm:$0xff]   ;;  %v7295_v62 = vld [vmem:[%s9280_s1 + $0xd48] ss:$16 sps:$4 sm:$0xff]  }
 0x178   :  { %3955 = vmatprep.subr.bf16.mxu0 %v7206_v63  ;;  %4779 = vmatprep.subr.bf16.mxu1 %v7209_v0  ;;  %v7300_v63 = vld [vmem:[%s9280_s1 + $0xd64] ss:$16 sps:$4 sm:$0xff]   ;;  %v7303_v0 = vld [vmem:[%s9280_s1 + $0xd6c] ss:$16 sps:$4 sm:$0xff]  }
 0x17b   :  { %3956 = vmatpush1.bf16.msra.mxu0 %v7204_v2  ;;  %4780 = vmatpush1.bf16.msra.mxu1 %v7207_v3  ;;  %v7319_v2 = vld [vmem:[%s9281_s0 + $0x2fc] ss:$60 sps:$4 sm:$0xff]   ;;  %v7298_v3 = vld [vmem:[%s9280_s1 + $0xd60] ss:$16 sps:$4 sm:$0xff]  }
 0x17c   :  { %3957 = vmatprep.subr.bf16.mxu0 %v7213_v4  ;;  %4781 = vmatprep.subr.bf16.mxu1 %v7216_v5  ;;  %v7301_v4 = vld [vmem:[%s9280_s1 + $0xd68] ss:$16 sps:$4 sm:$0xff]   ;;  %v5060_v5 = vld [vmem:[%s9282_s3] sm:$0xff] }
 0x17d   :  { %5076 = vperm.xlu0 %6534, %v5060_v5  }
 0x17f   :  { %3958 = vmatpush1.bf16.msra.mxu0 %v7211_v6  ;;  %4782 = vmatpush1.bf16.msra.mxu1 %v7214_v7  ;;  %v5062_v6 = vld [vmem:[%s9282_s3 + $0x10] sm:$0xff] }
 0x180   :  { %4030 = vmatprep.subr.bf16.mxu0 %v7222_v8  ;;  %4854 = vmatprep.subr.bf16.mxu1 %v7225_v9  ;;  %v7309_v7 = vld [vmem:[%s9280_s1 + $0xd84] ss:$16 sps:$4 sm:$0xff]   ;;  %v7312_v8 = vld [vmem:[%s9280_s1 + $0xd8c] ss:$16 sps:$4 sm:$0xff]  }
 0x181   :  { %v7321_v9 = vld [vmem:[%s9281_s0 + $0x2f8] ss:$60 sps:$4 sm:$0xff]   ;;  %5086 = vperm.xlu1 %6535, %v5062_v6  }
 0x182   :  { %3960 = vmatmul.mubr.bf16.vlgmr.msra.gmra.mrb[0].mxu0 %v7217_v10  ;;  %4784 = vmatmul.mubr.bf16.vlgmr.msra.gmra.mrb[0].mxu1 %v7217_v10  ;;  %v7307_v10 = vld [vmem:[%s9280_s1 + $0xd80] ss:$16 sps:$4 sm:$0xff]  }
 0x183   :  { %4031 = vmatpush1.bf16.msra.mxu0 %v7220_v11  ;;  %4855 = vmatpush1.bf16.msra.mxu1 %v7223_v12  ;;  %v7310_v11 = vld [vmem:[%s9280_s1 + $0xd88] ss:$16 sps:$4 sm:$0xff]   ;;  %v7315_v12 = vld [vmem:[%s9280_s1 + $0xda4] ss:$16 sps:$4 sm:$0xff]  }
 0x184   :  { %4032 = vmatprep.subr.bf16.mxu0 %v7228_v13  ;;  %4856 = vmatprep.subr.bf16.mxu1 %v7231_v14  ;;  %v7318_v13 = vld [vmem:[%s9280_s1 + $0xdac] ss:$16 sps:$4 sm:$0xff]   ;;  %v7336_v14 = vld [vmem:[%s9281_s0 + $0x34] ss:$60 sps:$4 sm:$0xff]  }
 0x185   :  { %3969 = vmatprep.mubr.bf16.mxu0 %v7244_v15  ;;  %4793 = vmatprep.mubr.bf16.mxu1 %v7244_v15  ;;  %v7313_v15 = vld [vmem:[%s9280_s1 + $0xda0] ss:$16 sps:$4 sm:$0xff]  }
 0x187   :  { %4033 = vmatpush1.bf16.msra.mxu0 %v7226_v16  ;;  %4857 = vmatpush1.bf16.msra.mxu1 %v7229_v17  ;;  %v7316_v16 = vld [vmem:[%s9280_s1 + $0xda8] ss:$16 sps:$4 sm:$0xff]  }
 0x188   :  { %4034 = vmatprep.subr.bf16.mxu0 %v7234_v18  ;;  %4858 = vmatprep.subr.bf16.mxu1 %v7237_v19  ;;  %v5061_v17 = vld [vmem:[%s9282_s3 + $0x8] sm:$0xff]  ;;  %v5063_v18 = vld [vmem:[%s9282_s3 + $0x18] sm:$0xff]  ;;  %v7324_v19 = vld [vmem:[%s9280_s1 + $0xdc4] ss:$16 sps:$4 sm:$0xff]  }
 0x189   :  { %5081 = vperm.xlu0 %6534, %v5061_v17   ;;  %5091 = vperm.xlu1 %6535, %v5063_v18  }
 0x18a   :  { %3970 = vmatmul.mubr.bf16.gmra.mrb[4].mxu0 %v7246_v20  ;;  %4794 = vmatmul.mubr.bf16.gmra.mrb[4].mxu1 %v7246_v20  ;;  %v7327_v20 = vld [vmem:[%s9280_s1 + $0xdcc] ss:$16 sps:$4 sm:$0xff]  }
 0x18b   :  { %4035 = vmatpush1.bf16.msra.mxu0 %v7232_v21  ;;  %4859 = vmatpush1.bf16.msra.mxu1 %v7235_v22  ;;  %v7322_v21 = vld [vmem:[%s9280_s1 + $0xdc0] ss:$16 sps:$4 sm:$0xff]   ;;  %v7325_v22 = vld [vmem:[%s9280_s1 + $0xdc8] ss:$16 sps:$4 sm:$0xff]  }
 0x18c   :  { %4036 = vmatprep.subr.bf16.mxu0 %v7240_v23  ;;  %4860 = vmatprep.subr.bf16.mxu1 %v7243_v24  ;;  %v5065_v23 = vld [vmem:[%s9282_s3 + $0x28] sm:$0xff]  ;;  %v5064_v24 = vld [vmem:[%s9282_s3 + $0x20] sm:$0xff] }
 0x18d   :  { %3979 = vmatprep.mubr.bf16.mxu0 %v7259_v25  ;;  %4803 = vmatprep.mubr.bf16.mxu1 %v7259_v25  ;;  %v7330_v25 = vld [vmem:[%s9280_s1 + $0xde4] ss:$16 sps:$4 sm:$0xff]  }
 0x18e   :  { %5101 = vperm.xlu1 %6535, %v5065_v23   ;;  %5096 = vperm.xlu0 %6534, %v5064_v24  }
 0x18f   :  { %4037 = vmatpush1.bf16.msra.mxu0 %v7238_v26  ;;  %4861 = vmatpush1.bf16.msra.mxu1 %v7241_v27  ;;  %v7333_v26 = vld [vmem:[%s9280_s1 + $0xdec] ss:$16 sps:$4 sm:$0xff]   ;;  %v578_v27 = vld [vmem:[%s9280_s1 + $0xe00] sm:$0xff] }
 0x190   :  { %4038 = vmatprep.subr.bf16.mxu0 %v7249_v28  ;;  %4862 = vmatprep.subr.bf16.mxu1 %v7252_v29  ;;  %v579_v28 = vld [vmem:[%s9280_s1 + $0xe08] sm:$0xff]  ;;  %v7328_v29 = vld [vmem:[%s9280_s1 + $0xde0] ss:$16 sps:$4 sm:$0xff]  }
 0x192   :  { %3980 = vmatmul.mubr.bf16.gmra.mrb[8].mxu0 %v7261_v30  ;;  %4804 = vmatmul.mubr.bf16.gmra.mrb[8].mxu1 %v7261_v30  ;;  %v7331_v30 = vld [vmem:[%s9280_s1 + $0xde8] ss:$16 sps:$4 sm:$0xff]  }
 0x193   :  { %4039 = vmatpush1.bf16.msra.mxu0 %v7247_v31  ;;  %4863 = vmatpush1.bf16.msra.mxu1 %v7250_v32  ;;  %v6010_v31 = vcombine.high %v578_v27, %v578_v27  ;;  %v5067_v32 = vld [vmem:[%s9282_s3 + $0x38] sm:$0xff] }
 0x194   :  { %4040 = vmatprep.subr.bf16.mxu0 %v7255_v33  ;;  %4864 = vmatprep.subr.bf16.mxu1 %v7258_v34  ;;  %v5066_v33 = vld [vmem:[%s9282_s3 + $0x30] sm:$0xff]  ;;  %v6012_v34 = vcombine.high %v579_v28, %v579_v28 }
 0x195   :  { %3989 = vmatprep.mubr.bf16.mxu0 %v7274_v35  ;;  %4813 = vmatprep.mubr.bf16.mxu1 %v7274_v35  ;;  %v6009_v35 = vcombine.low %v578_v27, %v578_v27 }
 0x196   :  { %5111 = vperm.xlu1 %6535, %v5067_v32   ;;  %5106 = vperm.xlu0 %6534, %v5066_v33  }
 0x197   :  { %4041 = vmatpush1.bf16.msra.mxu0 %v7253_v36  ;;  %4865 = vmatpush1.bf16.msra.mxu1 %v7256_v37  ;;  %v6011_v36 = vcombine.low %v579_v28, %v579_v28  ;;  %v7334_v37 = vld [vmem:[%s9281_s0 + $0x30] ss:$60 sps:$4 sm:$0xff]  }
 0x198   :  { %4042 = vmatprep.subr.bf16.mxu0 %v7264_v38  ;;  %4866 = vmatprep.subr.bf16.mxu1 %v7267_v39  ;;  %v3401_v38 = vsel %vm3399_vm0, %v6009_v35, 0 }
 0x199   :  { %v3407_v39 = vsel %vm3399_vm0, %v6011_v36, 0 }
 0x19a   :  { %3990 = vmatmul.mubr.bf16.gmra.mrb[12].mxu0 %v7276_v40  ;;  %4814 = vmatmul.mubr.bf16.gmra.mrb[12].mxu1 %v7276_v40  ;;  %v7341_v40 = vld [vmem:[%s9281_s0 + $0xac] ss:$60 sps:$4 sm:$0xff]  }
 0x19b   :  { %4043 = vmatpush1.bf16.msra.mxu0 %v7262_v41  ;;  %4867 = vmatpush1.bf16.msra.mxu1 %v7265_v42  ;;  %v5069_v41 = vld [vmem:[%s9282_s3 + $0x48] sm:$0xff]  ;;  %v5068_v42 = vld [vmem:[%s9282_s3 + $0x40] sm:$0xff] }
 0x19c   :  { %4044 = vmatprep.subr.bf16.mxu0 %v7270_v43  ;;  %4868 = vmatprep.subr.bf16.mxu1 %v7273_v44  ;;  %v7343_v43 = vld [vmem:[%s9281_s0 + $0xa8] ss:$60 sps:$4 sm:$0xff]   ;;  %v5071_v44 = vld [vmem:[%s9282_s3 + $0x58] sm:$0xff] }
 0x19d   :  { %3999 = vmatprep.mubr.bf16.mxu0 %v7289_v45  ;;  %4823 = vmatprep.mubr.bf16.mxu1 %v7289_v45  ;;  %v5070_v45 = vld [vmem:[%s9282_s3 + $0x50] sm:$0xff] }
 0x19e   :  { %5121 = vperm.xlu1 %6535, %v5069_v41   ;;  %5116 = vperm.xlu0 %6534, %v5068_v42  }
 0x19f   :  { %4045 = vmatpush1.bf16.msra.mxu0 %v7268_v46  ;;  %4869 = vmatpush1.bf16.msra.mxu1 %v7271_v47  ;;  %v7344_v46 = vld [vmem:[%s9281_s0 + $0x124] ss:$60 sps:$4 sm:$0xff]   ;;  %v5073_v47 = vld [vmem:[%s9282_s3 + $0x68] sm:$0xff] }
 0x1a0   :  { %4046 = vmatprep.subr.bf16.mxu0 %v7279_v48  ;;  %4870 = vmatprep.subr.bf16.mxu1 %v7282_v49  ;;  %v5072_v48 = vld [vmem:[%s9282_s3 + $0x60] sm:$0xff] }
 0x1a1   :  { %v7346_v49 = vld [vmem:[%s9281_s0 + $0x120] ss:$60 sps:$4 sm:$0xff]  }
 0x1a2   :  { %4000 = vmatmul.mubr.bf16.gmra.mrb[16].mxu0 %v7291_v50  ;;  %4824 = vmatmul.mubr.bf16.gmra.mrb[16].mxu1 %v7291_v50  ;;  %v7347_v50 = vld [vmem:[%s9281_s0 + $0x19c] ss:$60 sps:$4 sm:$0xff]  }
 0x1a3   :  { %4047 = vmatpush1.bf16.msra.mxu0 %v7277_v51  ;;  %4871 = vmatpush1.bf16.msra.mxu1 %v7280_v52  ;;  %v7349_v51 = vld [vmem:[%s9281_s0 + $0x198] ss:$60 sps:$4 sm:$0xff]  }
 0x1a4   :  { %4048 = vmatprep.subr.bf16.mxu0 %v7285_v53  ;;  %4872 = vmatprep.subr.bf16.mxu1 %v7288_v54  ;;  %v7350_v52 = vld [vmem:[%s9281_s0 + $0x214] ss:$60 sps:$4 sm:$0xff]   ;;  %v7353_v54 = vld [vmem:[%s9281_s0 + $0x28c] ss:$60 sps:$4 sm:$0xff]  }
 0x1a5   :  { %4009 = vmatprep.mubr.bf16.mxu0 %v7304_v55  ;;  %4833 = vmatprep.mubr.bf16.mxu1 %v7304_v55  ;;  %v7352_v53 = vld [vmem:[%s9281_s0 + $0x210] ss:$60 sps:$4 sm:$0xff]   ;;  %v7355_v55 = vld [vmem:[%s9281_s0 + $0x288] ss:$60 sps:$4 sm:$0xff]  }
 0x1a6   :  { %5131 = vperm.xlu1 %6535, %v5071_v44   ;;  %5126 = vperm.xlu0 %6534, %v5070_v45  }
 0x1a7   :  { %4049 = vmatpush1.bf16.msra.mxu0 %v7283_v56  ;;  %4873 = vmatpush1.bf16.msra.mxu1 %v7286_v57  ;;  %v7356_v56 = vld [vmem:[%s9281_s0 + $0x304] ss:$60 sps:$4 sm:$0xff]  }
 0x1a8   :  { %4050 = vmatprep.subr.bf16.mxu0 %v7294_v58  ;;  %4874 = vmatprep.subr.bf16.mxu1 %v7297_v59  ;;  %v7358_v57 = vld [vmem:[%s9281_s0 + $0x300] ss:$60 sps:$4 sm:$0xff]   ;;  %v7359_v58 = vld [vmem:[%s9281_s0 + $0x38] ss:$60 sps:$4 sm:$0xff]   ;;  %v7360_v59 = vld [vmem:[%s9281_s0 + $0xb0] ss:$60 sps:$4 sm:$0xff]  }
 0x1aa   :  { %4010 = vmatmul.mubr.bf16.gmra.mrb[20].mxu0 %v7306_v60  ;;  %4834 = vmatmul.mubr.bf16.gmra.mrb[20].mxu1 %v7306_v60  ;;  %v7361_v60 = vld [vmem:[%s9281_s0 + $0x128] ss:$60 sps:$4 sm:$0xff]  }
 0x1ab   :  { %4051 = vmatpush1.bf16.msra.mxu0 %v7292_v61  ;;  %4875 = vmatpush1.bf16.msra.mxu1 %v7295_v62  ;;  %v7362_v61 = vld [vmem:[%s9281_s0 + $0x1a0] ss:$60 sps:$4 sm:$0xff]   ;;  %v7363_v62 = vld [vmem:[%s9281_s0 + $0x218] ss:$60 sps:$4 sm:$0xff]  }
 0x1ac   :  { %4052 = vmatprep.subr.bf16.mxu0 %v7300_v63  ;;  %4876 = vmatprep.subr.bf16.mxu1 %v7303_v0  ;;  %v7364_v63 = vld [vmem:[%s9281_s0 + $0x290] ss:$60 sps:$4 sm:$0xff]   ;;  %v7365_v0 = vld [vmem:[%s9281_s0 + $0x308] ss:$60 sps:$4 sm:$0xff]  }
 0x1ad   :  { %4019 = vmatprep.mubr.bf16.mxu0 %v7319_v2  ;;  %4843 = vmatprep.mubr.bf16.mxu1 %v7319_v2  ;;  %v582_v2 = vlaneseq }
 0x1ae   :  { %5141 = vperm.xlu1 %6535, %v5073_v47   ;;  %5136 = vperm.xlu0 %6534, %v5072_v48  }
 0x1af   :  { %4053 = vmatpush1.bf16.msra.mxu0 %v7298_v3  ;;  %4877 = vmatpush1.bf16.msra.mxu1 %v7301_v4  ;;  %v583_v3 = vshrl.u32 %v582_v2, 7 }
 0x1b0   :  { %4054 = vmatprep.subr.bf16.mxu0 %v7309_v7  ;;  %4878 = vmatprep.subr.bf16.mxu1 %v7312_v8  ;;  %v580_v7 = vld [vmem:[%s9283_s2] sm:$0xf] }
 0x1b1   :  { %v584_v5 = vsub.s32 0, %v583_v3  ;;  %v592_v6 = vsub.s32 2, %v583_v3  ;;  %v588_v8 = vsub.s32 1, %v583_v3 }
 0x1b2   :  { %4020 = vmatmul.mubr.bf16.gmra.mrb[24].mxu0 %v7321_v9  ;;  %4844 = vmatmul.mubr.bf16.gmra.mrb[24].mxu1 %v7321_v9  ;;  %v596_v9 = vsub.s32 3, %v583_v3 }
 0x1b3   :  { %4055 = vmatpush1.bf16.msra.mxu0 %v7307_v10  ;;  %4879 = vmatpush1.bf16.msra.mxu1 %v7310_v11  ;;  %v9134_v10 = vrot.slane %v580_v7, %v592_v6  ;;  %v9136_v11 = vrot.slane %v580_v7, %v588_v8 }
 0x1b4   :  { %4056 = vmatprep.subr.bf16.mxu0 %v7315_v12  ;;  %4880 = vmatprep.subr.bf16.mxu1 %v7318_v13  ;;  %v9138_v12 = vrot.slane %v580_v7, %v596_v9 }
 0x1b5   :  { %4062 = vmatprep.mubr.bf16.mxu0 %v7336_v14  ;;  %4886 = vmatprep.mubr.bf16.mxu1 %v7336_v14 }
 0x1b7   :  { %4057 = vmatpush1.bf16.msra.mxu0 %v7313_v15  ;;  %4881 = vmatpush1.bf16.msra.mxu1 %v7316_v16 }
 0x1b8   :  { %4058 = vmatprep.subr.bf16.mxu0 %v7324_v19  ;;  %4882 = vmatprep.subr.bf16.mxu1 %v7327_v20 }
 0x1bb   :  { %4059 = vmatpush1.bf16.msra.mxu0 %v7322_v21  ;;  %4883 = vmatpush1.bf16.msra.mxu1 %v7325_v22 }
 0x1bc   :  { %4060 = vmatprep.subr.bf16.mxu0 %v7330_v25  ;;  %4884 = vmatprep.subr.bf16.mxu1 %v7333_v26 }
 0x1bf   :  { %4061 = vmatpush1.bf16.msra.mxu0 %v7328_v29  ;;  %4885 = vmatpush1.bf16.msra.mxu1 %v7331_v30 }
 0x1c0   :  { %6013 = vmatprep.subr.msk.bf16.mxu0 %vm3399_vm0, %v6010_v31  ;;  %6021 = vmatprep.subr.msk.bf16.mxu1 %vm3399_vm0, %v6012_v34 }
 0x1c2   :  { %4063 = vmatmul.mubr.bf16.vlgmr.msra.gmra.mrb[0].mxu0 %v7334_v37  ;;  %4887 = vmatmul.mubr.bf16.vlgmr.msra.gmra.mrb[0].mxu1 %v7334_v37 }
 0x1c3   :  { %4134 = vmatpush1.bf16.msra.mxu0 %v3401_v38  ;;  %4958 = vmatpush1.bf16.msra.mxu1 %v3407_v39 }
 0x1c4   :  { %4072 = vmatprep.mubr.bf16.mxu0 %v7341_v40  ;;  %4896 = vmatprep.mubr.bf16.mxu1 %v7341_v40 }
 0x1ca   :  { %4073 = vmatmul.mubr.bf16.gmra.mrb[4].mxu0 %v7343_v43  ;;  %4897 = vmatmul.mubr.bf16.gmra.mrb[4].mxu1 %v7343_v43 }
 0x1cb   :  { %4082 = vmatprep.mubr.bf16.mxu0 %v7344_v46  ;;  %4906 = vmatprep.mubr.bf16.mxu1 %v7344_v46 }
 0x1d2   :  { %4083 = vmatmul.mubr.bf16.gmra.mrb[8].mxu0 %v7346_v49  ;;  %4907 = vmatmul.mubr.bf16.gmra.mrb[8].mxu1 %v7346_v49 }
 0x1d3   :  { %4092 = vmatprep.mubr.bf16.mxu0 %v7347_v50  ;;  %4916 = vmatprep.mubr.bf16.mxu1 %v7347_v50 }
 0x1da   :  { %4093 = vmatmul.mubr.bf16.gmra.mrb[12].mxu0 %v7349_v51  ;;  %4917 = vmatmul.mubr.bf16.gmra.mrb[12].mxu1 %v7349_v51 }
 0x1db   :  { %4102 = vmatprep.mubr.bf16.mxu0 %v7350_v52  ;;  %4926 = vmatprep.mubr.bf16.mxu1 %v7350_v52 }
 0x1e2   :  { %4103 = vmatmul.mubr.bf16.gmra.mrb[16].mxu0 %v7352_v53  ;;  %4927 = vmatmul.mubr.bf16.gmra.mrb[16].mxu1 %v7352_v53 }
 0x1e3   :  { %4112 = vmatprep.mubr.bf16.mxu0 %v7353_v54  ;;  %4936 = vmatprep.mubr.bf16.mxu1 %v7353_v54 }
 0x1ea   :  { %4113 = vmatmul.mubr.bf16.gmra.mrb[20].mxu0 %v7355_v55  ;;  %4937 = vmatmul.mubr.bf16.gmra.mrb[20].mxu1 %v7355_v55 }
 0x1eb   :  { %4122 = vmatprep.mubr.bf16.mxu0 %v7356_v56  ;;  %4946 = vmatprep.mubr.bf16.mxu1 %v7356_v56 }
 0x1f2   :  { %4123 = vmatmul.mubr.bf16.gmra.mrb[24].mxu0 %v7358_v57  ;;  %4947 = vmatmul.mubr.bf16.gmra.mrb[24].mxu1 %v7358_v57 }
 0x1f3   :  { %4165 = vmatprep.mubr.bf16.mxu0 %v7366_v1  ;;  %4989 = vmatprep.mubr.bf16.mxu1 %v7366_v1 }
 0x1fa   :  { %6014 = vmatmul.mubr.msk.bf16.vlgmr.msra.gmra.mrb[0].mxu0 %vm3377_vm1, %v7359_v58  ;;  %6022 = vmatmul.mubr.msk.bf16.vlgmr.msra.gmra.mrb[0].mxu1 %vm3377_vm1, %v7359_v58 }
 0x1fb   :  { %4175 = vmatprep.mubr.bf16.mxu0 %v7366_v1  ;;  %4999 = vmatprep.mubr.bf16.mxu1 %v7366_v1 }
 0x1fc   :  { %v5077_v4 = vpop.permute.xlu0 %5076 }
 0x200   :  { %v5087_v42 = vpop.permute.xlu1 %5086 }
 0x202   :  { %6015 = vmatmul.mubr.msk.bf16.gmra.mrb[4].mxu0 %vm3377_vm1, %v7360_v59  ;;  %6023 = vmatmul.mubr.msk.bf16.gmra.mrb[4].mxu1 %vm3377_vm1, %v7360_v59 }
 0x203   :  { %4185 = vmatprep.mubr.bf16.mxu0 %v7366_v1  ;;  %5009 = vmatprep.mubr.bf16.mxu1 %v7366_v1 }
 0x208   :  { %v5082_v13 = vpop.permute.xlu0 %5081  ;;  %v5092_v6 = vpop.permute.xlu1 %5091 }
 0x20a   :  { %6016 = vmatmul.mubr.msk.bf16.gmra.mrb[8].mxu0 %vm3377_vm1, %v7361_v60  ;;  %6024 = vmatmul.mubr.msk.bf16.gmra.mrb[8].mxu1 %vm3377_vm1, %v7361_v60 }
 0x20b   :  { %4195 = vmatprep.mubr.bf16.mxu0 %v7366_v1  ;;  %5019 = vmatprep.mubr.bf16.mxu1 %v7366_v1 }
 0x212   :  { %6017 = vmatmul.mubr.msk.bf16.gmra.mrb[12].mxu0 %vm3377_vm1, %v7362_v61  ;;  %6025 = vmatmul.mubr.msk.bf16.gmra.mrb[12].mxu1 %vm3377_vm1, %v7362_v61 }
 0x213   :  { %4205 = vmatprep.mubr.bf16.mxu0 %v7366_v1  ;;  %5029 = vmatprep.mubr.bf16.mxu1 %v7366_v1 }
 0x21a   :  { %6018 = vmatmul.mubr.msk.bf16.gmra.mrb[16].mxu0 %vm3377_vm1, %v7363_v62  ;;  %6026 = vmatmul.mubr.msk.bf16.gmra.mrb[16].mxu1 %vm3377_vm1, %v7363_v62 }
 0x21b   :  { %4215 = vmatprep.mubr.bf16.mxu0 %v7366_v1  ;;  %5039 = vmatprep.mubr.bf16.mxu1 %v7366_v1 }
 0x222   :  { %6019 = vmatmul.mubr.msk.bf16.gmra.mrb[20].mxu0 %vm3377_vm1, %v7364_v63  ;;  %6027 = vmatmul.mubr.msk.bf16.gmra.mrb[20].mxu1 %vm3377_vm1, %v7364_v63 }
 0x223   :  { %4225 = vmatprep.mubr.bf16.mxu0 %v7366_v1  ;;  %5049 = vmatprep.mubr.bf16.mxu1 %v7366_v1  ;;  %v9132_v1 = vrot.slane %v580_v7, %v584_v5 }
 0x22a   :  { %6020 = vmatmul.mubr.msk.bf16.gmra.mrb[24].mxu0 %vm3377_vm1, %v7365_v0  ;;  %6028 = vmatmul.mubr.msk.bf16.gmra.mrb[24].mxu1 %vm3377_vm1, %v7365_v0 }
 0x2cd   :  { %v4167_v14 = vpop.f32.mrb[0].mxu0  ;;  %v4991_v15 = vpop.f32.mrb[0].mxu1 }
 0x2ce   :  { %v6085_v16 = vadd.f32 %v4167_v14, %v9132_v1  ;;  %v6113_v17 = vadd.f32 %v4991_v15, %v9134_v10  ;;  %v4169_v18 = vpop.f32.mrb[1].mxu0  ;;  %v4993_v19 = vpop.f32.mrb[1].mxu1 }
 0x2cf   :  { %v6086_v20 = vadd.f32 %v4169_v18, %v9136_v11  ;;  %v6114_v21 = vadd.f32 %v4993_v19, %v9138_v12  ;;  %v4171_v22 = vpop.f32.mrb[2].mxu0  ;;  %v4995_v23 = vpop.f32.mrb[2].mxu1 }
 0x2d0   :  { %v5144_v24 = vmul.f32 %v6085_v16, %v5077_v4  ;;  %v5146_v25 = vmul.f32 %v6113_v17, %v5077_v4  ;;  %v6087_v26 = vadd.f32 %v4171_v22, %v9132_v1  ;;  %v6115_v27 = vadd.f32 %v4995_v23, %v9134_v10  ;;  %v4173_v28 = vpop.f32.mrb[3].mxu0  ;;  %v4997_v29 = vpop.f32.mrb[3].mxu1 }
 0x2d1   :  { %v5145_v30 = vmul.f32 %v6086_v20, %v5077_v4  ;;  %v5147_v31 = vmul.f32 %v6114_v21, %v5077_v4  ;;  %v6088_v32 = vadd.f32 %v4173_v28, %v9136_v11  ;;  %v6116_v33 = vadd.f32 %v4997_v29, %v9138_v12  ;;  %v5097_v22 = vpop.permute.xlu0 %5096 }
 0x2d2   :  { %v5200_v34 = vmax.f32 %v5144_v24, 0.0  ;;  %v5202_v35 = vmax.f32 %v5146_v25, 0.0  ;;  %v5148_v36 = vmul.f32 %v6087_v26, %v5082_v13  ;;  %v5150_v37 = vmul.f32 %v6115_v27, %v5082_v13 }
 0x2d3   :  { %v5201_v38 = vmax.f32 %v5145_v30, 0.0  ;;  %v5203_v39 = vmax.f32 %v5147_v31, 0.0  ;;  %v5149_v40 = vmul.f32 %v6088_v32, %v5082_v13  ;;  %v5151_v41 = vmul.f32 %v6116_v33, %v5082_v13 }
 0x2d4   :  { %v5204_v43 = vmax.f32 %v5148_v36, 0.0  ;;  %v5206_v44 = vmax.f32 %v5150_v37, 0.0 }
 0x2d5   :  { %v6057_v45 = vpack.c.bf16 %v5201_v38, %v5200_v34  ;;  %v6058_v46 = vpack.c.bf16 %v5203_v39, %v5202_v35  ;;  %v5205_v47 = vmax.f32 %v5149_v40, 0.0  ;;  %v5207_v48 = vmax.f32 %v5151_v41, 0.0  ;;  %v4177_v49 = vpop.f32.mrb[4].mxu0  ;;  %v5001_v50 = vpop.f32.mrb[4].mxu1 }
 0x2d6   :  { %v6089_v51 = vadd.f32 %v4177_v49, %v9132_v1  ;;  %v6117_v52 = vadd.f32 %v5001_v50, %v9134_v10  ;;  %v4179_v53 = vpop.f32.mrb[5].mxu0  ;;  %v5003_v54 = vpop.f32.mrb[5].mxu1 }
 0x2d7   :  { %5424 = vst [vmem:[%s9284_s4] sm:$0xff] %v6057_v45  ;;  %5425 = vst [vmem:[%s9284_s4 + $0x8] sm:$0xff] %v6058_v46  ;;  %v6059_v55 = vpack.c.bf16 %v5205_v47, %v5204_v43  ;;  %v6060_v56 = vpack.c.bf16 %v5207_v48, %v5206_v44  ;;  %v6090_v57 = vadd.f32 %v4179_v53, %v9136_v11  ;;  %v4181_v59 = vpop.f32.mrb[6].mxu0  ;;  %v5005_v60 = vpop.f32.mrb[6].mxu1 }
 0x2d8   :  { %v6118_v58 = vadd.f32 %v5003_v54, %v9138_v12  ;;  %v5152_v61 = vmul.f32 %v6089_v51, %v5087_v42  ;;  %v5154_v62 = vmul.f32 %v6117_v52, %v5087_v42  ;;  %v6091_v63 = vadd.f32 %v4181_v59, %v9132_v1  ;;  %v4183_v2 = vpop.f32.mrb[7].mxu0  ;;  %v5007_v3 = vpop.f32.mrb[7].mxu1 }
 0x2d9   :  { %v6119_v0 = vadd.f32 %v5005_v60, %v9134_v10  ;;  %5426 = vst [vmem:[%s9284_s4 + $0x10] sm:$0xff] %v6059_v55  ;;  %5427 = vst [vmem:[%s9284_s4 + $0x18] sm:$0xff] %v6060_v56  ;;  %v5153_v4 = vmul.f32 %v6090_v57, %v5087_v42  ;;  %v6092_v7 = vadd.f32 %v4183_v2, %v9136_v11  ;;  %v5102_v45 = vpop.permute.xlu1 %5101 }
 0x2da   :  { %v5155_v5 = vmul.f32 %v6118_v58, %v5087_v42  ;;  %v6120_v8 = vadd.f32 %v5007_v3, %v9138_v12  ;;  %v5208_v9 = vmax.f32 %v5152_v61, 0.0  ;;  %v5210_v13 = vmax.f32 %v5154_v62, 0.0  ;;  %v5107_v58 = vpop.permute.xlu0 %5106 }
 0x2db   :  { %v5156_v14 = vmul.f32 %v6091_v63, %v5092_v6  ;;  %v5158_v15 = vmul.f32 %v6119_v0, %v5092_v6  ;;  %v5209_v16 = vmax.f32 %v5153_v4, 0.0  ;;  %v5157_v18 = vmul.f32 %v6092_v7, %v5092_v6 }
 0x2dc   :  { %v5211_v17 = vmax.f32 %v5155_v5, 0.0  ;;  %v5159_v19 = vmul.f32 %v6120_v8, %v5092_v6 }
 0x2dd   :  { %v5212_v20 = vmax.f32 %v5156_v14, 0.0  ;;  %v5214_v21 = vmax.f32 %v5158_v15, 0.0  ;;  %v6061_v23 = vpack.c.bf16 %v5209_v16, %v5208_v9  ;;  %v5213_v25 = vmax.f32 %v5157_v18, 0.0  ;;  %v4187_v27 = vpop.f32.mrb[8].mxu0  ;;  %v5011_v28 = vpop.f32.mrb[8].mxu1 }
 0x2de   :  { %v6062_v24 = vpack.c.bf16 %v5211_v17, %v5210_v13  ;;  %v5215_v26 = vmax.f32 %v5159_v19, 0.0  ;;  %v6093_v29 = vadd.f32 %v4187_v27, %v9132_v1  ;;  %v6121_v30 = vadd.f32 %v5011_v28, %v9134_v10  ;;  %v4189_v31 = vpop.f32.mrb[9].mxu0  ;;  %v5013_v32 = vpop.f32.mrb[9].mxu1 }
 0x2df   :  { %5428 = vst [vmem:[%s9284_s4 + $0x20] sm:$0xff] %v6061_v23  ;;  %v6063_v33 = vpack.c.bf16 %v5213_v25, %v5212_v20  ;;  %v6094_v35 = vadd.f32 %v4189_v31, %v9136_v11  ;;  %v6122_v36 = vadd.f32 %v5013_v32, %v9138_v12  ;;  %v4191_v37 = vpop.f32.mrb[10].mxu0  ;;  %v5015_v38 = vpop.f32.mrb[10].mxu1 }
 0x2e0   :  { %5429 = vst [vmem:[%s9284_s4 + $0x28] sm:$0xff] %v6062_v24  ;;  %v6064_v34 = vpack.c.bf16 %v5215_v26, %v5214_v21  ;;  %v5160_v39 = vmul.f32 %v6093_v29, %v5097_v22  ;;  %v5162_v40 = vmul.f32 %v6121_v30, %v5097_v22  ;;  %v6095_v41 = vadd.f32 %v4191_v37, %v9132_v1  ;;  %v4193_v43 = vpop.f32.mrb[11].mxu0  ;;  %v5017_v44 = vpop.f32.mrb[11].mxu1 }
 0x2e1   :  { %v6123_v42 = vadd.f32 %v5015_v38, %v9134_v10  ;;  %5430 = vst [vmem:[%s9284_s4 + $0x30] sm:$0xff] %v6063_v33  ;;  %v5161_v46 = vmul.f32 %v6094_v35, %v5097_v22  ;;  %v5163_v47 = vmul.f32 %v6122_v36, %v5097_v22  ;;  %v6096_v48 = vadd.f32 %v4193_v43, %v9136_v11  ;;  %v5112_v23 = vpop.permute.xlu1 %5111  ;;  %v5117_v36 = vpop.permute.xlu0 %5116 }
 0x2e2   :  { %5431 = vst [vmem:[%s9284_s4 + $0x38] sm:$0xff] %v6064_v34  ;;  %v6124_v49 = vadd.f32 %v5017_v44, %v9138_v12  ;;  %v5216_v50 = vmax.f32 %v5160_v39, 0.0  ;;  %v5218_v51 = vmax.f32 %v5162_v40, 0.0  ;;  %v5164_v52 = vmul.f32 %v6095_v41, %v5102_v45 }
 0x2e3   :  { %v5166_v53 = vmul.f32 %v6123_v42, %v5102_v45  ;;  %v5217_v54 = vmax.f32 %v5161_v46, 0.0  ;;  %v5219_v55 = vmax.f32 %v5163_v47, 0.0  ;;  %v5165_v56 = vmul.f32 %v6096_v48, %v5102_v45 }
 0x2e4   :  { %v5167_v57 = vmul.f32 %v6124_v49, %v5102_v45  ;;  %v5220_v59 = vmax.f32 %v5164_v52, 0.0 }
 0x2e5   :  { %v5222_v60 = vmax.f32 %v5166_v53, 0.0  ;;  %v6065_v61 = vpack.c.bf16 %v5217_v54, %v5216_v50  ;;  %v6066_v62 = vpack.c.bf16 %v5219_v55, %v5218_v51  ;;  %v5221_v63 = vmax.f32 %v5165_v56, 0.0  ;;  %v4197_v2 = vpop.f32.mrb[12].mxu0  ;;  %v5021_v3 = vpop.f32.mrb[12].mxu1 }
 0x2e6   :  { %v5223_v0 = vmax.f32 %v5167_v57, 0.0  ;;  %v6097_v4 = vadd.f32 %v4197_v2, %v9132_v1  ;;  %v6125_v5 = vadd.f32 %v5021_v3, %v9134_v10  ;;  %v4199_v6 = vpop.f32.mrb[13].mxu0  ;;  %v5023_v7 = vpop.f32.mrb[13].mxu1 }
 0x2e7   :  { %5432 = vst [vmem:[%s9284_s4 + $0x40] sm:$0xff] %v6065_v61  ;;  %5433 = vst [vmem:[%s9284_s4 + $0x48] sm:$0xff] %v6066_v62  ;;  %v6067_v8 = vpack.c.bf16 %v5221_v63, %v5220_v59  ;;  %v6098_v13 = vadd.f32 %v4199_v6, %v9136_v11  ;;  %v6126_v14 = vadd.f32 %v5023_v7, %v9138_v12  ;;  %v4201_v15 = vpop.f32.mrb[14].mxu0  ;;  %v5025_v16 = vpop.f32.mrb[14].mxu1 }
 0x2e8   :  { %v6068_v9 = vpack.c.bf16 %v5223_v0, %v5222_v60  ;;  %v5168_v17 = vmul.f32 %v6097_v4, %v5107_v58  ;;  %v5170_v18 = vmul.f32 %v6125_v5, %v5107_v58  ;;  %v6099_v19 = vadd.f32 %v4201_v15, %v9132_v1  ;;  %v4203_v21 = vpop.f32.mrb[15].mxu0  ;;  %v5027_v22 = vpop.f32.mrb[15].mxu1 }
 0x2e9   :  { %v6127_v20 = vadd.f32 %v5025_v16, %v9134_v10  ;;  %5434 = vst [vmem:[%s9284_s4 + $0x50] sm:$0xff] %v6067_v8  ;;  %v5169_v24 = vmul.f32 %v6098_v13, %v5107_v58  ;;  %v5171_v25 = vmul.f32 %v6126_v14, %v5107_v58  ;;  %v6100_v26 = vadd.f32 %v4203_v21, %v9136_v11  ;;  %v5122_v61 = vpop.permute.xlu1 %5121  ;;  %v5127_v14 = vpop.permute.xlu0 %5126 }
 0x2ea   :  { %5435 = vst [vmem:[%s9284_s4 + $0x58] sm:$0xff] %v6068_v9  ;;  %v6128_v27 = vadd.f32 %v5027_v22, %v9138_v12  ;;  %v5224_v28 = vmax.f32 %v5168_v17, 0.0  ;;  %v5226_v29 = vmax.f32 %v5170_v18, 0.0  ;;  %v5172_v30 = vmul.f32 %v6099_v19, %v5112_v23 }
 0x2eb   :  { %v5174_v31 = vmul.f32 %v6127_v20, %v5112_v23  ;;  %v5225_v32 = vmax.f32 %v5169_v24, 0.0  ;;  %v5227_v33 = vmax.f32 %v5171_v25, 0.0  ;;  %v5173_v34 = vmul.f32 %v6100_v26, %v5112_v23 }
 0x2ec   :  { %v5175_v35 = vmul.f32 %v6128_v27, %v5112_v23  ;;  %v5228_v37 = vmax.f32 %v5172_v30, 0.0 }
 0x2ed   :  { %v5230_v38 = vmax.f32 %v5174_v31, 0.0  ;;  %v6069_v39 = vpack.c.bf16 %v5225_v32, %v5224_v28  ;;  %v6070_v40 = vpack.c.bf16 %v5227_v33, %v5226_v29  ;;  %v5229_v41 = vmax.f32 %v5173_v34, 0.0  ;;  %v4207_v43 = vpop.f32.mrb[16].mxu0  ;;  %v5031_v44 = vpop.f32.mrb[16].mxu1 }
 0x2ee   :  { %v5231_v42 = vmax.f32 %v5175_v35, 0.0  ;;  %v6101_v45 = vadd.f32 %v4207_v43, %v9132_v1  ;;  %v6129_v46 = vadd.f32 %v5031_v44, %v9134_v10  ;;  %v4209_v47 = vpop.f32.mrb[17].mxu0  ;;  %v5033_v48 = vpop.f32.mrb[17].mxu1 }
 0x2ef   :  { %5436 = vst [vmem:[%s9284_s4 + $0x60] sm:$0xff] %v6069_v39  ;;  %5437 = vst [vmem:[%s9284_s4 + $0x68] sm:$0xff] %v6070_v40  ;;  %v6071_v49 = vpack.c.bf16 %v5229_v41, %v5228_v37  ;;  %v6102_v51 = vadd.f32 %v4209_v47, %v9136_v11  ;;  %v6130_v52 = vadd.f32 %v5033_v48, %v9138_v12  ;;  %v4211_v53 = vpop.f32.mrb[18].mxu0  ;;  %v5035_v54 = vpop.f32.mrb[18].mxu1 }
 0x2f0   :  { %v6072_v50 = vpack.c.bf16 %v5231_v42, %v5230_v38  ;;  %v5176_v55 = vmul.f32 %v6101_v45, %v5117_v36  ;;  %v5178_v56 = vmul.f32 %v6129_v46, %v5117_v36  ;;  %v6103_v57 = vadd.f32 %v4211_v53, %v9132_v1  ;;  %v4213_v59 = vpop.f32.mrb[19].mxu0  ;;  %v5037_v60 = vpop.f32.mrb[19].mxu1 }
 0x2f1   :  { %v6131_v58 = vadd.f32 %v5035_v54, %v9134_v10  ;;  %5438 = vst [vmem:[%s9284_s4 + $0x70] sm:$0xff] %v6071_v49  ;;  %v5177_v62 = vmul.f32 %v6102_v51, %v5117_v36  ;;  %v5179_v63 = vmul.f32 %v6130_v52, %v5117_v36  ;;  %v6104_v0 = vadd.f32 %v4213_v59, %v9136_v11  ;;  %v5132_v39 = vpop.permute.xlu1 %5131  ;;  %v5137_v52 = vpop.permute.xlu0 %5136 }
 0x2f2   :  { %5439 = vst [vmem:[%s9284_s4 + $0x78] sm:$0xff] %v6072_v50  ;;  %v6132_v2 = vadd.f32 %v5037_v60, %v9138_v12  ;;  %v5232_v3 = vmax.f32 %v5176_v55, 0.0  ;;  %v5234_v4 = vmax.f32 %v5178_v56, 0.0  ;;  %v5180_v5 = vmul.f32 %v6103_v57, %v5122_v61 }
 0x2f3   :  { %v5182_v6 = vmul.f32 %v6131_v58, %v5122_v61  ;;  %v5233_v7 = vmax.f32 %v5177_v62, 0.0  ;;  %v5235_v8 = vmax.f32 %v5179_v63, 0.0  ;;  %v5181_v9 = vmul.f32 %v6104_v0, %v5122_v61 }
 0x2f4   :  { %v5183_v13 = vmul.f32 %v6132_v2, %v5122_v61  ;;  %v5236_v15 = vmax.f32 %v5180_v5, 0.0 }
 0x2f5   :  { %v5238_v16 = vmax.f32 %v5182_v6, 0.0  ;;  %v6073_v17 = vpack.c.bf16 %v5233_v7, %v5232_v3  ;;  %v6074_v18 = vpack.c.bf16 %v5235_v8, %v5234_v4  ;;  %v5237_v19 = vmax.f32 %v5181_v9, 0.0  ;;  %v4217_v21 = vpop.f32.mrb[20].mxu0  ;;  %v5041_v22 = vpop.f32.mrb[20].mxu1 }
 0x2f6   :  { %v5239_v20 = vmax.f32 %v5183_v13, 0.0  ;;  %v6105_v23 = vadd.f32 %v4217_v21, %v9132_v1  ;;  %v6133_v24 = vadd.f32 %v5041_v22, %v9134_v10  ;;  %v4219_v25 = vpop.f32.mrb[21].mxu0  ;;  %v5043_v26 = vpop.f32.mrb[21].mxu1 }
 0x2f7   :  { %5440 = vst [vmem:[%s9284_s4 + $0x80] sm:$0xff] %v6073_v17  ;;  %5441 = vst [vmem:[%s9284_s4 + $0x88] sm:$0xff] %v6074_v18  ;;  %v6075_v27 = vpack.c.bf16 %v5237_v19, %v5236_v15  ;;  %v6106_v29 = vadd.f32 %v4219_v25, %v9136_v11  ;;  %v6134_v30 = vadd.f32 %v5043_v26, %v9138_v12  ;;  %v4221_v31 = vpop.f32.mrb[22].mxu0  ;;  %v5045_v32 = vpop.f32.mrb[22].mxu1 }
 0x2f8   :  { %v6076_v28 = vpack.c.bf16 %v5239_v20, %v5238_v16  ;;  %v5184_v33 = vmul.f32 %v6105_v23, %v5127_v14  ;;  %v5186_v34 = vmul.f32 %v6133_v24, %v5127_v14  ;;  %v6107_v35 = vadd.f32 %v4221_v31, %v9132_v1  ;;  %v4223_v37 = vpop.f32.mrb[23].mxu0  ;;  %v5047_v38 = vpop.f32.mrb[23].mxu1 }
 0x2f9   :  { %v6135_v36 = vadd.f32 %v5045_v32, %v9134_v10  ;;  %5442 = vst [vmem:[%s9284_s4 + $0x90] sm:$0xff] %v6075_v27  ;;  %v5185_v40 = vmul.f32 %v6106_v29, %v5127_v14  ;;  %v5187_v41 = vmul.f32 %v6134_v30, %v5127_v14  ;;  %v6108_v42 = vadd.f32 %v4223_v37, %v9136_v11  ;;  %v5142_v17 = vpop.permute.xlu1 %5141 }
 0x2fa   :  { %5443 = vst [vmem:[%s9284_s4 + $0x98] sm:$0xff] %v6076_v28  ;;  %v6136_v43 = vadd.f32 %v5047_v38, %v9138_v12  ;;  %v5240_v44 = vmax.f32 %v5184_v33, 0.0  ;;  %v5242_v45 = vmax.f32 %v5186_v34, 0.0  ;;  %v5188_v46 = vmul.f32 %v6107_v35, %v5132_v39 }
 0x2fb   :  { %v5190_v47 = vmul.f32 %v6135_v36, %v5132_v39  ;;  %v5241_v48 = vmax.f32 %v5185_v40, 0.0  ;;  %v5243_v49 = vmax.f32 %v5187_v41, 0.0  ;;  %v5189_v50 = vmul.f32 %v6108_v42, %v5132_v39 }
 0x2fc   :  { %v5191_v51 = vmul.f32 %v6136_v43, %v5132_v39  ;;  %v5244_v53 = vmax.f32 %v5188_v46, 0.0 }
 0x2fd   :  { %v5246_v54 = vmax.f32 %v5190_v47, 0.0  ;;  %v6077_v55 = vpack.c.bf16 %v5241_v48, %v5240_v44  ;;  %v6078_v56 = vpack.c.bf16 %v5243_v49, %v5242_v45  ;;  %v5245_v57 = vmax.f32 %v5189_v50, 0.0  ;;  %v4227_v59 = vpop.f32.mrb[24].mxu0  ;;  %v5051_v60 = vpop.f32.mrb[24].mxu1 }
 0x2fe   :  { %v5247_v58 = vmax.f32 %v5191_v51, 0.0  ;;  %v6109_v61 = vadd.f32 %v4227_v59, %v9132_v1  ;;  %v6137_v62 = vadd.f32 %v5051_v60, %v9134_v10  ;;  %v4229_v63 = vpop.f32.mrb[25].mxu0  ;;  %v5053_v0 = vpop.f32.mrb[25].mxu1 }
 0x2ff   :  { %5444 = vst [vmem:[%s9284_s4 + $0xa0] sm:$0xff] %v6077_v55  ;;  %5445 = vst [vmem:[%s9284_s4 + $0xa8] sm:$0xff] %v6078_v56  ;;  %v6079_v2 = vpack.c.bf16 %v5245_v57, %v5244_v53  ;;  %v6110_v4 = vadd.f32 %v4229_v63, %v9136_v11  ;;  %v6138_v5 = vadd.f32 %v5053_v0, %v9138_v12  ;;  %v4231_v6 = vpop.f32.mrb[26].mxu0  ;;  %v5055_v7 = vpop.f32.mrb[26].mxu1 }
 0x300   :  { %v6080_v3 = vpack.c.bf16 %v5247_v58, %v5246_v54  ;;  %v5192_v8 = vmul.f32 %v6109_v61, %v5137_v52  ;;  %v5194_v9 = vmul.f32 %v6137_v62, %v5137_v52  ;;  %v6111_v13 = vadd.f32 %v4231_v6, %v9132_v1  ;;  %v4233_v15 = vpop.f32.mrb[27].mxu0  ;;  %v5057_v16 = vpop.f32.mrb[27].mxu1 }
 0x301   :  { %v6139_v14 = vadd.f32 %v5055_v7, %v9134_v10  ;;  %5446 = vst [vmem:[%s9284_s4 + $0xb0] sm:$0xff] %v6079_v2  ;;  %v5193_v18 = vmul.f32 %v6110_v4, %v5137_v52  ;;  %v5195_v19 = vmul.f32 %v6138_v5, %v5137_v52  ;;  %v6112_v20 = vadd.f32 %v4233_v15, %v9136_v11 }
 0x302   :  { %5447 = vst [vmem:[%s9284_s4 + $0xb8] sm:$0xff] %v6080_v3  ;;  %v6140_v21 = vadd.f32 %v5057_v16, %v9138_v12  ;;  %v5248_v1 = vmax.f32 %v5192_v8, 0.0  ;;  %v5250_v22 = vmax.f32 %v5194_v9, 0.0  ;;  %v5196_v10 = vmul.f32 %v6111_v13, %v5142_v17 }
 0x303   :  { %v5198_v23 = vmul.f32 %v6139_v14, %v5142_v17  ;;  %v5249_v24 = vmax.f32 %v5193_v18, 0.0  ;;  %v5251_v25 = vmax.f32 %v5195_v19, 0.0  ;;  %v5197_v26 = vmul.f32 %v6112_v20, %v5142_v17 }
 0x304   :  { %v5199_v27 = vmul.f32 %v6140_v21, %v5142_v17  ;;  %v5252_v28 = vmax.f32 %v5196_v10, 0.0 }
 0x305   :  { %v5254_v29 = vmax.f32 %v5198_v23, 0.0  ;;  %v6081_v30 = vpack.c.bf16 %v5249_v24, %v5248_v1  ;;  %v6082_v31 = vpack.c.bf16 %v5251_v25, %v5250_v22  ;;  %v5253_v32 = vmax.f32 %v5197_v26, 0.0 }
 0x306   :  { %v5255_v33 = vmax.f32 %v5199_v27, 0.0 }
 0x307   :  { %5448 = vst [vmem:[%s9284_s4 + $0xc0] sm:$0xff] %v6081_v30  ;;  %5449 = vst [vmem:[%s9284_s4 + $0xc8] sm:$0xff] %v6082_v31  ;;  %v6083_v11 = vpack.c.bf16 %v5253_v32, %v5252_v28 }
 0x308   :  { %v6084_v12 = vpack.c.bf16 %v5255_v33, %v5254_v29 }
 0x309   :  { %5450 = vst [vmem:[%s9284_s4 + $0xd0] sm:$0xff] %v6083_v11 }
 0x30a   :  { %5451 = vst [vmem:[%s9284_s4 + $0xd8] sm:$0xff] %v6084_v12 }

// kernel: _lambda_.5
= control target key start
LH: loop header
LB: loop body
LE: loop exit
PB: predicated region body
PF: predicated region fallthrough
CT: control target
= control target key end

     0   :  { %vm10302_vm0 = vcmask 130048   ;;  %s24153_s1 = inlined_call_operand.vmem [shape: bf16[3600,896], index: 1, kind: input, shape index: {}]   ;;  %s24154_s0 = inlined_call_operand.vmem [shape: bf16[32,3600], index: 0, kind: input, shape index: {}]   ;;  %s24155_s2 = inlined_call_operand.vmem [shape: f32[1,896], index: 2, kind: input, shape index: {}]   ;;  %s24156_s3 = inlined_call_operand.vmem [shape: bf16[32,896], index: 3, kind: output, shape index: {}]  }
   0x1   :  { %v16000_v0 = vld [vmem:[%s24153_s1 + $0x4] ss:$28 sps:$4 sm:$0xff]   ;;  %v16006_v4 = vld [vmem:[%s24153_s1 + $0x3c] ss:$28 sps:$4 sm:$0xff]   ;;  %v16012_v8 = vld [vmem:[%s24153_s1 + $0x74] ss:$28 sps:$4 sm:$0xff]  }
   0x2   :  { %v16002_v1 = vld [vmem:[%s24153_s1 + $0xa84] ss:$28 sps:$4 sm:$0xff]   ;;  %10309 = vmatprep.subr.bf16.mxu1 %v16000_v0  ;;  %v16008_v5 = vld [vmem:[%s24153_s1 + $0xabc] ss:$28 sps:$4 sm:$0xff]   ;;  %v16014_v9 = vld [vmem:[%s24153_s1 + $0xaf4] ss:$28 sps:$4 sm:$0xff]  }
   0x3   :  { %v16004_v2 = vld [vmem:[%s24153_s1] ss:$28 sps:$4 sm:$0xff]   ;;  %10468 = vmatprep.subr.bf16.mxu0 %v16002_v1  ;;  %v16010_v6 = vld [vmem:[%s24153_s1 + $0x38] ss:$28 sps:$4 sm:$0xff]   ;;  %v16016_v10 = vld [vmem:[%s24153_s1 + $0x70] ss:$28 sps:$4 sm:$0xff]  }
   0x4   :  { %v16005_v3 = vld [vmem:[%s24153_s1 + $0xa80] ss:$28 sps:$4 sm:$0xff]   ;;  %10310 = vmatpush1.bf16.msra.mxu1 %v16004_v2  ;;  %v16011_v7 = vld [vmem:[%s24153_s1 + $0xab8] ss:$28 sps:$4 sm:$0xff]   ;;  %v16017_v11 = vld [vmem:[%s24153_s1 + $0xaf0] ss:$28 sps:$4 sm:$0xff]  }
   0x5   :  { %10469 = vmatpush1.bf16.msra.mxu0 %v16005_v3  ;;  %10311 = vmatprep.subr.bf16.mxu1 %v16006_v4  ;;  %v16018_v12 = vld [vmem:[%s24153_s1 + $0xac] ss:$28 sps:$4 sm:$0xff]   ;;  %v16024_v16 = vld [vmem:[%s24153_s1 + $0xe4] ss:$28 sps:$4 sm:$0xff]   ;;  %v16030_v20 = vld [vmem:[%s24153_s1 + $0x11c] ss:$28 sps:$4 sm:$0xff]  }
   0x6   :  { %10470 = vmatprep.subr.bf16.mxu0 %v16008_v5  ;;  %v16020_v13 = vld [vmem:[%s24153_s1 + $0xb2c] ss:$28 sps:$4 sm:$0xff]   ;;  %v16026_v17 = vld [vmem:[%s24153_s1 + $0xb64] ss:$28 sps:$4 sm:$0xff]   ;;  %v16032_v21 = vld [vmem:[%s24153_s1 + $0xb9c] ss:$28 sps:$4 sm:$0xff]  }
   0x7   :  { %v16022_v14 = vld [vmem:[%s24153_s1 + $0xa8] ss:$28 sps:$4 sm:$0xff]   ;;  %v16028_v18 = vld [vmem:[%s24153_s1 + $0xe0] ss:$28 sps:$4 sm:$0xff]   ;;  %v16034_v22 = vld [vmem:[%s24153_s1 + $0x118] ss:$28 sps:$4 sm:$0xff]  }
   0x8   :  { %10312 = vmatpush1.bf16.msra.mxu1 %v16010_v6  ;;  %v16023_v15 = vld [vmem:[%s24153_s1 + $0xb28] ss:$28 sps:$4 sm:$0xff]   ;;  %v16029_v19 = vld [vmem:[%s24153_s1 + $0xb60] ss:$28 sps:$4 sm:$0xff]   ;;  %v16035_v23 = vld [vmem:[%s24153_s1 + $0xb98] ss:$28 sps:$4 sm:$0xff]  }
   0x9   :  { %10471 = vmatpush1.bf16.msra.mxu0 %v16011_v7  ;;  %10313 = vmatprep.subr.bf16.mxu1 %v16012_v8  ;;  %v16036_v24 = vld [vmem:[%s24153_s1 + $0x154] ss:$28 sps:$4 sm:$0xff]   ;;  %v16042_v28 = vld [vmem:[%s24153_s1 + $0x18c] ss:$28 sps:$4 sm:$0xff]   ;;  %v16048_v32 = vld [vmem:[%s24153_s1 + $0x1c4] ss:$28 sps:$4 sm:$0xff]  }
   0xa   :  { %10472 = vmatprep.subr.bf16.mxu0 %v16014_v9  ;;  %v16038_v25 = vld [vmem:[%s24153_s1 + $0xbd4] ss:$28 sps:$4 sm:$0xff]   ;;  %v16044_v29 = vld [vmem:[%s24153_s1 + $0xc0c] ss:$28 sps:$4 sm:$0xff]   ;;  %v16050_v33 = vld [vmem:[%s24153_s1 + $0xc44] ss:$28 sps:$4 sm:$0xff]  }
   0xb   :  { %v16040_v26 = vld [vmem:[%s24153_s1 + $0x150] ss:$28 sps:$4 sm:$0xff]   ;;  %v16046_v30 = vld [vmem:[%s24153_s1 + $0x188] ss:$28 sps:$4 sm:$0xff]   ;;  %v16052_v34 = vld [vmem:[%s24153_s1 + $0x1c0] ss:$28 sps:$4 sm:$0xff]  }
   0xc   :  { %10314 = vmatpush1.bf16.msra.mxu1 %v16016_v10  ;;  %v16041_v27 = vld [vmem:[%s24153_s1 + $0xbd0] ss:$28 sps:$4 sm:$0xff]   ;;  %v16047_v31 = vld [vmem:[%s24153_s1 + $0xc08] ss:$28 sps:$4 sm:$0xff]   ;;  %v16053_v35 = vld [vmem:[%s24153_s1 + $0xc40] ss:$28 sps:$4 sm:$0xff]  }
   0xd   :  { %10473 = vmatpush1.bf16.msra.mxu0 %v16017_v11  ;;  %10315 = vmatprep.subr.bf16.mxu1 %v16018_v12  ;;  %v16054_v36 = vld [vmem:[%s24153_s1 + $0x1fc] ss:$28 sps:$4 sm:$0xff]   ;;  %v16060_v40 = vld [vmem:[%s24153_s1 + $0x234] ss:$28 sps:$4 sm:$0xff]   ;;  %v16066_v44 = vld [vmem:[%s24153_s1 + $0x26c] ss:$28 sps:$4 sm:$0xff]  }
   0xe   :  { %10474 = vmatprep.subr.bf16.mxu0 %v16020_v13  ;;  %v16056_v37 = vld [vmem:[%s24153_s1 + $0xc7c] ss:$28 sps:$4 sm:$0xff]   ;;  %v16062_v41 = vld [vmem:[%s24153_s1 + $0xcb4] ss:$28 sps:$4 sm:$0xff]   ;;  %v16068_v45 = vld [vmem:[%s24153_s1 + $0xcec] ss:$28 sps:$4 sm:$0xff]  }
   0xf   :  { %v16058_v38 = vld [vmem:[%s24153_s1 + $0x1f8] ss:$28 sps:$4 sm:$0xff]   ;;  %v16064_v42 = vld [vmem:[%s24153_s1 + $0x230] ss:$28 sps:$4 sm:$0xff]   ;;  %v16070_v46 = vld [vmem:[%s24153_s1 + $0x268] ss:$28 sps:$4 sm:$0xff]  }
  0x10   :  { %10316 = vmatpush1.bf16.msra.mxu1 %v16022_v14  ;;  %v16059_v39 = vld [vmem:[%s24153_s1 + $0xc78] ss:$28 sps:$4 sm:$0xff]   ;;  %v16065_v43 = vld [vmem:[%s24153_s1 + $0xcb0] ss:$28 sps:$4 sm:$0xff]   ;;  %v16071_v47 = vld [vmem:[%s24153_s1 + $0xce8] ss:$28 sps:$4 sm:$0xff]  }
  0x11   :  { %10475 = vmatpush1.bf16.msra.mxu0 %v16023_v15  ;;  %10317 = vmatprep.subr.bf16.mxu1 %v16024_v16  ;;  %v16096_v48 = vld [vmem:[%s24154_s0 + $0x4] ss:$116 sps:$4 sm:$0xff]   ;;  %v16101_v51 = vld [vmem:[%s24154_s0 + $0x1c] ss:$116 sps:$4 sm:$0xff]   ;;  %v16090_v62 = vld [vmem:[%s24153_s1 + $0x34c] ss:$28 sps:$4 sm:$0xff]  }
  0x12   :  { %10476 = vmatprep.subr.bf16.mxu0 %v16026_v17  ;;  %v16072_v49 = vld [vmem:[%s24153_s1 + $0x2a4] ss:$28 sps:$4 sm:$0xff]   ;;  %10341 = vmatprep.mubr.bf16.mxu1 %v16096_v48  ;;  %v16078_v54 = vld [vmem:[%s24153_s1 + $0x2dc] ss:$28 sps:$4 sm:$0xff]   ;;  %v16084_v58 = vld [vmem:[%s24153_s1 + $0x314] ss:$28 sps:$4 sm:$0xff]  }
  0x13   :  { %v16074_v50 = vld [vmem:[%s24153_s1 + $0xd24] ss:$28 sps:$4 sm:$0xff]   ;;  %10500 = vmatprep.mubr.bf16.mxu0 %v16101_v51  ;;  %v16080_v55 = vld [vmem:[%s24153_s1 + $0xd5c] ss:$28 sps:$4 sm:$0xff]   ;;  %v16086_v59 = vld [vmem:[%s24153_s1 + $0xd94] ss:$28 sps:$4 sm:$0xff]  }
  0x14   :  { %10318 = vmatpush1.bf16.msra.mxu1 %v16028_v18  ;;  %v16076_v52 = vld [vmem:[%s24153_s1 + $0x2a0] ss:$28 sps:$4 sm:$0xff]   ;;  %v16082_v56 = vld [vmem:[%s24153_s1 + $0x2d8] ss:$28 sps:$4 sm:$0xff]   ;;  %v16088_v60 = vld [vmem:[%s24153_s1 + $0x310] ss:$28 sps:$4 sm:$0xff]  }
  0x15   :  { %10477 = vmatpush1.bf16.msra.mxu0 %v16029_v19  ;;  %10319 = vmatprep.subr.bf16.mxu1 %v16030_v20  ;;  %v16077_v53 = vld [vmem:[%s24153_s1 + $0xd20] ss:$28 sps:$4 sm:$0xff]   ;;  %v16083_v57 = vld [vmem:[%s24153_s1 + $0xd58] ss:$28 sps:$4 sm:$0xff]   ;;  %v16089_v61 = vld [vmem:[%s24153_s1 + $0xd90] ss:$28 sps:$4 sm:$0xff]  }
  0x16   :  { %10478 = vmatprep.subr.bf16.mxu0 %v16032_v21  ;;  %v16092_v63 = vld [vmem:[%s24153_s1 + $0xdcc] ss:$28 sps:$4 sm:$0xff]   ;;  %v16100_v2 = vld [vmem:[%s24153_s1 + $0x384] ss:$28 sps:$4 sm:$0xff]   ;;  %v16110_v8 = vld [vmem:[%s24153_s1 + $0x3bc] ss:$28 sps:$4 sm:$0xff]  }
  0x17   :  { %v16094_v0 = vld [vmem:[%s24153_s1 + $0x348] ss:$28 sps:$4 sm:$0xff]   ;;  %v16098_v4 = vld [vmem:[%s24153_s1 + $0x380] ss:$28 sps:$4 sm:$0xff]   ;;  %v16107_v7 = vld [vmem:[%s24154_s0 + $0x18] ss:$116 sps:$4 sm:$0xff]  }
  0x18   :  { %10320 = vmatpush1.bf16.msra.mxu1 %v16034_v22  ;;  %v16095_v1 = vld [vmem:[%s24153_s1 + $0xdc8] ss:$28 sps:$4 sm:$0xff]   ;;  %v16103_v5 = vld [vmem:[%s24153_s1 + $0xe00] ss:$28 sps:$4 sm:$0xff]   ;;  %v16108_v10 = vld [vmem:[%s24153_s1 + $0x3b8] ss:$28 sps:$4 sm:$0xff]  }
  0x19   :  { %10479 = vmatpush1.bf16.msra.mxu0 %v16035_v23  ;;  %10321 = vmatprep.subr.bf16.mxu1 %v16036_v24  ;;  %v16105_v3 = vld [vmem:[%s24153_s1 + $0xe04] ss:$28 sps:$4 sm:$0xff]   ;;  %v16113_v9 = vld [vmem:[%s24153_s1 + $0xe3c] ss:$28 sps:$4 sm:$0xff]   ;;  %v16116_v12 = vld [vmem:[%s24153_s1 + $0x3f4] ss:$28 sps:$4 sm:$0xff]  }
  0x1a   :  { %10480 = vmatprep.subr.bf16.mxu0 %v16038_v25  ;;  %v16106_v6 = vld [vmem:[%s24154_s0] ss:$116 sps:$4 sm:$0xff]   ;;  %v16114_v14 = vld [vmem:[%s24153_s1 + $0x3f0] ss:$28 sps:$4 sm:$0xff]   ;;  %v16120_v18 = vld [vmem:[%s24153_s1 + $0x428] ss:$28 sps:$4 sm:$0xff]  }
  0x1b   :  { %v16111_v11 = vld [vmem:[%s24153_s1 + $0xe38] ss:$28 sps:$4 sm:$0xff]   ;;  %v16117_v15 = vld [vmem:[%s24153_s1 + $0xe70] ss:$28 sps:$4 sm:$0xff]   ;;  %v16123_v19 = vld [vmem:[%s24153_s1 + $0xea8] ss:$28 sps:$4 sm:$0xff]  }
  0x1c   :  { %10322 = vmatpush1.bf16.msra.mxu1 %v16040_v26  ;;  %v16119_v13 = vld [vmem:[%s24153_s1 + $0xe74] ss:$28 sps:$4 sm:$0xff]   ;;  %v16122_v16 = vld [vmem:[%s24153_s1 + $0x42c] ss:$28 sps:$4 sm:$0xff]   ;;  %v16128_v20 = vld [vmem:[%s24153_s1 + $0x464] ss:$28 sps:$4 sm:$0xff]  }
  0x1d   :  { %10481 = vmatpush1.bf16.msra.mxu0 %v16041_v27  ;;  %10323 = vmatprep.subr.bf16.mxu1 %v16042_v28  ;;  %v16125_v17 = vld [vmem:[%s24153_s1 + $0xeac] ss:$28 sps:$4 sm:$0xff]   ;;  %v16131_v21 = vld [vmem:[%s24153_s1 + $0xee4] ss:$28 sps:$4 sm:$0xff]   ;;  %v16134_v24 = vld [vmem:[%s24153_s1 + $0x49c] ss:$28 sps:$4 sm:$0xff]  }
  0x1e   :  { %10482 = vmatprep.subr.bf16.mxu0 %v16044_v29  ;;  %v16126_v22 = vld [vmem:[%s24153_s1 + $0x460] ss:$28 sps:$4 sm:$0xff]   ;;  %v16132_v26 = vld [vmem:[%s24153_s1 + $0x498] ss:$28 sps:$4 sm:$0xff]  }
  0x1f   :  { %v16129_v23 = vld [vmem:[%s24153_s1 + $0xee0] ss:$28 sps:$4 sm:$0xff]   ;;  %v16135_v27 = vld [vmem:[%s24153_s1 + $0xf18] ss:$28 sps:$4 sm:$0xff]  }
  0x20   :  { %10324 = vmatpush1.bf16.msra.mxu1 %v16046_v30  ;;  %v16137_v25 = vld [vmem:[%s24153_s1 + $0xf1c] ss:$28 sps:$4 sm:$0xff]   ;;  %v16186_v28 = vld [vmem:[%s24154_s0 + $0xec] ss:$116 sps:$4 sm:$0xff]   ;;  %v16140_v29 = vld [vmem:[%s24153_s1 + $0x4d4] ss:$28 sps:$4 sm:$0xff]  }
  0x21   :  { %10483 = vmatpush1.bf16.msra.mxu0 %v16047_v31  ;;  %10325 = vmatprep.subr.bf16.mxu1 %v16048_v32  ;;  %v16143_v30 = vld [vmem:[%s24153_s1 + $0xf54] ss:$28 sps:$4 sm:$0xff]   ;;  %v16191_v31 = vld [vmem:[%s24154_s0 + $0x104] ss:$116 sps:$4 sm:$0xff]  }
  0x22   :  { %10484 = vmatprep.subr.bf16.mxu0 %v16050_v33  ;;  %v16138_v32 = vld [vmem:[%s24153_s1 + $0x4d0] ss:$28 sps:$4 sm:$0xff]   ;;  %v16156_v48 = vld [vmem:[%s24153_s1 + $0x578] ss:$28 sps:$4 sm:$0xff]  }
  0x23   :  { %v16141_v33 = vld [vmem:[%s24153_s1 + $0xf50] ss:$28 sps:$4 sm:$0xff]  }
  0x24   :  { %10326 = vmatpush1.bf16.msra.mxu1 %v16052_v34  ;;  %v16196_v34 = vld [vmem:[%s24154_s0 + $0xe8] ss:$116 sps:$4 sm:$0xff]   ;;  %v16167_v51 = vld [vmem:[%s24153_s1 + $0x1034] ss:$28 sps:$4 sm:$0xff]  }
  0x25   :  { %10485 = vmatpush1.bf16.msra.mxu0 %v16053_v35  ;;  %10327 = vmatprep.subr.bf16.mxu1 %v16054_v36  ;;  %v16197_v35 = vld [vmem:[%s24154_s0 + $0x100] ss:$116 sps:$4 sm:$0xff]   ;;  %v16146_v36 = vld [vmem:[%s24153_s1 + $0x50c] ss:$28 sps:$4 sm:$0xff]  }
  0x26   :  { %10486 = vmatprep.subr.bf16.mxu0 %v16056_v37  ;;  %v16149_v37 = vld [vmem:[%s24153_s1 + $0xf8c] ss:$28 sps:$4 sm:$0xff]  }
  0x28   :  { %10328 = vmatpush1.bf16.msra.mxu1 %v16058_v38  ;;  %v16144_v38 = vld [vmem:[%s24153_s1 + $0x508] ss:$28 sps:$4 sm:$0xff]  }
  0x29   :  { %10487 = vmatpush1.bf16.msra.mxu0 %v16059_v39  ;;  %10329 = vmatprep.subr.bf16.mxu1 %v16060_v40  ;;  %v16147_v39 = vld [vmem:[%s24153_s1 + $0xf88] ss:$28 sps:$4 sm:$0xff]   ;;  %v16206_v40 = vld [vmem:[%s24154_s0 + $0xc] ss:$116 sps:$4 sm:$0xff]  }
  0x2a   :  { %10488 = vmatprep.subr.bf16.mxu0 %v16062_v41  ;;  %v16152_v41 = vld [vmem:[%s24153_s1 + $0x544] ss:$28 sps:$4 sm:$0xff]  }
  0x2c   :  { %10330 = vmatpush1.bf16.msra.mxu1 %v16064_v42  ;;  %v16155_v42 = vld [vmem:[%s24153_s1 + $0xfc4] ss:$28 sps:$4 sm:$0xff]  }
  0x2d   :  { %10489 = vmatpush1.bf16.msra.mxu0 %v16065_v43  ;;  %10331 = vmatprep.subr.bf16.mxu1 %v16066_v44  ;;  %v16212_v43 = vld [vmem:[%s24154_s0 + $0x24] ss:$116 sps:$4 sm:$0xff]   ;;  %v16150_v44 = vld [vmem:[%s24153_s1 + $0x540] ss:$28 sps:$4 sm:$0xff]  }
  0x2e   :  { %10490 = vmatprep.subr.bf16.mxu0 %v16068_v45  ;;  %v16153_v45 = vld [vmem:[%s24153_s1 + $0xfc0] ss:$28 sps:$4 sm:$0xff]  }
  0x30   :  { %10332 = vmatpush1.bf16.msra.mxu1 %v16070_v46  ;;  %v16158_v46 = vld [vmem:[%s24153_s1 + $0x57c] ss:$28 sps:$4 sm:$0xff]  }
  0x31   :  { %10491 = vmatpush1.bf16.msra.mxu0 %v16071_v47  ;;  %10333 = vmatprep.subr.bf16.mxu1 %v16072_v49  ;;  %v16161_v47 = vld [vmem:[%s24153_s1 + $0xffc] ss:$28 sps:$4 sm:$0xff]  }
  0x32   :  { %10492 = vmatprep.subr.bf16.mxu0 %v16074_v50  ;;  %v16159_v49 = vld [vmem:[%s24153_s1 + $0xff8] ss:$28 sps:$4 sm:$0xff]  }
  0x33   :  { %v16164_v50 = vld [vmem:[%s24153_s1 + $0x5b4] ss:$28 sps:$4 sm:$0xff]  }
  0x34   :  { %10334 = vmatpush1.bf16.msra.mxu1 %v16076_v52  ;;  %v16162_v52 = vld [vmem:[%s24153_s1 + $0x5b0] ss:$28 sps:$4 sm:$0xff]  }
  0x35   :  { %10493 = vmatpush1.bf16.msra.mxu0 %v16077_v53  ;;  %10335 = vmatprep.subr.bf16.mxu1 %v16078_v54  ;;  %v16165_v53 = vld [vmem:[%s24153_s1 + $0x1030] ss:$28 sps:$4 sm:$0xff]  }
  0x36   :  { %10494 = vmatprep.subr.bf16.mxu0 %v16080_v55  ;;  %v16170_v54 = vld [vmem:[%s24153_s1 + $0x5ec] ss:$28 sps:$4 sm:$0xff]  }
  0x37   :  { %v16173_v55 = vld [vmem:[%s24153_s1 + $0x106c] ss:$28 sps:$4 sm:$0xff]  }
  0x38   :  { %10336 = vmatpush1.bf16.msra.mxu1 %v16082_v56  ;;  %v16168_v56 = vld [vmem:[%s24153_s1 + $0x5e8] ss:$28 sps:$4 sm:$0xff]  }
  0x39   :  { %10495 = vmatpush1.bf16.msra.mxu0 %v16083_v57  ;;  %10337 = vmatprep.subr.bf16.mxu1 %v16084_v58  ;;  %v16171_v57 = vld [vmem:[%s24153_s1 + $0x1068] ss:$28 sps:$4 sm:$0xff]  }
  0x3a   :  { %10496 = vmatprep.subr.bf16.mxu0 %v16086_v59  ;;  %v16176_v58 = vld [vmem:[%s24153_s1 + $0x624] ss:$28 sps:$4 sm:$0xff]  }
  0x3b   :  { %v16179_v59 = vld [vmem:[%s24153_s1 + $0x10a4] ss:$28 sps:$4 sm:$0xff]  }
  0x3c   :  { %10338 = vmatpush1.bf16.msra.mxu1 %v16088_v60  ;;  %v16174_v60 = vld [vmem:[%s24153_s1 + $0x620] ss:$28 sps:$4 sm:$0xff]  }
  0x3d   :  { %10497 = vmatpush1.bf16.msra.mxu0 %v16089_v61  ;;  %10339 = vmatprep.subr.bf16.mxu1 %v16090_v62  ;;  %v16177_v61 = vld [vmem:[%s24153_s1 + $0x10a0] ss:$28 sps:$4 sm:$0xff]  }
  0x3e   :  { %10498 = vmatprep.subr.bf16.mxu0 %v16092_v63  ;;  %v16182_v62 = vld [vmem:[%s24153_s1 + $0x65c] ss:$28 sps:$4 sm:$0xff]  }
  0x3f   :  { %v16185_v63 = vld [vmem:[%s24153_s1 + $0x10dc] ss:$28 sps:$4 sm:$0xff]  }
  0x40   :  { %10340 = vmatpush1.bf16.msra.mxu1 %v16094_v0  ;;  %v16180_v0 = vld [vmem:[%s24153_s1 + $0x658] ss:$28 sps:$4 sm:$0xff]  }
  0x41   :  { %10499 = vmatpush1.bf16.msra.mxu0 %v16095_v1  ;;  %10362 = vmatprep.subr.bf16.mxu1 %v16100_v2  ;;  %v16183_v1 = vld [vmem:[%s24153_s1 + $0x10d8] ss:$28 sps:$4 sm:$0xff]  }
  0x42   :  { %10521 = vmatprep.subr.bf16.mxu0 %v16105_v3  ;;  %v16190_v2 = vld [vmem:[%s24153_s1 + $0x694] ss:$28 sps:$4 sm:$0xff]  }
  0x43   :  { %10342 = vmatmul.mubr.bf16.vlgmr.msra.gmra.mrb[0].mxu1 %v16106_v6  ;;  %v16195_v3 = vld [vmem:[%s24153_s1 + $0x1114] ss:$28 sps:$4 sm:$0xff]   ;;  %v16200_v6 = vld [vmem:[%s24153_s1 + $0x6cc] ss:$28 sps:$4 sm:$0xff]  }
  0x44   :  { %10501 = vmatmul.mubr.bf16.vlgmr.msra.gmra.mrb[0].mxu0 %v16107_v7  ;;  %10363 = vmatpush1.bf16.msra.mxu1 %v16098_v4  ;;  %v16188_v4 = vld [vmem:[%s24153_s1 + $0x690] ss:$28 sps:$4 sm:$0xff]  }
  0x45   :  { %10522 = vmatpush1.bf16.msra.mxu0 %v16103_v5  ;;  %10364 = vmatprep.subr.bf16.mxu1 %v16110_v8  ;;  %v16193_v5 = vld [vmem:[%s24153_s1 + $0x1110] ss:$28 sps:$4 sm:$0xff]   ;;  %v16198_v8 = vld [vmem:[%s24153_s1 + $0x6c8] ss:$28 sps:$4 sm:$0xff]  }
  0x46   :  { %10523 = vmatprep.subr.bf16.mxu0 %v16113_v9  ;;  %10351 = vmatprep.mubr.bf16.mxu1 %v16186_v28  ;;  %v16203_v7 = vld [vmem:[%s24153_s1 + $0x114c] ss:$28 sps:$4 sm:$0xff]  }
  0x47   :  { %10510 = vmatprep.mubr.bf16.mxu0 %v16191_v31  ;;  %v16201_v9 = vld [vmem:[%s24153_s1 + $0x1148] ss:$28 sps:$4 sm:$0xff]  }
  0x48   :  { %10365 = vmatpush1.bf16.msra.mxu1 %v16108_v10  ;;  %v16209_v10 = vld [vmem:[%s24153_s1 + $0x704] ss:$28 sps:$4 sm:$0xff]   ;;  %v16230_v28 = vld [vmem:[%s24153_s1 + $0x7ac] ss:$28 sps:$4 sm:$0xff]  }
  0x49   :  { %10524 = vmatpush1.bf16.msra.mxu0 %v16111_v11  ;;  %10366 = vmatprep.subr.bf16.mxu1 %v16116_v12  ;;  %v16215_v11 = vld [vmem:[%s24153_s1 + $0x1184] ss:$28 sps:$4 sm:$0xff]   ;;  %v16204_v12 = vld [vmem:[%s24154_s0 + $0x8] ss:$116 sps:$4 sm:$0xff]  }
  0x4a   :  { %10525 = vmatprep.subr.bf16.mxu0 %v16119_v13  ;;  %v16207_v13 = vld [vmem:[%s24153_s1 + $0x700] ss:$28 sps:$4 sm:$0xff]   ;;  %v16231_v31 = vld [vmem:[%s24153_s1 + $0x1228] ss:$28 sps:$4 sm:$0xff]  }
  0x4b   :  { %10352 = vmatmul.mubr.bf16.gmra.mrb[4].mxu1 %v16196_v34  ;;  %v16239_v34 = vld [vmem:[%s24153_s1 + $0x1264] ss:$28 sps:$4 sm:$0xff]  }
  0x4c   :  { %10367 = vmatpush1.bf16.msra.mxu1 %v16114_v14  ;;  %10511 = vmatmul.mubr.bf16.gmra.mrb[4].mxu0 %v16197_v35  ;;  %v16210_v14 = vld [vmem:[%s24154_s0 + $0x20] ss:$116 sps:$4 sm:$0xff]  }
  0x4d   :  { %10526 = vmatpush1.bf16.msra.mxu0 %v16117_v15  ;;  %10368 = vmatprep.subr.bf16.mxu1 %v16122_v16  ;;  %v16213_v15 = vld [vmem:[%s24153_s1 + $0x1180] ss:$28 sps:$4 sm:$0xff]  }
  0x4e   :  { %10527 = vmatprep.subr.bf16.mxu0 %v16125_v17  ;;  %10394 = vmatprep.mubr.bf16.mxu1 %v16206_v40  ;;  %v16218_v16 = vld [vmem:[%s24153_s1 + $0x73c] ss:$28 sps:$4 sm:$0xff]   ;;  %v16317_v35 = vld [vmem:[%s24154_s0 + $0x2c] ss:$116 sps:$4 sm:$0xff]  }
  0x4f   :  { %10553 = vmatprep.mubr.bf16.mxu0 %v16212_v43  ;;  %v16221_v17 = vld [vmem:[%s24153_s1 + $0x11bc] ss:$28 sps:$4 sm:$0xff]   ;;  %v16251_v43 = vld [vmem:[%s24153_s1 + $0x12d4] ss:$28 sps:$4 sm:$0xff]  }
  0x50   :  { %10369 = vmatpush1.bf16.msra.mxu1 %v16120_v18  ;;  %v16216_v18 = vld [vmem:[%s24153_s1 + $0x738] ss:$28 sps:$4 sm:$0xff]  }
  0x51   :  { %10528 = vmatpush1.bf16.msra.mxu0 %v16123_v19  ;;  %10370 = vmatprep.subr.bf16.mxu1 %v16128_v20  ;;  %v16219_v19 = vld [vmem:[%s24153_s1 + $0x11b8] ss:$28 sps:$4 sm:$0xff]  }
  0x52   :  { %10529 = vmatprep.subr.bf16.mxu0 %v16131_v21  ;;  %v16294_v20 = vld [vmem:[%s24154_s0 + $0xf4] ss:$116 sps:$4 sm:$0xff]  }
  0x53   :  { %v16224_v21 = vld [vmem:[%s24153_s1 + $0x774] ss:$28 sps:$4 sm:$0xff]  }
  0x54   :  { %10371 = vmatpush1.bf16.msra.mxu1 %v16126_v22  ;;  %v16227_v22 = vld [vmem:[%s24153_s1 + $0x11f4] ss:$28 sps:$4 sm:$0xff]  }
  0x55   :  { %10530 = vmatpush1.bf16.msra.mxu0 %v16129_v23  ;;  %10372 = vmatprep.subr.bf16.mxu1 %v16134_v24  ;;  %v16222_v23 = vld [vmem:[%s24153_s1 + $0x770] ss:$28 sps:$4 sm:$0xff]   ;;  %v16240_v40 = vld [vmem:[%s24153_s1 + $0x818] ss:$28 sps:$4 sm:$0xff]  }
  0x56   :  { %10531 = vmatprep.subr.bf16.mxu0 %v16137_v25  ;;  %v16300_v24 = vld [vmem:[%s24154_s0 + $0x10c] ss:$116 sps:$4 sm:$0xff]  }
  0x57   :  { %v16225_v25 = vld [vmem:[%s24153_s1 + $0x11f0] ss:$28 sps:$4 sm:$0xff]  }
  0x58   :  { %10373 = vmatpush1.bf16.msra.mxu1 %v16132_v26  ;;  %v16296_v26 = vld [vmem:[%s24154_s0 + $0xf0] ss:$116 sps:$4 sm:$0xff]  }
  0x59   :  { %10532 = vmatpush1.bf16.msra.mxu0 %v16135_v27  ;;  %10374 = vmatprep.subr.bf16.mxu1 %v16140_v29  ;;  %v16305_v27 = vld [vmem:[%s24154_s0 + $0x108] ss:$116 sps:$4 sm:$0xff]  }
  0x5a   :  { %10533 = vmatprep.subr.bf16.mxu0 %v16143_v30  ;;  %v16233_v29 = vld [vmem:[%s24153_s1 + $0x122c] ss:$28 sps:$4 sm:$0xff]  }
  0x5b   :  { %v16228_v30 = vld [vmem:[%s24153_s1 + $0x7a8] ss:$28 sps:$4 sm:$0xff]  }
  0x5c   :  { %10375 = vmatpush1.bf16.msra.mxu1 %v16138_v32  ;;  %v16236_v32 = vld [vmem:[%s24153_s1 + $0x7e4] ss:$28 sps:$4 sm:$0xff]  }
  0x5d   :  { %10534 = vmatpush1.bf16.msra.mxu0 %v16141_v33  ;;  %10376 = vmatprep.subr.bf16.mxu1 %v16146_v36  ;;  %v16314_v33 = vld [vmem:[%s24154_s0 + $0x14] ss:$116 sps:$4 sm:$0xff]   ;;  %v16234_v36 = vld [vmem:[%s24153_s1 + $0x7e0] ss:$28 sps:$4 sm:$0xff]  }
  0x5e   :  { %10535 = vmatprep.subr.bf16.mxu0 %v16149_v37  ;;  %v16237_v37 = vld [vmem:[%s24153_s1 + $0x1260] ss:$28 sps:$4 sm:$0xff]  }
  0x60   :  { %10377 = vmatpush1.bf16.msra.mxu1 %v16144_v38  ;;  %v16242_v38 = vld [vmem:[%s24153_s1 + $0x81c] ss:$28 sps:$4 sm:$0xff]  }
  0x61   :  { %10536 = vmatpush1.bf16.msra.mxu0 %v16147_v39  ;;  %10378 = vmatprep.subr.bf16.mxu1 %v16152_v41  ;;  %v16245_v39 = vld [vmem:[%s24153_s1 + $0x129c] ss:$28 sps:$4 sm:$0xff]  }
  0x62   :  { %10537 = vmatprep.subr.bf16.mxu0 %v16155_v42  ;;  %v16243_v41 = vld [vmem:[%s24153_s1 + $0x1298] ss:$28 sps:$4 sm:$0xff]  }
  0x63   :  { %v16248_v42 = vld [vmem:[%s24153_s1 + $0x854] ss:$28 sps:$4 sm:$0xff]  }
  0x64   :  { %10379 = vmatpush1.bf16.msra.mxu1 %v16150_v44  ;;  %v16246_v44 = vld [vmem:[%s24153_s1 + $0x850] ss:$28 sps:$4 sm:$0xff]  }
  0x65   :  { %10538 = vmatpush1.bf16.msra.mxu0 %v16153_v45  ;;  %10380 = vmatprep.subr.bf16.mxu1 %v16158_v46  ;;  %v16249_v45 = vld [vmem:[%s24153_s1 + $0x12d0] ss:$28 sps:$4 sm:$0xff]  }
  0x66   :  { %10539 = vmatprep.subr.bf16.mxu0 %v16161_v47  ;;  %v16254_v46 = vld [vmem:[%s24153_s1 + $0x88c] ss:$28 sps:$4 sm:$0xff]  }
  0x67   :  { %v16257_v47 = vld [vmem:[%s24153_s1 + $0x130c] ss:$28 sps:$4 sm:$0xff]  }
  0x68   :  { %10381 = vmatpush1.bf16.msra.mxu1 %v16156_v48  ;;  %v16252_v48 = vld [vmem:[%s24153_s1 + $0x888] ss:$28 sps:$4 sm:$0xff]  }
  0x69   :  { %10540 = vmatpush1.bf16.msra.mxu0 %v16159_v49  ;;  %10382 = vmatprep.subr.bf16.mxu1 %v16164_v50  ;;  %v16255_v49 = vld [vmem:[%s24153_s1 + $0x1308] ss:$28 sps:$4 sm:$0xff]  }
  0x6a   :  { %10541 = vmatprep.subr.bf16.mxu0 %v16167_v51  ;;  %v16260_v50 = vld [vmem:[%s24153_s1 + $0x8c4] ss:$28 sps:$4 sm:$0xff]  }
  0x6b   :  { %v16263_v51 = vld [vmem:[%s24153_s1 + $0x1344] ss:$28 sps:$4 sm:$0xff]  }
  0x6c   :  { %10383 = vmatpush1.bf16.msra.mxu1 %v16162_v52  ;;  %v16258_v52 = vld [vmem:[%s24153_s1 + $0x8c0] ss:$28 sps:$4 sm:$0xff]  }
  0x6d   :  { %10542 = vmatpush1.bf16.msra.mxu0 %v16165_v53  ;;  %10384 = vmatprep.subr.bf16.mxu1 %v16170_v54  ;;  %v16261_v53 = vld [vmem:[%s24153_s1 + $0x1340] ss:$28 sps:$4 sm:$0xff]  }
  0x6e   :  { %10543 = vmatprep.subr.bf16.mxu0 %v16173_v55  ;;  %v16266_v54 = vld [vmem:[%s24153_s1 + $0x8fc] ss:$28 sps:$4 sm:$0xff]  }
  0x6f   :  { %v16269_v55 = vld [vmem:[%s24153_s1 + $0x137c] ss:$28 sps:$4 sm:$0xff]  }
  0x70   :  { %10385 = vmatpush1.bf16.msra.mxu1 %v16168_v56  ;;  %v16264_v56 = vld [vmem:[%s24153_s1 + $0x8f8] ss:$28 sps:$4 sm:$0xff]  }
  0x71   :  { %10544 = vmatpush1.bf16.msra.mxu0 %v16171_v57  ;;  %10386 = vmatprep.subr.bf16.mxu1 %v16176_v58  ;;  %v16267_v57 = vld [vmem:[%s24153_s1 + $0x1378] ss:$28 sps:$4 sm:$0xff]  }
  0x72   :  { %10545 = vmatprep.subr.bf16.mxu0 %v16179_v59  ;;  %v16272_v58 = vld [vmem:[%s24153_s1 + $0x934] ss:$28 sps:$4 sm:$0xff]  }
  0x73   :  { %v16275_v59 = vld [vmem:[%s24153_s1 + $0x13b4] ss:$28 sps:$4 sm:$0xff]  }
  0x74   :  { %10387 = vmatpush1.bf16.msra.mxu1 %v16174_v60  ;;  %v16270_v60 = vld [vmem:[%s24153_s1 + $0x930] ss:$28 sps:$4 sm:$0xff]  }
  0x75   :  { %10546 = vmatpush1.bf16.msra.mxu0 %v16177_v61  ;;  %10388 = vmatprep.subr.bf16.mxu1 %v16182_v62  ;;  %v16273_v61 = vld [vmem:[%s24153_s1 + $0x13b0] ss:$28 sps:$4 sm:$0xff]  }
  0x76   :  { %10547 = vmatprep.subr.bf16.mxu0 %v16185_v63  ;;  %v16278_v62 = vld [vmem:[%s24153_s1 + $0x96c] ss:$28 sps:$4 sm:$0xff]  }
  0x77   :  { %v16281_v63 = vld [vmem:[%s24153_s1 + $0x13ec] ss:$28 sps:$4 sm:$0xff]  }
  0x78   :  { %10389 = vmatpush1.bf16.msra.mxu1 %v16180_v0  ;;  %v16276_v0 = vld [vmem:[%s24153_s1 + $0x968] ss:$28 sps:$4 sm:$0xff]  }
  0x79   :  { %10548 = vmatpush1.bf16.msra.mxu0 %v16183_v1  ;;  %10390 = vmatprep.subr.bf16.mxu1 %v16190_v2  ;;  %v16279_v1 = vld [vmem:[%s24153_s1 + $0x13e8] ss:$28 sps:$4 sm:$0xff]  }
  0x7a   :  { %10549 = vmatprep.subr.bf16.mxu0 %v16195_v3  ;;  %v16284_v2 = vld [vmem:[%s24153_s1 + $0x9a4] ss:$28 sps:$4 sm:$0xff]  }
  0x7b   :  { %v16287_v3 = vld [vmem:[%s24153_s1 + $0x1424] ss:$28 sps:$4 sm:$0xff]  }
  0x7c   :  { %10391 = vmatpush1.bf16.msra.mxu1 %v16188_v4  ;;  %v16282_v4 = vld [vmem:[%s24153_s1 + $0x9a0] ss:$28 sps:$4 sm:$0xff]  }
  0x7d   :  { %10550 = vmatpush1.bf16.msra.mxu0 %v16193_v5  ;;  %10392 = vmatprep.subr.bf16.mxu1 %v16200_v6  ;;  %v16285_v5 = vld [vmem:[%s24153_s1 + $0x1420] ss:$28 sps:$4 sm:$0xff]  }
  0x7e   :  { %10551 = vmatprep.subr.bf16.mxu0 %v16203_v7  ;;  %v16290_v6 = vld [vmem:[%s24153_s1 + $0x9dc] ss:$28 sps:$4 sm:$0xff]  }
  0x7f   :  { %v16293_v7 = vld [vmem:[%s24153_s1 + $0x145c] ss:$28 sps:$4 sm:$0xff]  }
  0x80   :  { %10393 = vmatpush1.bf16.msra.mxu1 %v16198_v8  ;;  %v16288_v8 = vld [vmem:[%s24153_s1 + $0x9d8] ss:$28 sps:$4 sm:$0xff]  }
  0x81   :  { %10552 = vmatpush1.bf16.msra.mxu0 %v16201_v9  ;;  %10415 = vmatprep.subr.bf16.mxu1 %v16209_v10  ;;  %v16291_v9 = vld [vmem:[%s24153_s1 + $0x1458] ss:$28 sps:$4 sm:$0xff]  }
  0x82   :  { %10574 = vmatprep.subr.bf16.mxu0 %v16215_v11  ;;  %v16299_v10 = vld [vmem:[%s24153_s1 + $0xa14] ss:$28 sps:$4 sm:$0xff]  }
  0x83   :  { %10395 = vmatmul.mubr.bf16.vlgmr.msra.gmra.mrb[0].mxu1 %v16204_v12  ;;  %v16304_v11 = vld [vmem:[%s24153_s1 + $0x1494] ss:$28 sps:$4 sm:$0xff]  }
  0x84   :  { %10554 = vmatmul.mubr.bf16.vlgmr.msra.gmra.mrb[0].mxu0 %v16210_v14  ;;  %10416 = vmatpush1.bf16.msra.mxu1 %v16207_v13  ;;  %v16297_v12 = vld [vmem:[%s24153_s1 + $0xa10] ss:$28 sps:$4 sm:$0xff]  }
  0x85   :  { %10575 = vmatpush1.bf16.msra.mxu0 %v16213_v15  ;;  %10417 = vmatprep.subr.bf16.mxu1 %v16218_v16  ;;  %v16302_v13 = vld [vmem:[%s24153_s1 + $0x1490] ss:$28 sps:$4 sm:$0xff]   ;;  %v16306_v16 = vld [vmem:[%s24153_s1 + $0xa48] ss:$28 sps:$4 sm:$0xff]  }
  0x86   :  { %10576 = vmatprep.subr.bf16.mxu0 %v16221_v17  ;;  %10404 = vmatprep.mubr.bf16.mxu1 %v16294_v20  ;;  %v16308_v14 = vld [vmem:[%s24153_s1 + $0xa4c] ss:$28 sps:$4 sm:$0xff]   ;;  %v16332_v20 = vld [vmem:[%s24153_s1 + $0x3104] ss:$28 sps:$4 sm:$0xff]  }
  0x87   :  { %10563 = vmatprep.mubr.bf16.mxu0 %v16300_v24  ;;  %v16311_v15 = vld [vmem:[%s24153_s1 + $0x14cc] ss:$28 sps:$4 sm:$0xff]   ;;  %v16324_v24 = vld [vmem:[%s24154_s0 + $0xfc] ss:$116 sps:$4 sm:$0xff]  }
  0x88   :  { %10418 = vmatpush1.bf16.msra.mxu1 %v16216_v18  ;;  %v16309_v17 = vld [vmem:[%s24153_s1 + $0x14c8] ss:$28 sps:$4 sm:$0xff]  }
  0x89   :  { %10577 = vmatpush1.bf16.msra.mxu0 %v16219_v19  ;;  %10419 = vmatprep.subr.bf16.mxu1 %v16224_v21  ;;  %v16320_v18 = vld [vmem:[%s24153_s1 + $0x1504] ss:$28 sps:$4 sm:$0xff]   ;;  %v16315_v21 = vld [vmem:[%s24154_s0 + $0x28] ss:$116 sps:$4 sm:$0xff]  }
  0x8a   :  { %10578 = vmatprep.subr.bf16.mxu0 %v16227_v22  ;;  %v16312_v19 = vld [vmem:[%s24154_s0 + $0x10] ss:$116 sps:$4 sm:$0xff]   ;;  %v16318_v22 = vld [vmem:[%s24153_s1 + $0x1500] ss:$28 sps:$4 sm:$0xff]  }
  0x8b   :  { %10405 = vmatmul.mubr.bf16.gmra.mrb[4].mxu1 %v16296_v26  ;;  %v16338_v26 = vld [vmem:[%s24153_s1 + $0xc] ss:$28 sps:$4 sm:$0xff]  }
  0x8c   :  { %10564 = vmatmul.mubr.bf16.gmra.mrb[4].mxu0 %v16305_v27  ;;  %10420 = vmatpush1.bf16.msra.mxu1 %v16222_v23  ;;  %v16323_v23 = vld [vmem:[%s24153_s1 + $0x153c] ss:$28 sps:$4 sm:$0xff]   ;;  %v16400_v27 = vld [vmem:[%s24154_s0 + $0x114] ss:$116 sps:$4 sm:$0xff]  }
  0x8d   :  { %10579 = vmatpush1.bf16.msra.mxu0 %v16225_v25  ;;  %10421 = vmatprep.subr.bf16.mxu1 %v16230_v28  ;;  %v16330_v25 = vld [vmem:[%s24153_s1 + $0x3100] ss:$28 sps:$4 sm:$0xff]   ;;  %v16321_v28 = vld [vmem:[%s24153_s1 + $0x1538] ss:$28 sps:$4 sm:$0xff]  }
  0x8e   :  { %10580 = vmatprep.subr.bf16.mxu0 %v16233_v29  ;;  %10447 = vmatprep.mubr.bf16.mxu1 %v16314_v33  ;;  %v16329_v29 = vld [vmem:[%s24153_s1 + $0x1574] ss:$28 sps:$4 sm:$0xff]   ;;  %v16335_v33 = vld [vmem:[%s24153_s1 + $0x15ac] ss:$28 sps:$4 sm:$0xff]  }
  0x8f   :  { %10606 = vmatprep.mubr.bf16.mxu0 %v16317_v35  ;;  %v16333_v35 = vld [vmem:[%s24153_s1 + $0x15a8] ss:$28 sps:$4 sm:$0xff]  }
  0x90   :  { %10422 = vmatpush1.bf16.msra.mxu1 %v16228_v30  ;;  %v16326_v30 = vld [vmem:[%s24154_s0 + $0xf8] ss:$116 sps:$4 sm:$0xff]  }
  0x91   :  { %10581 = vmatpush1.bf16.msra.mxu0 %v16231_v31  ;;  %10423 = vmatprep.subr.bf16.mxu1 %v16236_v32  ;;  %v16405_v31 = vld [vmem:[%s24154_s0 + $0x110] ss:$116 sps:$4 sm:$0xff]  }
  0x92   :  { %10582 = vmatprep.subr.bf16.mxu0 %v16239_v34  ;;  %v16327_v32 = vld [vmem:[%s24153_s1 + $0x1570] ss:$28 sps:$4 sm:$0xff]   ;;  %v16417_v34 = vld [vmem:[%s24154_s0 + $0x34] ss:$116 sps:$4 sm:$0xff]  }
  0x94   :  { %10424 = vmatpush1.bf16.msra.mxu1 %v16234_v36  ;;  %v18477_v36 = vmov 0  }
  0x95   :  { %10583 = vmatpush1.bf16.msra.mxu0 %v16237_v37  ;;  %10425 = vmatprep.subr.bf16.mxu1 %v16242_v38  ;;  %v16341_v37 = vld [vmem:[%s24153_s1 + $0x15e4] ss:$28 sps:$4 sm:$0xff]  }
  0x96   :  { %10584 = vmatprep.subr.bf16.mxu0 %v16245_v39  ;;  %v16342_v38 = vld [vmem:[%s24154_s0 + $0x70] ss:$116 sps:$4 sm:$0xff]  }
  0x97   :  { %v16336_v39 = vld [vmem:[%s24153_s1 + $0x8] ss:$28 sps:$4 sm:$0xff]  }
  0x98   :  { %10426 = vmatpush1.bf16.msra.mxu1 %v16240_v40  ;;  %v16339_v40 = vld [vmem:[%s24153_s1 + $0x15e0] ss:$28 sps:$4 sm:$0xff]  }
  0x99   :  { %10585 = vmatpush1.bf16.msra.mxu0 %v16243_v41  ;;  %10427 = vmatprep.subr.bf16.mxu1 %v16248_v42  ;;  %v16345_v41 = vld [vmem:[%s24153_s1 + $0x44] ss:$28 sps:$4 sm:$0xff]   ;;  %v16348_v42 = vld [vmem:[%s24153_s1 + $0x161c] ss:$28 sps:$4 sm:$0xff]  }
  0x9a   :  { %10586 = vmatprep.subr.bf16.mxu0 %v16251_v43  ;;  %v16343_v43 = vld [vmem:[%s24153_s1 + $0x40] ss:$28 sps:$4 sm:$0xff]  }
  0x9c   :  { %10428 = vmatpush1.bf16.msra.mxu1 %v16246_v44  ;;  %v16346_v44 = vld [vmem:[%s24153_s1 + $0x1618] ss:$28 sps:$4 sm:$0xff]  }
  0x9d   :  { %10587 = vmatpush1.bf16.msra.mxu0 %v16249_v45  ;;  %10429 = vmatprep.subr.bf16.mxu1 %v16254_v46  ;;  %v16351_v45 = vld [vmem:[%s24153_s1 + $0x7c] ss:$28 sps:$4 sm:$0xff]   ;;  %v16354_v46 = vld [vmem:[%s24153_s1 + $0x1654] ss:$28 sps:$4 sm:$0xff]  }
  0x9e   :  { %10588 = vmatprep.subr.bf16.mxu0 %v16257_v47  ;;  %v16433_v47 = vld [vmem:[%s24154_s0 + $0x158] ss:$116 sps:$4 sm:$0xff]  }
  0xa0   :  { %10430 = vmatpush1.bf16.msra.mxu1 %v16252_v48  ;;  %v16349_v48 = vld [vmem:[%s24153_s1 + $0x78] ss:$28 sps:$4 sm:$0xff]  }
  0xa1   :  { %10589 = vmatpush1.bf16.msra.mxu0 %v16255_v49  ;;  %10431 = vmatprep.subr.bf16.mxu1 %v16260_v50  ;;  %v16352_v49 = vld [vmem:[%s24153_s1 + $0x1650] ss:$28 sps:$4 sm:$0xff]  }
  0xa2   :  { %10590 = vmatprep.subr.bf16.mxu0 %v16263_v51  ;;  %v16357_v50 = vld [vmem:[%s24153_s1 + $0xb4] ss:$28 sps:$4 sm:$0xff]   ;;  %v16360_v51 = vld [vmem:[%s24153_s1 + $0x168c] ss:$28 sps:$4 sm:$0xff]  }
  0xa4   :  { %10432 = vmatpush1.bf16.msra.mxu1 %v16258_v52  ;;  %v16355_v52 = vld [vmem:[%s24153_s1 + $0xb0] ss:$28 sps:$4 sm:$0xff]  }
  0xa5   :  { %10591 = vmatpush1.bf16.msra.mxu0 %v16261_v53  ;;  %10433 = vmatprep.subr.bf16.mxu1 %v16266_v54  ;;  %v16358_v53 = vld [vmem:[%s24153_s1 + $0x1688] ss:$28 sps:$4 sm:$0xff]  }
  0xa6   :  { %10592 = vmatprep.subr.bf16.mxu0 %v16269_v55  ;;  %v16363_v54 = vld [vmem:[%s24153_s1 + $0xec] ss:$28 sps:$4 sm:$0xff]   ;;  %v16366_v55 = vld [vmem:[%s24153_s1 + $0x16c4] ss:$28 sps:$4 sm:$0xff]  }
  0xa8   :  { %10434 = vmatpush1.bf16.msra.mxu1 %v16264_v56  ;;  %v18336_v56 = vld [vmem:[%s24154_s0 + $0x4] ss:$116 sps:$4 sm:$0xff]  }
  0xa9   :  { %10593 = vmatpush1.bf16.msra.mxu0 %v16267_v57  ;;  %10435 = vmatprep.subr.bf16.mxu1 %v16272_v58  ;;  %v16361_v57 = vld [vmem:[%s24153_s1 + $0xe8] ss:$28 sps:$4 sm:$0xff]   ;;  %v16364_v58 = vld [vmem:[%s24153_s1 + $0x16c0] ss:$28 sps:$4 sm:$0xff]  }
  0xaa   :  { %10594 = vmatprep.subr.bf16.mxu0 %v16275_v59  ;;  %v16369_v59 = vld [vmem:[%s24153_s1 + $0x124] ss:$28 sps:$4 sm:$0xff]  }
  0xac   :  { %10436 = vmatpush1.bf16.msra.mxu1 %v16270_v60  ;;  %v16372_v60 = vld [vmem:[%s24153_s1 + $0x16fc] ss:$28 sps:$4 sm:$0xff]  }
  0xad   :  { %10595 = vmatpush1.bf16.msra.mxu0 %v16273_v61  ;;  %10437 = vmatprep.subr.bf16.mxu1 %v16278_v62  ;;  %v16367_v61 = vld [vmem:[%s24153_s1 + $0x120] ss:$28 sps:$4 sm:$0xff]   ;;  %v16370_v62 = vld [vmem:[%s24153_s1 + $0x16f8] ss:$28 sps:$4 sm:$0xff]  }
  0xae   :  { %10596 = vmatprep.subr.bf16.mxu0 %v16281_v63  ;;  %v16375_v63 = vld [vmem:[%s24153_s1 + $0x15c] ss:$28 sps:$4 sm:$0xff]  }
  0xb0   :  { %10438 = vmatpush1.bf16.msra.mxu1 %v16276_v0  ;;  %v16378_v0 = vld [vmem:[%s24153_s1 + $0x1734] ss:$28 sps:$4 sm:$0xff]  }
  0xb1   :  { %10597 = vmatpush1.bf16.msra.mxu0 %v16279_v1  ;;  %10439 = vmatprep.subr.bf16.mxu1 %v16284_v2  ;;  %v16373_v1 = vld [vmem:[%s24153_s1 + $0x158] ss:$28 sps:$4 sm:$0xff]   ;;  %v16376_v2 = vld [vmem:[%s24153_s1 + $0x1730] ss:$28 sps:$4 sm:$0xff]  }
  0xb2   :  { %10598 = vmatprep.subr.bf16.mxu0 %v16287_v3  ;;  %v16381_v3 = vld [vmem:[%s24153_s1 + $0x194] ss:$28 sps:$4 sm:$0xff]  }
  0xb4   :  { %10440 = vmatpush1.bf16.msra.mxu1 %v16282_v4  ;;  %v16384_v4 = vld [vmem:[%s24153_s1 + $0x176c] ss:$28 sps:$4 sm:$0xff]  }
  0xb5   :  { %10599 = vmatpush1.bf16.msra.mxu0 %v16285_v5  ;;  %10441 = vmatprep.subr.bf16.mxu1 %v16290_v6  ;;  %v16379_v5 = vld [vmem:[%s24153_s1 + $0x190] ss:$28 sps:$4 sm:$0xff]   ;;  %v16382_v6 = vld [vmem:[%s24153_s1 + $0x1768] ss:$28 sps:$4 sm:$0xff]  }
  0xb6   :  { %10600 = vmatprep.subr.bf16.mxu0 %v16293_v7  ;;  %v16387_v7 = vld [vmem:[%s24153_s1 + $0x1cc] ss:$28 sps:$4 sm:$0xff]  }
  0xb8   :  { %10442 = vmatpush1.bf16.msra.mxu1 %v16288_v8  ;;  %v16390_v8 = vld [vmem:[%s24153_s1 + $0x17a4] ss:$28 sps:$4 sm:$0xff]  }
  0xb9   :  { %10601 = vmatpush1.bf16.msra.mxu0 %v16291_v9  ;;  %10443 = vmatprep.subr.bf16.mxu1 %v16299_v10  ;;  %v16385_v9 = vld [vmem:[%s24153_s1 + $0x1c8] ss:$28 sps:$4 sm:$0xff]   ;;  %v16388_v10 = vld [vmem:[%s24153_s1 + $0x17a0] ss:$28 sps:$4 sm:$0xff]  }
  0xba   :  { %10602 = vmatprep.subr.bf16.mxu0 %v16304_v11  ;;  %v16393_v11 = vld [vmem:[%s24153_s1 + $0x204] ss:$28 sps:$4 sm:$0xff]  }
  0xbc   :  { %10444 = vmatpush1.bf16.msra.mxu1 %v16297_v12  ;;  %v16396_v12 = vld [vmem:[%s24153_s1 + $0x17dc] ss:$28 sps:$4 sm:$0xff]  }
  0xbd   :  { %10603 = vmatpush1.bf16.msra.mxu0 %v16302_v13  ;;  %10445 = vmatprep.subr.bf16.mxu1 %v16308_v14  ;;  %v16391_v13 = vld [vmem:[%s24153_s1 + $0x200] ss:$28 sps:$4 sm:$0xff]   ;;  %v16394_v14 = vld [vmem:[%s24153_s1 + $0x17d8] ss:$28 sps:$4 sm:$0xff]  }
  0xbe   :  { %10604 = vmatprep.subr.bf16.mxu0 %v16311_v15  ;;  %v16399_v15 = vld [vmem:[%s24153_s1 + $0x23c] ss:$28 sps:$4 sm:$0xff]  }
  0xc0   :  { %10446 = vmatpush1.bf16.msra.mxu1 %v16306_v16  ;;  %v16404_v16 = vld [vmem:[%s24153_s1 + $0x1814] ss:$28 sps:$4 sm:$0xff]  }
  0xc1   :  { %10605 = vmatpush1.bf16.msra.mxu0 %v16309_v17  ;;  %11051 = vmatprep.subr.bf16.mxu1 %v16332_v20  ;;  %v16397_v17 = vld [vmem:[%s24153_s1 + $0x238] ss:$28 sps:$4 sm:$0xff]   ;;  %v16411_v20 = vld [vmem:[%s24153_s1 + $0x184c] ss:$28 sps:$4 sm:$0xff]  }
  0xc2   :  { %10627 = vmatprep.subr.bf16.mxu0 %v16320_v18  ;;  %v16402_v18 = vld [vmem:[%s24153_s1 + $0x1810] ss:$28 sps:$4 sm:$0xff]  }
  0xc3   :  { %10448 = vmatmul.mubr.bf16.vlgmr.msra.gmra.mrb[0].mxu1 %v16312_v19  ;;  %v16408_v19 = vld [vmem:[%s24153_s1 + $0x274] ss:$28 sps:$4 sm:$0xff]  }
  0xc4   :  { %10607 = vmatmul.mubr.bf16.vlgmr.msra.gmra.mrb[0].mxu0 %v16315_v21  ;;  %10457 = vmatprep.mubr.bf16.mxu1 %v16324_v24  ;;  %v16406_v21 = vld [vmem:[%s24153_s1 + $0x270] ss:$28 sps:$4 sm:$0xff]   ;;  %v16420_v24 = vld [vmem:[%s24153_s1 + $0x1884] ss:$28 sps:$4 sm:$0xff]  }
  0xc5   :  { %10628 = vmatpush1.bf16.msra.mxu0 %v16318_v22  ;;  %11052 = vmatpush1.bf16.msra.mxu1 %v16330_v25  ;;  %v16409_v22 = vld [vmem:[%s24153_s1 + $0x1848] ss:$28 sps:$4 sm:$0xff]  }
  0xc6   :  { %10629 = vmatprep.subr.bf16.mxu0 %v16323_v23  ;;  %11104 = vmatprep.subr.bf16.mxu1 %v16338_v26  ;;  %v16414_v23 = vld [vmem:[%s24153_s1 + $0x2ac] ss:$28 sps:$4 sm:$0xff]   ;;  %v16415_v25 = vld [vmem:[%s24154_s0 + $0x30] ss:$116 sps:$4 sm:$0xff]  }
  0xc7   :  { %10616 = vmatprep.mubr.bf16.mxu0 %v16400_v27  ;;  %v16412_v26 = vld [vmem:[%s24153_s1 + $0x2a8] ss:$28 sps:$4 sm:$0xff]   ;;  %v16418_v27 = vld [vmem:[%s24153_s1 + $0x1880] ss:$28 sps:$4 sm:$0xff]  }
  0xc9   :  { %10630 = vmatpush1.bf16.msra.mxu0 %v16321_v28  ;;  %v16423_v28 = vld [vmem:[%s24153_s1 + $0x2e4] ss:$28 sps:$4 sm:$0xff]  }
  0xca   :  { %10631 = vmatprep.subr.bf16.mxu0 %v16329_v29  ;;  %v16426_v29 = vld [vmem:[%s24153_s1 + $0x18bc] ss:$28 sps:$4 sm:$0xff]  }
  0xcb   :  { %10458 = vmatmul.mubr.bf16.gmra.mrb[4].mxu1 %v16326_v30  ;;  %v16503_v30 = vld [vmem:[%s24154_s0 + $0x11c] ss:$116 sps:$4 sm:$0xff]  }
  0xcc   :  { %10617 = vmatmul.mubr.bf16.gmra.mrb[4].mxu0 %v16405_v31  ;;  %11083 = vmatprep.mubr.bf16.mxu1 %v18477_v36  ;;  %v16421_v31 = vld [vmem:[%s24153_s1 + $0x2e0] ss:$28 sps:$4 sm:$0xff]  }
  0xcd   :  { %10632 = vmatpush1.bf16.msra.mxu0 %v16327_v32  ;;  %10659 = vmatprep.mubr.bf16.mxu0 %v16417_v34  ;;  %v16424_v32 = vld [vmem:[%s24153_s1 + $0x18b8] ss:$28 sps:$4 sm:$0xff]  }
  0xce   :  { %10633 = vmatprep.subr.bf16.mxu0 %v16335_v33  ;;  %v16429_v33 = vld [vmem:[%s24153_s1 + $0x31c] ss:$28 sps:$4 sm:$0xff]   ;;  %v16432_v34 = vld [vmem:[%s24153_s1 + $0x18f4] ss:$28 sps:$4 sm:$0xff]  }
  0xd1   :  { %10634 = vmatpush1.bf16.msra.mxu0 %v16333_v35  ;;  %v16508_v35 = vld [vmem:[%s24154_s0 + $0x118] ss:$116 sps:$4 sm:$0xff]  }
  0xd2   :  { %10635 = vmatprep.subr.bf16.mxu0 %v16341_v37  ;;  %v16427_v37 = vld [vmem:[%s24153_s1 + $0x318] ss:$28 sps:$4 sm:$0xff]  }
  0xd3   :  { %15198 = vmatmul.mubr.msk.bf16.vlgmr.msra.gmra.mrb[8].mxu1 %vm10302_vm0, %v16342_v38  ;;  %v16430_v38 = vld [vmem:[%s24153_s1 + $0x18f0] ss:$28 sps:$4 sm:$0xff]  }
  0xd4   :  { %11105 = vmatpush1.bf16.msra.mxu1 %v16336_v39  ;;  %11093 = vmatprep.mubr.bf16.mxu1 %v18477_v36  ;;  %v16436_v39 = vld [vmem:[%s24153_s1 + $0x354] ss:$28 sps:$4 sm:$0xff]  }
  0xd5   :  { %10636 = vmatpush1.bf16.msra.mxu0 %v16339_v40  ;;  %11106 = vmatprep.subr.bf16.mxu1 %v16345_v41  ;;  %v16439_v40 = vld [vmem:[%s24153_s1 + $0x192c] ss:$28 sps:$4 sm:$0xff]   ;;  %v16520_v41 = vld [vmem:[%s24154_s0 + $0x3c] ss:$116 sps:$4 sm:$0xff]  }
  0xd6   :  { %10637 = vmatprep.subr.bf16.mxu0 %v16348_v42  ;;  %v16434_v42 = vld [vmem:[%s24153_s1 + $0x350] ss:$28 sps:$4 sm:$0xff]  }
  0xd8   :  { %11107 = vmatpush1.bf16.msra.mxu1 %v16343_v43  ;;  %v16437_v43 = vld [vmem:[%s24153_s1 + $0x1928] ss:$28 sps:$4 sm:$0xff]  }
  0xd9   :  { %10638 = vmatpush1.bf16.msra.mxu0 %v16346_v44  ;;  %11108 = vmatprep.subr.bf16.mxu1 %v16351_v45  ;;  %v16442_v44 = vld [vmem:[%s24153_s1 + $0x38c] ss:$28 sps:$4 sm:$0xff]   ;;  %v16445_v45 = vld [vmem:[%s24153_s1 + $0x1964] ss:$28 sps:$4 sm:$0xff]  }
  0xda   :  { %10639 = vmatprep.subr.bf16.mxu0 %v16354_v46  ;;  %v16440_v46 = vld [vmem:[%s24153_s1 + $0x388] ss:$28 sps:$4 sm:$0xff]  }
  0xdb   :  { %15199 = vmatmul.mubr.msk.bf16.gmra.mrb[12].mxu1 %vm10302_vm0, %v16433_v47  ;;  %v16443_v47 = vld [vmem:[%s24153_s1 + $0x1960] ss:$28 sps:$4 sm:$0xff]  }
  0xdc   :  { %11109 = vmatpush1.bf16.msra.mxu1 %v16349_v48  ;;  %11136 = vmatprep.mubr.bf16.mxu1 %v18336_v56  ;;  %v16448_v48 = vld [vmem:[%s24153_s1 + $0x3c4] ss:$28 sps:$4 sm:$0xff]   ;;  %v16452_v56 = vld [vmem:[%s24153_s1 + $0x3f8] ss:$28 sps:$4 sm:$0xff]  }
  0xdd   :  { %10640 = vmatpush1.bf16.msra.mxu0 %v16352_v49  ;;  %11110 = vmatprep.subr.bf16.mxu1 %v16357_v50  ;;  %v16451_v49 = vld [vmem:[%s24153_s1 + $0x199c] ss:$28 sps:$4 sm:$0xff]   ;;  %v18337_v50 = vld [vmem:[%s24154_s0] ss:$116 sps:$4 sm:$0xff]  }
  0xde   :  { %10641 = vmatprep.subr.bf16.mxu0 %v16360_v51  ;;  %v16446_v51 = vld [vmem:[%s24153_s1 + $0x3c0] ss:$28 sps:$4 sm:$0xff]  }
  0xe0   :  { %11111 = vmatpush1.bf16.msra.mxu1 %v16355_v52  ;;  %v16449_v52 = vld [vmem:[%s24153_s1 + $0x1998] ss:$28 sps:$4 sm:$0xff]  }
  0xe1   :  { %10642 = vmatpush1.bf16.msra.mxu0 %v16358_v53  ;;  %11112 = vmatprep.subr.bf16.mxu1 %v16363_v54  ;;  %v16454_v53 = vld [vmem:[%s24153_s1 + $0x3fc] ss:$28 sps:$4 sm:$0xff]   ;;  %v16457_v54 = vld [vmem:[%s24153_s1 + $0x19d4] ss:$28 sps:$4 sm:$0xff]  }
  0xe2   :  { %10643 = vmatprep.subr.bf16.mxu0 %v16366_v55  ;;  %v18338_v55 = vld [vmem:[%s24154_s0 + $0xec] ss:$116 sps:$4 sm:$0xff]  }
  0xe4   :  { %11113 = vmatpush1.bf16.msra.mxu1 %v16361_v57  ;;  %v16455_v57 = vld [vmem:[%s24153_s1 + $0x19d0] ss:$28 sps:$4 sm:$0xff]  }
  0xe5   :  { %10644 = vmatpush1.bf16.msra.mxu0 %v16364_v58  ;;  %11114 = vmatprep.subr.bf16.mxu1 %v16369_v59  ;;  %v16460_v58 = vld [vmem:[%s24153_s1 + $0x434] ss:$28 sps:$4 sm:$0xff]   ;;  %v16463_v59 = vld [vmem:[%s24153_s1 + $0x1a0c] ss:$28 sps:$4 sm:$0xff]  }
  0xe6   :  { %10645 = vmatprep.subr.bf16.mxu0 %v16372_v60  ;;  %v18339_v60 = vld [vmem:[%s24154_s0 + $0xe8] ss:$116 sps:$4 sm:$0xff]  }
  0xe8   :  { %11115 = vmatpush1.bf16.msra.mxu1 %v16367_v61  ;;  %v16458_v61 = vld [vmem:[%s24153_s1 + $0x430] ss:$28 sps:$4 sm:$0xff]  }
  0xe9   :  { %10646 = vmatpush1.bf16.msra.mxu0 %v16370_v62  ;;  %11116 = vmatprep.subr.bf16.mxu1 %v16375_v63  ;;  %v16461_v62 = vld [vmem:[%s24153_s1 + $0x1a08] ss:$28 sps:$4 sm:$0xff]  }
  0xea   :  { %10647 = vmatprep.subr.bf16.mxu0 %v16378_v0  ;;  %v16466_v63 = vld [vmem:[%s24153_s1 + $0x46c] ss:$28 sps:$4 sm:$0xff]   ;;  %v16469_v0 = vld [vmem:[%s24153_s1 + $0x1a44] ss:$28 sps:$4 sm:$0xff]  }
  0xec   :  { %11117 = vmatpush1.bf16.msra.mxu1 %v16373_v1  ;;  %v18340_v1 = vld [vmem:[%s24154_s0 + $0xc] ss:$116 sps:$4 sm:$0xff]  }
  0xed   :  { %10648 = vmatpush1.bf16.msra.mxu0 %v16376_v2  ;;  %11118 = vmatprep.subr.bf16.mxu1 %v16381_v3  ;;  %v16464_v2 = vld [vmem:[%s24153_s1 + $0x468] ss:$28 sps:$4 sm:$0xff]   ;;  %v16467_v3 = vld [vmem:[%s24153_s1 + $0x1a40] ss:$28 sps:$4 sm:$0xff]  }
  0xee   :  { %10649 = vmatprep.subr.bf16.mxu0 %v16384_v4  ;;  %v16472_v4 = vld [vmem:[%s24153_s1 + $0x4a4] ss:$28 sps:$4 sm:$0xff]  }
  0xf0   :  { %11119 = vmatpush1.bf16.msra.mxu1 %v16379_v5  ;;  %v16475_v5 = vld [vmem:[%s24153_s1 + $0x1a7c] ss:$28 sps:$4 sm:$0xff]  }
  0xf1   :  { %10650 = vmatpush1.bf16.msra.mxu0 %v16382_v6  ;;  %11120 = vmatprep.subr.bf16.mxu1 %v16387_v7  ;;  %v16470_v6 = vld [vmem:[%s24153_s1 + $0x4a0] ss:$28 sps:$4 sm:$0xff]   ;;  %v16473_v7 = vld [vmem:[%s24153_s1 + $0x1a78] ss:$28 sps:$4 sm:$0xff]  }
  0xf2   :  { %10651 = vmatprep.subr.bf16.mxu0 %v16390_v8  ;;  %v16478_v8 = vld [vmem:[%s24153_s1 + $0x4dc] ss:$28 sps:$4 sm:$0xff]  }
  0xf4   :  { %11121 = vmatpush1.bf16.msra.mxu1 %v16385_v9  ;;  %v16481_v9 = vld [vmem:[%s24153_s1 + $0x1ab4] ss:$28 sps:$4 sm:$0xff]  }
  0xf5   :  { %10652 = vmatpush1.bf16.msra.mxu0 %v16388_v10  ;;  %11122 = vmatprep.subr.bf16.mxu1 %v16393_v11  ;;  %v16476_v10 = vld [vmem:[%s24153_s1 + $0x4d8] ss:$28 sps:$4 sm:$0xff]   ;;  %v16479_v11 = vld [vmem:[%s24153_s1 + $0x1ab0] ss:$28 sps:$4 sm:$0xff]  }
  0xf6   :  { %10653 = vmatprep.subr.bf16.mxu0 %v16396_v12  ;;  %v16484_v12 = vld [vmem:[%s24153_s1 + $0x514] ss:$28 sps:$4 sm:$0xff]  }
  0xf8   :  { %11123 = vmatpush1.bf16.msra.mxu1 %v16391_v13  ;;  %v16487_v13 = vld [vmem:[%s24153_s1 + $0x1aec] ss:$28 sps:$4 sm:$0xff]  }
  0xf9   :  { %10654 = vmatpush1.bf16.msra.mxu0 %v16394_v14  ;;  %11124 = vmatprep.subr.bf16.mxu1 %v16399_v15  ;;  %v16482_v14 = vld [vmem:[%s24153_s1 + $0x510] ss:$28 sps:$4 sm:$0xff]   ;;  %v16485_v15 = vld [vmem:[%s24153_s1 + $0x1ae8] ss:$28 sps:$4 sm:$0xff]  }
  0xfa   :  { %10655 = vmatprep.subr.bf16.mxu0 %v16404_v16  ;;  %v16490_v16 = vld [vmem:[%s24153_s1 + $0x54c] ss:$28 sps:$4 sm:$0xff]  }
  0xfc   :  { %11125 = vmatpush1.bf16.msra.mxu1 %v16397_v17  ;;  %v16493_v17 = vld [vmem:[%s24153_s1 + $0x1b24] ss:$28 sps:$4 sm:$0xff]  }
  0xfd   :  { %10656 = vmatpush1.bf16.msra.mxu0 %v16402_v18  ;;  %11126 = vmatprep.subr.bf16.mxu1 %v16408_v19  ;;  %v16488_v18 = vld [vmem:[%s24153_s1 + $0x548] ss:$28 sps:$4 sm:$0xff]   ;;  %v16491_v19 = vld [vmem:[%s24153_s1 + $0x1b20] ss:$28 sps:$4 sm:$0xff]  }
  0xfe   :  { %10657 = vmatprep.subr.bf16.mxu0 %v16411_v20  ;;  %v16496_v20 = vld [vmem:[%s24153_s1 + $0x584] ss:$28 sps:$4 sm:$0xff]  }
 0x100   :  { %11127 = vmatpush1.bf16.msra.mxu1 %v16406_v21  ;;  %v16499_v21 = vld [vmem:[%s24153_s1 + $0x1b5c] ss:$28 sps:$4 sm:$0xff]  }
 0x101   :  { %10658 = vmatpush1.bf16.msra.mxu0 %v16409_v22  ;;  %11128 = vmatprep.subr.bf16.mxu1 %v16414_v23  ;;  %v16494_v22 = vld [vmem:[%s24153_s1 + $0x580] ss:$28 sps:$4 sm:$0xff]   ;;  %v16497_v23 = vld [vmem:[%s24153_s1 + $0x1b58] ss:$28 sps:$4 sm:$0xff]  }
 0x102   :  { %10680 = vmatprep.subr.bf16.mxu0 %v16420_v24  ;;  %v16502_v24 = vld [vmem:[%s24153_s1 + $0x5bc] ss:$28 sps:$4 sm:$0xff]  }
 0x104   :  { %10660 = vmatmul.mubr.bf16.vlgmr.msra.gmra.mrb[0].mxu0 %v16415_v25  ;;  %11129 = vmatpush1.bf16.msra.mxu1 %v16412_v26  ;;  %v16507_v25 = vld [vmem:[%s24153_s1 + $0x1b94] ss:$28 sps:$4 sm:$0xff]  }
 0x105   :  { %10681 = vmatpush1.bf16.msra.mxu0 %v16418_v27  ;;  %11130 = vmatprep.subr.bf16.mxu1 %v16423_v28  ;;  %v16500_v26 = vld [vmem:[%s24153_s1 + $0x5b8] ss:$28 sps:$4 sm:$0xff]   ;;  %v16505_v27 = vld [vmem:[%s24153_s1 + $0x1b90] ss:$28 sps:$4 sm:$0xff]  }
 0x106   :  { %10682 = vmatprep.subr.bf16.mxu0 %v16426_v29  ;;  %10669 = vmatprep.mubr.bf16.mxu0 %v16503_v30  ;;  %v16511_v28 = vld [vmem:[%s24153_s1 + $0x5f4] ss:$28 sps:$4 sm:$0xff]   ;;  %v16514_v29 = vld [vmem:[%s24153_s1 + $0x1bcc] ss:$28 sps:$4 sm:$0xff]  }
 0x107   :  { %v16509_v30 = vld [vmem:[%s24153_s1 + $0x5f0] ss:$28 sps:$4 sm:$0xff]  }
 0x108   :  { %11131 = vmatpush1.bf16.msra.mxu1 %v16421_v31  ;;  %v16512_v31 = vld [vmem:[%s24153_s1 + $0x1bc8] ss:$28 sps:$4 sm:$0xff]  }
 0x109   :  { %10683 = vmatpush1.bf16.msra.mxu0 %v16424_v32  ;;  %11132 = vmatprep.subr.bf16.mxu1 %v16429_v33  ;;  %v16517_v32 = vld [vmem:[%s24153_s1 + $0x62c] ss:$28 sps:$4 sm:$0xff]   ;;  %v16523_v33 = vld [vmem:[%s24153_s1 + $0x1c04] ss:$28 sps:$4 sm:$0xff]  }
 0x10a   :  { %10684 = vmatprep.subr.bf16.mxu0 %v16432_v34  ;;  %v16515_v34 = vld [vmem:[%s24153_s1 + $0x628] ss:$28 sps:$4 sm:$0xff]  }
 0x10c   :  { %10670 = vmatmul.mubr.bf16.gmra.mrb[4].mxu0 %v16508_v35  ;;  %11133 = vmatpush1.bf16.msra.mxu1 %v16427_v37  ;;  %v16518_v35 = vld [vmem:[%s24154_s0 + $0x38] ss:$116 sps:$4 sm:$0xff]   ;;  %v16521_v37 = vld [vmem:[%s24153_s1 + $0x1c00] ss:$28 sps:$4 sm:$0xff]  }
 0x10d   :  { %10685 = vmatpush1.bf16.msra.mxu0 %v16430_v38  ;;  %11134 = vmatprep.subr.bf16.mxu1 %v16436_v39  ;;  %v16526_v38 = vld [vmem:[%s24153_s1 + $0x664] ss:$28 sps:$4 sm:$0xff]   ;;  %v16529_v39 = vld [vmem:[%s24153_s1 + $0x1c3c] ss:$28 sps:$4 sm:$0xff]  }
 0x10e   :  { %10686 = vmatprep.subr.bf16.mxu0 %v16439_v40  ;;  %10712 = vmatprep.mubr.bf16.mxu0 %v16520_v41  ;;  %v16605_v40 = vld [vmem:[%s24154_s0 + $0x124] ss:$116 sps:$4 sm:$0xff]   ;;  %v16524_v41 = vld [vmem:[%s24153_s1 + $0x660] ss:$28 sps:$4 sm:$0xff]  }
 0x110   :  { %11135 = vmatpush1.bf16.msra.mxu1 %v16434_v42  ;;  %v16527_v42 = vld [vmem:[%s24153_s1 + $0x1c38] ss:$28 sps:$4 sm:$0xff]  }
 0x111   :  { %10687 = vmatpush1.bf16.msra.mxu0 %v16437_v43  ;;  %11157 = vmatprep.subr.bf16.mxu1 %v16442_v44  ;;  %v16532_v43 = vld [vmem:[%s24153_s1 + $0x69c] ss:$28 sps:$4 sm:$0xff]   ;;  %v16535_v44 = vld [vmem:[%s24153_s1 + $0x1c74] ss:$28 sps:$4 sm:$0xff]  }
 0x112   :  { %10688 = vmatprep.subr.bf16.mxu0 %v16445_v45  ;;  %v16530_v45 = vld [vmem:[%s24153_s1 + $0x698] ss:$28 sps:$4 sm:$0xff]  }
 0x113   :  { %11137 = vmatmul.mubr.bf16.vlgmr.msra.gmra.mrb[16].mxu1 %v18337_v50  ;;  %v16622_v50 = vld [vmem:[%s24154_s0 + $0x44] ss:$116 sps:$4 sm:$0xff]  }
 0x114   :  { %11158 = vmatpush1.bf16.msra.mxu1 %v16440_v46  ;;  %11146 = vmatprep.mubr.bf16.mxu1 %v18338_v55  ;;  %v16610_v46 = vld [vmem:[%s24154_s0 + $0x120] ss:$116 sps:$4 sm:$0xff]   ;;  %v16542_v55 = vld [vmem:[%s24153_s1 + $0x708] ss:$28 sps:$4 sm:$0xff]  }
 0x115   :  { %10689 = vmatpush1.bf16.msra.mxu0 %v16443_v47  ;;  %11159 = vmatprep.subr.bf16.mxu1 %v16448_v48  ;;  %v16533_v47 = vld [vmem:[%s24153_s1 + $0x1c70] ss:$28 sps:$4 sm:$0xff]  }
 0x116   :  { %10690 = vmatprep.subr.bf16.mxu0 %v16451_v49  ;;  %v16538_v48 = vld [vmem:[%s24153_s1 + $0x6d4] ss:$28 sps:$4 sm:$0xff]   ;;  %v16541_v49 = vld [vmem:[%s24153_s1 + $0x1cac] ss:$28 sps:$4 sm:$0xff]  }
 0x118   :  { %11160 = vmatpush1.bf16.msra.mxu1 %v16446_v51  ;;  %v16536_v51 = vld [vmem:[%s24153_s1 + $0x6d0] ss:$28 sps:$4 sm:$0xff]  }
 0x119   :  { %10691 = vmatpush1.bf16.msra.mxu0 %v16449_v52  ;;  %11161 = vmatprep.subr.bf16.mxu1 %v16454_v53  ;;  %v16539_v52 = vld [vmem:[%s24153_s1 + $0x1ca8] ss:$28 sps:$4 sm:$0xff]  }
 0x11a   :  { %10692 = vmatprep.subr.bf16.mxu0 %v16457_v54  ;;  %v16544_v53 = vld [vmem:[%s24153_s1 + $0x70c] ss:$28 sps:$4 sm:$0xff]   ;;  %v16547_v54 = vld [vmem:[%s24153_s1 + $0x1ce4] ss:$28 sps:$4 sm:$0xff]  }
 0x11b   :  { %11147 = vmatmul.mubr.bf16.gmra.mrb[20].mxu1 %v18339_v60  ;;  %v16548_v60 = vld [vmem:[%s24153_s1 + $0x740] ss:$28 sps:$4 sm:$0xff]  }
 0x11c   :  { %11162 = vmatpush1.bf16.msra.mxu1 %v16452_v56  ;;  %11189 = vmatprep.mubr.bf16.mxu1 %v18340_v1  ;;  %v16545_v56 = vld [vmem:[%s24153_s1 + $0x1ce0] ss:$28 sps:$4 sm:$0xff]   ;;  %v16554_v1 = vld [vmem:[%s24153_s1 + $0x778] ss:$28 sps:$4 sm:$0xff]  }
 0x11d   :  { %10693 = vmatpush1.bf16.msra.mxu0 %v16455_v57  ;;  %11163 = vmatprep.subr.bf16.mxu1 %v16460_v58  ;;  %v16550_v57 = vld [vmem:[%s24153_s1 + $0x744] ss:$28 sps:$4 sm:$0xff]   ;;  %v16553_v58 = vld [vmem:[%s24153_s1 + $0x1d1c] ss:$28 sps:$4 sm:$0xff]  }
 0x11e   :  { %10694 = vmatprep.subr.bf16.mxu0 %v16463_v59  ;;  %v18341_v59 = vld [vmem:[%s24154_s0 + $0x8] ss:$116 sps:$4 sm:$0xff]  }
 0x120   :  { %11164 = vmatpush1.bf16.msra.mxu1 %v16458_v61  ;;  %v16551_v61 = vld [vmem:[%s24153_s1 + $0x1d18] ss:$28 sps:$4 sm:$0xff]  }
 0x121   :  { %10695 = vmatpush1.bf16.msra.mxu0 %v16461_v62  ;;  %11165 = vmatprep.subr.bf16.mxu1 %v16466_v63  ;;  %v16556_v62 = vld [vmem:[%s24153_s1 + $0x77c] ss:$28 sps:$4 sm:$0xff]   ;;  %v16559_v63 = vld [vmem:[%s24153_s1 + $0x1d54] ss:$28 sps:$4 sm:$0xff]  }
 0x122   :  { %10696 = vmatprep.subr.bf16.mxu0 %v16469_v0  ;;  %v18342_v0 = vld [vmem:[%s24154_s0 + $0xf4] ss:$116 sps:$4 sm:$0xff]  }
 0x124   :  { %11166 = vmatpush1.bf16.msra.mxu1 %v16464_v2  ;;  %v16557_v2 = vld [vmem:[%s24153_s1 + $0x1d50] ss:$28 sps:$4 sm:$0xff]  }
 0x125   :  { %10697 = vmatpush1.bf16.msra.mxu0 %v16467_v3  ;;  %11167 = vmatprep.subr.bf16.mxu1 %v16472_v4  ;;  %v16562_v3 = vld [vmem:[%s24153_s1 + $0x7b4] ss:$28 sps:$4 sm:$0xff]   ;;  %v16565_v4 = vld [vmem:[%s24153_s1 + $0x1d8c] ss:$28 sps:$4 sm:$0xff]  }
 0x126   :  { %10698 = vmatprep.subr.bf16.mxu0 %v16475_v5  ;;  %v18343_v5 = vld [vmem:[%s24154_s0 + $0xf0] ss:$116 sps:$4 sm:$0xff]  }
 0x128   :  { %11168 = vmatpush1.bf16.msra.mxu1 %v16470_v6  ;;  %v16560_v6 = vld [vmem:[%s24153_s1 + $0x7b0] ss:$28 sps:$4 sm:$0xff]  }
 0x129   :  { %10699 = vmatpush1.bf16.msra.mxu0 %v16473_v7  ;;  %11169 = vmatprep.subr.bf16.mxu1 %v16478_v8  ;;  %v16563_v7 = vld [vmem:[%s24153_s1 + $0x1d88] ss:$28 sps:$4 sm:$0xff]  }
 0x12a   :  { %10700 = vmatprep.subr.bf16.mxu0 %v16481_v9  ;;  %v16568_v8 = vld [vmem:[%s24153_s1 + $0x7ec] ss:$28 sps:$4 sm:$0xff]   ;;  %v16571_v9 = vld [vmem:[%s24153_s1 + $0x1dc4] ss:$28 sps:$4 sm:$0xff]  }
 0x12c   :  { %11170 = vmatpush1.bf16.msra.mxu1 %v16476_v10  ;;  %v18344_v10 = vld [vmem:[%s24154_s0 + $0x14] ss:$116 sps:$4 sm:$0xff]  }
 0x12d   :  { %10701 = vmatpush1.bf16.msra.mxu0 %v16479_v11  ;;  %11171 = vmatprep.subr.bf16.mxu1 %v16484_v12  ;;  %v16566_v11 = vld [vmem:[%s24153_s1 + $0x7e8] ss:$28 sps:$4 sm:$0xff]   ;;  %v16569_v12 = vld [vmem:[%s24153_s1 + $0x1dc0] ss:$28 sps:$4 sm:$0xff]  }
 0x12e   :  { %10702 = vmatprep.subr.bf16.mxu0 %v16487_v13  ;;  %v16574_v13 = vld [vmem:[%s24153_s1 + $0x824] ss:$28 sps:$4 sm:$0xff]  }
 0x130   :  { %11172 = vmatpush1.bf16.msra.mxu1 %v16482_v14  ;;  %v16577_v14 = vld [vmem:[%s24153_s1 + $0x1dfc] ss:$28 sps:$4 sm:$0xff]  }
 0x131   :  { %10703 = vmatpush1.bf16.msra.mxu0 %v16485_v15  ;;  %11173 = vmatprep.subr.bf16.mxu1 %v16490_v16  ;;  %v16572_v15 = vld [vmem:[%s24153_s1 + $0x820] ss:$28 sps:$4 sm:$0xff]   ;;  %v16575_v16 = vld [vmem:[%s24153_s1 + $0x1df8] ss:$28 sps:$4 sm:$0xff]  }
 0x132   :  { %10704 = vmatprep.subr.bf16.mxu0 %v16493_v17  ;;  %v16580_v17 = vld [vmem:[%s24153_s1 + $0x85c] ss:$28 sps:$4 sm:$0xff]  }
 0x134   :  { %11174 = vmatpush1.bf16.msra.mxu1 %v16488_v18  ;;  %v16583_v18 = vld [vmem:[%s24153_s1 + $0x1e34] ss:$28 sps:$4 sm:$0xff]  }
 0x135   :  { %10705 = vmatpush1.bf16.msra.mxu0 %v16491_v19  ;;  %11175 = vmatprep.subr.bf16.mxu1 %v16496_v20  ;;  %v16578_v19 = vld [vmem:[%s24153_s1 + $0x858] ss:$28 sps:$4 sm:$0xff]   ;;  %v16581_v20 = vld [vmem:[%s24153_s1 + $0x1e30] ss:$28 sps:$4 sm:$0xff]  }
 0x136   :  { %10706 = vmatprep.subr.bf16.mxu0 %v16499_v21  ;;  %v16586_v21 = vld [vmem:[%s24153_s1 + $0x894] ss:$28 sps:$4 sm:$0xff]  }
 0x138   :  { %11176 = vmatpush1.bf16.msra.mxu1 %v16494_v22  ;;  %v16589_v22 = vld [vmem:[%s24153_s1 + $0x1e6c] ss:$28 sps:$4 sm:$0xff]  }
 0x139   :  { %10707 = vmatpush1.bf16.msra.mxu0 %v16497_v23  ;;  %11177 = vmatprep.subr.bf16.mxu1 %v16502_v24  ;;  %v16584_v23 = vld [vmem:[%s24153_s1 + $0x890] ss:$28 sps:$4 sm:$0xff]   ;;  %v16587_v24 = vld [vmem:[%s24153_s1 + $0x1e68] ss:$28 sps:$4 sm:$0xff]  }
 0x13a   :  { %10708 = vmatprep.subr.bf16.mxu0 %v16507_v25  ;;  %v16592_v25 = vld [vmem:[%s24153_s1 + $0x8cc] ss:$28 sps:$4 sm:$0xff]  }
 0x13c   :  { %11178 = vmatpush1.bf16.msra.mxu1 %v16500_v26  ;;  %v16595_v26 = vld [vmem:[%s24153_s1 + $0x1ea4] ss:$28 sps:$4 sm:$0xff]  }
 0x13d   :  { %10709 = vmatpush1.bf16.msra.mxu0 %v16505_v27  ;;  %11179 = vmatprep.subr.bf16.mxu1 %v16511_v28  ;;  %v16590_v27 = vld [vmem:[%s24153_s1 + $0x8c8] ss:$28 sps:$4 sm:$0xff]   ;;  %v16593_v28 = vld [vmem:[%s24153_s1 + $0x1ea0] ss:$28 sps:$4 sm:$0xff]  }
 0x13e   :  { %10710 = vmatprep.subr.bf16.mxu0 %v16514_v29  ;;  %v16598_v29 = vld [vmem:[%s24153_s1 + $0x904] ss:$28 sps:$4 sm:$0xff]  }
 0x140   :  { %11180 = vmatpush1.bf16.msra.mxu1 %v16509_v30  ;;  %v16601_v30 = vld [vmem:[%s24153_s1 + $0x1edc] ss:$28 sps:$4 sm:$0xff]  }
 0x141   :  { %10711 = vmatpush1.bf16.msra.mxu0 %v16512_v31  ;;  %11181 = vmatprep.subr.bf16.mxu1 %v16517_v32  ;;  %v16596_v31 = vld [vmem:[%s24153_s1 + $0x900] ss:$28 sps:$4 sm:$0xff]   ;;  %v16599_v32 = vld [vmem:[%s24153_s1 + $0x1ed8] ss:$28 sps:$4 sm:$0xff]  }
 0x142   :  { %10733 = vmatprep.subr.bf16.mxu0 %v16523_v33  ;;  %v16604_v33 = vld [vmem:[%s24153_s1 + $0x93c] ss:$28 sps:$4 sm:$0xff]  }
 0x144   :  { %10713 = vmatmul.mubr.bf16.vlgmr.msra.gmra.mrb[0].mxu0 %v16518_v35  ;;  %11182 = vmatpush1.bf16.msra.mxu1 %v16515_v34  ;;  %v16609_v34 = vld [vmem:[%s24153_s1 + $0x1f14] ss:$28 sps:$4 sm:$0xff]  }
 0x145   :  { %10734 = vmatpush1.bf16.msra.mxu0 %v16521_v37  ;;  %11183 = vmatprep.subr.bf16.mxu1 %v16526_v38  ;;  %v16602_v35 = vld [vmem:[%s24153_s1 + $0x938] ss:$28 sps:$4 sm:$0xff]   ;;  %v16607_v37 = vld [vmem:[%s24153_s1 + $0x1f10] ss:$28 sps:$4 sm:$0xff]  }
 0x146   :  { %10735 = vmatprep.subr.bf16.mxu0 %v16529_v39  ;;  %10722 = vmatprep.mubr.bf16.mxu0 %v16605_v40  ;;  %v16613_v38 = vld [vmem:[%s24153_s1 + $0x974] ss:$28 sps:$4 sm:$0xff]   ;;  %v16616_v39 = vld [vmem:[%s24153_s1 + $0x1f4c] ss:$28 sps:$4 sm:$0xff]  }
 0x147   :  { %v16611_v40 = vld [vmem:[%s24153_s1 + $0x970] ss:$28 sps:$4 sm:$0xff]  }
 0x148   :  { %11184 = vmatpush1.bf16.msra.mxu1 %v16524_v41  ;;  %v16614_v41 = vld [vmem:[%s24153_s1 + $0x1f48] ss:$28 sps:$4 sm:$0xff]  }
 0x149   :  { %10736 = vmatpush1.bf16.msra.mxu0 %v16527_v42  ;;  %11185 = vmatprep.subr.bf16.mxu1 %v16532_v43  ;;  %v16619_v42 = vld [vmem:[%s24153_s1 + $0x9ac] ss:$28 sps:$4 sm:$0xff]   ;;  %v16620_v43 = vld [vmem:[%s24154_s0 + $0x40] ss:$116 sps:$4 sm:$0xff]  }
 0x14a   :  { %10737 = vmatprep.subr.bf16.mxu0 %v16535_v44  ;;  %v16625_v44 = vld [vmem:[%s24153_s1 + $0x1f84] ss:$28 sps:$4 sm:$0xff]  }
 0x14c   :  { %10723 = vmatmul.mubr.bf16.gmra.mrb[4].mxu0 %v16610_v46  ;;  %11186 = vmatpush1.bf16.msra.mxu1 %v16530_v45  ;;  %v16617_v45 = vld [vmem:[%s24153_s1 + $0x9a8] ss:$28 sps:$4 sm:$0xff]   ;;  %v16623_v46 = vld [vmem:[%s24153_s1 + $0x1f80] ss:$28 sps:$4 sm:$0xff]  }
 0x14d   :  { %10738 = vmatpush1.bf16.msra.mxu0 %v16533_v47  ;;  %11187 = vmatprep.subr.bf16.mxu1 %v16538_v48  ;;  %v16628_v47 = vld [vmem:[%s24153_s1 + $0x9e4] ss:$28 sps:$4 sm:$0xff]   ;;  %v16631_v48 = vld [vmem:[%s24153_s1 + $0x1fbc] ss:$28 sps:$4 sm:$0xff]  }
 0x14e   :  { %10739 = vmatprep.subr.bf16.mxu0 %v16541_v49  ;;  %10765 = vmatprep.mubr.bf16.mxu0 %v16622_v50  ;;  %v16626_v49 = vld [vmem:[%s24153_s1 + $0x9e0] ss:$28 sps:$4 sm:$0xff]  }
 0x14f   :  { %v16707_v50 = vld [vmem:[%s24154_s0 + $0x12c] ss:$116 sps:$4 sm:$0xff]  }
 0x150   :  { %11188 = vmatpush1.bf16.msra.mxu1 %v16536_v51  ;;  %v16629_v51 = vld [vmem:[%s24153_s1 + $0x1fb8] ss:$28 sps:$4 sm:$0xff]  }
 0x151   :  { %10740 = vmatpush1.bf16.msra.mxu0 %v16539_v52  ;;  %11210 = vmatprep.subr.bf16.mxu1 %v16544_v53  ;;  %v16634_v52 = vld [vmem:[%s24153_s1 + $0xa1c] ss:$28 sps:$4 sm:$0xff]   ;;  %v16637_v53 = vld [vmem:[%s24153_s1 + $0x1ff4] ss:$28 sps:$4 sm:$0xff]  }
 0x152   :  { %10741 = vmatprep.subr.bf16.mxu0 %v16547_v54  ;;  %v16712_v54 = vld [vmem:[%s24154_s0 + $0x128] ss:$116 sps:$4 sm:$0xff]  }
 0x153   :  { %11190 = vmatmul.mubr.bf16.vlgmr.msra.gmra.mrb[16].mxu1 %v18341_v59  ;;  %v16724_v59 = vld [vmem:[%s24154_s0 + $0x4c] ss:$116 sps:$4 sm:$0xff]  }
 0x154   :  { %11211 = vmatpush1.bf16.msra.mxu1 %v16542_v55  ;;  %11199 = vmatprep.mubr.bf16.mxu1 %v18342_v0  ;;  %v16632_v55 = vld [vmem:[%s24153_s1 + $0xa18] ss:$28 sps:$4 sm:$0xff]   ;;  %v16644_v0 = vld [vmem:[%s24153_s1 + $0xa88] ss:$28 sps:$4 sm:$0xff]  }
 0x155   :  { %10742 = vmatpush1.bf16.msra.mxu0 %v16545_v56  ;;  %11212 = vmatprep.subr.bf16.mxu1 %v16550_v57  ;;  %v16635_v56 = vld [vmem:[%s24153_s1 + $0x1ff0] ss:$28 sps:$4 sm:$0xff]  }
 0x156   :  { %10743 = vmatprep.subr.bf16.mxu0 %v16553_v58  ;;  %v16640_v57 = vld [vmem:[%s24153_s1 + $0xa54] ss:$28 sps:$4 sm:$0xff]   ;;  %v16643_v58 = vld [vmem:[%s24153_s1 + $0x202c] ss:$28 sps:$4 sm:$0xff]  }
 0x158   :  { %11213 = vmatpush1.bf16.msra.mxu1 %v16548_v60  ;;  %v16638_v60 = vld [vmem:[%s24153_s1 + $0xa50] ss:$28 sps:$4 sm:$0xff]  }
 0x159   :  { %10744 = vmatpush1.bf16.msra.mxu0 %v16551_v61  ;;  %11214 = vmatprep.subr.bf16.mxu1 %v16556_v62  ;;  %v16641_v61 = vld [vmem:[%s24153_s1 + $0x2028] ss:$28 sps:$4 sm:$0xff]  }
 0x15a   :  { %10745 = vmatprep.subr.bf16.mxu0 %v16559_v63  ;;  %v16646_v62 = vld [vmem:[%s24153_s1 + $0xa8c] ss:$28 sps:$4 sm:$0xff]   ;;  %v16649_v63 = vld [vmem:[%s24153_s1 + $0x2064] ss:$28 sps:$4 sm:$0xff]  }
 0x15b   :  { %11200 = vmatmul.mubr.bf16.gmra.mrb[20].mxu1 %v18343_v5  ;;  %v16650_v5 = vld [vmem:[%s24153_s1 + $0xac0] ss:$28 sps:$4 sm:$0xff]  }
 0x15c   :  { %11215 = vmatpush1.bf16.msra.mxu1 %v16554_v1  ;;  %11242 = vmatprep.mubr.bf16.mxu1 %v18344_v10  ;;  %v16647_v1 = vld [vmem:[%s24153_s1 + $0x2060] ss:$28 sps:$4 sm:$0xff]  }
 0x15d   :  { %10746 = vmatpush1.bf16.msra.mxu0 %v16557_v2  ;;  %11216 = vmatprep.subr.bf16.mxu1 %v16562_v3  ;;  %v16652_v2 = vld [vmem:[%s24153_s1 + $0xac4] ss:$28 sps:$4 sm:$0xff]   ;;  %v16655_v3 = vld [vmem:[%s24153_s1 + $0x209c] ss:$28 sps:$4 sm:$0xff]  }
 0x15e   :  { %10747 = vmatprep.subr.bf16.mxu0 %v16565_v4  ;;  %v18345_v4 = vld [vmem:[%s24154_s0 + $0x10] ss:$116 sps:$4 sm:$0xff]  }
 0x15f   :  { %v18346_v10 = vld [vmem:[%s24154_s0 + $0xfc] ss:$116 sps:$4 sm:$0xff]  }
 0x160   :  { %11217 = vmatpush1.bf16.msra.mxu1 %v16560_v6  ;;  %v16653_v6 = vld [vmem:[%s24153_s1 + $0x2098] ss:$28 sps:$4 sm:$0xff]  }
 0x161   :  { %10748 = vmatpush1.bf16.msra.mxu0 %v16563_v7  ;;  %11218 = vmatprep.subr.bf16.mxu1 %v16568_v8  ;;  %v16658_v7 = vld [vmem:[%s24153_s1 + $0xafc] ss:$28 sps:$4 sm:$0xff]   ;;  %v16661_v8 = vld [vmem:[%s24153_s1 + $0x20d4] ss:$28 sps:$4 sm:$0xff]  }
 0x162   :  { %10749 = vmatprep.subr.bf16.mxu0 %v16571_v9 }
 0x164   :  { %11219 = vmatpush1.bf16.msra.mxu1 %v16566_v11 }
 0x165   :  { %10750 = vmatpush1.bf16.msra.mxu0 %v16569_v12  ;;  %11220 = vmatprep.subr.bf16.mxu1 %v16574_v13  ;;  %v16656_v13 = vld [vmem:[%s24153_s1 + $0xaf8] ss:$28 sps:$4 sm:$0xff]  }
 0x166   :  { %10751 = vmatprep.subr.bf16.mxu0 %v16577_v14  ;;  %v16659_v14 = vld [vmem:[%s24153_s1 + $0x20d0] ss:$28 sps:$4 sm:$0xff]  }
 0x168   :  { %11221 = vmatpush1.bf16.msra.mxu1 %v16572_v15 }
 0x169   :  { %10752 = vmatpush1.bf16.msra.mxu0 %v16575_v16  ;;  %11222 = vmatprep.subr.bf16.mxu1 %v16580_v17  ;;  %v16664_v16 = vld [vmem:[%s24153_s1 + $0xb34] ss:$28 sps:$4 sm:$0xff]   ;;  %v16667_v17 = vld [vmem:[%s24153_s1 + $0x210c] ss:$28 sps:$4 sm:$0xff]  }
 0x16a   :  { %10753 = vmatprep.subr.bf16.mxu0 %v16583_v18  ;;  %v18347_v18 = vld [vmem:[%s24154_s0 + $0xf8] ss:$116 sps:$4 sm:$0xff]  }
 0x16c   :  { %11223 = vmatpush1.bf16.msra.mxu1 %v16578_v19  ;;  %v16662_v19 = vld [vmem:[%s24153_s1 + $0xb30] ss:$28 sps:$4 sm:$0xff]  }
 0x16d   :  { %10754 = vmatpush1.bf16.msra.mxu0 %v16581_v20  ;;  %11224 = vmatprep.subr.bf16.mxu1 %v16586_v21  ;;  %v16665_v20 = vld [vmem:[%s24153_s1 + $0x2108] ss:$28 sps:$4 sm:$0xff]  }
 0x16e   :  { %10755 = vmatprep.subr.bf16.mxu0 %v16589_v22  ;;  %v16670_v21 = vld [vmem:[%s24153_s1 + $0xb6c] ss:$28 sps:$4 sm:$0xff]   ;;  %v16673_v22 = vld [vmem:[%s24153_s1 + $0x2144] ss:$28 sps:$4 sm:$0xff]  }
 0x170   :  { %11225 = vmatpush1.bf16.msra.mxu1 %v16584_v23 }
 0x171   :  { %10756 = vmatpush1.bf16.msra.mxu0 %v16587_v24  ;;  %11226 = vmatprep.subr.bf16.mxu1 %v16592_v25  ;;  %v18348_v24 = vld [vmem:[%s24154_s0 + $0x1c] ss:$116 sps:$4 sm:$0xff]  }
 0x172   :  { %10757 = vmatprep.subr.bf16.mxu0 %v16595_v26 }
 0x174   :  { %11227 = vmatpush1.bf16.msra.mxu1 %v16590_v27  ;;  %v16668_v27 = vld [vmem:[%s24153_s1 + $0xb68] ss:$28 sps:$4 sm:$0xff]  }
 0x175   :  { %10758 = vmatpush1.bf16.msra.mxu0 %v16593_v28  ;;  %11228 = vmatprep.subr.bf16.mxu1 %v16598_v29  ;;  %v16671_v28 = vld [vmem:[%s24153_s1 + $0x2140] ss:$28 sps:$4 sm:$0xff]  }
 0x176   :  { %10759 = vmatprep.subr.bf16.mxu0 %v16601_v30  ;;  %v16676_v30 = vld [vmem:[%s24153_s1 + $0xba4] ss:$28 sps:$4 sm:$0xff]  }
 0x178   :  { %11229 = vmatpush1.bf16.msra.mxu1 %v16596_v31  ;;  %v16679_v31 = vld [vmem:[%s24153_s1 + $0x217c] ss:$28 sps:$4 sm:$0xff]  }
 0x179   :  { %10760 = vmatpush1.bf16.msra.mxu0 %v16599_v32  ;;  %11230 = vmatprep.subr.bf16.mxu1 %v16604_v33  ;;  %v16674_v32 = vld [vmem:[%s24153_s1 + $0xba0] ss:$28 sps:$4 sm:$0xff]   ;;  %v16677_v33 = vld [vmem:[%s24153_s1 + $0x2178] ss:$28 sps:$4 sm:$0xff]  }
 0x17a   :  { %10761 = vmatprep.subr.bf16.mxu0 %v16609_v34  ;;  %v16682_v34 = vld [vmem:[%s24153_s1 + $0xbdc] ss:$28 sps:$4 sm:$0xff]  }
 0x17c   :  { %11231 = vmatpush1.bf16.msra.mxu1 %v16602_v35  ;;  %v16685_v35 = vld [vmem:[%s24153_s1 + $0x21b4] ss:$28 sps:$4 sm:$0xff]  }
 0x17d   :  { %10762 = vmatpush1.bf16.msra.mxu0 %v16607_v37  ;;  %11232 = vmatprep.subr.bf16.mxu1 %v16613_v38 }
 0x17e   :  { %10763 = vmatprep.subr.bf16.mxu0 %v16616_v39  ;;  %v16680_v39 = vld [vmem:[%s24153_s1 + $0xbd8] ss:$28 sps:$4 sm:$0xff]  }
 0x180   :  { %11233 = vmatpush1.bf16.msra.mxu1 %v16611_v40  ;;  %v16683_v40 = vld [vmem:[%s24153_s1 + $0x21b0] ss:$28 sps:$4 sm:$0xff]  }
 0x181   :  { %10764 = vmatpush1.bf16.msra.mxu0 %v16614_v41  ;;  %11234 = vmatprep.subr.bf16.mxu1 %v16619_v42  ;;  %v16688_v42 = vld [vmem:[%s24153_s1 + $0xc14] ss:$28 sps:$4 sm:$0xff]  }
 0x182   :  { %10786 = vmatprep.subr.bf16.mxu0 %v16625_v44 }
 0x184   :  { %10766 = vmatmul.mubr.bf16.vlgmr.msra.gmra.mrb[0].mxu0 %v16620_v43  ;;  %11235 = vmatpush1.bf16.msra.mxu1 %v16617_v45  ;;  %v16691_v43 = vld [vmem:[%s24153_s1 + $0x21ec] ss:$28 sps:$4 sm:$0xff]  }
 0x185   :  { %10787 = vmatpush1.bf16.msra.mxu0 %v16623_v46  ;;  %11236 = vmatprep.subr.bf16.mxu1 %v16628_v47  ;;  %v16686_v45 = vld [vmem:[%s24153_s1 + $0xc10] ss:$28 sps:$4 sm:$0xff]   ;;  %v16689_v46 = vld [vmem:[%s24153_s1 + $0x21e8] ss:$28 sps:$4 sm:$0xff]  }
 0x186   :  { %10788 = vmatprep.subr.bf16.mxu0 %v16631_v48  ;;  %10775 = vmatprep.mubr.bf16.mxu0 %v16707_v50  ;;  %v16694_v47 = vld [vmem:[%s24153_s1 + $0xc4c] ss:$28 sps:$4 sm:$0xff]   ;;  %v16697_v48 = vld [vmem:[%s24153_s1 + $0x2224] ss:$28 sps:$4 sm:$0xff]  }
 0x188   :  { %11237 = vmatpush1.bf16.msra.mxu1 %v16626_v49 }
 0x189   :  { %10789 = vmatpush1.bf16.msra.mxu0 %v16629_v51  ;;  %11238 = vmatprep.subr.bf16.mxu1 %v16634_v52  ;;  %v16692_v51 = vld [vmem:[%s24153_s1 + $0xc48] ss:$28 sps:$4 sm:$0xff]   ;;  %v16695_v52 = vld [vmem:[%s24153_s1 + $0x2220] ss:$28 sps:$4 sm:$0xff]  }
 0x18a   :  { %10790 = vmatprep.subr.bf16.mxu0 %v16637_v53 }
 0x18c   :  { %10776 = vmatmul.mubr.bf16.gmra.mrb[4].mxu0 %v16712_v54  ;;  %11239 = vmatpush1.bf16.msra.mxu1 %v16632_v55  ;;  %v16700_v54 = vld [vmem:[%s24153_s1 + $0xc84] ss:$28 sps:$4 sm:$0xff]   ;;  %v16703_v55 = vld [vmem:[%s24153_s1 + $0x225c] ss:$28 sps:$4 sm:$0xff]  }
 0x18d   :  { %10791 = vmatpush1.bf16.msra.mxu0 %v16635_v56  ;;  %11240 = vmatprep.subr.bf16.mxu1 %v16640_v57  ;;  %v16698_v57 = vld [vmem:[%s24153_s1 + $0xc80] ss:$28 sps:$4 sm:$0xff]  }
 0x18e   :  { %10792 = vmatprep.subr.bf16.mxu0 %v16643_v58  ;;  %10818 = vmatprep.mubr.bf16.mxu0 %v16724_v59  ;;  %v16701_v58 = vld [vmem:[%s24153_s1 + $0x2258] ss:$28 sps:$4 sm:$0xff]  }
 0x18f   :  { %v16706_v59 = vld [vmem:[%s24153_s1 + $0xcbc] ss:$28 sps:$4 sm:$0xff]  }
 0x190   :  { %11241 = vmatpush1.bf16.msra.mxu1 %v16638_v60  ;;  %v16711_v60 = vld [vmem:[%s24153_s1 + $0x2294] ss:$28 sps:$4 sm:$0xff]  }
 0x191   :  { %10793 = vmatpush1.bf16.msra.mxu0 %v16641_v61  ;;  %11263 = vmatprep.subr.bf16.mxu1 %v16646_v62  ;;  %v16704_v61 = vld [vmem:[%s24153_s1 + $0xcb8] ss:$28 sps:$4 sm:$0xff]   ;;  %v16709_v62 = vld [vmem:[%s24153_s1 + $0x2290] ss:$28 sps:$4 sm:$0xff]  }
 0x192   :  { %10794 = vmatprep.subr.bf16.mxu0 %v16649_v63  ;;  %v16715_v63 = vld [vmem:[%s24153_s1 + $0xcf4] ss:$28 sps:$4 sm:$0xff]  }
 0x193   :  { %11243 = vmatmul.mubr.bf16.vlgmr.msra.gmra.mrb[16].mxu1 %v18345_v4  ;;  %v16722_v4 = vld [vmem:[%s24154_s0 + $0x48] ss:$116 sps:$4 sm:$0xff]  }
 0x194   :  { %11264 = vmatpush1.bf16.msra.mxu1 %v16644_v0  ;;  %11252 = vmatprep.mubr.bf16.mxu1 %v18346_v10  ;;  %v16718_v0 = vld [vmem:[%s24153_s1 + $0x22cc] ss:$28 sps:$4 sm:$0xff]   ;;  %v16733_v10 = vld [vmem:[%s24153_s1 + $0x233c] ss:$28 sps:$4 sm:$0xff]  }
 0x195   :  { %10795 = vmatpush1.bf16.msra.mxu0 %v16647_v1  ;;  %11265 = vmatprep.subr.bf16.mxu1 %v16652_v2  ;;  %v16713_v1 = vld [vmem:[%s24153_s1 + $0xcf0] ss:$28 sps:$4 sm:$0xff]   ;;  %v16716_v2 = vld [vmem:[%s24153_s1 + $0x22c8] ss:$28 sps:$4 sm:$0xff]  }
 0x196   :  { %10796 = vmatprep.subr.bf16.mxu0 %v16655_v3  ;;  %v19861_v9 = vpop.f32.mrb[0].mxu1  ;;  %v16721_v3 = vld [vmem:[%s24153_s1 + $0xd2c] ss:$28 sps:$4 sm:$0xff]  }
 0x197   :  { %v19866_v11 = vpop.f32.mrb[1].mxu1 }
 0x198   :  { %11266 = vmatpush1.bf16.msra.mxu1 %v16650_v5  ;;  %v19868_v12 = vpop.f32.mrb[2].mxu1  ;;  %v16727_v5 = vld [vmem:[%s24153_s1 + $0x2304] ss:$28 sps:$4 sm:$0xff]  }
 0x199   :  { %10797 = vmatpush1.bf16.msra.mxu0 %v16653_v6  ;;  %v19876_v15 = vpop.f32.mrb[3].mxu1  ;;  %11267 = vmatprep.subr.bf16.mxu1 %v16658_v7  ;;  %v16719_v6 = vld [vmem:[%s24153_s1 + $0xd28] ss:$28 sps:$4 sm:$0xff]   ;;  %v16725_v7 = vld [vmem:[%s24153_s1 + $0x2300] ss:$28 sps:$4 sm:$0xff]  }
 0x19a   :  { %10798 = vmatprep.subr.bf16.mxu0 %v16661_v8  ;;  %v16730_v8 = vld [vmem:[%s24153_s1 + $0xd64] ss:$28 sps:$4 sm:$0xff]  }
 0x19b   :  { %11253 = vmatmul.mubr.bf16.gmra.mrb[20].mxu1 %v18347_v18  ;;  %v16739_v18 = vld [vmem:[%s24153_s1 + $0x2374] ss:$28 sps:$4 sm:$0xff]  }
 0x19c   :  { %11268 = vmatpush1.bf16.msra.mxu1 %v16656_v13  ;;  %11295 = vmatprep.mubr.bf16.mxu1 %v18348_v24  ;;  %v16728_v13 = vld [vmem:[%s24153_s1 + $0xd60] ss:$28 sps:$4 sm:$0xff]   ;;  %v16745_v24 = vld [vmem:[%s24153_s1 + $0x23ac] ss:$28 sps:$4 sm:$0xff]  }
 0x19d   :  { %10799 = vmatpush1.bf16.msra.mxu0 %v16659_v14  ;;  %11269 = vmatprep.subr.bf16.mxu1 %v16664_v16  ;;  %v16809_v14 = vld [vmem:[%s24154_s0 + $0x134] ss:$116 sps:$4 sm:$0xff]  }
 0x19e   :  { %10800 = vmatprep.subr.bf16.mxu0 %v16667_v17  ;;  %v19899_v23 = vpop.f32.mrb[4].mxu1  ;;  %v16731_v16 = vld [vmem:[%s24153_s1 + $0x2338] ss:$28 sps:$4 sm:$0xff]  }
 0x19f   :  { %v19904_v25 = vpop.f32.mrb[5].mxu1  ;;  %v16736_v17 = vld [vmem:[%s24153_s1 + $0xd9c] ss:$28 sps:$4 sm:$0xff]  }
 0x1a0   :  { %11270 = vmatpush1.bf16.msra.mxu1 %v16662_v19  ;;  %v19906_v26 = vpop.f32.mrb[6].mxu1  ;;  %v16814_v19 = vld [vmem:[%s24154_s0 + $0x130] ss:$116 sps:$4 sm:$0xff]  }
 0x1a1   :  { %10801 = vmatpush1.bf16.msra.mxu0 %v16665_v20  ;;  %v19914_v29 = vpop.f32.mrb[7].mxu1  ;;  %11271 = vmatprep.subr.bf16.mxu1 %v16670_v21  ;;  %v16734_v20 = vld [vmem:[%s24153_s1 + $0xd98] ss:$28 sps:$4 sm:$0xff]   ;;  %v16737_v21 = vld [vmem:[%s24153_s1 + $0x2370] ss:$28 sps:$4 sm:$0xff]  }
 0x1a2   :  { %10802 = vmatprep.subr.bf16.mxu0 %v16673_v22  ;;  %v16742_v22 = vld [vmem:[%s24153_s1 + $0xdd4] ss:$28 sps:$4 sm:$0xff]  }
 0x1a4   :  { %11272 = vmatpush1.bf16.msra.mxu1 %v16668_v27  ;;  %v16826_v27 = vld [vmem:[%s24154_s0 + $0x54] ss:$116 sps:$4 sm:$0xff]  }
 0x1a5   :  { %10803 = vmatpush1.bf16.msra.mxu0 %v16671_v28  ;;  %11273 = vmatprep.subr.bf16.mxu1 %v16676_v30  ;;  %v16740_v28 = vld [vmem:[%s24153_s1 + $0xdd0] ss:$28 sps:$4 sm:$0xff]   ;;  %v16743_v30 = vld [vmem:[%s24153_s1 + $0x23a8] ss:$28 sps:$4 sm:$0xff]  }
 0x1a6   :  { %10804 = vmatprep.subr.bf16.mxu0 %v16679_v31  ;;  %v19934_v37 = vpop.f32.mrb[8].mxu1  ;;  %v16748_v31 = vld [vmem:[%s24153_s1 + $0xe0c] ss:$28 sps:$4 sm:$0xff]  }
 0x1a7   :  { %v19936_v38 = vpop.f32.mrb[9].mxu1 }
 0x1a8   :  { %11274 = vmatpush1.bf16.msra.mxu1 %v16674_v32  ;;  %v19944_v41 = vpop.f32.mrb[10].mxu1  ;;  %v16751_v32 = vld [vmem:[%s24153_s1 + $0x23e4] ss:$28 sps:$4 sm:$0xff]  }
 0x1a9   :  { %10805 = vmatpush1.bf16.msra.mxu0 %v16677_v33  ;;  %11275 = vmatprep.subr.bf16.mxu1 %v16682_v34  ;;  %v19952_v44 = vpop.f32.mrb[11].mxu1  ;;  %v16746_v33 = vld [vmem:[%s24153_s1 + $0xe08] ss:$28 sps:$4 sm:$0xff]   ;;  %v16749_v34 = vld [vmem:[%s24153_s1 + $0x23e0] ss:$28 sps:$4 sm:$0xff]  }
 0x1aa   :  { %10806 = vmatprep.subr.bf16.mxu0 %v16685_v35  ;;  %v16754_v35 = vld [vmem:[%s24153_s1 + $0xe44] ss:$28 sps:$4 sm:$0xff]  }
 0x1ac   :  { %11276 = vmatpush1.bf16.msra.mxu1 %v16680_v39  ;;  %v16757_v39 = vld [vmem:[%s24153_s1 + $0x241c] ss:$28 sps:$4 sm:$0xff]  }
 0x1ad   :  { %10807 = vmatpush1.bf16.msra.mxu0 %v16683_v40  ;;  %11277 = vmatprep.subr.bf16.mxu1 %v16688_v42  ;;  %v18349_v40 = vld [vmem:[%s24154_s0 + $0x18] ss:$116 sps:$4 sm:$0xff]   ;;  %v16752_v42 = vld [vmem:[%s24153_s1 + $0xe40] ss:$28 sps:$4 sm:$0xff]  }
 0x1ae   :  { %10808 = vmatprep.subr.bf16.mxu0 %v16691_v43  ;;  %v19966_v49 = vpop.f32.mrb[12].mxu1  ;;  %v16755_v43 = vld [vmem:[%s24153_s1 + $0x2418] ss:$28 sps:$4 sm:$0xff]  }
 0x1af   :  { %v19968_v50 = vpop.f32.mrb[13].mxu1 }
 0x1b0   :  { %11278 = vmatpush1.bf16.msra.mxu1 %v16686_v45  ;;  %v19976_v53 = vpop.f32.mrb[14].mxu1  ;;  %v16760_v45 = vld [vmem:[%s24153_s1 + $0xe7c] ss:$28 sps:$4 sm:$0xff]  }
 0x1b1   :  { %10809 = vmatpush1.bf16.msra.mxu0 %v16689_v46  ;;  %11279 = vmatprep.subr.bf16.mxu1 %v16694_v47  ;;  %v19984_v56 = vpop.f32.mrb[15].mxu1  ;;  %v16763_v46 = vld [vmem:[%s24153_s1 + $0x2454] ss:$28 sps:$4 sm:$0xff]   ;;  %v18350_v47 = vld [vmem:[%s24154_s0 + $0x104] ss:$116 sps:$4 sm:$0xff]  }
 0x1b2   :  { %10810 = vmatprep.subr.bf16.mxu0 %v16697_v48  ;;  %v16758_v48 = vld [vmem:[%s24153_s1 + $0xe78] ss:$28 sps:$4 sm:$0xff]  }
 0x1b4   :  { %11280 = vmatpush1.bf16.msra.mxu1 %v16692_v51  ;;  %v16761_v51 = vld [vmem:[%s24153_s1 + $0x2450] ss:$28 sps:$4 sm:$0xff]  }
 0x1b5   :  { %10811 = vmatpush1.bf16.msra.mxu0 %v16695_v52  ;;  %11281 = vmatprep.subr.bf16.mxu1 %v16700_v54  ;;  %v16766_v52 = vld [vmem:[%s24153_s1 + $0xeb4] ss:$28 sps:$4 sm:$0xff]   ;;  %v16769_v54 = vld [vmem:[%s24153_s1 + $0x248c] ss:$28 sps:$4 sm:$0xff]  }
 0x1b6   :  { %10812 = vmatprep.subr.bf16.mxu0 %v16703_v55  ;;  %v18351_v55 = vld [vmem:[%s24154_s0 + $0x100] ss:$116 sps:$4 sm:$0xff]  }
 0x1b8   :  { %11282 = vmatpush1.bf16.msra.mxu1 %v16698_v57  ;;  %v16764_v57 = vld [vmem:[%s24153_s1 + $0xeb0] ss:$28 sps:$4 sm:$0xff]  }
 0x1b9   :  { %10813 = vmatpush1.bf16.msra.mxu0 %v16701_v58  ;;  %11283 = vmatprep.subr.bf16.mxu1 %v16706_v59  ;;  %v16767_v58 = vld [vmem:[%s24153_s1 + $0x2488] ss:$28 sps:$4 sm:$0xff]  }
 0x1ba   :  { %10814 = vmatprep.subr.bf16.mxu0 %v16711_v60  ;;  %v16772_v59 = vld [vmem:[%s24153_s1 + $0xeec] ss:$28 sps:$4 sm:$0xff]   ;;  %v16775_v60 = vld [vmem:[%s24153_s1 + $0x24c4] ss:$28 sps:$4 sm:$0xff]  }
 0x1bc   :  { %11284 = vmatpush1.bf16.msra.mxu1 %v16704_v61  ;;  %v18352_v61 = vld [vmem:[%s24154_s0 + $0x24] ss:$116 sps:$4 sm:$0xff]  }
 0x1bd   :  { %10815 = vmatpush1.bf16.msra.mxu0 %v16709_v62  ;;  %11285 = vmatprep.subr.bf16.mxu1 %v16715_v63  ;;  %v16770_v62 = vld [vmem:[%s24153_s1 + $0xee8] ss:$28 sps:$4 sm:$0xff]   ;;  %v16773_v63 = vld [vmem:[%s24153_s1 + $0x24c0] ss:$28 sps:$4 sm:$0xff]  }
 0x1be   :  { %10816 = vmatprep.subr.bf16.mxu0 %v16718_v0  ;;  %v16778_v0 = vld [vmem:[%s24153_s1 + $0xf24] ss:$28 sps:$4 sm:$0xff]  }
 0x1c0   :  { %11286 = vmatpush1.bf16.msra.mxu1 %v16713_v1  ;;  %v16781_v1 = vld [vmem:[%s24153_s1 + $0x24fc] ss:$28 sps:$4 sm:$0xff]  }
 0x1c1   :  { %10817 = vmatpush1.bf16.msra.mxu0 %v16716_v2  ;;  %11287 = vmatprep.subr.bf16.mxu1 %v16721_v3  ;;  %v16776_v2 = vld [vmem:[%s24153_s1 + $0xf20] ss:$28 sps:$4 sm:$0xff]   ;;  %v16779_v3 = vld [vmem:[%s24153_s1 + $0x24f8] ss:$28 sps:$4 sm:$0xff]  }
 0x1c2   :  { %10839 = vmatprep.subr.bf16.mxu0 %v16727_v5  ;;  %v16787_v5 = vld [vmem:[%s24153_s1 + $0x2534] ss:$28 sps:$4 sm:$0xff]  }
 0x1c4   :  { %10819 = vmatmul.mubr.bf16.vlgmr.msra.gmra.mrb[0].mxu0 %v16722_v4  ;;  %11288 = vmatpush1.bf16.msra.mxu1 %v16719_v6  ;;  %v16784_v4 = vld [vmem:[%s24153_s1 + $0xf5c] ss:$28 sps:$4 sm:$0xff]  }
 0x1c5   :  { %10840 = vmatpush1.bf16.msra.mxu0 %v16725_v7  ;;  %11289 = vmatprep.subr.bf16.mxu1 %v16730_v8  ;;  %v16782_v6 = vld [vmem:[%s24153_s1 + $0xf58] ss:$28 sps:$4 sm:$0xff]   ;;  %v16785_v7 = vld [vmem:[%s24153_s1 + $0x2530] ss:$28 sps:$4 sm:$0xff]  }
 0x1c6   :  { %10841 = vmatprep.subr.bf16.mxu0 %v16733_v10  ;;  %10828 = vmatprep.mubr.bf16.mxu0 %v16809_v14  ;;  %v16790_v8 = vld [vmem:[%s24153_s1 + $0xf94] ss:$28 sps:$4 sm:$0xff]   ;;  %v16793_v10 = vld [vmem:[%s24153_s1 + $0x256c] ss:$28 sps:$4 sm:$0xff]  }
 0x1c7   :  { %v16791_v14 = vld [vmem:[%s24153_s1 + $0x2568] ss:$28 sps:$4 sm:$0xff]  }
 0x1c8   :  { %11290 = vmatpush1.bf16.msra.mxu1 %v16728_v13  ;;  %v16788_v13 = vld [vmem:[%s24153_s1 + $0xf90] ss:$28 sps:$4 sm:$0xff]  }
 0x1c9   :  { %10842 = vmatpush1.bf16.msra.mxu0 %v16731_v16  ;;  %11291 = vmatprep.subr.bf16.mxu1 %v16736_v17  ;;  %v16796_v16 = vld [vmem:[%s24153_s1 + $0xfcc] ss:$28 sps:$4 sm:$0xff]   ;;  %v16799_v17 = vld [vmem:[%s24153_s1 + $0x25a4] ss:$28 sps:$4 sm:$0xff]  }
 0x1ca   :  { %10843 = vmatprep.subr.bf16.mxu0 %v16739_v18  ;;  %v16794_v18 = vld [vmem:[%s24153_s1 + $0xfc8] ss:$28 sps:$4 sm:$0xff]  }
 0x1cc   :  { %10829 = vmatmul.mubr.bf16.gmra.mrb[4].mxu0 %v16814_v19  ;;  %11292 = vmatpush1.bf16.msra.mxu1 %v16734_v20  ;;  %v16797_v19 = vld [vmem:[%s24153_s1 + $0x25a0] ss:$28 sps:$4 sm:$0xff]  }
 0x1cd   :  { %10844 = vmatpush1.bf16.msra.mxu0 %v16737_v21  ;;  %11293 = vmatprep.subr.bf16.mxu1 %v16742_v22  ;;  %v16802_v20 = vld [vmem:[%s24153_s1 + $0x1004] ss:$28 sps:$4 sm:$0xff]   ;;  %v16805_v21 = vld [vmem:[%s24153_s1 + $0x25dc] ss:$28 sps:$4 sm:$0xff]  }
 0x1ce   :  { %10845 = vmatprep.subr.bf16.mxu0 %v16745_v24  ;;  %10871 = vmatprep.mubr.bf16.mxu0 %v16826_v27  ;;  %v16800_v22 = vld [vmem:[%s24153_s1 + $0x1000] ss:$28 sps:$4 sm:$0xff]   ;;  %v16803_v24 = vld [vmem:[%s24153_s1 + $0x25d8] ss:$28 sps:$4 sm:$0xff]  }
 0x1cf   :  { %v16808_v27 = vld [vmem:[%s24153_s1 + $0x103c] ss:$28 sps:$4 sm:$0xff]  }
 0x1d0   :  { %11294 = vmatpush1.bf16.msra.mxu1 %v16740_v28  ;;  %v16813_v28 = vld [vmem:[%s24153_s1 + $0x2614] ss:$28 sps:$4 sm:$0xff]  }
 0x1d1   :  { %10846 = vmatpush1.bf16.msra.mxu0 %v16743_v30  ;;  %11316 = vmatprep.subr.bf16.mxu1 %v16748_v31  ;;  %v16806_v30 = vld [vmem:[%s24153_s1 + $0x1038] ss:$28 sps:$4 sm:$0xff]   ;;  %v16811_v31 = vld [vmem:[%s24153_s1 + $0x2610] ss:$28 sps:$4 sm:$0xff]  }
 0x1d2   :  { %10847 = vmatprep.subr.bf16.mxu0 %v16751_v32  ;;  %v16817_v32 = vld [vmem:[%s24153_s1 + $0x1074] ss:$28 sps:$4 sm:$0xff]  }
 0x1d3   :  { %11296 = vmatmul.mubr.bf16.vlgmr.msra.gmra.mrb[16].mxu1 %v18349_v40  ;;  %v16824_v40 = vld [vmem:[%s24154_s0 + $0x50] ss:$116 sps:$4 sm:$0xff]  }
 0x1d4   :  { %11317 = vmatpush1.bf16.msra.mxu1 %v16746_v33  ;;  %11305 = vmatprep.mubr.bf16.mxu1 %v18350_v47  ;;  %v16820_v33 = vld [vmem:[%s24153_s1 + $0x264c] ss:$28 sps:$4 sm:$0xff]   ;;  %v16835_v47 = vld [vmem:[%s24153_s1 + $0x26bc] ss:$28 sps:$4 sm:$0xff]  }
 0x1d5   :  { %10848 = vmatpush1.bf16.msra.mxu0 %v16749_v34  ;;  %11318 = vmatprep.subr.bf16.mxu1 %v16754_v35  ;;  %v16815_v34 = vld [vmem:[%s24153_s1 + $0x1070] ss:$28 sps:$4 sm:$0xff]   ;;  %v16818_v35 = vld [vmem:[%s24153_s1 + $0x2648] ss:$28 sps:$4 sm:$0xff]  }
 0x1d6   :  { %10849 = vmatprep.subr.bf16.mxu0 %v16757_v39  ;;  %v16823_v39 = vld [vmem:[%s24153_s1 + $0x10ac] ss:$28 sps:$4 sm:$0xff]  }
 0x1d8   :  { %11319 = vmatpush1.bf16.msra.mxu1 %v16752_v42  ;;  %v16829_v42 = vld [vmem:[%s24153_s1 + $0x2684] ss:$28 sps:$4 sm:$0xff]  }
 0x1d9   :  { %10850 = vmatpush1.bf16.msra.mxu0 %v16755_v43  ;;  %11320 = vmatprep.subr.bf16.mxu1 %v16760_v45  ;;  %v16821_v43 = vld [vmem:[%s24153_s1 + $0x10a8] ss:$28 sps:$4 sm:$0xff]   ;;  %v16827_v45 = vld [vmem:[%s24153_s1 + $0x2680] ss:$28 sps:$4 sm:$0xff]  }
 0x1da   :  { %10851 = vmatprep.subr.bf16.mxu0 %v16763_v46  ;;  %v16832_v46 = vld [vmem:[%s24153_s1 + $0x10e4] ss:$28 sps:$4 sm:$0xff]  }
 0x1db   :  { %11306 = vmatmul.mubr.bf16.gmra.mrb[20].mxu1 %v18351_v55  ;;  %v16841_v55 = vld [vmem:[%s24153_s1 + $0x26f4] ss:$28 sps:$4 sm:$0xff]  }
 0x1dc   :  { %11321 = vmatpush1.bf16.msra.mxu1 %v16758_v48  ;;  %11348 = vmatprep.mubr.bf16.mxu1 %v18352_v61  ;;  %v16830_v48 = vld [vmem:[%s24153_s1 + $0x10e0] ss:$28 sps:$4 sm:$0xff]   ;;  %v16847_v61 = vld [vmem:[%s24153_s1 + $0x272c] ss:$28 sps:$4 sm:$0xff]  }
 0x1dd   :  { %10852 = vmatpush1.bf16.msra.mxu0 %v16761_v51  ;;  %11322 = vmatprep.subr.bf16.mxu1 %v16766_v52  ;;  %v16911_v51 = vld [vmem:[%s24154_s0 + $0x13c] ss:$116 sps:$4 sm:$0xff]   ;;  %v16833_v52 = vld [vmem:[%s24153_s1 + $0x26b8] ss:$28 sps:$4 sm:$0xff]  }
 0x1de   :  { %10853 = vmatprep.subr.bf16.mxu0 %v16769_v54  ;;  %v16838_v54 = vld [vmem:[%s24153_s1 + $0x111c] ss:$28 sps:$4 sm:$0xff]  }
 0x1e0   :  { %11323 = vmatpush1.bf16.msra.mxu1 %v16764_v57  ;;  %v16916_v57 = vld [vmem:[%s24154_s0 + $0x138] ss:$116 sps:$4 sm:$0xff]  }
 0x1e1   :  { %10854 = vmatpush1.bf16.msra.mxu0 %v16767_v58  ;;  %11324 = vmatprep.subr.bf16.mxu1 %v16772_v59  ;;  %v16836_v58 = vld [vmem:[%s24153_s1 + $0x1118] ss:$28 sps:$4 sm:$0xff]   ;;  %v16839_v59 = vld [vmem:[%s24153_s1 + $0x26f0] ss:$28 sps:$4 sm:$0xff]  }
 0x1e2   :  { %10855 = vmatprep.subr.bf16.mxu0 %v16775_v60  ;;  %v16844_v60 = vld [vmem:[%s24153_s1 + $0x1154] ss:$28 sps:$4 sm:$0xff]  }
 0x1e4   :  { %11325 = vmatpush1.bf16.msra.mxu1 %v16770_v62  ;;  %v16928_v62 = vld [vmem:[%s24154_s0 + $0x5c] ss:$116 sps:$4 sm:$0xff]  }
 0x1e5   :  { %10856 = vmatpush1.bf16.msra.mxu0 %v16773_v63  ;;  %11326 = vmatprep.subr.bf16.mxu1 %v16778_v0  ;;  %v16842_v63 = vld [vmem:[%s24153_s1 + $0x1150] ss:$28 sps:$4 sm:$0xff]   ;;  %v16845_v0 = vld [vmem:[%s24153_s1 + $0x2728] ss:$28 sps:$4 sm:$0xff]  }
 0x1e6   :  { %10857 = vmatprep.subr.bf16.mxu0 %v16781_v1  ;;  %v16850_v1 = vld [vmem:[%s24153_s1 + $0x118c] ss:$28 sps:$4 sm:$0xff]  }
 0x1e8   :  { %11327 = vmatpush1.bf16.msra.mxu1 %v16776_v2  ;;  %v16853_v2 = vld [vmem:[%s24153_s1 + $0x2764] ss:$28 sps:$4 sm:$0xff]  }
 0x1e9   :  { %10858 = vmatpush1.bf16.msra.mxu0 %v16779_v3  ;;  %11328 = vmatprep.subr.bf16.mxu1 %v16784_v4  ;;  %v16848_v3 = vld [vmem:[%s24153_s1 + $0x1188] ss:$28 sps:$4 sm:$0xff]   ;;  %v16851_v4 = vld [vmem:[%s24153_s1 + $0x2760] ss:$28 sps:$4 sm:$0xff]  }
 0x1ea   :  { %10859 = vmatprep.subr.bf16.mxu0 %v16787_v5  ;;  %v16856_v5 = vld [vmem:[%s24153_s1 + $0x11c4] ss:$28 sps:$4 sm:$0xff]  }
 0x1ec   :  { %11329 = vmatpush1.bf16.msra.mxu1 %v16782_v6  ;;  %v16859_v6 = vld [vmem:[%s24153_s1 + $0x279c] ss:$28 sps:$4 sm:$0xff]  }
 0x1ed   :  { %10860 = vmatpush1.bf16.msra.mxu0 %v16785_v7  ;;  %11330 = vmatprep.subr.bf16.mxu1 %v16790_v8  ;;  %v18353_v7 = vld [vmem:[%s24154_s0 + $0x20] ss:$116 sps:$4 sm:$0xff]  }
 0x1ee   :  { %10861 = vmatprep.subr.bf16.mxu0 %v16793_v10  ;;  %v16854_v8 = vld [vmem:[%s24153_s1 + $0x11c0] ss:$28 sps:$4 sm:$0xff]   ;;  %v16857_v10 = vld [vmem:[%s24153_s1 + $0x2798] ss:$28 sps:$4 sm:$0xff]  }
 0x1f0   :  { %11331 = vmatpush1.bf16.msra.mxu1 %v16788_v13  ;;  %v16862_v13 = vld [vmem:[%s24153_s1 + $0x11fc] ss:$28 sps:$4 sm:$0xff]  }
 0x1f1   :  { %10862 = vmatpush1.bf16.msra.mxu0 %v16791_v14  ;;  %11332 = vmatprep.subr.bf16.mxu1 %v16796_v16  ;;  %v16865_v14 = vld [vmem:[%s24153_s1 + $0x27d4] ss:$28 sps:$4 sm:$0xff]   ;;  %v18354_v16 = vld [vmem:[%s24154_s0 + $0x10c] ss:$116 sps:$4 sm:$0xff]  }
 0x1f2   :  { %10863 = vmatprep.subr.bf16.mxu0 %v16799_v17  ;;  %v16860_v17 = vld [vmem:[%s24153_s1 + $0x11f8] ss:$28 sps:$4 sm:$0xff]  }
 0x1f4   :  { %11333 = vmatpush1.bf16.msra.mxu1 %v16794_v18  ;;  %v16863_v18 = vld [vmem:[%s24153_s1 + $0x27d0] ss:$28 sps:$4 sm:$0xff]  }
 0x1f5   :  { %10864 = vmatpush1.bf16.msra.mxu0 %v16797_v19  ;;  %11334 = vmatprep.subr.bf16.mxu1 %v16802_v20  ;;  %v16868_v19 = vld [vmem:[%s24153_s1 + $0x1234] ss:$28 sps:$4 sm:$0xff]   ;;  %v16871_v20 = vld [vmem:[%s24153_s1 + $0x280c] ss:$28 sps:$4 sm:$0xff]  }
 0x1f6   :  { %10865 = vmatprep.subr.bf16.mxu0 %v16805_v21  ;;  %v18355_v21 = vld [vmem:[%s24154_s0 + $0x108] ss:$116 sps:$4 sm:$0xff]  }
 0x1f8   :  { %11335 = vmatpush1.bf16.msra.mxu1 %v16800_v22  ;;  %v16866_v22 = vld [vmem:[%s24153_s1 + $0x1230] ss:$28 sps:$4 sm:$0xff]  }
 0x1f9   :  { %10866 = vmatpush1.bf16.msra.mxu0 %v16803_v24  ;;  %11336 = vmatprep.subr.bf16.mxu1 %v16808_v27  ;;  %v16869_v24 = vld [vmem:[%s24153_s1 + $0x2808] ss:$28 sps:$4 sm:$0xff]  }
 0x1fa   :  { %10867 = vmatprep.subr.bf16.mxu0 %v16813_v28  ;;  %v16874_v27 = vld [vmem:[%s24153_s1 + $0x126c] ss:$28 sps:$4 sm:$0xff]   ;;  %v16877_v28 = vld [vmem:[%s24153_s1 + $0x2844] ss:$28 sps:$4 sm:$0xff]  }
 0x1fc   :  { %11337 = vmatpush1.bf16.msra.mxu1 %v16806_v30  ;;  %v18356_v30 = vld [vmem:[%s24154_s0 + $0x2c] ss:$116 sps:$4 sm:$0xff]  }
 0x1fd   :  { %10868 = vmatpush1.bf16.msra.mxu0 %v16811_v31  ;;  %11338 = vmatprep.subr.bf16.mxu1 %v16817_v32  ;;  %v16872_v31 = vld [vmem:[%s24153_s1 + $0x1268] ss:$28 sps:$4 sm:$0xff]   ;;  %v16875_v32 = vld [vmem:[%s24153_s1 + $0x2840] ss:$28 sps:$4 sm:$0xff]  }
 0x1fe   :  { %10869 = vmatprep.subr.bf16.mxu0 %v16820_v33  ;;  %v16880_v33 = vld [vmem:[%s24153_s1 + $0x12a4] ss:$28 sps:$4 sm:$0xff]  }
 0x200   :  { %11339 = vmatpush1.bf16.msra.mxu1 %v16815_v34  ;;  %v16883_v34 = vld [vmem:[%s24153_s1 + $0x287c] ss:$28 sps:$4 sm:$0xff]  }
 0x201   :  { %10870 = vmatpush1.bf16.msra.mxu0 %v16818_v35  ;;  %11340 = vmatprep.subr.bf16.mxu1 %v16823_v39  ;;  %v16878_v35 = vld [vmem:[%s24153_s1 + $0x12a0] ss:$28 sps:$4 sm:$0xff]   ;;  %v16881_v39 = vld [vmem:[%s24153_s1 + $0x2878] ss:$28 sps:$4 sm:$0xff]  }
 0x202   :  { %10892 = vmatprep.subr.bf16.mxu0 %v16829_v42  ;;  %v16889_v42 = vld [vmem:[%s24153_s1 + $0x28b4] ss:$28 sps:$4 sm:$0xff]  }
 0x204   :  { %10872 = vmatmul.mubr.bf16.vlgmr.msra.gmra.mrb[0].mxu0 %v16824_v40  ;;  %11341 = vmatpush1.bf16.msra.mxu1 %v16821_v43  ;;  %v16886_v40 = vld [vmem:[%s24153_s1 + $0x12dc] ss:$28 sps:$4 sm:$0xff]  }
 0x205   :  { %10893 = vmatpush1.bf16.msra.mxu0 %v16827_v45  ;;  %11342 = vmatprep.subr.bf16.mxu1 %v16832_v46  ;;  %v16884_v43 = vld [vmem:[%s24153_s1 + $0x12d8] ss:$28 sps:$4 sm:$0xff]   ;;  %v16887_v45 = vld [vmem:[%s24153_s1 + $0x28b0] ss:$28 sps:$4 sm:$0xff]  }
 0x206   :  { %10894 = vmatprep.subr.bf16.mxu0 %v16835_v47  ;;  %10881 = vmatprep.mubr.bf16.mxu0 %v16911_v51  ;;  %v16892_v46 = vld [vmem:[%s24153_s1 + $0x1314] ss:$28 sps:$4 sm:$0xff]   ;;  %v16895_v47 = vld [vmem:[%s24153_s1 + $0x28ec] ss:$28 sps:$4 sm:$0xff]  }
 0x207   :  { %v16893_v51 = vld [vmem:[%s24153_s1 + $0x28e8] ss:$28 sps:$4 sm:$0xff]  }
 0x208   :  { %11343 = vmatpush1.bf16.msra.mxu1 %v16830_v48  ;;  %v16890_v48 = vld [vmem:[%s24153_s1 + $0x1310] ss:$28 sps:$4 sm:$0xff]  }
 0x209   :  { %10895 = vmatpush1.bf16.msra.mxu0 %v16833_v52  ;;  %11344 = vmatprep.subr.bf16.mxu1 %v16838_v54  ;;  %v16898_v52 = vld [vmem:[%s24153_s1 + $0x134c] ss:$28 sps:$4 sm:$0xff]   ;;  %v16901_v54 = vld [vmem:[%s24153_s1 + $0x2924] ss:$28 sps:$4 sm:$0xff]  }
 0x20a   :  { %10896 = vmatprep.subr.bf16.mxu0 %v16841_v55  ;;  %v16896_v55 = vld [vmem:[%s24153_s1 + $0x1348] ss:$28 sps:$4 sm:$0xff]  }
 0x20c   :  { %10882 = vmatmul.mubr.bf16.gmra.mrb[4].mxu0 %v16916_v57  ;;  %11345 = vmatpush1.bf16.msra.mxu1 %v16836_v58  ;;  %v16899_v57 = vld [vmem:[%s24153_s1 + $0x2920] ss:$28 sps:$4 sm:$0xff]  }
 0x20d   :  { %10897 = vmatpush1.bf16.msra.mxu0 %v16839_v59  ;;  %11346 = vmatprep.subr.bf16.mxu1 %v16844_v60  ;;  %v16904_v58 = vld [vmem:[%s24153_s1 + $0x1384] ss:$28 sps:$4 sm:$0xff]   ;;  %v16907_v59 = vld [vmem:[%s24153_s1 + $0x295c] ss:$28 sps:$4 sm:$0xff]  }
 0x20e   :  { %10898 = vmatprep.subr.bf16.mxu0 %v16847_v61  ;;  %10924 = vmatprep.mubr.bf16.mxu0 %v16928_v62  ;;  %v16902_v60 = vld [vmem:[%s24153_s1 + $0x1380] ss:$28 sps:$4 sm:$0xff]   ;;  %v16905_v61 = vld [vmem:[%s24153_s1 + $0x2958] ss:$28 sps:$4 sm:$0xff]  }
 0x20f   :  { %v16910_v62 = vld [vmem:[%s24153_s1 + $0x13bc] ss:$28 sps:$4 sm:$0xff]  }
 0x210   :  { %11347 = vmatpush1.bf16.msra.mxu1 %v16842_v63  ;;  %v16915_v63 = vld [vmem:[%s24153_s1 + $0x2994] ss:$28 sps:$4 sm:$0xff]  }
 0x211   :  { %10899 = vmatpush1.bf16.msra.mxu0 %v16845_v0  ;;  %11369 = vmatprep.subr.bf16.mxu1 %v16850_v1  ;;  %v16908_v0 = vld [vmem:[%s24153_s1 + $0x13b8] ss:$28 sps:$4 sm:$0xff]   ;;  %v16913_v1 = vld [vmem:[%s24153_s1 + $0x2990] ss:$28 sps:$4 sm:$0xff]  }
 0x212   :  { %10900 = vmatprep.subr.bf16.mxu0 %v16853_v2  ;;  %v16919_v2 = vld [vmem:[%s24153_s1 + $0x13f4] ss:$28 sps:$4 sm:$0xff]  }
 0x213   :  { %11349 = vmatmul.mubr.bf16.vlgmr.msra.gmra.mrb[16].mxu1 %v18353_v7  ;;  %v16926_v7 = vld [vmem:[%s24154_s0 + $0x58] ss:$116 sps:$4 sm:$0xff]  }
 0x214   :  { %11370 = vmatpush1.bf16.msra.mxu1 %v16848_v3  ;;  %11358 = vmatprep.mubr.bf16.mxu1 %v18354_v16  ;;  %v16922_v3 = vld [vmem:[%s24153_s1 + $0x29cc] ss:$28 sps:$4 sm:$0xff]   ;;  %v16937_v16 = vld [vmem:[%s24153_s1 + $0x2a3c] ss:$28 sps:$4 sm:$0xff]  }
 0x215   :  { %10901 = vmatpush1.bf16.msra.mxu0 %v16851_v4  ;;  %11371 = vmatprep.subr.bf16.mxu1 %v16856_v5  ;;  %v16917_v4 = vld [vmem:[%s24153_s1 + $0x13f0] ss:$28 sps:$4 sm:$0xff]   ;;  %v16920_v5 = vld [vmem:[%s24153_s1 + $0x29c8] ss:$28 sps:$4 sm:$0xff]  }
 0x216   :  { %10902 = vmatprep.subr.bf16.mxu0 %v16859_v6  ;;  %v16925_v6 = vld [vmem:[%s24153_s1 + $0x142c] ss:$28 sps:$4 sm:$0xff]  }
 0x218   :  { %11372 = vmatpush1.bf16.msra.mxu1 %v16854_v8  ;;  %v16931_v8 = vld [vmem:[%s24153_s1 + $0x2a04] ss:$28 sps:$4 sm:$0xff]  }
 0x219   :  { %10903 = vmatpush1.bf16.msra.mxu0 %v16857_v10  ;;  %11373 = vmatprep.subr.bf16.mxu1 %v16862_v13  ;;  %v16923_v10 = vld [vmem:[%s24153_s1 + $0x1428] ss:$28 sps:$4 sm:$0xff]   ;;  %v16929_v13 = vld [vmem:[%s24153_s1 + $0x2a00] ss:$28 sps:$4 sm:$0xff]  }
 0x21a   :  { %10904 = vmatprep.subr.bf16.mxu0 %v16865_v14  ;;  %v16934_v14 = vld [vmem:[%s24153_s1 + $0x1464] ss:$28 sps:$4 sm:$0xff]  }
 0x21b   :  { %11359 = vmatmul.mubr.bf16.gmra.mrb[20].mxu1 %v18355_v21  ;;  %v16943_v21 = vld [vmem:[%s24153_s1 + $0x2a74] ss:$28 sps:$4 sm:$0xff]  }
 0x21c   :  { %11374 = vmatpush1.bf16.msra.mxu1 %v16860_v17  ;;  %11401 = vmatprep.mubr.bf16.mxu1 %v18356_v30  ;;  %v16932_v17 = vld [vmem:[%s24153_s1 + $0x1460] ss:$28 sps:$4 sm:$0xff]   ;;  %v16949_v30 = vld [vmem:[%s24153_s1 + $0x2aac] ss:$28 sps:$4 sm:$0xff]  }
 0x21d   :  { %10905 = vmatpush1.bf16.msra.mxu0 %v16863_v18  ;;  %11375 = vmatprep.subr.bf16.mxu1 %v16868_v19  ;;  %v17013_v18 = vld [vmem:[%s24154_s0 + $0x144] ss:$116 sps:$4 sm:$0xff]  }
 0x21e   :  { %10906 = vmatprep.subr.bf16.mxu0 %v16871_v20  ;;  %v16935_v19 = vld [vmem:[%s24153_s1 + $0x2a38] ss:$28 sps:$4 sm:$0xff]  }
 0x21f   :  { %v16940_v20 = vld [vmem:[%s24153_s1 + $0x149c] ss:$28 sps:$4 sm:$0xff]  }
 0x220   :  { %11376 = vmatpush1.bf16.msra.mxu1 %v16866_v22  ;;  %v17018_v22 = vld [vmem:[%s24154_s0 + $0x140] ss:$116 sps:$4 sm:$0xff]  }
 0x221   :  { %10907 = vmatpush1.bf16.msra.mxu0 %v16869_v24  ;;  %11377 = vmatprep.subr.bf16.mxu1 %v16874_v27  ;;  %v16938_v24 = vld [vmem:[%s24153_s1 + $0x1498] ss:$28 sps:$4 sm:$0xff]   ;;  %v16941_v27 = vld [vmem:[%s24153_s1 + $0x2a70] ss:$28 sps:$4 sm:$0xff]  }
 0x222   :  { %10908 = vmatprep.subr.bf16.mxu0 %v16877_v28  ;;  %v16946_v28 = vld [vmem:[%s24153_s1 + $0x14d4] ss:$28 sps:$4 sm:$0xff]  }
 0x224   :  { %11378 = vmatpush1.bf16.msra.mxu1 %v16872_v31  ;;  %v16944_v31 = vld [vmem:[%s24153_s1 + $0x14d0] ss:$28 sps:$4 sm:$0xff]  }
 0x225   :  { %10909 = vmatpush1.bf16.msra.mxu0 %v16875_v32  ;;  %11379 = vmatprep.subr.bf16.mxu1 %v16880_v33  ;;  %v17030_v32 = vld [vmem:[%s24154_s0 + $0x64] ss:$116 sps:$4 sm:$0xff]  }
 0x226   :  { %10910 = vmatprep.subr.bf16.mxu0 %v16883_v34  ;;  %v16947_v33 = vld [vmem:[%s24153_s1 + $0x2aa8] ss:$28 sps:$4 sm:$0xff]  }
 0x227   :  { %v16952_v34 = vld [vmem:[%s24153_s1 + $0x150c] ss:$28 sps:$4 sm:$0xff]  }
 0x228   :  { %11380 = vmatpush1.bf16.msra.mxu1 %v16878_v35  ;;  %v16955_v35 = vld [vmem:[%s24153_s1 + $0x2ae4] ss:$28 sps:$4 sm:$0xff]  }
 0x229   :  { %10911 = vmatpush1.bf16.msra.mxu0 %v16881_v39  ;;  %11381 = vmatprep.subr.bf16.mxu1 %v16886_v40  ;;  %v16950_v39 = vld [vmem:[%s24153_s1 + $0x1508] ss:$28 sps:$4 sm:$0xff]   ;;  %v16953_v40 = vld [vmem:[%s24153_s1 + $0x2ae0] ss:$28 sps:$4 sm:$0xff]  }
 0x22a   :  { %10912 = vmatprep.subr.bf16.mxu0 %v16889_v42  ;;  %v16958_v42 = vld [vmem:[%s24153_s1 + $0x1544] ss:$28 sps:$4 sm:$0xff]  }
 0x22c   :  { %11382 = vmatpush1.bf16.msra.mxu1 %v16884_v43  ;;  %v16961_v43 = vld [vmem:[%s24153_s1 + $0x2b1c] ss:$28 sps:$4 sm:$0xff]  }
 0x22d   :  { %10913 = vmatpush1.bf16.msra.mxu0 %v16887_v45  ;;  %11383 = vmatprep.subr.bf16.mxu1 %v16892_v46  ;;  %v16956_v45 = vld [vmem:[%s24153_s1 + $0x1540] ss:$28 sps:$4 sm:$0xff]  }
 0x22e   :  { %10914 = vmatprep.subr.bf16.mxu0 %v16895_v47  ;;  %v18357_v46 = vld [vmem:[%s24154_s0 + $0x28] ss:$116 sps:$4 sm:$0xff]   ;;  %v16959_v47 = vld [vmem:[%s24153_s1 + $0x2b18] ss:$28 sps:$4 sm:$0xff]  }
 0x230   :  { %11384 = vmatpush1.bf16.msra.mxu1 %v16890_v48  ;;  %v16964_v48 = vld [vmem:[%s24153_s1 + $0x157c] ss:$28 sps:$4 sm:$0xff]  }
 0x231   :  { %10915 = vmatpush1.bf16.msra.mxu0 %v16893_v51  ;;  %11385 = vmatprep.subr.bf16.mxu1 %v16898_v52  ;;  %v16967_v51 = vld [vmem:[%s24153_s1 + $0x2b54] ss:$28 sps:$4 sm:$0xff]  }
 0x232   :  { %10916 = vmatprep.subr.bf16.mxu0 %v16901_v54  ;;  %v16962_v52 = vld [vmem:[%s24153_s1 + $0x1578] ss:$28 sps:$4 sm:$0xff]  }
 0x233   :  { %v18358_v54 = vld [vmem:[%s24154_s0 + $0x114] ss:$116 sps:$4 sm:$0xff]  }
 0x234   :  { %11386 = vmatpush1.bf16.msra.mxu1 %v16896_v55  ;;  %v16965_v55 = vld [vmem:[%s24153_s1 + $0x2b50] ss:$28 sps:$4 sm:$0xff]  }
 0x235   :  { %10917 = vmatpush1.bf16.msra.mxu0 %v16899_v57  ;;  %11387 = vmatprep.subr.bf16.mxu1 %v16904_v58  ;;  %v16970_v57 = vld [vmem:[%s24153_s1 + $0x15b4] ss:$28 sps:$4 sm:$0xff]   ;;  %v16973_v58 = vld [vmem:[%s24153_s1 + $0x2b8c] ss:$28 sps:$4 sm:$0xff]  }
 0x236   :  { %10918 = vmatprep.subr.bf16.mxu0 %v16907_v59  ;;  %v16968_v59 = vld [vmem:[%s24153_s1 + $0x15b0] ss:$28 sps:$4 sm:$0xff]  }
 0x238   :  { %11388 = vmatpush1.bf16.msra.mxu1 %v16902_v60  ;;  %v16971_v60 = vld [vmem:[%s24153_s1 + $0x2b88] ss:$28 sps:$4 sm:$0xff]  }
 0x239   :  { %10919 = vmatpush1.bf16.msra.mxu0 %v16905_v61  ;;  %11389 = vmatprep.subr.bf16.mxu1 %v16910_v62  ;;  %v18359_v61 = vld [vmem:[%s24154_s0 + $0x110] ss:$116 sps:$4 sm:$0xff]   ;;  %v16976_v62 = vld [vmem:[%s24153_s1 + $0x15ec] ss:$28 sps:$4 sm:$0xff]  }
 0x23a   :  { %10920 = vmatprep.subr.bf16.mxu0 %v16915_v63  ;;  %v16979_v63 = vld [vmem:[%s24153_s1 + $0x2bc4] ss:$28 sps:$4 sm:$0xff]  }
 0x23c   :  { %11390 = vmatpush1.bf16.msra.mxu1 %v16908_v0  ;;  %v16974_v0 = vld [vmem:[%s24153_s1 + $0x15e8] ss:$28 sps:$4 sm:$0xff]  }
 0x23d   :  { %10921 = vmatpush1.bf16.msra.mxu0 %v16913_v1  ;;  %11391 = vmatprep.subr.bf16.mxu1 %v16919_v2  ;;  %v18360_v1 = vld [vmem:[%s24154_s0 + $0x34] ss:$116 sps:$4 sm:$0xff]   ;;  %v16977_v2 = vld [vmem:[%s24153_s1 + $0x2bc0] ss:$28 sps:$4 sm:$0xff]  }
 0x23e   :  { %10922 = vmatprep.subr.bf16.mxu0 %v16922_v3  ;;  %v16982_v3 = vld [vmem:[%s24153_s1 + $0x1624] ss:$28 sps:$4 sm:$0xff]  }
 0x240   :  { %11392 = vmatpush1.bf16.msra.mxu1 %v16917_v4  ;;  %v16985_v4 = vld [vmem:[%s24153_s1 + $0x2bfc] ss:$28 sps:$4 sm:$0xff]  }
 0x241   :  { %10923 = vmatpush1.bf16.msra.mxu0 %v16920_v5  ;;  %11393 = vmatprep.subr.bf16.mxu1 %v16925_v6  ;;  %v16980_v5 = vld [vmem:[%s24153_s1 + $0x1620] ss:$28 sps:$4 sm:$0xff]   ;;  %v16983_v6 = vld [vmem:[%s24153_s1 + $0x2bf8] ss:$28 sps:$4 sm:$0xff]  }
 0x242   :  { %10945 = vmatprep.subr.bf16.mxu0 %v16931_v8  ;;  %v16991_v8 = vld [vmem:[%s24153_s1 + $0x2c34] ss:$28 sps:$4 sm:$0xff]  }
 0x244   :  { %10925 = vmatmul.mubr.bf16.vlgmr.msra.gmra.mrb[0].mxu0 %v16926_v7  ;;  %11394 = vmatpush1.bf16.msra.mxu1 %v16923_v10  ;;  %v16988_v7 = vld [vmem:[%s24153_s1 + $0x165c] ss:$28 sps:$4 sm:$0xff]  }
 0x245   :  { %10946 = vmatpush1.bf16.msra.mxu0 %v16929_v13  ;;  %11395 = vmatprep.subr.bf16.mxu1 %v16934_v14  ;;  %v16986_v10 = vld [vmem:[%s24153_s1 + $0x1658] ss:$28 sps:$4 sm:$0xff]   ;;  %v16989_v13 = vld [vmem:[%s24153_s1 + $0x2c30] ss:$28 sps:$4 sm:$0xff]  }
 0x246   :  { %10947 = vmatprep.subr.bf16.mxu0 %v16937_v16  ;;  %10934 = vmatprep.mubr.bf16.mxu0 %v17013_v18  ;;  %v16994_v14 = vld [vmem:[%s24153_s1 + $0x1694] ss:$28 sps:$4 sm:$0xff]   ;;  %v16997_v16 = vld [vmem:[%s24153_s1 + $0x2c6c] ss:$28 sps:$4 sm:$0xff]  }
 0x247   :  { %v16995_v18 = vld [vmem:[%s24153_s1 + $0x2c68] ss:$28 sps:$4 sm:$0xff]  }
 0x248   :  { %11396 = vmatpush1.bf16.msra.mxu1 %v16932_v17  ;;  %v16992_v17 = vld [vmem:[%s24153_s1 + $0x1690] ss:$28 sps:$4 sm:$0xff]  }
 0x249   :  { %10948 = vmatpush1.bf16.msra.mxu0 %v16935_v19  ;;  %11397 = vmatprep.subr.bf16.mxu1 %v16940_v20  ;;  %v17000_v19 = vld [vmem:[%s24153_s1 + $0x16cc] ss:$28 sps:$4 sm:$0xff]   ;;  %v17003_v20 = vld [vmem:[%s24153_s1 + $0x2ca4] ss:$28 sps:$4 sm:$0xff]  }
 0x24a   :  { %10949 = vmatprep.subr.bf16.mxu0 %v16943_v21  ;;  %v16998_v21 = vld [vmem:[%s24153_s1 + $0x16c8] ss:$28 sps:$4 sm:$0xff]  }
 0x24c   :  { %10935 = vmatmul.mubr.bf16.gmra.mrb[4].mxu0 %v17018_v22  ;;  %11398 = vmatpush1.bf16.msra.mxu1 %v16938_v24  ;;  %v17001_v22 = vld [vmem:[%s24153_s1 + $0x2ca0] ss:$28 sps:$4 sm:$0xff]  }
 0x24d   :  { %10950 = vmatpush1.bf16.msra.mxu0 %v16941_v27  ;;  %11399 = vmatprep.subr.bf16.mxu1 %v16946_v28  ;;  %v17006_v24 = vld [vmem:[%s24153_s1 + $0x1704] ss:$28 sps:$4 sm:$0xff]   ;;  %v17009_v27 = vld [vmem:[%s24153_s1 + $0x2cdc] ss:$28 sps:$4 sm:$0xff]  }
 0x24e   :  { %10951 = vmatprep.subr.bf16.mxu0 %v16949_v30  ;;  %10977 = vmatprep.mubr.bf16.mxu0 %v17030_v32  ;;  %v17004_v28 = vld [vmem:[%s24153_s1 + $0x1700] ss:$28 sps:$4 sm:$0xff]   ;;  %v17007_v30 = vld [vmem:[%s24153_s1 + $0x2cd8] ss:$28 sps:$4 sm:$0xff]  }
 0x24f   :  { %v17017_v32 = vld [vmem:[%s24153_s1 + $0x2d14] ss:$28 sps:$4 sm:$0xff]  }
 0x250   :  { %11400 = vmatpush1.bf16.msra.mxu1 %v16944_v31  ;;  %v17012_v31 = vld [vmem:[%s24153_s1 + $0x173c] ss:$28 sps:$4 sm:$0xff]  }
 0x251   :  { %10952 = vmatpush1.bf16.msra.mxu0 %v16947_v33  ;;  %11422 = vmatprep.subr.bf16.mxu1 %v16952_v34  ;;  %v17010_v33 = vld [vmem:[%s24153_s1 + $0x1738] ss:$28 sps:$4 sm:$0xff]   ;;  %v17015_v34 = vld [vmem:[%s24153_s1 + $0x2d10] ss:$28 sps:$4 sm:$0xff]  }
 0x252   :  { %10953 = vmatprep.subr.bf16.mxu0 %v16955_v35  ;;  %v17021_v35 = vld [vmem:[%s24153_s1 + $0x1774] ss:$28 sps:$4 sm:$0xff]  }
 0x253   :  { %11402 = vmatmul.mubr.bf16.vlgmr.msra.gmra.mrb[16].mxu1 %v18357_v46  ;;  %v17025_v46 = vld [vmem:[%s24153_s1 + $0x17a8] ss:$28 sps:$4 sm:$0xff]  }
 0x254   :  { %11423 = vmatpush1.bf16.msra.mxu1 %v16950_v39  ;;  %11411 = vmatprep.mubr.bf16.mxu1 %v18358_v54  ;;  %v17024_v39 = vld [vmem:[%s24153_s1 + $0x2d4c] ss:$28 sps:$4 sm:$0xff]   ;;  %v17034_v54 = vld [vmem:[%s24153_s1 + $0x17e0] ss:$28 sps:$4 sm:$0xff]  }
 0x255   :  { %10954 = vmatpush1.bf16.msra.mxu0 %v16953_v40  ;;  %11424 = vmatprep.subr.bf16.mxu1 %v16958_v42  ;;  %v17019_v40 = vld [vmem:[%s24153_s1 + $0x1770] ss:$28 sps:$4 sm:$0xff]   ;;  %v17022_v42 = vld [vmem:[%s24153_s1 + $0x2d48] ss:$28 sps:$4 sm:$0xff]  }
 0x256   :  { %10955 = vmatprep.subr.bf16.mxu0 %v16961_v43  ;;  %v17027_v43 = vld [vmem:[%s24153_s1 + $0x17ac] ss:$28 sps:$4 sm:$0xff]  }
 0x258   :  { %11425 = vmatpush1.bf16.msra.mxu1 %v16956_v45  ;;  %v17033_v45 = vld [vmem:[%s24153_s1 + $0x2d84] ss:$28 sps:$4 sm:$0xff]  }
 0x259   :  { %10956 = vmatpush1.bf16.msra.mxu0 %v16959_v47  ;;  %11426 = vmatprep.subr.bf16.mxu1 %v16964_v48  ;;  %v17028_v47 = vld [vmem:[%s24154_s0 + $0x60] ss:$116 sps:$4 sm:$0xff]  }
 0x25a   :  { %10957 = vmatprep.subr.bf16.mxu0 %v16967_v51  ;;  %v17031_v48 = vld [vmem:[%s24153_s1 + $0x2d80] ss:$28 sps:$4 sm:$0xff]  }
 0x25b   :  { %11412 = vmatmul.mubr.bf16.gmra.mrb[20].mxu1 %v18359_v61  ;;  %v17036_v51 = vld [vmem:[%s24153_s1 + $0x17e4] ss:$28 sps:$4 sm:$0xff]   ;;  %v17043_v61 = vld [vmem:[%s24153_s1 + $0x2df0] ss:$28 sps:$4 sm:$0xff]  }
 0x25c   :  { %11427 = vmatpush1.bf16.msra.mxu1 %v16962_v52  ;;  %11454 = vmatprep.mubr.bf16.mxu1 %v18360_v1  ;;  %v17039_v52 = vld [vmem:[%s24153_s1 + $0x2dbc] ss:$28 sps:$4 sm:$0xff]   ;;  %v17046_v1 = vld [vmem:[%s24153_s1 + $0x1850] ss:$28 sps:$4 sm:$0xff]  }
 0x25d   :  { %10958 = vmatpush1.bf16.msra.mxu0 %v16965_v55  ;;  %11428 = vmatprep.subr.bf16.mxu1 %v16970_v57  ;;  %v17112_v55 = vld [vmem:[%s24154_s0 + $0x14c] ss:$116 sps:$4 sm:$0xff]   ;;  %v17037_v57 = vld [vmem:[%s24153_s1 + $0x2db8] ss:$28 sps:$4 sm:$0xff]  }
 0x25e   :  { %10959 = vmatprep.subr.bf16.mxu0 %v16973_v58  ;;  %v17042_v58 = vld [vmem:[%s24153_s1 + $0x181c] ss:$28 sps:$4 sm:$0xff]  }
 0x260   :  { %11429 = vmatpush1.bf16.msra.mxu1 %v16968_v59  ;;  %v17045_v59 = vld [vmem:[%s24153_s1 + $0x2df4] ss:$28 sps:$4 sm:$0xff]  }
 0x261   :  { %10960 = vmatpush1.bf16.msra.mxu0 %v16971_v60  ;;  %11430 = vmatprep.subr.bf16.mxu1 %v16976_v62  ;;  %v17040_v60 = vld [vmem:[%s24153_s1 + $0x1818] ss:$28 sps:$4 sm:$0xff]   ;;  %v17117_v62 = vld [vmem:[%s24154_s0 + $0x148] ss:$116 sps:$4 sm:$0xff]  }
 0x262   :  { %10961 = vmatprep.subr.bf16.mxu0 %v16979_v63  ;;  %v17048_v63 = vld [vmem:[%s24153_s1 + $0x1854] ss:$28 sps:$4 sm:$0xff]  }
 0x264   :  { %11431 = vmatpush1.bf16.msra.mxu1 %v16974_v0  ;;  %v17051_v0 = vld [vmem:[%s24153_s1 + $0x2e2c] ss:$28 sps:$4 sm:$0xff]  }
 0x265   :  { %10962 = vmatpush1.bf16.msra.mxu0 %v16977_v2  ;;  %11432 = vmatprep.subr.bf16.mxu1 %v16982_v3  ;;  %v17129_v2 = vld [vmem:[%s24154_s0 + $0x6c] ss:$116 sps:$4 sm:$0xff]   ;;  %v17049_v3 = vld [vmem:[%s24153_s1 + $0x2e28] ss:$28 sps:$4 sm:$0xff]  }
 0x266   :  { %10963 = vmatprep.subr.bf16.mxu0 %v16985_v4  ;;  %v17054_v4 = vld [vmem:[%s24153_s1 + $0x188c] ss:$28 sps:$4 sm:$0xff]  }
 0x268   :  { %11433 = vmatpush1.bf16.msra.mxu1 %v16980_v5  ;;  %v17057_v5 = vld [vmem:[%s24153_s1 + $0x2e64] ss:$28 sps:$4 sm:$0xff]  }
 0x269   :  { %10964 = vmatpush1.bf16.msra.mxu0 %v16983_v6  ;;  %11434 = vmatprep.subr.bf16.mxu1 %v16988_v7  ;;  %v17052_v6 = vld [vmem:[%s24153_s1 + $0x1888] ss:$28 sps:$4 sm:$0xff]   ;;  %v17055_v7 = vld [vmem:[%s24153_s1 + $0x2e60] ss:$28 sps:$4 sm:$0xff]  }
 0x26a   :  { %10965 = vmatprep.subr.bf16.mxu0 %v16991_v8  ;;  %v17060_v8 = vld [vmem:[%s24153_s1 + $0x18c4] ss:$28 sps:$4 sm:$0xff]  }
 0x26c   :  { %11435 = vmatpush1.bf16.msra.mxu1 %v16986_v10  ;;  %v17063_v10 = vld [vmem:[%s24153_s1 + $0x2e9c] ss:$28 sps:$4 sm:$0xff]  }
 0x26d   :  { %10966 = vmatpush1.bf16.msra.mxu0 %v16989_v13  ;;  %11436 = vmatprep.subr.bf16.mxu1 %v16994_v14  ;;  %v17058_v13 = vld [vmem:[%s24153_s1 + $0x18c0] ss:$28 sps:$4 sm:$0xff]   ;;  %v18361_v14 = vld [vmem:[%s24154_s0 + $0x30] ss:$116 sps:$4 sm:$0xff]  }
 0x26e   :  { %10967 = vmatprep.subr.bf16.mxu0 %v16997_v16  ;;  %v17061_v16 = vld [vmem:[%s24153_s1 + $0x2e98] ss:$28 sps:$4 sm:$0xff]  }
 0x270   :  { %11437 = vmatpush1.bf16.msra.mxu1 %v16992_v17  ;;  %v17066_v17 = vld [vmem:[%s24153_s1 + $0x18fc] ss:$28 sps:$4 sm:$0xff]  }
 0x271   :  { %10968 = vmatpush1.bf16.msra.mxu0 %v16995_v18  ;;  %11438 = vmatprep.subr.bf16.mxu1 %v17000_v19  ;;  %v17069_v18 = vld [vmem:[%s24153_s1 + $0x2ed4] ss:$28 sps:$4 sm:$0xff]  }
 0x272   :  { %10969 = vmatprep.subr.bf16.mxu0 %v17003_v20  ;;  %v17064_v19 = vld [vmem:[%s24153_s1 + $0x18f8] ss:$28 sps:$4 sm:$0xff]   ;;  %v18362_v20 = vld [vmem:[%s24154_s0 + $0x11c] ss:$116 sps:$4 sm:$0xff]  }
 0x274   :  { %11439 = vmatpush1.bf16.msra.mxu1 %v16998_v21  ;;  %v17067_v21 = vld [vmem:[%s24153_s1 + $0x2ed0] ss:$28 sps:$4 sm:$0xff]  }
 0x275   :  { %10970 = vmatpush1.bf16.msra.mxu0 %v17001_v22  ;;  %11440 = vmatprep.subr.bf16.mxu1 %v17006_v24  ;;  %v17072_v22 = vld [vmem:[%s24153_s1 + $0x1934] ss:$28 sps:$4 sm:$0xff]   ;;  %v17075_v24 = vld [vmem:[%s24153_s1 + $0x2f0c] ss:$28 sps:$4 sm:$0xff]  }
 0x276   :  { %10971 = vmatprep.subr.bf16.mxu0 %v17009_v27  ;;  %v17070_v27 = vld [vmem:[%s24153_s1 + $0x1930] ss:$28 sps:$4 sm:$0xff]  }
 0x278   :  { %11441 = vmatpush1.bf16.msra.mxu1 %v17004_v28  ;;  %v17073_v28 = vld [vmem:[%s24153_s1 + $0x2f08] ss:$28 sps:$4 sm:$0xff]  }
 0x279   :  { %10972 = vmatpush1.bf16.msra.mxu0 %v17007_v30  ;;  %11442 = vmatprep.subr.bf16.mxu1 %v17012_v31  ;;  %v18363_v30 = vld [vmem:[%s24154_s0 + $0x118] ss:$116 sps:$4 sm:$0xff]  }
 0x27a   :  { %10973 = vmatprep.subr.bf16.mxu0 %v17017_v32  ;;  %v17078_v31 = vld [vmem:[%s24153_s1 + $0x196c] ss:$28 sps:$4 sm:$0xff]   ;;  %v17081_v32 = vld [vmem:[%s24153_s1 + $0x2f44] ss:$28 sps:$4 sm:$0xff]  }
 0x27c   :  { %11443 = vmatpush1.bf16.msra.mxu1 %v17010_v33  ;;  %v17076_v33 = vld [vmem:[%s24153_s1 + $0x1968] ss:$28 sps:$4 sm:$0xff]  }
 0x27d   :  { %10974 = vmatpush1.bf16.msra.mxu0 %v17015_v34  ;;  %11444 = vmatprep.subr.bf16.mxu1 %v17021_v35  ;;  %v18364_v34 = vld [vmem:[%s24154_s0 + $0x3c] ss:$116 sps:$4 sm:$0xff]  }
 0x27e   :  { %10975 = vmatprep.subr.bf16.mxu0 %v17024_v39  ;;  %v17079_v35 = vld [vmem:[%s24153_s1 + $0x2f40] ss:$28 sps:$4 sm:$0xff]  }
 0x27f   :  { %v17084_v39 = vld [vmem:[%s24153_s1 + $0x19a4] ss:$28 sps:$4 sm:$0xff]  }
 0x280   :  { %11445 = vmatpush1.bf16.msra.mxu1 %v17019_v40  ;;  %v17087_v40 = vld [vmem:[%s24153_s1 + $0x2f7c] ss:$28 sps:$4 sm:$0xff]  }
 0x281   :  { %10976 = vmatpush1.bf16.msra.mxu0 %v17022_v42  ;;  %11446 = vmatprep.subr.bf16.mxu1 %v17027_v43  ;;  %v17082_v42 = vld [vmem:[%s24153_s1 + $0x19a0] ss:$28 sps:$4 sm:$0xff]   ;;  %v17085_v43 = vld [vmem:[%s24153_s1 + $0x2f78] ss:$28 sps:$4 sm:$0xff]  }
 0x282   :  { %10998 = vmatprep.subr.bf16.mxu0 %v17033_v45  ;;  %v17090_v45 = vld [vmem:[%s24153_s1 + $0x19dc] ss:$28 sps:$4 sm:$0xff]  }
 0x284   :  { %10978 = vmatmul.mubr.bf16.vlgmr.msra.gmra.mrb[0].mxu0 %v17028_v47  ;;  %11447 = vmatpush1.bf16.msra.mxu1 %v17025_v46  ;;  %v17093_v46 = vld [vmem:[%s24153_s1 + $0x2fb4] ss:$28 sps:$4 sm:$0xff]  }
 0x285   :  { %10999 = vmatpush1.bf16.msra.mxu0 %v17031_v48  ;;  %11448 = vmatprep.subr.bf16.mxu1 %v17036_v51  ;;  %v17088_v47 = vld [vmem:[%s24153_s1 + $0x19d8] ss:$28 sps:$4 sm:$0xff]   ;;  %v17091_v48 = vld [vmem:[%s24153_s1 + $0x2fb0] ss:$28 sps:$4 sm:$0xff]  }
 0x286   :  { %11000 = vmatprep.subr.bf16.mxu0 %v17039_v52  ;;  %10987 = vmatprep.mubr.bf16.mxu0 %v17112_v55  ;;  %v17096_v51 = vld [vmem:[%s24153_s1 + $0x1a14] ss:$28 sps:$4 sm:$0xff]   ;;  %v17099_v52 = vld [vmem:[%s24153_s1 + $0x2fec] ss:$28 sps:$4 sm:$0xff]  }
 0x287   :  { %v17097_v55 = vld [vmem:[%s24153_s1 + $0x2fe8] ss:$28 sps:$4 sm:$0xff]  }
 0x288   :  { %11449 = vmatpush1.bf16.msra.mxu1 %v17034_v54  ;;  %v17094_v54 = vld [vmem:[%s24153_s1 + $0x1a10] ss:$28 sps:$4 sm:$0xff]  }
 0x289   :  { %11001 = vmatpush1.bf16.msra.mxu0 %v17037_v57  ;;  %11450 = vmatprep.subr.bf16.mxu1 %v17042_v58  ;;  %v17102_v57 = vld [vmem:[%s24153_s1 + $0x1a4c] ss:$28 sps:$4 sm:$0xff]   ;;  %v17105_v58 = vld [vmem:[%s24153_s1 + $0x3024] ss:$28 sps:$4 sm:$0xff]  }
 0x28a   :  { %11002 = vmatprep.subr.bf16.mxu0 %v17045_v59  ;;  %v17100_v59 = vld [vmem:[%s24153_s1 + $0x1a48] ss:$28 sps:$4 sm:$0xff]  }
 0x28c   :  { %10988 = vmatmul.mubr.bf16.gmra.mrb[4].mxu0 %v17117_v62  ;;  %11451 = vmatpush1.bf16.msra.mxu1 %v17040_v60  ;;  %v17103_v60 = vld [vmem:[%s24153_s1 + $0x3020] ss:$28 sps:$4 sm:$0xff]  }
 0x28d   :  { %11003 = vmatpush1.bf16.msra.mxu0 %v17043_v61  ;;  %11452 = vmatprep.subr.bf16.mxu1 %v17048_v63  ;;  %v17108_v61 = vld [vmem:[%s24153_s1 + $0x1a84] ss:$28 sps:$4 sm:$0xff]   ;;  %v17111_v62 = vld [vmem:[%s24153_s1 + $0x305c] ss:$28 sps:$4 sm:$0xff]  }
 0x28e   :  { %11004 = vmatprep.subr.bf16.mxu0 %v17051_v0  ;;  %11030 = vmatprep.mubr.bf16.mxu0 %v17129_v2  ;;  %v17106_v63 = vld [vmem:[%s24153_s1 + $0x1a80] ss:$28 sps:$4 sm:$0xff]   ;;  %v17109_v0 = vld [vmem:[%s24153_s1 + $0x3058] ss:$28 sps:$4 sm:$0xff]  }
 0x28f   :  { %v17120_v2 = vld [vmem:[%s24153_s1 + $0x3094] ss:$28 sps:$4 sm:$0xff]  }
 0x290   :  { %11453 = vmatpush1.bf16.msra.mxu1 %v17046_v1  ;;  %v17116_v1 = vld [vmem:[%s24153_s1 + $0x1abc] ss:$28 sps:$4 sm:$0xff]  }
 0x291   :  { %11005 = vmatpush1.bf16.msra.mxu0 %v17049_v3  ;;  %11475 = vmatprep.subr.bf16.mxu1 %v17054_v4  ;;  %v17114_v3 = vld [vmem:[%s24153_s1 + $0x1ab8] ss:$28 sps:$4 sm:$0xff]   ;;  %v17118_v4 = vld [vmem:[%s24153_s1 + $0x3090] ss:$28 sps:$4 sm:$0xff]  }
 0x292   :  { %11006 = vmatprep.subr.bf16.mxu0 %v17057_v5  ;;  %v17123_v5 = vld [vmem:[%s24153_s1 + $0x1af4] ss:$28 sps:$4 sm:$0xff]  }
 0x293   :  { %11455 = vmatmul.mubr.bf16.vlgmr.msra.gmra.mrb[16].mxu1 %v18361_v14  ;;  %v17127_v14 = vld [vmem:[%s24154_s0 + $0x68] ss:$116 sps:$4 sm:$0xff]  }
 0x294   :  { %11476 = vmatpush1.bf16.msra.mxu1 %v17052_v6  ;;  %11464 = vmatprep.mubr.bf16.mxu1 %v18362_v20  ;;  %v17126_v6 = vld [vmem:[%s24153_s1 + $0x30cc] ss:$28 sps:$4 sm:$0xff]   ;;  %v17136_v20 = vld [vmem:[%s24153_s1 + $0x1b60] ss:$28 sps:$4 sm:$0xff]  }
 0x295   :  { %11007 = vmatpush1.bf16.msra.mxu0 %v17055_v7  ;;  %11477 = vmatprep.subr.bf16.mxu1 %v17060_v8  ;;  %v17121_v7 = vld [vmem:[%s24153_s1 + $0x1af0] ss:$28 sps:$4 sm:$0xff]   ;;  %v17124_v8 = vld [vmem:[%s24153_s1 + $0x30c8] ss:$28 sps:$4 sm:$0xff]  }
 0x296   :  { %11008 = vmatprep.subr.bf16.mxu0 %v17063_v10  ;;  %v17132_v10 = vld [vmem:[%s24153_s1 + $0x1b2c] ss:$28 sps:$4 sm:$0xff]  }
 0x298   :  { %11478 = vmatpush1.bf16.msra.mxu1 %v17058_v13  ;;  %v17135_v13 = vld [vmem:[%s24153_s1 + $0x14] ss:$28 sps:$4 sm:$0xff]  }
 0x299   :  { %11009 = vmatpush1.bf16.msra.mxu0 %v17061_v16  ;;  %11479 = vmatprep.subr.bf16.mxu1 %v17066_v17  ;;  %v17130_v16 = vld [vmem:[%s24153_s1 + $0x1b28] ss:$28 sps:$4 sm:$0xff]   ;;  %v17133_v17 = vld [vmem:[%s24153_s1 + $0x10] ss:$28 sps:$4 sm:$0xff]  }
 0x29a   :  { %11010 = vmatprep.subr.bf16.mxu0 %v17069_v18  ;;  %v17138_v18 = vld [vmem:[%s24153_s1 + $0x1b64] ss:$28 sps:$4 sm:$0xff]  }
 0x29b   :  { %11465 = vmatmul.mubr.bf16.gmra.mrb[20].mxu1 %v18363_v30  ;;  %v17147_v30 = vld [vmem:[%s24154_s0 + $0x150] ss:$116 sps:$4 sm:$0xff]  }
 0x29c   :  { %11480 = vmatpush1.bf16.msra.mxu1 %v17064_v19  ;;  %11507 = vmatprep.mubr.bf16.mxu1 %v18364_v34  ;;  %v17141_v19 = vld [vmem:[%s24153_s1 + $0x4c] ss:$28 sps:$4 sm:$0xff]  }
 0x29d   :  { %11011 = vmatpush1.bf16.msra.mxu0 %v17067_v21  ;;  %11481 = vmatprep.subr.bf16.mxu1 %v17072_v22  ;;  %v17142_v21 = vld [vmem:[%s24154_s0 + $0x154] ss:$116 sps:$4 sm:$0xff]   ;;  %v17151_v34 = vld [vmem:[%s24153_s1 + $0x1bd0] ss:$28 sps:$4 sm:$0xff]  }
 0x29e   :  { %11012 = vmatprep.subr.bf16.mxu0 %v17075_v24  ;;  %v17139_v22 = vld [vmem:[%s24153_s1 + $0x48] ss:$28 sps:$4 sm:$0xff]   ;;  %v17146_v24 = vld [vmem:[%s24153_s1 + $0x1b9c] ss:$28 sps:$4 sm:$0xff]  }
 0x2a0   :  { %11482 = vmatpush1.bf16.msra.mxu1 %v17070_v27  ;;  %v17150_v27 = vld [vmem:[%s24153_s1 + $0x84] ss:$28 sps:$4 sm:$0xff]  }
 0x2a1   :  { %11013 = vmatpush1.bf16.msra.mxu0 %v17073_v28  ;;  %11483 = vmatprep.subr.bf16.mxu1 %v17078_v31  ;;  %v17144_v28 = vld [vmem:[%s24153_s1 + $0x1b98] ss:$28 sps:$4 sm:$0xff]   ;;  %v17148_v31 = vld [vmem:[%s24153_s1 + $0x80] ss:$28 sps:$4 sm:$0xff]  }
 0x2a2   :  { %11014 = vmatprep.subr.bf16.mxu0 %v17081_v32  ;;  %v17153_v32 = vld [vmem:[%s24153_s1 + $0x1bd4] ss:$28 sps:$4 sm:$0xff]  }
 0x2a4   :  { %11484 = vmatpush1.bf16.msra.mxu1 %v17076_v33  ;;  %v17156_v33 = vld [vmem:[%s24153_s1 + $0xbc] ss:$28 sps:$4 sm:$0xff]  }
 0x2a5   :  { %11015 = vmatpush1.bf16.msra.mxu0 %v17079_v35  ;;  %11485 = vmatprep.subr.bf16.mxu1 %v17084_v39  ;;  %v17154_v35 = vld [vmem:[%s24153_s1 + $0xb8] ss:$28 sps:$4 sm:$0xff]   ;;  %v17159_v39 = vld [vmem:[%s24153_s1 + $0x1c0c] ss:$28 sps:$4 sm:$0xff]  }
 0x2a6   :  { %11016 = vmatprep.subr.bf16.mxu0 %v17087_v40  ;;  %v17162_v40 = vld [vmem:[%s24153_s1 + $0xf4] ss:$28 sps:$4 sm:$0xff]  }
 0x2a8   :  { %11486 = vmatpush1.bf16.msra.mxu1 %v17082_v42  ;;  %v17157_v42 = vld [vmem:[%s24153_s1 + $0x1c08] ss:$28 sps:$4 sm:$0xff]  }
 0x2a9   :  { %11017 = vmatpush1.bf16.msra.mxu0 %v17085_v43  ;;  %11487 = vmatprep.subr.bf16.mxu1 %v17090_v45  ;;  %v18365_v43 = vld [vmem:[%s24154_s0 + $0x4] ss:$116 sps:$4 sm:$0xff]   ;;  %v17160_v45 = vld [vmem:[%s24153_s1 + $0xf0] ss:$28 sps:$4 sm:$0xff]  }
 0x2aa   :  { %11018 = vmatprep.subr.bf16.mxu0 %v17093_v46  ;;  %v17165_v46 = vld [vmem:[%s24153_s1 + $0x1c44] ss:$28 sps:$4 sm:$0xff]  }
 0x2ac   :  { %11488 = vmatpush1.bf16.msra.mxu1 %v17088_v47  ;;  %v17168_v47 = vld [vmem:[%s24153_s1 + $0x12c] ss:$28 sps:$4 sm:$0xff]  }
 0x2ad   :  { %11019 = vmatpush1.bf16.msra.mxu0 %v17091_v48  ;;  %11489 = vmatprep.subr.bf16.mxu1 %v17096_v51  ;;  %v17163_v48 = vld [vmem:[%s24153_s1 + $0x1c40] ss:$28 sps:$4 sm:$0xff]   ;;  %v18366_v51 = vld [vmem:[%s24154_s0 + $0x38] ss:$116 sps:$4 sm:$0xff]  }
 0x2ae   :  { %11020 = vmatprep.subr.bf16.mxu0 %v17099_v52  ;;  %v17166_v52 = vld [vmem:[%s24153_s1 + $0x128] ss:$28 sps:$4 sm:$0xff]  }
 0x2b0   :  { %11490 = vmatpush1.bf16.msra.mxu1 %v17094_v54  ;;  %v17171_v54 = vld [vmem:[%s24153_s1 + $0x1c7c] ss:$28 sps:$4 sm:$0xff]  }
 0x2b1   :  { %11021 = vmatpush1.bf16.msra.mxu0 %v17097_v55  ;;  %11491 = vmatprep.subr.bf16.mxu1 %v17102_v57  ;;  %v17174_v55 = vld [vmem:[%s24153_s1 + $0x164] ss:$28 sps:$4 sm:$0xff]   ;;  %v17169_v57 = vld [vmem:[%s24153_s1 + $0x1c78] ss:$28 sps:$4 sm:$0xff]  }
 0x2b2   :  { %11022 = vmatprep.subr.bf16.mxu0 %v17105_v58  ;;  %v18367_v58 = vld [vmem:[%s24154_s0 + $0x124] ss:$116 sps:$4 sm:$0xff]  }
 0x2b4   :  { %11492 = vmatpush1.bf16.msra.mxu1 %v17100_v59  ;;  %v17172_v59 = vld [vmem:[%s24153_s1 + $0x160] ss:$28 sps:$4 sm:$0xff]  }
 0x2b5   :  { %11023 = vmatpush1.bf16.msra.mxu0 %v17103_v60  ;;  %11493 = vmatprep.subr.bf16.mxu1 %v17108_v61  ;;  %v17177_v60 = vld [vmem:[%s24153_s1 + $0x1cb4] ss:$28 sps:$4 sm:$0xff]   ;;  %v17180_v61 = vld [vmem:[%s24153_s1 + $0x19c] ss:$28 sps:$4 sm:$0xff]  }
 0x2b6   :  { %11024 = vmatprep.subr.bf16.mxu0 %v17111_v62  ;;  %v17175_v62 = vld [vmem:[%s24153_s1 + $0x1cb0] ss:$28 sps:$4 sm:$0xff]  }
 0x2b8   :  { %11494 = vmatpush1.bf16.msra.mxu1 %v17106_v63  ;;  %v17178_v63 = vld [vmem:[%s24153_s1 + $0x198] ss:$28 sps:$4 sm:$0xff]  }
 0x2b9   :  { %11025 = vmatpush1.bf16.msra.mxu0 %v17109_v0  ;;  %11495 = vmatprep.subr.bf16.mxu1 %v17116_v1  ;;  %v18368_v0 = vld [vmem:[%s24154_s0 + $0x120] ss:$116 sps:$4 sm:$0xff]   ;;  %v17183_v1 = vld [vmem:[%s24153_s1 + $0x1cec] ss:$28 sps:$4 sm:$0xff]  }
 0x2ba   :  { %11026 = vmatprep.subr.bf16.mxu0 %v17120_v2  ;;  %v17186_v2 = vld [vmem:[%s24153_s1 + $0x1d4] ss:$28 sps:$4 sm:$0xff]  }
 0x2bc   :  { %11496 = vmatpush1.bf16.msra.mxu1 %v17114_v3  ;;  %v17181_v3 = vld [vmem:[%s24153_s1 + $0x1ce8] ss:$28 sps:$4 sm:$0xff]  }
 0x2bd   :  { %11027 = vmatpush1.bf16.msra.mxu0 %v17118_v4  ;;  %11497 = vmatprep.subr.bf16.mxu1 %v17123_v5  ;;  %v18369_v4 = vld [vmem:[%s24154_s0 + $0x44] ss:$116 sps:$4 sm:$0xff]   ;;  %v17184_v5 = vld [vmem:[%s24153_s1 + $0x1d0] ss:$28 sps:$4 sm:$0xff]  }
 0x2be   :  { %11028 = vmatprep.subr.bf16.mxu0 %v17126_v6  ;;  %v17189_v6 = vld [vmem:[%s24153_s1 + $0x1d24] ss:$28 sps:$4 sm:$0xff]  }
 0x2c0   :  { %11498 = vmatpush1.bf16.msra.mxu1 %v17121_v7  ;;  %v17192_v7 = vld [vmem:[%s24153_s1 + $0x20c] ss:$28 sps:$4 sm:$0xff]  }
 0x2c1   :  { %11029 = vmatpush1.bf16.msra.mxu0 %v17124_v8  ;;  %11499 = vmatprep.subr.bf16.mxu1 %v17132_v10  ;;  %v17187_v8 = vld [vmem:[%s24153_s1 + $0x1d20] ss:$28 sps:$4 sm:$0xff]   ;;  %v17190_v10 = vld [vmem:[%s24153_s1 + $0x208] ss:$28 sps:$4 sm:$0xff]  }
 0x2c2   :  { %11899 = vmatprep.subr.bf16.mxu0 %v17135_v13  ;;  %v17195_v13 = vld [vmem:[%s24153_s1 + $0x1d5c] ss:$28 sps:$4 sm:$0xff]  }
 0x2c4   :  { %11031 = vmatmul.mubr.bf16.vlgmr.msra.gmra.mrb[0].mxu0 %v17127_v14  ;;  %11500 = vmatpush1.bf16.msra.mxu1 %v17130_v16  ;;  %v17198_v14 = vld [vmem:[%s24153_s1 + $0x244] ss:$28 sps:$4 sm:$0xff]   ;;  %v17193_v16 = vld [vmem:[%s24153_s1 + $0x1d58] ss:$28 sps:$4 sm:$0xff]  }
 0x2c5   :  { %11900 = vmatpush1.bf16.msra.mxu0 %v17133_v17  ;;  %11501 = vmatprep.subr.bf16.mxu1 %v17138_v18  ;;  %v17196_v17 = vld [vmem:[%s24153_s1 + $0x240] ss:$28 sps:$4 sm:$0xff]   ;;  %v17201_v18 = vld [vmem:[%s24153_s1 + $0x1d94] ss:$28 sps:$4 sm:$0xff]  }
 0x2c6   :  { %11901 = vmatprep.subr.bf16.mxu0 %v17141_v19  ;;  %11040 = vmatprep.mubr.bf16.mxu0 %v17142_v21  ;;  %v17204_v19 = vld [vmem:[%s24153_s1 + $0x27c] ss:$28 sps:$4 sm:$0xff]  }
 0x2c7   :  { %v17202_v21 = vld [vmem:[%s24153_s1 + $0x278] ss:$28 sps:$4 sm:$0xff]  }
 0x2c8   :  { %11502 = vmatpush1.bf16.msra.mxu1 %v17136_v20  ;;  %v17199_v20 = vld [vmem:[%s24153_s1 + $0x1d90] ss:$28 sps:$4 sm:$0xff]  }
 0x2c9   :  { %11902 = vmatpush1.bf16.msra.mxu0 %v17139_v22  ;;  %11503 = vmatprep.subr.bf16.mxu1 %v17146_v24  ;;  %v17207_v22 = vld [vmem:[%s24153_s1 + $0x1dcc] ss:$28 sps:$4 sm:$0xff]   ;;  %v17210_v24 = vld [vmem:[%s24153_s1 + $0x2b4] ss:$28 sps:$4 sm:$0xff]  }
 0x2ca   :  { %11903 = vmatprep.subr.bf16.mxu0 %v17150_v27  ;;  %v17205_v27 = vld [vmem:[%s24153_s1 + $0x1dc8] ss:$28 sps:$4 sm:$0xff]  }
 0x2cc   :  { %11041 = vmatmul.mubr.bf16.gmra.mrb[4].mxu0 %v17147_v30  ;;  %11504 = vmatpush1.bf16.msra.mxu1 %v17144_v28  ;;  %v17208_v28 = vld [vmem:[%s24153_s1 + $0x2b0] ss:$28 sps:$4 sm:$0xff]   ;;  %v17213_v30 = vld [vmem:[%s24153_s1 + $0x1e04] ss:$28 sps:$4 sm:$0xff]  }
 0x2cd   :  { %11904 = vmatpush1.bf16.msra.mxu0 %v17148_v31  ;;  %11505 = vmatprep.subr.bf16.mxu1 %v17153_v32  ;;  %v17216_v31 = vld [vmem:[%s24153_s1 + $0x2ec] ss:$28 sps:$4 sm:$0xff]   ;;  %v17211_v32 = vld [vmem:[%s24153_s1 + $0x1e00] ss:$28 sps:$4 sm:$0xff]  }
 0x2ce   :  { %11905 = vmatprep.subr.bf16.mxu0 %v17156_v33  ;;  %11931 = vmatprep.mubr.bf16.mxu0 %v18365_v43  ;;  %v17214_v33 = vld [vmem:[%s24153_s1 + $0x2e8] ss:$28 sps:$4 sm:$0xff]   ;;  %v17228_v43 = vld [vmem:[%s24153_s1 + $0x35c] ss:$28 sps:$4 sm:$0xff]  }
 0x2d0   :  { %11506 = vmatpush1.bf16.msra.mxu1 %v17151_v34  ;;  %v17219_v34 = vld [vmem:[%s24153_s1 + $0x1e3c] ss:$28 sps:$4 sm:$0xff]  }
 0x2d1   :  { %11906 = vmatpush1.bf16.msra.mxu0 %v17154_v35  ;;  %11528 = vmatprep.subr.bf16.mxu1 %v17159_v39  ;;  %v17222_v35 = vld [vmem:[%s24153_s1 + $0x324] ss:$28 sps:$4 sm:$0xff]   ;;  %v17217_v39 = vld [vmem:[%s24153_s1 + $0x1e38] ss:$28 sps:$4 sm:$0xff]  }
 0x2d2   :  { %11907 = vmatprep.subr.bf16.mxu0 %v17162_v40  ;;  %v17220_v40 = vld [vmem:[%s24153_s1 + $0x320] ss:$28 sps:$4 sm:$0xff]  }
 0x2d3   :  { %11508 = vmatmul.mubr.bf16.vlgmr.msra.gmra.mrb[16].mxu1 %v18366_v51  ;;  %v17229_v51 = vld [vmem:[%s24153_s1 + $0x1ea8] ss:$28 sps:$4 sm:$0xff]  }
 0x2d4   :  { %11529 = vmatpush1.bf16.msra.mxu1 %v17157_v42  ;;  %11517 = vmatprep.mubr.bf16.mxu1 %v18367_v58  ;;  %v17225_v42 = vld [vmem:[%s24153_s1 + $0x1e74] ss:$28 sps:$4 sm:$0xff]  }
 0x2d5   :  { %11908 = vmatpush1.bf16.msra.mxu0 %v17160_v45  ;;  %11530 = vmatprep.subr.bf16.mxu1 %v17165_v46  ;;  %v17223_v45 = vld [vmem:[%s24153_s1 + $0x1e70] ss:$28 sps:$4 sm:$0xff]   ;;  %v17226_v46 = vld [vmem:[%s24153_s1 + $0x358] ss:$28 sps:$4 sm:$0xff]  }
 0x2d6   :  { %11909 = vmatprep.subr.bf16.mxu0 %v17168_v47  ;;  %v17231_v47 = vld [vmem:[%s24153_s1 + $0x1eac] ss:$28 sps:$4 sm:$0xff]   ;;  %v18370_v58 = vld [vmem:[%s24154_s0] ss:$116 sps:$4 sm:$0xff]  }
 0x2d8   :  { %11531 = vmatpush1.bf16.msra.mxu1 %v17163_v48  ;;  %v17234_v48 = vld [vmem:[%s24153_s1 + $0x394] ss:$28 sps:$4 sm:$0xff]  }
 0x2d9   :  { %11910 = vmatpush1.bf16.msra.mxu0 %v17166_v52  ;;  %11532 = vmatprep.subr.bf16.mxu1 %v17171_v54  ;;  %v17232_v52 = vld [vmem:[%s24153_s1 + $0x390] ss:$28 sps:$4 sm:$0xff]   ;;  %v17237_v54 = vld [vmem:[%s24153_s1 + $0x1ee4] ss:$28 sps:$4 sm:$0xff]  }
 0x2da   :  { %11911 = vmatprep.subr.bf16.mxu0 %v17174_v55  ;;  %v17240_v55 = vld [vmem:[%s24153_s1 + $0x3cc] ss:$28 sps:$4 sm:$0xff]  }
 0x2db   :  { %11518 = vmatmul.mubr.bf16.gmra.mrb[20].mxu1 %v18368_v0  ;;  %v17244_v0 = vld [vmem:[%s24153_s1 + $0x400] ss:$28 sps:$4 sm:$0xff]  }
 0x2dc   :  { %11533 = vmatpush1.bf16.msra.mxu1 %v17169_v57  ;;  %11560 = vmatprep.mubr.bf16.mxu1 %v18369_v4  ;;  %v17235_v57 = vld [vmem:[%s24153_s1 + $0x1ee0] ss:$28 sps:$4 sm:$0xff]   ;;  %v17250_v4 = vld [vmem:[%s24153_s1 + $0x438] ss:$28 sps:$4 sm:$0xff]  }
 0x2dd   :  { %11912 = vmatpush1.bf16.msra.mxu0 %v17172_v59  ;;  %11534 = vmatprep.subr.bf16.mxu1 %v17177_v60  ;;  %v17238_v59 = vld [vmem:[%s24153_s1 + $0x3c8] ss:$28 sps:$4 sm:$0xff]   ;;  %v17243_v60 = vld [vmem:[%s24153_s1 + $0x1f1c] ss:$28 sps:$4 sm:$0xff]  }
 0x2de   :  { %11913 = vmatprep.subr.bf16.mxu0 %v17180_v61  ;;  %v17246_v61 = vld [vmem:[%s24153_s1 + $0x404] ss:$28 sps:$4 sm:$0xff]  }
 0x2e0   :  { %11535 = vmatpush1.bf16.msra.mxu1 %v17175_v62  ;;  %v17241_v62 = vld [vmem:[%s24153_s1 + $0x1f18] ss:$28 sps:$4 sm:$0xff]  }
 0x2e1   :  { %11914 = vmatpush1.bf16.msra.mxu0 %v17178_v63  ;;  %11536 = vmatprep.subr.bf16.mxu1 %v17183_v1  ;;  %v18371_v63 = vld [vmem:[%s24154_s0 + $0xec] ss:$116 sps:$4 sm:$0xff]   ;;  %v17249_v1 = vld [vmem:[%s24153_s1 + $0x1f54] ss:$28 sps:$4 sm:$0xff]  }
 0x2e2   :  { %11915 = vmatprep.subr.bf16.mxu0 %v17186_v2  ;;  %v17252_v2 = vld [vmem:[%s24153_s1 + $0x43c] ss:$28 sps:$4 sm:$0xff]  }
 0x2e4   :  { %11537 = vmatpush1.bf16.msra.mxu1 %v17181_v3  ;;  %v17247_v3 = vld [vmem:[%s24153_s1 + $0x1f50] ss:$28 sps:$4 sm:$0xff]  }
 0x2e5   :  { %11916 = vmatpush1.bf16.msra.mxu0 %v17184_v5  ;;  %11538 = vmatprep.subr.bf16.mxu1 %v17189_v6  ;;  %v18372_v5 = vld [vmem:[%s24154_s0 + $0xe8] ss:$116 sps:$4 sm:$0xff]  }
 0x2e6   :  { %11917 = vmatprep.subr.bf16.mxu0 %v17192_v7  ;;  %v17255_v6 = vld [vmem:[%s24153_s1 + $0x1f8c] ss:$28 sps:$4 sm:$0xff]   ;;  %v17258_v7 = vld [vmem:[%s24153_s1 + $0x474] ss:$28 sps:$4 sm:$0xff]  }
 0x2e8   :  { %11539 = vmatpush1.bf16.msra.mxu1 %v17187_v8  ;;  %v17253_v8 = vld [vmem:[%s24153_s1 + $0x1f88] ss:$28 sps:$4 sm:$0xff]  }
 0x2e9   :  { %11918 = vmatpush1.bf16.msra.mxu0 %v17190_v10  ;;  %11540 = vmatprep.subr.bf16.mxu1 %v17195_v13  ;;  %v18373_v10 = vld [vmem:[%s24154_s0 + $0xc] ss:$116 sps:$4 sm:$0xff]  }
 0x2ea   :  { %11919 = vmatprep.subr.bf16.mxu0 %v17198_v14  ;;  %v17256_v13 = vld [vmem:[%s24153_s1 + $0x470] ss:$28 sps:$4 sm:$0xff]   ;;  %v17261_v14 = vld [vmem:[%s24153_s1 + $0x1fc4] ss:$28 sps:$4 sm:$0xff]  }
 0x2ec   :  { %11541 = vmatpush1.bf16.msra.mxu1 %v17193_v16  ;;  %v17264_v16 = vld [vmem:[%s24153_s1 + $0x4ac] ss:$28 sps:$4 sm:$0xff]  }
 0x2ed   :  { %11920 = vmatpush1.bf16.msra.mxu0 %v17196_v17  ;;  %11542 = vmatprep.subr.bf16.mxu1 %v17201_v18  ;;  %v17259_v17 = vld [vmem:[%s24153_s1 + $0x1fc0] ss:$28 sps:$4 sm:$0xff]   ;;  %v17262_v18 = vld [vmem:[%s24153_s1 + $0x4a8] ss:$28 sps:$4 sm:$0xff]  }
 0x2ee   :  { %11921 = vmatprep.subr.bf16.mxu0 %v17204_v19  ;;  %v18374_v19 = vld [vmem:[%s24154_s0 + $0x40] ss:$116 sps:$4 sm:$0xff]  }
 0x2f0   :  { %11543 = vmatpush1.bf16.msra.mxu1 %v17199_v20  ;;  %v17267_v20 = vld [vmem:[%s24153_s1 + $0x1ffc] ss:$28 sps:$4 sm:$0xff]  }
 0x2f1   :  { %11922 = vmatpush1.bf16.msra.mxu0 %v17202_v21  ;;  %11544 = vmatprep.subr.bf16.mxu1 %v17207_v22  ;;  %v17270_v21 = vld [vmem:[%s24153_s1 + $0x4e4] ss:$28 sps:$4 sm:$0xff]   ;;  %v17265_v22 = vld [vmem:[%s24153_s1 + $0x1ff8] ss:$28 sps:$4 sm:$0xff]  }
 0x2f2   :  { %11923 = vmatprep.subr.bf16.mxu0 %v17210_v24  ;;  %v17268_v24 = vld [vmem:[%s24153_s1 + $0x4e0] ss:$28 sps:$4 sm:$0xff]  }
 0x2f4   :  { %11545 = vmatpush1.bf16.msra.mxu1 %v17205_v27  ;;  %v18375_v27 = vld [vmem:[%s24154_s0 + $0x12c] ss:$116 sps:$4 sm:$0xff]  }
 0x2f5   :  { %11924 = vmatpush1.bf16.msra.mxu0 %v17208_v28  ;;  %11546 = vmatprep.subr.bf16.mxu1 %v17213_v30  ;;  %v17273_v28 = vld [vmem:[%s24153_s1 + $0x2034] ss:$28 sps:$4 sm:$0xff]   ;;  %v17276_v30 = vld [vmem:[%s24153_s1 + $0x51c] ss:$28 sps:$4 sm:$0xff]  }
 0x2f6   :  { %11925 = vmatprep.subr.bf16.mxu0 %v17216_v31  ;;  %v17271_v31 = vld [vmem:[%s24153_s1 + $0x2030] ss:$28 sps:$4 sm:$0xff]  }
 0x2f8   :  { %11547 = vmatpush1.bf16.msra.mxu1 %v17211_v32  ;;  %v17274_v32 = vld [vmem:[%s24153_s1 + $0x518] ss:$28 sps:$4 sm:$0xff]  }
 0x2f9   :  { %11926 = vmatpush1.bf16.msra.mxu0 %v17214_v33  ;;  %11548 = vmatprep.subr.bf16.mxu1 %v17219_v34  ;;  %v17279_v33 = vld [vmem:[%s24153_s1 + $0x206c] ss:$28 sps:$4 sm:$0xff]  }
 0x2fa   :  { %11927 = vmatprep.subr.bf16.mxu0 %v17222_v35  ;;  %v18376_v34 = vld [vmem:[%s24154_s0 + $0x128] ss:$116 sps:$4 sm:$0xff]   ;;  %v17282_v35 = vld [vmem:[%s24153_s1 + $0x554] ss:$28 sps:$4 sm:$0xff]  }
 0x2fc   :  { %11549 = vmatpush1.bf16.msra.mxu1 %v17217_v39  ;;  %v17277_v39 = vld [vmem:[%s24153_s1 + $0x2068] ss:$28 sps:$4 sm:$0xff]  }
 0x2fd   :  { %11928 = vmatpush1.bf16.msra.mxu0 %v17220_v40  ;;  %11550 = vmatprep.subr.bf16.mxu1 %v17225_v42  ;;  %v17280_v40 = vld [vmem:[%s24153_s1 + $0x550] ss:$28 sps:$4 sm:$0xff]  }
 0x2fe   :  { %11929 = vmatprep.subr.bf16.mxu0 %v17228_v43  ;;  %v18377_v42 = vld [vmem:[%s24154_s0 + $0x4c] ss:$116 sps:$4 sm:$0xff]  }
 0x2ff   :  { %v17285_v43 = vld [vmem:[%s24153_s1 + $0x20a4] ss:$28 sps:$4 sm:$0xff]  }
 0x300   :  { %11551 = vmatpush1.bf16.msra.mxu1 %v17223_v45  ;;  %v17288_v45 = vld [vmem:[%s24153_s1 + $0x58c] ss:$28 sps:$4 sm:$0xff]  }
 0x301   :  { %11930 = vmatpush1.bf16.msra.mxu0 %v17226_v46  ;;  %11552 = vmatprep.subr.bf16.mxu1 %v17231_v47  ;;  %v17283_v46 = vld [vmem:[%s24153_s1 + $0x20a0] ss:$28 sps:$4 sm:$0xff]   ;;  %v17286_v47 = vld [vmem:[%s24153_s1 + $0x588] ss:$28 sps:$4 sm:$0xff]  }
 0x302   :  { %11952 = vmatprep.subr.bf16.mxu0 %v17234_v48  ;;  %v17291_v48 = vld [vmem:[%s24153_s1 + $0x20dc] ss:$28 sps:$4 sm:$0xff]  }
 0x304   :  { %11932 = vmatmul.mubr.bf16.vlgmr.msra.gmra.mrb[8].mxu0 %v18370_v58  ;;  %11553 = vmatpush1.bf16.msra.mxu1 %v17229_v51  ;;  %v17294_v51 = vld [vmem:[%s24153_s1 + $0x5c4] ss:$28 sps:$4 sm:$0xff]   ;;  %v17295_v58 = vld [vmem:[%s24153_s1 + $0x2110] ss:$28 sps:$4 sm:$0xff]  }
 0x305   :  { %11953 = vmatpush1.bf16.msra.mxu0 %v17232_v52  ;;  %11554 = vmatprep.subr.bf16.mxu1 %v17237_v54  ;;  %v17289_v52 = vld [vmem:[%s24153_s1 + $0x20d8] ss:$28 sps:$4 sm:$0xff]   ;;  %v17292_v54 = vld [vmem:[%s24153_s1 + $0x5c0] ss:$28 sps:$4 sm:$0xff]  }
 0x306   :  { %11954 = vmatprep.subr.bf16.mxu0 %v17240_v55  ;;  %11941 = vmatprep.mubr.bf16.mxu0 %v18371_v63  ;;  %v17297_v55 = vld [vmem:[%s24153_s1 + $0x2114] ss:$28 sps:$4 sm:$0xff]  }
 0x307   :  { %v17304_v63 = vld [vmem:[%s24153_s1 + $0x630] ss:$28 sps:$4 sm:$0xff]  }
 0x308   :  { %11555 = vmatpush1.bf16.msra.mxu1 %v17235_v57  ;;  %v17300_v57 = vld [vmem:[%s24153_s1 + $0x5fc] ss:$28 sps:$4 sm:$0xff]  }
 0x309   :  { %11955 = vmatpush1.bf16.msra.mxu0 %v17238_v59  ;;  %11556 = vmatprep.subr.bf16.mxu1 %v17243_v60  ;;  %v17298_v59 = vld [vmem:[%s24153_s1 + $0x5f8] ss:$28 sps:$4 sm:$0xff]   ;;  %v17303_v60 = vld [vmem:[%s24153_s1 + $0x214c] ss:$28 sps:$4 sm:$0xff]  }
 0x30a   :  { %11956 = vmatprep.subr.bf16.mxu0 %v17246_v61  ;;  %v17306_v61 = vld [vmem:[%s24153_s1 + $0x634] ss:$28 sps:$4 sm:$0xff]  }
 0x30c   :  { %11942 = vmatmul.mubr.bf16.gmra.mrb[12].mxu0 %v18372_v5  ;;  %11557 = vmatpush1.bf16.msra.mxu1 %v17241_v62  ;;  %v17301_v62 = vld [vmem:[%s24153_s1 + $0x2148] ss:$28 sps:$4 sm:$0xff]  }
 0x30d   :  { %11957 = vmatpush1.bf16.msra.mxu0 %v17244_v0  ;;  %11558 = vmatprep.subr.bf16.mxu1 %v17249_v1  ;;  %v17309_v0 = vld [vmem:[%s24153_s1 + $0x2184] ss:$28 sps:$4 sm:$0xff]   ;;  %v17312_v1 = vld [vmem:[%s24153_s1 + $0x66c] ss:$28 sps:$4 sm:$0xff]  }
 0x30e   :  { %11958 = vmatprep.subr.bf16.mxu0 %v17252_v2  ;;  %11984 = vmatprep.mubr.bf16.mxu0 %v18373_v10  ;;  %v17307_v2 = vld [vmem:[%s24153_s1 + $0x2180] ss:$28 sps:$4 sm:$0xff]  }
 0x30f   :  { %v17318_v5 = vld [vmem:[%s24153_s1 + $0x6a4] ss:$28 sps:$4 sm:$0xff]   ;;  %v17324_v10 = vld [vmem:[%s24153_s1 + $0x6dc] ss:$28 sps:$4 sm:$0xff]  }
 0x310   :  { %11559 = vmatpush1.bf16.msra.mxu1 %v17247_v3  ;;  %v17310_v3 = vld [vmem:[%s24153_s1 + $0x668] ss:$28 sps:$4 sm:$0xff]  }
 0x311   :  { %11959 = vmatpush1.bf16.msra.mxu0 %v17250_v4  ;;  %11581 = vmatprep.subr.bf16.mxu1 %v17255_v6  ;;  %v17315_v4 = vld [vmem:[%s24153_s1 + $0x21bc] ss:$28 sps:$4 sm:$0xff]  }
 0x312   :  { %11960 = vmatprep.subr.bf16.mxu0 %v17258_v7  ;;  %v17313_v6 = vld [vmem:[%s24153_s1 + $0x21b8] ss:$28 sps:$4 sm:$0xff]   ;;  %v17316_v7 = vld [vmem:[%s24153_s1 + $0x6a0] ss:$28 sps:$4 sm:$0xff]  }
 0x313   :  { %11561 = vmatmul.mubr.bf16.vlgmr.msra.gmra.mrb[16].mxu1 %v18374_v19  ;;  %v17328_v19 = vld [vmem:[%s24153_s1 + $0x710] ss:$28 sps:$4 sm:$0xff]  }
 0x314   :  { %11582 = vmatpush1.bf16.msra.mxu1 %v17253_v8  ;;  %11570 = vmatprep.mubr.bf16.mxu1 %v18375_v27  ;;  %v17321_v8 = vld [vmem:[%s24153_s1 + $0x21f4] ss:$28 sps:$4 sm:$0xff]   ;;  %v17334_v27 = vld [vmem:[%s24153_s1 + $0x748] ss:$28 sps:$4 sm:$0xff]  }
 0x315   :  { %11961 = vmatpush1.bf16.msra.mxu0 %v17256_v13  ;;  %11583 = vmatprep.subr.bf16.mxu1 %v17261_v14  ;;  %v17319_v13 = vld [vmem:[%s24153_s1 + $0x21f0] ss:$28 sps:$4 sm:$0xff]   ;;  %v17322_v14 = vld [vmem:[%s24153_s1 + $0x6d8] ss:$28 sps:$4 sm:$0xff]  }
 0x316   :  { %11962 = vmatprep.subr.bf16.mxu0 %v17264_v16  ;;  %v17327_v16 = vld [vmem:[%s24153_s1 + $0x222c] ss:$28 sps:$4 sm:$0xff]  }
 0x318   :  { %11584 = vmatpush1.bf16.msra.mxu1 %v17259_v17  ;;  %v17330_v17 = vld [vmem:[%s24153_s1 + $0x714] ss:$28 sps:$4 sm:$0xff]  }
 0x319   :  { %11963 = vmatpush1.bf16.msra.mxu0 %v17262_v18  ;;  %11585 = vmatprep.subr.bf16.mxu1 %v17267_v20  ;;  %v17325_v18 = vld [vmem:[%s24153_s1 + $0x2228] ss:$28 sps:$4 sm:$0xff]  }
 0x31a   :  { %11964 = vmatprep.subr.bf16.mxu0 %v17270_v21  ;;  %v17333_v20 = vld [vmem:[%s24153_s1 + $0x2264] ss:$28 sps:$4 sm:$0xff]   ;;  %v17336_v21 = vld [vmem:[%s24153_s1 + $0x74c] ss:$28 sps:$4 sm:$0xff]  }
 0x31b   :  { %11571 = vmatmul.mubr.bf16.gmra.mrb[20].mxu1 %v18376_v34  ;;  %v17345_v34 = vld [vmem:[%s24153_s1 + $0x22d4] ss:$28 sps:$4 sm:$0xff]  }
 0x31c   :  { %11586 = vmatpush1.bf16.msra.mxu1 %v17265_v22  ;;  %11613 = vmatprep.mubr.bf16.mxu1 %v18377_v42  ;;  %v17331_v22 = vld [vmem:[%s24153_s1 + $0x2260] ss:$28 sps:$4 sm:$0xff]   ;;  %v18380_v42 = vld [vmem:[%s24154_s0 + $0xf0] ss:$116 sps:$4 sm:$0xff]  }
 0x31d   :  { %11965 = vmatpush1.bf16.msra.mxu0 %v17268_v24  ;;  %11587 = vmatprep.subr.bf16.mxu1 %v17273_v28  ;;  %v18378_v24 = vld [vmem:[%s24154_s0 + $0x8] ss:$116 sps:$4 sm:$0xff]  }
 0x31e   :  { %11966 = vmatprep.subr.bf16.mxu0 %v17276_v30  ;;  %v17339_v28 = vld [vmem:[%s24153_s1 + $0x229c] ss:$28 sps:$4 sm:$0xff]   ;;  %v17342_v30 = vld [vmem:[%s24153_s1 + $0x784] ss:$28 sps:$4 sm:$0xff]  }
 0x320   :  { %11588 = vmatpush1.bf16.msra.mxu1 %v17271_v31  ;;  %v17337_v31 = vld [vmem:[%s24153_s1 + $0x2298] ss:$28 sps:$4 sm:$0xff]  }
 0x321   :  { %11967 = vmatpush1.bf16.msra.mxu0 %v17274_v32  ;;  %11589 = vmatprep.subr.bf16.mxu1 %v17279_v33  ;;  %v18379_v32 = vld [vmem:[%s24154_s0 + $0xf4] ss:$116 sps:$4 sm:$0xff]   ;;  %v17340_v33 = vld [vmem:[%s24153_s1 + $0x780] ss:$28 sps:$4 sm:$0xff]  }
 0x322   :  { %11968 = vmatprep.subr.bf16.mxu0 %v17282_v35  ;;  %v17348_v35 = vld [vmem:[%s24153_s1 + $0x7bc] ss:$28 sps:$4 sm:$0xff]  }
 0x324   :  { %11590 = vmatpush1.bf16.msra.mxu1 %v17277_v39  ;;  %v17343_v39 = vld [vmem:[%s24153_s1 + $0x22d0] ss:$28 sps:$4 sm:$0xff]  }
 0x325   :  { %11969 = vmatpush1.bf16.msra.mxu0 %v17280_v40  ;;  %11591 = vmatprep.subr.bf16.mxu1 %v17285_v43  ;;  %v17346_v40 = vld [vmem:[%s24153_s1 + $0x7b8] ss:$28 sps:$4 sm:$0xff]   ;;  %v17351_v43 = vld [vmem:[%s24153_s1 + $0x230c] ss:$28 sps:$4 sm:$0xff]  }
 0x326   :  { %11970 = vmatprep.subr.bf16.mxu0 %v17288_v45  ;;  %v17354_v45 = vld [vmem:[%s24153_s1 + $0x7f4] ss:$28 sps:$4 sm:$0xff]  }
 0x328   :  { %11592 = vmatpush1.bf16.msra.mxu1 %v17283_v46  ;;  %v17349_v46 = vld [vmem:[%s24153_s1 + $0x2308] ss:$28 sps:$4 sm:$0xff]  }
 0x329   :  { %11971 = vmatpush1.bf16.msra.mxu0 %v17286_v47  ;;  %11593 = vmatprep.subr.bf16.mxu1 %v17291_v48  ;;  %v18381_v47 = vld [vmem:[%s24154_s0 + $0x14] ss:$116 sps:$4 sm:$0xff]   ;;  %v17352_v48 = vld [vmem:[%s24153_s1 + $0x7f0] ss:$28 sps:$4 sm:$0xff]  }
 0x32a   :  { %11972 = vmatprep.subr.bf16.mxu0 %v17294_v51  ;;  %v17357_v51 = vld [vmem:[%s24153_s1 + $0x2344] ss:$28 sps:$4 sm:$0xff]  }
 0x32c   :  { %11594 = vmatpush1.bf16.msra.mxu1 %v17289_v52  ;;  %v17360_v52 = vld [vmem:[%s24153_s1 + $0x82c] ss:$28 sps:$4 sm:$0xff]  }
 0x32d   :  { %11973 = vmatpush1.bf16.msra.mxu0 %v17292_v54  ;;  %11595 = vmatprep.subr.bf16.mxu1 %v17297_v55  ;;  %v17355_v54 = vld [vmem:[%s24153_s1 + $0x2340] ss:$28 sps:$4 sm:$0xff]  }
 0x32e   :  { %11974 = vmatprep.subr.bf16.mxu0 %v17300_v57  ;;  %v18382_v55 = vld [vmem:[%s24154_s0 + $0x48] ss:$116 sps:$4 sm:$0xff]  }
 0x32f   :  { %v17358_v57 = vld [vmem:[%s24153_s1 + $0x828] ss:$28 sps:$4 sm:$0xff]  }
 0x330   :  { %11596 = vmatpush1.bf16.msra.mxu1 %v17295_v58  ;;  %v17363_v58 = vld [vmem:[%s24153_s1 + $0x237c] ss:$28 sps:$4 sm:$0xff]  }
 0x331   :  { %11975 = vmatpush1.bf16.msra.mxu0 %v17298_v59  ;;  %11597 = vmatprep.subr.bf16.mxu1 %v17303_v60  ;;  %v17366_v59 = vld [vmem:[%s24153_s1 + $0x864] ss:$28 sps:$4 sm:$0xff]   ;;  %v17361_v60 = vld [vmem:[%s24153_s1 + $0x2378] ss:$28 sps:$4 sm:$0xff]  }
 0x332   :  { %11976 = vmatprep.subr.bf16.mxu0 %v17306_v61  ;;  %v18383_v61 = vld [vmem:[%s24154_s0 + $0x134] ss:$116 sps:$4 sm:$0xff]  }
 0x334   :  { %11598 = vmatpush1.bf16.msra.mxu1 %v17301_v62  ;;  %v17364_v62 = vld [vmem:[%s24153_s1 + $0x860] ss:$28 sps:$4 sm:$0xff]  }
 0x335   :  { %11977 = vmatpush1.bf16.msra.mxu0 %v17304_v63  ;;  %11599 = vmatprep.subr.bf16.mxu1 %v17309_v0  ;;  %v17369_v63 = vld [vmem:[%s24153_s1 + $0x23b4] ss:$28 sps:$4 sm:$0xff]   ;;  %v17372_v0 = vld [vmem:[%s24153_s1 + $0x89c] ss:$28 sps:$4 sm:$0xff]  }
 0x336   :  { %11978 = vmatprep.subr.bf16.mxu0 %v17312_v1  ;;  %v17367_v1 = vld [vmem:[%s24153_s1 + $0x23b0] ss:$28 sps:$4 sm:$0xff]  }
 0x338   :  { %11600 = vmatpush1.bf16.msra.mxu1 %v17307_v2  ;;  %v17370_v2 = vld [vmem:[%s24153_s1 + $0x898] ss:$28 sps:$4 sm:$0xff]  }
 0x339   :  { %11979 = vmatpush1.bf16.msra.mxu0 %v17310_v3  ;;  %11601 = vmatprep.subr.bf16.mxu1 %v17315_v4  ;;  %v18384_v3 = vld [vmem:[%s24154_s0 + $0x130] ss:$116 sps:$4 sm:$0xff]   ;;  %v17375_v4 = vld [vmem:[%s24153_s1 + $0x23ec] ss:$28 sps:$4 sm:$0xff]  }
 0x33a   :  { %11980 = vmatprep.subr.bf16.mxu0 %v17318_v5  ;;  %v17378_v5 = vld [vmem:[%s24153_s1 + $0x8d4] ss:$28 sps:$4 sm:$0xff]  }
 0x33c   :  { %11602 = vmatpush1.bf16.msra.mxu1 %v17313_v6  ;;  %v17373_v6 = vld [vmem:[%s24153_s1 + $0x23e8] ss:$28 sps:$4 sm:$0xff]  }
 0x33d   :  { %11981 = vmatpush1.bf16.msra.mxu0 %v17316_v7  ;;  %11603 = vmatprep.subr.bf16.mxu1 %v17321_v8  ;;  %v18385_v7 = vld [vmem:[%s24154_s0 + $0x54] ss:$116 sps:$4 sm:$0xff]   ;;  %v17376_v8 = vld [vmem:[%s24153_s1 + $0x8d0] ss:$28 sps:$4 sm:$0xff]  }
 0x33e   :  { %11982 = vmatprep.subr.bf16.mxu0 %v17324_v10  ;;  %v17381_v10 = vld [vmem:[%s24153_s1 + $0x2424] ss:$28 sps:$4 sm:$0xff]  }
 0x340   :  { %11604 = vmatpush1.bf16.msra.mxu1 %v17319_v13  ;;  %v17384_v13 = vld [vmem:[%s24153_s1 + $0x90c] ss:$28 sps:$4 sm:$0xff]  }
 0x341   :  { %11983 = vmatpush1.bf16.msra.mxu0 %v17322_v14  ;;  %11605 = vmatprep.subr.bf16.mxu1 %v17327_v16  ;;  %v17379_v14 = vld [vmem:[%s24153_s1 + $0x2420] ss:$28 sps:$4 sm:$0xff]   ;;  %v17382_v16 = vld [vmem:[%s24153_s1 + $0x908] ss:$28 sps:$4 sm:$0xff]  }
 0x342   :  { %12005 = vmatprep.subr.bf16.mxu0 %v17330_v17  ;;  %v17387_v17 = vld [vmem:[%s24153_s1 + $0x245c] ss:$28 sps:$4 sm:$0xff]  }
 0x344   :  { %11985 = vmatmul.mubr.bf16.vlgmr.msra.gmra.mrb[8].mxu0 %v18378_v24  ;;  %11606 = vmatpush1.bf16.msra.mxu1 %v17325_v18  ;;  %v17390_v18 = vld [vmem:[%s24153_s1 + $0x944] ss:$28 sps:$4 sm:$0xff]   ;;  %v17391_v24 = vld [vmem:[%s24153_s1 + $0x2490] ss:$28 sps:$4 sm:$0xff]  }
 0x345   :  { %12006 = vmatpush1.bf16.msra.mxu0 %v17328_v19  ;;  %11607 = vmatprep.subr.bf16.mxu1 %v17333_v20  ;;  %v17385_v19 = vld [vmem:[%s24153_s1 + $0x2458] ss:$28 sps:$4 sm:$0xff]   ;;  %v17388_v20 = vld [vmem:[%s24153_s1 + $0x940] ss:$28 sps:$4 sm:$0xff]  }
 0x346   :  { %12007 = vmatprep.subr.bf16.mxu0 %v17336_v21  ;;  %11994 = vmatprep.mubr.bf16.mxu0 %v18379_v32  ;;  %v17393_v21 = vld [vmem:[%s24153_s1 + $0x2494] ss:$28 sps:$4 sm:$0xff]  }
 0x347   :  { %v17400_v32 = vld [vmem:[%s24153_s1 + $0x9b0] ss:$28 sps:$4 sm:$0xff]  }
 0x348   :  { %11608 = vmatpush1.bf16.msra.mxu1 %v17331_v22  ;;  %v17396_v22 = vld [vmem:[%s24153_s1 + $0x97c] ss:$28 sps:$4 sm:$0xff]  }
 0x349   :  { %12008 = vmatpush1.bf16.msra.mxu0 %v17334_v27  ;;  %11609 = vmatprep.subr.bf16.mxu1 %v17339_v28  ;;  %v17394_v27 = vld [vmem:[%s24153_s1 + $0x978] ss:$28 sps:$4 sm:$0xff]   ;;  %v17399_v28 = vld [vmem:[%s24153_s1 + $0x24cc] ss:$28 sps:$4 sm:$0xff]  }
 0x34a   :  { %12009 = vmatprep.subr.bf16.mxu0 %v17342_v30  ;;  %v17402_v30 = vld [vmem:[%s24153_s1 + $0x9b4] ss:$28 sps:$4 sm:$0xff]  }
 0x34c   :  { %11995 = vmatmul.mubr.bf16.gmra.mrb[12].mxu0 %v18380_v42  ;;  %11610 = vmatpush1.bf16.msra.mxu1 %v17337_v31  ;;  %v17397_v31 = vld [vmem:[%s24153_s1 + $0x24c8] ss:$28 sps:$4 sm:$0xff]  }
 0x34d   :  { %12010 = vmatpush1.bf16.msra.mxu0 %v17340_v33  ;;  %11611 = vmatprep.subr.bf16.mxu1 %v17345_v34  ;;  %v17405_v33 = vld [vmem:[%s24153_s1 + $0x2504] ss:$28 sps:$4 sm:$0xff]   ;;  %v17408_v34 = vld [vmem:[%s24153_s1 + $0x9ec] ss:$28 sps:$4 sm:$0xff]  }
 0x34e   :  { %12011 = vmatprep.subr.bf16.mxu0 %v17348_v35  ;;  %12037 = vmatprep.mubr.bf16.mxu0 %v18381_v47  ;;  %v17403_v35 = vld [vmem:[%s24153_s1 + $0x2500] ss:$28 sps:$4 sm:$0xff]  }
 0x34f   :  { %v17414_v42 = vld [vmem:[%s24153_s1 + $0xa24] ss:$28 sps:$4 sm:$0xff]   ;;  %v17420_v47 = vld [vmem:[%s24153_s1 + $0xa5c] ss:$28 sps:$4 sm:$0xff]  }
 0x350   :  { %11612 = vmatpush1.bf16.msra.mxu1 %v17343_v39  ;;  %v17406_v39 = vld [vmem:[%s24153_s1 + $0x9e8] ss:$28 sps:$4 sm:$0xff]  }
 0x351   :  { %12012 = vmatpush1.bf16.msra.mxu0 %v17346_v40  ;;  %11634 = vmatprep.subr.bf16.mxu1 %v17351_v43  ;;  %v17411_v40 = vld [vmem:[%s24153_s1 + $0x253c] ss:$28 sps:$4 sm:$0xff]  }
 0x352   :  { %12013 = vmatprep.subr.bf16.mxu0 %v17354_v45  ;;  %v17409_v43 = vld [vmem:[%s24153_s1 + $0x2538] ss:$28 sps:$4 sm:$0xff]   ;;  %v17412_v45 = vld [vmem:[%s24153_s1 + $0xa20] ss:$28 sps:$4 sm:$0xff]  }
 0x353   :  { %11614 = vmatmul.mubr.bf16.vlgmr.msra.gmra.mrb[16].mxu1 %v18382_v55  ;;  %v17421_v55 = vld [vmem:[%s24153_s1 + $0x25a8] ss:$28 sps:$4 sm:$0xff]  }
 0x354   :  { %11635 = vmatpush1.bf16.msra.mxu1 %v17349_v46  ;;  %11623 = vmatprep.mubr.bf16.mxu1 %v18383_v61  ;;  %v17417_v46 = vld [vmem:[%s24153_s1 + $0x2574] ss:$28 sps:$4 sm:$0xff]  }
 0x355   :  { %12014 = vmatpush1.bf16.msra.mxu0 %v17352_v48  ;;  %11636 = vmatprep.subr.bf16.mxu1 %v17357_v51  ;;  %v17415_v48 = vld [vmem:[%s24153_s1 + $0x2570] ss:$28 sps:$4 sm:$0xff]   ;;  %v17418_v51 = vld [vmem:[%s24153_s1 + $0xa58] ss:$28 sps:$4 sm:$0xff]  }
 0x356   :  { %12015 = vmatprep.subr.bf16.mxu0 %v17360_v52  ;;  %v17423_v52 = vld [vmem:[%s24153_s1 + $0x25ac] ss:$28 sps:$4 sm:$0xff]   ;;  %v18386_v61 = vld [vmem:[%s24154_s0 + $0x10] ss:$116 sps:$4 sm:$0xff]  }
 0x358   :  { %11637 = vmatpush1.bf16.msra.mxu1 %v17355_v54  ;;  %v17426_v54 = vld [vmem:[%s24153_s1 + $0xa94] ss:$28 sps:$4 sm:$0xff]  }
 0x359   :  { %12016 = vmatpush1.bf16.msra.mxu0 %v17358_v57  ;;  %11638 = vmatprep.subr.bf16.mxu1 %v17363_v58  ;;  %v17424_v57 = vld [vmem:[%s24153_s1 + $0xa90] ss:$28 sps:$4 sm:$0xff]   ;;  %v17429_v58 = vld [vmem:[%s24153_s1 + $0x25e4] ss:$28 sps:$4 sm:$0xff]  }
 0x35a   :  { %12017 = vmatprep.subr.bf16.mxu0 %v17366_v59  ;;  %v17432_v59 = vld [vmem:[%s24153_s1 + $0xacc] ss:$28 sps:$4 sm:$0xff]  }
 0x35b   :  { %11624 = vmatmul.mubr.bf16.gmra.mrb[20].mxu1 %v18384_v3  ;;  %v18387_v3 = vld [vmem:[%s24154_s0 + $0xfc] ss:$116 sps:$4 sm:$0xff]  }
 0x35c   :  { %11639 = vmatpush1.bf16.msra.mxu1 %v17361_v60  ;;  %11666 = vmatprep.mubr.bf16.mxu1 %v18385_v7  ;;  %v17427_v60 = vld [vmem:[%s24153_s1 + $0x25e0] ss:$28 sps:$4 sm:$0xff]  }
 0x35d   :  { %12018 = vmatpush1.bf16.msra.mxu0 %v17364_v62  ;;  %11640 = vmatprep.subr.bf16.mxu1 %v17369_v63  ;;  %v17430_v62 = vld [vmem:[%s24153_s1 + $0xac8] ss:$28 sps:$4 sm:$0xff]   ;;  %v1877_v63 = vlaneseq  ;;  %v17444_v7 = vld [vmem:[%s24153_s1 + $0xb3c] ss:$28 sps:$4 sm:$0xff]  }
 0x35e   :  { %12019 = vmatprep.subr.bf16.mxu0 %v17372_v0  ;;  %v17435_v0 = vld [vmem:[%s24153_s1 + $0x261c] ss:$28 sps:$4 sm:$0xff]  }
 0x360   :  { %11641 = vmatpush1.bf16.msra.mxu1 %v17367_v1  ;;  %v17438_v1 = vld [vmem:[%s24153_s1 + $0xb04] ss:$28 sps:$4 sm:$0xff]  }
 0x361   :  { %12020 = vmatpush1.bf16.msra.mxu0 %v17370_v2  ;;  %11642 = vmatprep.subr.bf16.mxu1 %v17375_v4  ;;  %v17433_v2 = vld [vmem:[%s24153_s1 + $0x2618] ss:$28 sps:$4 sm:$0xff]   ;;  %v17436_v4 = vld [vmem:[%s24153_s1 + $0xb00] ss:$28 sps:$4 sm:$0xff]  }
 0x362   :  { %12021 = vmatprep.subr.bf16.mxu0 %v17378_v5  ;;  %v21570_v5 = vshrl.u32 %v1877_v63, 7  ;;  %v17466_v63 = vld [vmem:[%s24153_s1 + $0xc18] ss:$28 sps:$4 sm:$0xff]  }
 0x364   :  { %11643 = vmatpush1.bf16.msra.mxu1 %v17373_v6  ;;  %v17441_v6 = vld [vmem:[%s24153_s1 + $0x2654] ss:$28 sps:$4 sm:$0xff]  }
 0x365   :  { %12022 = vmatpush1.bf16.msra.mxu0 %v17376_v8  ;;  %11644 = vmatprep.subr.bf16.mxu1 %v17381_v10  ;;  %v17439_v8 = vld [vmem:[%s24153_s1 + $0x2650] ss:$28 sps:$4 sm:$0xff]   ;;  %v17442_v10 = vld [vmem:[%s24153_s1 + $0xb38] ss:$28 sps:$4 sm:$0xff]  }
 0x366   :  { %12023 = vmatprep.subr.bf16.mxu0 %v17384_v13  ;;  %v18388_v13 = vld [vmem:[%s24154_s0 + $0xf8] ss:$116 sps:$4 sm:$0xff]  }
 0x368   :  { %11645 = vmatpush1.bf16.msra.mxu1 %v17379_v14  ;;  %v1875_v14 = vld [vmem:[%s24155_s2] sm:$0xff] }
 0x369   :  { %12024 = vmatpush1.bf16.msra.mxu0 %v17382_v16  ;;  %11646 = vmatprep.subr.bf16.mxu1 %v17387_v17  ;;  %v17447_v16 = vld [vmem:[%s24153_s1 + $0x268c] ss:$28 sps:$4 sm:$0xff]   ;;  %v17450_v17 = vld [vmem:[%s24153_s1 + $0xb74] ss:$28 sps:$4 sm:$0xff]  }
 0x36a   :  { %12025 = vmatprep.subr.bf16.mxu0 %v17390_v18  ;;  %v1879_v18 = vsub.s32 0, %v21570_v5 }
 0x36c   :  { %11647 = vmatpush1.bf16.msra.mxu1 %v17385_v19  ;;  %v1883_v19 = vsub.s32 1, %v21570_v5 }
 0x36d   :  { %12026 = vmatpush1.bf16.msra.mxu0 %v17388_v20  ;;  %11648 = vmatprep.subr.bf16.mxu1 %v17393_v21  ;;  %v17445_v20 = vld [vmem:[%s24153_s1 + $0x2688] ss:$28 sps:$4 sm:$0xff]   ;;  %v18389_v21 = vld [vmem:[%s24154_s0 + $0x1c] ss:$116 sps:$4 sm:$0xff]  }
 0x36e   :  { %12027 = vmatprep.subr.bf16.mxu0 %v17396_v22  ;;  %v17448_v22 = vld [vmem:[%s24153_s1 + $0xb70] ss:$28 sps:$4 sm:$0xff]  }
 0x370   :  { %11649 = vmatpush1.bf16.msra.mxu1 %v17391_v24  ;;  %v17453_v24 = vld [vmem:[%s24153_s1 + $0x26c4] ss:$28 sps:$4 sm:$0xff]  }
 0x371   :  { %12028 = vmatpush1.bf16.msra.mxu0 %v17394_v27  ;;  %11650 = vmatprep.subr.bf16.mxu1 %v17399_v28  ;;  %v17456_v27 = vld [vmem:[%s24153_s1 + $0xbac] ss:$28 sps:$4 sm:$0xff]   ;;  %v1880_v28 = vrot.slane %v1875_v14, %v1879_v18 }
 0x372   :  { %12029 = vmatprep.subr.bf16.mxu0 %v17402_v30  ;;  %v21613_v30 = vrot.slane %v1875_v14, %v1883_v19 }
 0x374   :  { %11651 = vmatpush1.bf16.msra.mxu1 %v17397_v31  ;;  %v17451_v31 = vld [vmem:[%s24153_s1 + $0x26c0] ss:$28 sps:$4 sm:$0xff]  }
 0x375   :  { %12030 = vmatpush1.bf16.msra.mxu0 %v17400_v32  ;;  %11652 = vmatprep.subr.bf16.mxu1 %v17405_v33  ;;  %v18390_v32 = vld [vmem:[%s24154_s0 + $0x50] ss:$116 sps:$4 sm:$0xff]  }
 0x376   :  { %12031 = vmatprep.subr.bf16.mxu0 %v17408_v34  ;;  %v17454_v33 = vld [vmem:[%s24153_s1 + $0xba8] ss:$28 sps:$4 sm:$0xff]   ;;  %v17459_v34 = vld [vmem:[%s24153_s1 + $0x26fc] ss:$28 sps:$4 sm:$0xff]  }
 0x378   :  { %11653 = vmatpush1.bf16.msra.mxu1 %v17403_v35  ;;  %v17462_v35 = vld [vmem:[%s24153_s1 + $0xbe4] ss:$28 sps:$4 sm:$0xff]  }
 0x379   :  { %12032 = vmatpush1.bf16.msra.mxu0 %v17406_v39  ;;  %11654 = vmatprep.subr.bf16.mxu1 %v17411_v40  ;;  %v15639_v39 = vadd.f32 %v19861_v9, %v1880_v28  ;;  %v15642_v40 = vadd.f32 %v19866_v11, %v21613_v30  ;;  %v17460_v9 = vld [vmem:[%s24153_s1 + $0xbe0] ss:$28 sps:$4 sm:$0xff]   ;;  %v15648_v11 = vadd.f32 %v19876_v15, %v21613_v30 }
 0x37a   :  { %12033 = vmatprep.subr.bf16.mxu0 %v17414_v42 }
 0x37c   :  { %11655 = vmatpush1.bf16.msra.mxu1 %v17409_v43  ;;  %v17457_v43 = vld [vmem:[%s24153_s1 + $0x26f8] ss:$28 sps:$4 sm:$0xff]  }
 0x37d   :  { %12034 = vmatpush1.bf16.msra.mxu0 %v17412_v45  ;;  %11656 = vmatprep.subr.bf16.mxu1 %v17417_v46  ;;  %v18391_v45 = vld [vmem:[%s24154_s0 + $0x13c] ss:$116 sps:$4 sm:$0xff]   ;;  %v15645_v46 = vadd.f32 %v19868_v12, %v1880_v28 }
 0x37e   :  { %12035 = vmatprep.subr.bf16.mxu0 %v17420_v47  ;;  %v17468_v12 = vld [vmem:[%s24153_s1 + $0xc1c] ss:$28 sps:$4 sm:$0xff]  }
 0x380   :  { %11657 = vmatpush1.bf16.msra.mxu1 %v17415_v48 }
 0x381   :  { %12036 = vmatpush1.bf16.msra.mxu0 %v17418_v51  ;;  %11658 = vmatprep.subr.bf16.mxu1 %v17423_v52 }
 0x382   :  { %12058 = vmatprep.subr.bf16.mxu0 %v17426_v54  ;;  %v17465_v54 = vld [vmem:[%s24153_s1 + $0x2734] ss:$28 sps:$4 sm:$0xff]  }
 0x384   :  { %12038 = vmatmul.mubr.bf16.vlgmr.msra.gmra.mrb[8].mxu0 %v18386_v61  ;;  %11659 = vmatpush1.bf16.msra.mxu1 %v17421_v55 }
 0x385   :  { %12059 = vmatpush1.bf16.msra.mxu0 %v17424_v57  ;;  %11660 = vmatprep.subr.bf16.mxu1 %v17429_v58 }
 0x386   :  { %12060 = vmatprep.subr.bf16.mxu0 %v17432_v59  ;;  %12047 = vmatprep.mubr.bf16.mxu0 %v18387_v3 }
 0x388   :  { %11661 = vmatpush1.bf16.msra.mxu1 %v17427_v60  ;;  %v17463_v60 = vld [vmem:[%s24153_s1 + $0x2730] ss:$28 sps:$4 sm:$0xff]  }
 0x389   :  { %12061 = vmatpush1.bf16.msra.mxu0 %v17430_v62  ;;  %11662 = vmatprep.subr.bf16.mxu1 %v17435_v0 }
 0x38a   :  { %12062 = vmatprep.subr.bf16.mxu0 %v17438_v1  ;;  %v17471_v1 = vld [vmem:[%s24153_s1 + $0x276c] ss:$28 sps:$4 sm:$0xff]  }
 0x38c   :  { %12048 = vmatmul.mubr.bf16.gmra.mrb[12].mxu0 %v18388_v13  ;;  %11663 = vmatpush1.bf16.msra.mxu1 %v17433_v2  ;;  %v15651_v2 = vadd.f32 %v19899_v23, %v1880_v28  ;;  %v15657_v23 = vadd.f32 %v19906_v26, %v1880_v28  ;;  %v17477_v26 = vld [vmem:[%s24153_s1 + $0x27a4] ss:$28 sps:$4 sm:$0xff]  }
 0x38d   :  { %12063 = vmatpush1.bf16.msra.mxu0 %v17436_v4  ;;  %11664 = vmatprep.subr.bf16.mxu1 %v17441_v6  ;;  %v15654_v4 = vadd.f32 %v19904_v25, %v21613_v30  ;;  %v17472_v25 = vld [vmem:[%s24153_s1 + $0xc50] ss:$28 sps:$4 sm:$0xff]   ;;  %v17475_v28 = vld [vmem:[%s24153_s1 + $0x27a0] ss:$28 sps:$4 sm:$0xff]  }
 0x38e   :  { %12064 = vmatprep.subr.bf16.mxu0 %v17444_v7  ;;  %12090 = vmatprep.mubr.bf16.mxu0 %v18389_v21 }
 0x390   :  { %11665 = vmatpush1.bf16.msra.mxu1 %v17439_v8  ;;  %v17469_v8 = vld [vmem:[%s24153_s1 + $0x2768] ss:$28 sps:$4 sm:$0xff]  }
 0x391   :  { %12065 = vmatpush1.bf16.msra.mxu0 %v17442_v10  ;;  %11687 = vmatprep.subr.bf16.mxu1 %v17447_v16  ;;  %v18393_v10 = vld [vmem:[%s24154_s0 + $0x5c] ss:$116 sps:$4 sm:$0xff]   ;;  %v15660_v16 = vadd.f32 %v19914_v29, %v21613_v30 }
 0x392   :  { %12066 = vmatprep.subr.bf16.mxu0 %v17450_v17 }
 0x393   :  { %11667 = vmatmul.mubr.bf16.vlgmr.msra.gmra.mrb[16].mxu1 %v18390_v32 }
 0x394   :  { %11688 = vmatpush1.bf16.msra.mxu1 %v17445_v20  ;;  %11676 = vmatprep.mubr.bf16.mxu1 %v18391_v45  ;;  %v17480_v20 = vld [vmem:[%s24153_s1 + $0xc8c] ss:$28 sps:$4 sm:$0xff]   ;;  %v17492_v45 = vld [vmem:[%s24153_s1 + $0xcfc] ss:$28 sps:$4 sm:$0xff]  }
 0x395   :  { %12067 = vmatpush1.bf16.msra.mxu0 %v17448_v22  ;;  %11689 = vmatprep.subr.bf16.mxu1 %v17453_v24 }
 0x396   :  { %12068 = vmatprep.subr.bf16.mxu0 %v17456_v27 }
 0x397   :  { %v11032_v42 = vpop.f32.mrb[0].mxu0 }
 0x398   :  { %v15640_v47 = vadd.f32 %v15639_v39, %v11032_v42  ;;  %v11034_v48 = vpop.f32.mrb[1].mxu0  ;;  %11690 = vmatpush1.bf16.msra.mxu1 %v17451_v31 }
 0x399   :  { %v15643_v51 = vadd.f32 %v15642_v40, %v11034_v48  ;;  %v11036_v52 = vpop.f32.mrb[2].mxu0  ;;  %12069 = vmatpush1.bf16.msra.mxu0 %v17454_v33  ;;  %11691 = vmatprep.subr.bf16.mxu1 %v17459_v34  ;;  %v17486_v34 = vld [vmem:[%s24153_s1 + $0xcc4] ss:$28 sps:$4 sm:$0xff]   ;;  %v17481_v40 = vld [vmem:[%s24153_s1 + $0x27d8] ss:$28 sps:$4 sm:$0xff]  }
 0x39a   :  { %v15641_v55 = vadd.f32 %v15640_v47, %v19934_v37  ;;  %v15646_v57 = vadd.f32 %v15645_v46, %v11036_v52  ;;  %v11038_v58 = vpop.f32.mrb[3].mxu0  ;;  %12070 = vmatprep.subr.bf16.mxu0 %v17462_v35  ;;  %v18392_v37 = vld [vmem:[%s24154_s0 + $0x138] ss:$116 sps:$4 sm:$0xff]   ;;  %v17501_v52 = vld [vmem:[%s24153_s1 + $0x2884] ss:$28 sps:$4 sm:$0xff]  }
 0x39b   :  { %v15644_v15 = vadd.f32 %v15643_v51, %v19936_v38  ;;  %v15649_v59 = vadd.f32 %v15648_v11, %v11038_v58  ;;  %11677 = vmatmul.mubr.bf16.gmra.mrb[20].mxu1 %v18392_v37  ;;  %v17487_v46 = vld [vmem:[%s24153_s1 + $0x2810] ss:$28 sps:$4 sm:$0xff]   ;;  %v17490_v47 = vld [vmem:[%s24153_s1 + $0xcf8] ss:$28 sps:$4 sm:$0xff]   ;;  %v17493_v11 = vld [vmem:[%s24153_s1 + $0x2848] ss:$28 sps:$4 sm:$0xff]  }
 0x39c   :  { %v13429_v61 = vmax.f32 %v15641_v55, 0.0  ;;  %v15647_v62 = vadd.f32 %v15646_v57, %v19944_v41  ;;  %11692 = vmatpush1.bf16.msra.mxu1 %v17457_v43  ;;  %v17474_v41 = vld [vmem:[%s24153_s1 + $0xc54] ss:$28 sps:$4 sm:$0xff]   ;;  %11719 = vmatprep.mubr.bf16.mxu1 %v18393_v10  ;;  %v17495_v48 = vld [vmem:[%s24153_s1 + $0x284c] ss:$28 sps:$4 sm:$0xff]  }
 0x39d   :  { %v13430_v0 = vmax.f32 %v15644_v15, 0.0  ;;  %v15650_v38 = vadd.f32 %v15649_v59, %v19952_v44  ;;  %12071 = vmatpush1.bf16.msra.mxu0 %v17460_v9  ;;  %11693 = vmatprep.subr.bf16.mxu1 %v17465_v54  ;;  %v17489_v43 = vld [vmem:[%s24153_s1 + $0x2814] ss:$28 sps:$4 sm:$0xff]   ;;  %v17504_v54 = vld [vmem:[%s24153_s1 + $0xd6c] ss:$28 sps:$4 sm:$0xff]  }
 0x39e   :  { %v13436_v3 = vmax.f32 %v15647_v62, 0.0  ;;  %12072 = vmatprep.subr.bf16.mxu0 %v17468_v12  ;;  %v17498_v9 = vld [vmem:[%s24153_s1 + $0xd34] ss:$28 sps:$4 sm:$0xff]   ;;  %v17499_v12 = vld [vmem:[%s24153_s1 + $0x2880] ss:$28 sps:$4 sm:$0xff]  }
 0x39f   :  { %v15222_v6 = vpack.c.bf16 %v13430_v0, %v13429_v61  ;;  %v13437_v44 = vmax.f32 %v15650_v38, 0.0  ;;  %v11042_v7 = vpop.f32.mrb[4].mxu0  ;;  %v17496_v51 = vld [vmem:[%s24153_s1 + $0xd30] ss:$28 sps:$4 sm:$0xff]   ;;  %v17502_v55 = vld [vmem:[%s24153_s1 + $0xd68] ss:$28 sps:$4 sm:$0xff]  }
 0x3a0   :  { %v15652_v13 = vadd.f32 %v15651_v2, %v11042_v7  ;;  %v11044_v14 = vpop.f32.mrb[5].mxu0  ;;  %11694 = vmatpush1.bf16.msra.mxu1 %v17463_v60  ;;  %v17507_v57 = vld [vmem:[%s24153_s1 + $0x28bc] ss:$28 sps:$4 sm:$0xff]   ;;  %v17510_v58 = vld [vmem:[%s24153_s1 + $0xda4] ss:$28 sps:$4 sm:$0xff]  }
 0x3a1   :  { %13545 = vst [vmem:[%s24156_s3] sm:$0xff] %v15222_v6  ;;  %v15226_v17 = vpack.c.bf16 %v13437_v44, %v13436_v3  ;;  %v15655_v18 = vadd.f32 %v15654_v4, %v11044_v14  ;;  %v11046_v19 = vpop.f32.mrb[6].mxu0  ;;  %12073 = vmatpush1.bf16.msra.mxu0 %v17466_v63  ;;  %11695 = vmatprep.subr.bf16.mxu1 %v17471_v1  ;;  %v17505_v15 = vld [vmem:[%s24153_s1 + $0x28b8] ss:$28 sps:$4 sm:$0xff]   ;;  %v17508_v59 = vld [vmem:[%s24153_s1 + $0xda0] ss:$28 sps:$4 sm:$0xff]  }
 0x3a2   :  { %v15653_v21 = vadd.f32 %v15652_v13, %v19966_v49  ;;  %v15658_v29 = vadd.f32 %v15657_v23, %v11046_v19  ;;  %v11048_v22 = vpop.f32.mrb[7].mxu0  ;;  %12074 = vmatprep.subr.bf16.mxu0 %v17474_v41  ;;  %v17478_v49 = vld [vmem:[%s24153_s1 + $0xc88] ss:$28 sps:$4 sm:$0xff]   ;;  %v17513_v60 = vld [vmem:[%s24153_s1 + $0x28f4] ss:$28 sps:$4 sm:$0xff]  }
 0x3a3   :  { %13549 = vst [vmem:[%s24156_s3 + $0x1c] sm:$0xff] %v15226_v17  ;;  %v15656_v24 = vadd.f32 %v15655_v18, %v19968_v50  ;;  %v15661_v27 = vadd.f32 %v15660_v16, %v11048_v22  ;;  %v17483_v50 = vld [vmem:[%s24153_s1 + $0x27dc] ss:$28 sps:$4 sm:$0xff]   ;;  %v17511_v62 = vld [vmem:[%s24153_s1 + $0x28f0] ss:$28 sps:$4 sm:$0xff]  }
 0x3a4   :  { %v13443_v30 = vmax.f32 %v15653_v21, 0.0  ;;  %v15659_v31 = vadd.f32 %v15658_v29, %v19976_v53  ;;  %11696 = vmatpush1.bf16.msra.mxu1 %v17469_v8  ;;  %v17516_v61 = vld [vmem:[%s24153_s1 + $0xddc] ss:$28 sps:$4 sm:$0xff]   ;;  %v17519_v37 = vld [vmem:[%s24153_s1 + $0x292c] ss:$28 sps:$4 sm:$0xff]  }
 0x3a5   :  { %v13444_v32 = vmax.f32 %v15656_v24, 0.0  ;;  %v15662_v33 = vadd.f32 %v15661_v27, %v19984_v56  ;;  %12075 = vmatpush1.bf16.msra.mxu0 %v17472_v25  ;;  %11697 = vmatprep.subr.bf16.mxu1 %v17477_v26  ;;  %v17484_v56 = vld [vmem:[%s24153_s1 + $0xcc0] ss:$28 sps:$4 sm:$0xff]   ;;  %v17514_v63 = vld [vmem:[%s24153_s1 + $0xdd8] ss:$28 sps:$4 sm:$0xff]  }
 0x3a6   :  { %v13450_v35 = vmax.f32 %v15659_v31, 0.0  ;;  %12076 = vmatprep.subr.bf16.mxu0 %v17480_v20  ;;  %v17522_v0 = vld [vmem:[%s24153_s1 + $0xe14] ss:$28 sps:$4 sm:$0xff]   ;;  %v17517_v38 = vld [vmem:[%s24153_s1 + $0x2928] ss:$28 sps:$4 sm:$0xff]  }
 0x3a7   :  { %v15230_v53 = vpack.c.bf16 %v13444_v32, %v13443_v30  ;;  %v13451_v39 = vmax.f32 %v15662_v33, 0.0  ;;  %v17520_v1 = vld [vmem:[%s24153_s1 + $0xe10] ss:$28 sps:$4 sm:$0xff]   ;;  %v17525_v41 = vld [vmem:[%s24153_s1 + $0x2964] ss:$28 sps:$4 sm:$0xff]  }
 0x3a8   :  { %11698 = vmatpush1.bf16.msra.mxu1 %v17475_v28  ;;  %v17528_v2 = vld [vmem:[%s24153_s1 + $0xe4c] ss:$28 sps:$4 sm:$0xff]   ;;  %v17523_v3 = vld [vmem:[%s24153_s1 + $0x2960] ss:$28 sps:$4 sm:$0xff]   ;;  %v17529_v8 = vld [vmem:[%s24153_s1 + $0x2998] ss:$28 sps:$4 sm:$0xff]  }
 0x3a9   :  { %13553 = vst [vmem:[%s24156_s3 + $0x38] sm:$0xff] %v15230_v53  ;;  %v15234_v42 = vpack.c.bf16 %v13451_v39, %v13450_v35  ;;  %12077 = vmatpush1.bf16.msra.mxu0 %v17478_v49  ;;  %11699 = vmatprep.subr.bf16.mxu1 %v17483_v50  ;;  %v18394_v4 = vld [vmem:[%s24154_s0 + $0x18] ss:$116 sps:$4 sm:$0xff]   ;;  %v17526_v6 = vld [vmem:[%s24153_s1 + $0xe48] ss:$28 sps:$4 sm:$0xff]  }
 0x3aa   :  { %12078 = vmatprep.subr.bf16.mxu0 %v17486_v34  ;;  %v17531_v44 = vld [vmem:[%s24153_s1 + $0x299c] ss:$28 sps:$4 sm:$0xff]   ;;  %v17534_v7 = vld [vmem:[%s24153_s1 + $0xe84] ss:$28 sps:$4 sm:$0xff]   ;;  %v17537_v13 = vld [vmem:[%s24153_s1 + $0x29d4] ss:$28 sps:$4 sm:$0xff]  }
 0x3ab   :  { %13557 = vst [vmem:[%s24156_s3 + $0x54] sm:$0xff] %v15234_v42  ;;  %v18395_v10 = vld [vmem:[%s24154_s0 + $0x104] ss:$116 sps:$4 sm:$0xff]   ;;  %v17532_v23 = vld [vmem:[%s24153_s1 + $0xe80] ss:$28 sps:$4 sm:$0xff]  }
 0x3ac   :  { %11700 = vmatpush1.bf16.msra.mxu1 %v17481_v40  ;;  %v17540_v14 = vld [vmem:[%s24153_s1 + $0xebc] ss:$28 sps:$4 sm:$0xff]   ;;  %v17535_v25 = vld [vmem:[%s24153_s1 + $0x29d0] ss:$28 sps:$4 sm:$0xff]   ;;  %v18396_v17 = vld [vmem:[%s24154_s0 + $0x100] ss:$116 sps:$4 sm:$0xff]  }
 0x3ad   :  { %12079 = vmatpush1.bf16.msra.mxu0 %v17484_v56  ;;  %11701 = vmatprep.subr.bf16.mxu1 %v17489_v43  ;;  %v17538_v16 = vld [vmem:[%s24153_s1 + $0xeb8] ss:$28 sps:$4 sm:$0xff]   ;;  %v17543_v18 = vld [vmem:[%s24153_s1 + $0x2a0c] ss:$28 sps:$4 sm:$0xff]   ;;  %v17549_v29 = vld [vmem:[%s24153_s1 + $0x2a44] ss:$28 sps:$4 sm:$0xff]  }
 0x3ae   :  { %12080 = vmatprep.subr.bf16.mxu0 %v17492_v45  ;;  %v17546_v19 = vld [vmem:[%s24153_s1 + $0xef4] ss:$28 sps:$4 sm:$0xff]   ;;  %v17541_v26 = vld [vmem:[%s24153_s1 + $0x2a08] ss:$28 sps:$4 sm:$0xff]   ;;  %v17547_v24 = vld [vmem:[%s24153_s1 + $0x2a40] ss:$28 sps:$4 sm:$0xff]  }
 0x3af   :  { %v17544_v20 = vld [vmem:[%s24153_s1 + $0xef0] ss:$28 sps:$4 sm:$0xff]   ;;  %v18397_v21 = vld [vmem:[%s24154_s0 + $0x24] ss:$116 sps:$4 sm:$0xff]   ;;  %v17556_v32 = vld [vmem:[%s24153_s1 + $0xf60] ss:$28 sps:$4 sm:$0xff]  }
 0x3b0   :  { %11702 = vmatpush1.bf16.msra.mxu1 %v17487_v46  ;;  %v17552_v22 = vld [vmem:[%s24153_s1 + $0xf2c] ss:$28 sps:$4 sm:$0xff]   ;;  %v17555_v30 = vld [vmem:[%s24153_s1 + $0x2a7c] ss:$28 sps:$4 sm:$0xff]   ;;  %v17558_v31 = vld [vmem:[%s24153_s1 + $0xf64] ss:$28 sps:$4 sm:$0xff]  }
 0x3b1   :  { %12081 = vmatpush1.bf16.msra.mxu0 %v17490_v47  ;;  %11703 = vmatprep.subr.bf16.mxu1 %v17495_v48  ;;  %v18398_v27 = vld [vmem:[%s24154_s0 + $0x58] ss:$116 sps:$4 sm:$0xff]   ;;  %v17550_v28 = vld [vmem:[%s24153_s1 + $0xf28] ss:$28 sps:$4 sm:$0xff]   ;;  %v17561_v50 = vld [vmem:[%s24153_s1 + $0x2ab4] ss:$28 sps:$4 sm:$0xff]  }
 0x3b2   :  { %12082 = vmatprep.subr.bf16.mxu0 %v17498_v9  ;;  %v17553_v49 = vld [vmem:[%s24153_s1 + $0x2a78] ss:$28 sps:$4 sm:$0xff]   ;;  %v17559_v53 = vld [vmem:[%s24153_s1 + $0x2ab0] ss:$28 sps:$4 sm:$0xff]   ;;  %v17565_v42 = vld [vmem:[%s24153_s1 + $0x2ae8] ss:$28 sps:$4 sm:$0xff]  }
 0x3b3   :  { %v18399_v33 = vld [vmem:[%s24154_s0 + $0x144] ss:$116 sps:$4 sm:$0xff]   ;;  %v18400_v35 = vld [vmem:[%s24154_s0 + $0x140] ss:$116 sps:$4 sm:$0xff]   ;;  %v17567_v40 = vld [vmem:[%s24153_s1 + $0x2aec] ss:$28 sps:$4 sm:$0xff]  }
 0x3b4   :  { %11704 = vmatpush1.bf16.msra.mxu1 %v17493_v11  ;;  %v17564_v34 = vld [vmem:[%s24153_s1 + $0xf9c] ss:$28 sps:$4 sm:$0xff]   ;;  %v17570_v56 = vld [vmem:[%s24153_s1 + $0xfd4] ss:$28 sps:$4 sm:$0xff]   ;;  %v17573_v46 = vld [vmem:[%s24153_s1 + $0x2b24] ss:$28 sps:$4 sm:$0xff]  }
 0x3b5   :  { %12083 = vmatpush1.bf16.msra.mxu0 %v17496_v51  ;;  %11705 = vmatprep.subr.bf16.mxu1 %v17501_v52  ;;  %v17562_v39 = vld [vmem:[%s24153_s1 + $0xf98] ss:$28 sps:$4 sm:$0xff]   ;;  %v17568_v43 = vld [vmem:[%s24153_s1 + $0xfd0] ss:$28 sps:$4 sm:$0xff]   ;;  %v17571_v48 = vld [vmem:[%s24153_s1 + $0x2b20] ss:$28 sps:$4 sm:$0xff]  }
 0x3b6   :  { %12084 = vmatprep.subr.bf16.mxu0 %v17504_v54  ;;  %v18401_v45 = vld [vmem:[%s24154_s0 + $0x64] ss:$116 sps:$4 sm:$0xff]   ;;  %v17576_v47 = vld [vmem:[%s24153_s1 + $0x100c] ss:$28 sps:$4 sm:$0xff]   ;;  %v17580_v54 = vld [vmem:[%s24153_s1 + $0x1040] ss:$28 sps:$4 sm:$0xff]  }
 0x3b7   :  { %v17574_v9 = vld [vmem:[%s24153_s1 + $0x1008] ss:$28 sps:$4 sm:$0xff]   ;;  %v17579_v11 = vld [vmem:[%s24153_s1 + $0x2b5c] ss:$28 sps:$4 sm:$0xff]  }
 0x3b8   :  { %11706 = vmatpush1.bf16.msra.mxu1 %v17499_v12  ;;  %v17582_v51 = vld [vmem:[%s24153_s1 + $0x1044] ss:$28 sps:$4 sm:$0xff]   ;;  %v17577_v52 = vld [vmem:[%s24153_s1 + $0x2b58] ss:$28 sps:$4 sm:$0xff]  }
 0x3b9   :  { %12085 = vmatpush1.bf16.msra.mxu0 %v17502_v55  ;;  %11707 = vmatprep.subr.bf16.mxu1 %v17507_v57  ;;  %v17585_v12 = vld [vmem:[%s24153_s1 + $0x2b94] ss:$28 sps:$4 sm:$0xff]   ;;  %v17588_v55 = vld [vmem:[%s24153_s1 + $0x107c] ss:$28 sps:$4 sm:$0xff]  }
 0x3ba   :  { %12086 = vmatprep.subr.bf16.mxu0 %v17510_v58  ;;  %v17583_v57 = vld [vmem:[%s24153_s1 + $0x2b90] ss:$28 sps:$4 sm:$0xff]   ;;  %v17586_v58 = vld [vmem:[%s24153_s1 + $0x1078] ss:$28 sps:$4 sm:$0xff]  }
 0x3bc   :  { %11708 = vmatpush1.bf16.msra.mxu1 %v17505_v15  ;;  %v17591_v15 = vld [vmem:[%s24153_s1 + $0x2bcc] ss:$28 sps:$4 sm:$0xff]  }
 0x3bd   :  { %12087 = vmatpush1.bf16.msra.mxu0 %v17508_v59  ;;  %11709 = vmatprep.subr.bf16.mxu1 %v17513_v60  ;;  %v17594_v59 = vld [vmem:[%s24153_s1 + $0x10b4] ss:$28 sps:$4 sm:$0xff]   ;;  %v17589_v60 = vld [vmem:[%s24153_s1 + $0x2bc8] ss:$28 sps:$4 sm:$0xff]  }
 0x3be   :  { %12088 = vmatprep.subr.bf16.mxu0 %v17516_v61  ;;  %v17592_v61 = vld [vmem:[%s24153_s1 + $0x10b0] ss:$28 sps:$4 sm:$0xff]  }
 0x3c0   :  { %11710 = vmatpush1.bf16.msra.mxu1 %v17511_v62  ;;  %v17597_v62 = vld [vmem:[%s24153_s1 + $0x2c04] ss:$28 sps:$4 sm:$0xff]  }
 0x3c1   :  { %12089 = vmatpush1.bf16.msra.mxu0 %v17514_v63  ;;  %11711 = vmatprep.subr.bf16.mxu1 %v17519_v37  ;;  %v17600_v63 = vld [vmem:[%s24153_s1 + $0x10ec] ss:$28 sps:$4 sm:$0xff]   ;;  %v17595_v37 = vld [vmem:[%s24153_s1 + $0x2c00] ss:$28 sps:$4 sm:$0xff]  }
 0x3c2   :  { %12111 = vmatprep.subr.bf16.mxu0 %v17522_v0  ;;  %v17598_v0 = vld [vmem:[%s24153_s1 + $0x10e8] ss:$28 sps:$4 sm:$0xff]  }
 0x3c4   :  { %12091 = vmatmul.mubr.bf16.vlgmr.msra.gmra.mrb[8].mxu0 %v18394_v4  ;;  %11712 = vmatpush1.bf16.msra.mxu1 %v17517_v38  ;;  %v17603_v38 = vld [vmem:[%s24153_s1 + $0x2c3c] ss:$28 sps:$4 sm:$0xff]  }
 0x3c5   :  { %12112 = vmatpush1.bf16.msra.mxu0 %v17520_v1  ;;  %11713 = vmatprep.subr.bf16.mxu1 %v17525_v41  ;;  %v17606_v1 = vld [vmem:[%s24153_s1 + $0x1124] ss:$28 sps:$4 sm:$0xff]   ;;  %v17601_v41 = vld [vmem:[%s24153_s1 + $0x2c38] ss:$28 sps:$4 sm:$0xff]  }
 0x3c6   :  { %12113 = vmatprep.subr.bf16.mxu0 %v17528_v2  ;;  %12100 = vmatprep.mubr.bf16.mxu0 %v18395_v10  ;;  %v17604_v2 = vld [vmem:[%s24153_s1 + $0x1120] ss:$28 sps:$4 sm:$0xff]   ;;  %v17613_v10 = vld [vmem:[%s24153_s1 + $0x2ca8] ss:$28 sps:$4 sm:$0xff]  }
 0x3c7   :  { %v17612_v4 = vld [vmem:[%s24153_s1 + $0x115c] ss:$28 sps:$4 sm:$0xff]  }
 0x3c8   :  { %11714 = vmatpush1.bf16.msra.mxu1 %v17523_v3  ;;  %v17609_v3 = vld [vmem:[%s24153_s1 + $0x2c74] ss:$28 sps:$4 sm:$0xff]  }
 0x3c9   :  { %12114 = vmatpush1.bf16.msra.mxu0 %v17526_v6  ;;  %11715 = vmatprep.subr.bf16.mxu1 %v17531_v44  ;;  %v17607_v6 = vld [vmem:[%s24153_s1 + $0x2c70] ss:$28 sps:$4 sm:$0xff]   ;;  %v17610_v44 = vld [vmem:[%s24153_s1 + $0x1158] ss:$28 sps:$4 sm:$0xff]  }
 0x3ca   :  { %12115 = vmatprep.subr.bf16.mxu0 %v17534_v7  ;;  %v17615_v7 = vld [vmem:[%s24153_s1 + $0x2cac] ss:$28 sps:$4 sm:$0xff]  }
 0x3cc   :  { %12101 = vmatmul.mubr.bf16.gmra.mrb[12].mxu0 %v18396_v17  ;;  %11716 = vmatpush1.bf16.msra.mxu1 %v17529_v8  ;;  %v17618_v8 = vld [vmem:[%s24153_s1 + $0x1194] ss:$28 sps:$4 sm:$0xff]   ;;  %v17622_v17 = vld [vmem:[%s24153_s1 + $0x11c8] ss:$28 sps:$4 sm:$0xff]  }
 0x3cd   :  { %12116 = vmatpush1.bf16.msra.mxu0 %v17532_v23  ;;  %11717 = vmatprep.subr.bf16.mxu1 %v17537_v13  ;;  %v17616_v23 = vld [vmem:[%s24153_s1 + $0x1190] ss:$28 sps:$4 sm:$0xff]   ;;  %v17621_v13 = vld [vmem:[%s24153_s1 + $0x2ce4] ss:$28 sps:$4 sm:$0xff]  }
 0x3ce   :  { %12117 = vmatprep.subr.bf16.mxu0 %v17540_v14  ;;  %12143 = vmatprep.mubr.bf16.mxu0 %v18397_v21  ;;  %v17624_v14 = vld [vmem:[%s24153_s1 + $0x11cc] ss:$28 sps:$4 sm:$0xff]   ;;  %v17628_v21 = vld [vmem:[%s24153_s1 + $0x1200] ss:$28 sps:$4 sm:$0xff]  }
 0x3d0   :  { %11718 = vmatpush1.bf16.msra.mxu1 %v17535_v25  ;;  %v18402_v25 = vld [vmem:[%s24154_s0 + $0x20] ss:$116 sps:$4 sm:$0xff]  }
 0x3d1   :  { %12118 = vmatpush1.bf16.msra.mxu0 %v17538_v16  ;;  %11740 = vmatprep.subr.bf16.mxu1 %v17543_v18  ;;  %v17619_v16 = vld [vmem:[%s24153_s1 + $0x2ce0] ss:$28 sps:$4 sm:$0xff]  }
 0x3d2   :  { %12119 = vmatprep.subr.bf16.mxu0 %v17546_v19  ;;  %v17627_v18 = vld [vmem:[%s24153_s1 + $0x2d1c] ss:$28 sps:$4 sm:$0xff]   ;;  %v17630_v19 = vld [vmem:[%s24153_s1 + $0x1204] ss:$28 sps:$4 sm:$0xff]  }
 0x3d3   :  { %11720 = vmatmul.mubr.bf16.vlgmr.msra.gmra.mrb[16].mxu1 %v18398_v27  ;;  %v17631_v27 = vld [vmem:[%s24153_s1 + $0x2d50] ss:$28 sps:$4 sm:$0xff]  }
 0x3d4   :  { %11741 = vmatpush1.bf16.msra.mxu1 %v17541_v26  ;;  %11729 = vmatprep.mubr.bf16.mxu1 %v18399_v33  ;;  %v18403_v26 = vld [vmem:[%s24154_s0 + $0x10c] ss:$116 sps:$4 sm:$0xff]  }
 0x3d5   :  { %12120 = vmatpush1.bf16.msra.mxu0 %v17544_v20  ;;  %11742 = vmatprep.subr.bf16.mxu1 %v17549_v29  ;;  %v17625_v20 = vld [vmem:[%s24153_s1 + $0x2d18] ss:$28 sps:$4 sm:$0xff]   ;;  %v17640_v33 = vld [vmem:[%s24153_s1 + $0x1270] ss:$28 sps:$4 sm:$0xff]  }
 0x3d6   :  { %12121 = vmatprep.subr.bf16.mxu0 %v17552_v22  ;;  %v17633_v29 = vld [vmem:[%s24153_s1 + $0x2d54] ss:$28 sps:$4 sm:$0xff]   ;;  %v17636_v22 = vld [vmem:[%s24153_s1 + $0x123c] ss:$28 sps:$4 sm:$0xff]  }
 0x3d8   :  { %11743 = vmatpush1.bf16.msra.mxu1 %v17547_v24  ;;  %v18404_v24 = vld [vmem:[%s24154_s0 + $0x108] ss:$116 sps:$4 sm:$0xff]  }
 0x3d9   :  { %12122 = vmatpush1.bf16.msra.mxu0 %v17550_v28  ;;  %11744 = vmatprep.subr.bf16.mxu1 %v17555_v30  ;;  %v17634_v28 = vld [vmem:[%s24153_s1 + $0x1238] ss:$28 sps:$4 sm:$0xff]   ;;  %v17639_v30 = vld [vmem:[%s24153_s1 + $0x2d8c] ss:$28 sps:$4 sm:$0xff]  }
 0x3da   :  { %12123 = vmatprep.subr.bf16.mxu0 %v17558_v31  ;;  %v17642_v31 = vld [vmem:[%s24153_s1 + $0x1274] ss:$28 sps:$4 sm:$0xff]  }
 0x3db   :  { %11730 = vmatmul.mubr.bf16.gmra.mrb[20].mxu1 %v18400_v35  ;;  %v18406_v35 = vld [vmem:[%s24154_s0 + $0x60] ss:$116 sps:$4 sm:$0xff]  }
 0x3dc   :  { %11745 = vmatpush1.bf16.msra.mxu1 %v17553_v49  ;;  %11772 = vmatprep.mubr.bf16.mxu1 %v18401_v45  ;;  %v18405_v49 = vld [vmem:[%s24154_s0 + $0x2c] ss:$116 sps:$4 sm:$0xff]  }
 0x3dd   :  { %12124 = vmatpush1.bf16.msra.mxu0 %v17556_v32  ;;  %11746 = vmatprep.subr.bf16.mxu1 %v17561_v50  ;;  %v17637_v32 = vld [vmem:[%s24153_s1 + $0x2d88] ss:$28 sps:$4 sm:$0xff]   ;;  %v17652_v45 = vld [vmem:[%s24153_s1 + $0x12e0] ss:$28 sps:$4 sm:$0xff]  }
 0x3de   :  { %12125 = vmatprep.subr.bf16.mxu0 %v17564_v34  ;;  %v17645_v50 = vld [vmem:[%s24153_s1 + $0x2dc4] ss:$28 sps:$4 sm:$0xff]   ;;  %v17648_v34 = vld [vmem:[%s24153_s1 + $0x12ac] ss:$28 sps:$4 sm:$0xff]  }
 0x3e0   :  { %11747 = vmatpush1.bf16.msra.mxu1 %v17559_v53  ;;  %v17643_v53 = vld [vmem:[%s24153_s1 + $0x2dc0] ss:$28 sps:$4 sm:$0xff]  }
 0x3e1   :  { %12126 = vmatpush1.bf16.msra.mxu0 %v17562_v39  ;;  %11748 = vmatprep.subr.bf16.mxu1 %v17567_v40  ;;  %v17646_v39 = vld [vmem:[%s24153_s1 + $0x12a8] ss:$28 sps:$4 sm:$0xff]   ;;  %v17651_v40 = vld [vmem:[%s24153_s1 + $0x2dfc] ss:$28 sps:$4 sm:$0xff]  }
 0x3e2   :  { %12127 = vmatprep.subr.bf16.mxu0 %v17570_v56  ;;  %v17654_v56 = vld [vmem:[%s24153_s1 + $0x12e4] ss:$28 sps:$4 sm:$0xff]  }
 0x3e4   :  { %11749 = vmatpush1.bf16.msra.mxu1 %v17565_v42  ;;  %v18407_v42 = vld [vmem:[%s24154_s0 + $0x14c] ss:$116 sps:$4 sm:$0xff]  }
 0x3e5   :  { %12128 = vmatpush1.bf16.msra.mxu0 %v17568_v43  ;;  %11750 = vmatprep.subr.bf16.mxu1 %v17573_v46  ;;  %v17649_v43 = vld [vmem:[%s24153_s1 + $0x2df8] ss:$28 sps:$4 sm:$0xff]  }
 0x3e6   :  { %12129 = vmatprep.subr.bf16.mxu0 %v17576_v47  ;;  %v17657_v46 = vld [vmem:[%s24153_s1 + $0x2e34] ss:$28 sps:$4 sm:$0xff]   ;;  %v17660_v47 = vld [vmem:[%s24153_s1 + $0x131c] ss:$28 sps:$4 sm:$0xff]  }
 0x3e8   :  { %11751 = vmatpush1.bf16.msra.mxu1 %v17571_v48  ;;  %v18408_v48 = vld [vmem:[%s24154_s0 + $0x148] ss:$116 sps:$4 sm:$0xff]  }
 0x3e9   :  { %12130 = vmatpush1.bf16.msra.mxu0 %v17574_v9  ;;  %11752 = vmatprep.subr.bf16.mxu1 %v17579_v11  ;;  %v17655_v9 = vld [vmem:[%s24153_s1 + $0x2e30] ss:$28 sps:$4 sm:$0xff]   ;;  %v17658_v11 = vld [vmem:[%s24153_s1 + $0x1318] ss:$28 sps:$4 sm:$0xff]  }
 0x3ea   :  { %12131 = vmatprep.subr.bf16.mxu0 %v17582_v51  ;;  %v17663_v51 = vld [vmem:[%s24153_s1 + $0x2e6c] ss:$28 sps:$4 sm:$0xff]  }
 0x3ec   :  { %11753 = vmatpush1.bf16.msra.mxu1 %v17577_v52  ;;  %v17666_v52 = vld [vmem:[%s24153_s1 + $0x1354] ss:$28 sps:$4 sm:$0xff]  }
 0x3ed   :  { %12132 = vmatpush1.bf16.msra.mxu0 %v17580_v54  ;;  %11754 = vmatprep.subr.bf16.mxu1 %v17585_v12  ;;  %v18409_v54 = vld [vmem:[%s24154_s0 + $0x6c] ss:$116 sps:$4 sm:$0xff]   ;;  %v17661_v12 = vld [vmem:[%s24153_s1 + $0x2e68] ss:$28 sps:$4 sm:$0xff]  }
 0x3ee   :  { %12133 = vmatprep.subr.bf16.mxu0 %v17588_v55  ;;  %v17664_v55 = vld [vmem:[%s24153_s1 + $0x1350] ss:$28 sps:$4 sm:$0xff]  }
 0x3f0   :  { %11755 = vmatpush1.bf16.msra.mxu1 %v17583_v57  ;;  %v17669_v57 = vld [vmem:[%s24153_s1 + $0x2ea4] ss:$28 sps:$4 sm:$0xff]  }
 0x3f1   :  { %12134 = vmatpush1.bf16.msra.mxu0 %v17586_v58  ;;  %11756 = vmatprep.subr.bf16.mxu1 %v17591_v15  ;;  %v17672_v58 = vld [vmem:[%s24153_s1 + $0x138c] ss:$28 sps:$4 sm:$0xff]   ;;  %v17667_v15 = vld [vmem:[%s24153_s1 + $0x2ea0] ss:$28 sps:$4 sm:$0xff]  }
 0x3f2   :  { %12135 = vmatprep.subr.bf16.mxu0 %v17594_v59  ;;  %v17670_v59 = vld [vmem:[%s24153_s1 + $0x1388] ss:$28 sps:$4 sm:$0xff]  }
 0x3f4   :  { %11757 = vmatpush1.bf16.msra.mxu1 %v17589_v60  ;;  %v17675_v60 = vld [vmem:[%s24153_s1 + $0x2edc] ss:$28 sps:$4 sm:$0xff]  }
 0x3f5   :  { %12136 = vmatpush1.bf16.msra.mxu0 %v17592_v61  ;;  %11758 = vmatprep.subr.bf16.mxu1 %v17597_v62  ;;  %v17678_v61 = vld [vmem:[%s24153_s1 + $0x13c4] ss:$28 sps:$4 sm:$0xff]   ;;  %v17673_v62 = vld [vmem:[%s24153_s1 + $0x2ed8] ss:$28 sps:$4 sm:$0xff]  }
 0x3f6   :  { %12137 = vmatprep.subr.bf16.mxu0 %v17600_v63  ;;  %v17676_v63 = vld [vmem:[%s24153_s1 + $0x13c0] ss:$28 sps:$4 sm:$0xff]  }
 0x3f8   :  { %11759 = vmatpush1.bf16.msra.mxu1 %v17595_v37  ;;  %v17681_v37 = vld [vmem:[%s24153_s1 + $0x2f14] ss:$28 sps:$4 sm:$0xff]  }
 0x3f9   :  { %12138 = vmatpush1.bf16.msra.mxu0 %v17598_v0  ;;  %11760 = vmatprep.subr.bf16.mxu1 %v17603_v38  ;;  %v17684_v0 = vld [vmem:[%s24153_s1 + $0x13fc] ss:$28 sps:$4 sm:$0xff]   ;;  %v17679_v38 = vld [vmem:[%s24153_s1 + $0x2f10] ss:$28 sps:$4 sm:$0xff]  }
 0x3fa   :  { %12139 = vmatprep.subr.bf16.mxu0 %v17606_v1  ;;  %v17682_v1 = vld [vmem:[%s24153_s1 + $0x13f8] ss:$28 sps:$4 sm:$0xff]  }
 0x3fc   :  { %11761 = vmatpush1.bf16.msra.mxu1 %v17601_v41  ;;  %v17687_v41 = vld [vmem:[%s24153_s1 + $0x2f4c] ss:$28 sps:$4 sm:$0xff]  }
 0x3fd   :  { %12140 = vmatpush1.bf16.msra.mxu0 %v17604_v2  ;;  %11762 = vmatprep.subr.bf16.mxu1 %v17609_v3  ;;  %v17690_v2 = vld [vmem:[%s24153_s1 + $0x1434] ss:$28 sps:$4 sm:$0xff]   ;;  %v17685_v3 = vld [vmem:[%s24153_s1 + $0x2f48] ss:$28 sps:$4 sm:$0xff]  }
 0x3fe   :  { %12141 = vmatprep.subr.bf16.mxu0 %v17612_v4  ;;  %v17688_v4 = vld [vmem:[%s24153_s1 + $0x1430] ss:$28 sps:$4 sm:$0xff]  }
 0x400   :  { %11763 = vmatpush1.bf16.msra.mxu1 %v17607_v6  ;;  %v17693_v6 = vld [vmem:[%s24153_s1 + $0x2f84] ss:$28 sps:$4 sm:$0xff]  }
 0x401   :  { %12142 = vmatpush1.bf16.msra.mxu0 %v17610_v44  ;;  %11764 = vmatprep.subr.bf16.mxu1 %v17615_v7  ;;  %v17696_v44 = vld [vmem:[%s24153_s1 + $0x146c] ss:$28 sps:$4 sm:$0xff]   ;;  %v17691_v7 = vld [vmem:[%s24153_s1 + $0x2f80] ss:$28 sps:$4 sm:$0xff]  }
 0x402   :  { %12164 = vmatprep.subr.bf16.mxu0 %v17618_v8  ;;  %v17694_v8 = vld [vmem:[%s24153_s1 + $0x1468] ss:$28 sps:$4 sm:$0xff]  }
 0x404   :  { %12144 = vmatmul.mubr.bf16.vlgmr.msra.gmra.mrb[8].mxu0 %v18402_v25  ;;  %11765 = vmatpush1.bf16.msra.mxu1 %v17613_v10  ;;  %v17699_v10 = vld [vmem:[%s24153_s1 + $0x2fbc] ss:$28 sps:$4 sm:$0xff]   ;;  %v17705_v25 = vld [vmem:[%s24153_s1 + $0x2ff4] ss:$28 sps:$4 sm:$0xff]  }
 0x405   :  { %12165 = vmatpush1.bf16.msra.mxu0 %v17616_v23  ;;  %11766 = vmatprep.subr.bf16.mxu1 %v17621_v13  ;;  %v17702_v23 = vld [vmem:[%s24153_s1 + $0x14a4] ss:$28 sps:$4 sm:$0xff]   ;;  %v17697_v13 = vld [vmem:[%s24153_s1 + $0x2fb8] ss:$28 sps:$4 sm:$0xff]  }
 0x406   :  { %12166 = vmatprep.subr.bf16.mxu0 %v17624_v14  ;;  %12153 = vmatprep.mubr.bf16.mxu0 %v18403_v26  ;;  %v17700_v14 = vld [vmem:[%s24153_s1 + $0x14a0] ss:$28 sps:$4 sm:$0xff]   ;;  %v17714_v26 = vld [vmem:[%s24153_s1 + $0x1514] ss:$28 sps:$4 sm:$0xff]  }
 0x408   :  { %11767 = vmatpush1.bf16.msra.mxu1 %v17619_v16  ;;  %v17708_v16 = vld [vmem:[%s24153_s1 + $0x14dc] ss:$28 sps:$4 sm:$0xff]  }
 0x409   :  { %12167 = vmatpush1.bf16.msra.mxu0 %v17622_v17  ;;  %11768 = vmatprep.subr.bf16.mxu1 %v17627_v18  ;;  %v17703_v17 = vld [vmem:[%s24153_s1 + $0x2ff0] ss:$28 sps:$4 sm:$0xff]   ;;  %v17706_v18 = vld [vmem:[%s24153_s1 + $0x14d8] ss:$28 sps:$4 sm:$0xff]  }
 0x40a   :  { %12168 = vmatprep.subr.bf16.mxu0 %v17630_v19  ;;  %v17711_v19 = vld [vmem:[%s24153_s1 + $0x302c] ss:$28 sps:$4 sm:$0xff]  }
 0x40c   :  { %12154 = vmatmul.mubr.bf16.gmra.mrb[12].mxu0 %v18404_v24  ;;  %11769 = vmatpush1.bf16.msra.mxu1 %v17625_v20  ;;  %v17709_v20 = vld [vmem:[%s24153_s1 + $0x3028] ss:$28 sps:$4 sm:$0xff]  }
 0x40d   :  { %12169 = vmatpush1.bf16.msra.mxu0 %v17628_v21  ;;  %11770 = vmatprep.subr.bf16.mxu1 %v17633_v29  ;;  %v17712_v21 = vld [vmem:[%s24153_s1 + $0x1510] ss:$28 sps:$4 sm:$0xff]   ;;  %v17717_v29 = vld [vmem:[%s24153_s1 + $0x3064] ss:$28 sps:$4 sm:$0xff]   ;;  %v22238_v24 = vld [vmem:[%s24154_s0 + $0x28] ss:$116 sps:$4 sm:$0xff]  }
 0x40e   :  { %12170 = vmatprep.subr.bf16.mxu0 %v17636_v22  ;;  %12196 = vmatprep.mubr.bf16.mxu0 %v18405_v49  ;;  %v17720_v22 = vld [vmem:[%s24153_s1 + $0x154c] ss:$28 sps:$4 sm:$0xff]  }
 0x40f   :  { %v22256_v49 = vld [vmem:[%s24154_s0 + $0x114] ss:$116 sps:$4 sm:$0xff]  }
 0x410   :  { %11771 = vmatpush1.bf16.msra.mxu1 %v17631_v27  ;;  %v17715_v27 = vld [vmem:[%s24153_s1 + $0x3060] ss:$28 sps:$4 sm:$0xff]  }
 0x411   :  { %12171 = vmatpush1.bf16.msra.mxu0 %v17634_v28  ;;  %11793 = vmatprep.subr.bf16.mxu1 %v17639_v30  ;;  %v17718_v28 = vld [vmem:[%s24153_s1 + $0x1548] ss:$28 sps:$4 sm:$0xff]   ;;  %v17723_v30 = vld [vmem:[%s24153_s1 + $0x309c] ss:$28 sps:$4 sm:$0xff]  }
 0x412   :  { %12172 = vmatprep.subr.bf16.mxu0 %v17642_v31  ;;  %v17726_v31 = vld [vmem:[%s24153_s1 + $0x1584] ss:$28 sps:$4 sm:$0xff]  }
 0x413   :  { %11773 = vmatmul.mubr.bf16.vlgmr.msra.gmra.mrb[16].mxu1 %v18406_v35  ;;  %v18412_v35 = vld [vmem:[%s24154_s0 + $0x110] ss:$116 sps:$4 sm:$0xff]  }
 0x414   :  { %11794 = vmatpush1.bf16.msra.mxu1 %v17637_v32  ;;  %11782 = vmatprep.mubr.bf16.mxu1 %v18407_v42  ;;  %v17721_v32 = vld [vmem:[%s24153_s1 + $0x3098] ss:$28 sps:$4 sm:$0xff]  }
 0x415   :  { %12173 = vmatpush1.bf16.msra.mxu0 %v17640_v33  ;;  %11795 = vmatprep.subr.bf16.mxu1 %v17645_v50  ;;  %v17724_v33 = vld [vmem:[%s24153_s1 + $0x1580] ss:$28 sps:$4 sm:$0xff]   ;;  %v17729_v50 = vld [vmem:[%s24153_s1 + $0x30d4] ss:$28 sps:$4 sm:$0xff]  }
 0x416   :  { %12174 = vmatprep.subr.bf16.mxu0 %v17648_v34  ;;  %v17732_v34 = vld [vmem:[%s24153_s1 + $0x15bc] ss:$28 sps:$4 sm:$0xff]   ;;  %v18413_v42 = vld [vmem:[%s24154_s0 + $0x34] ss:$116 sps:$4 sm:$0xff]  }
 0x418   :  { %11796 = vmatpush1.bf16.msra.mxu1 %v17643_v53  ;;  %v17727_v53 = vld [vmem:[%s24153_s1 + $0x30d0] ss:$28 sps:$4 sm:$0xff]  }
 0x419   :  { %12175 = vmatpush1.bf16.msra.mxu0 %v17646_v39  ;;  %11797 = vmatprep.subr.bf16.mxu1 %v17651_v40  ;;  %v17730_v39 = vld [vmem:[%s24153_s1 + $0x15b8] ss:$28 sps:$4 sm:$0xff]  }
 0x41a   :  { %12176 = vmatprep.subr.bf16.mxu0 %v17654_v56  ;;  %v17735_v40 = vld [vmem:[%s24153_s1 + $0x15f4] ss:$28 sps:$4 sm:$0xff]   ;;  %v17744_v56 = vld [vmem:[%s24153_s1 + $0x310c] ss:$28 sps:$4 sm:$0xff]  }
 0x41b   :  { %11783 = vmatmul.mubr.bf16.gmra.mrb[20].mxu1 %v18408_v48  ;;  %v18414_v48 = vld [vmem:[%s24154_s0 + $0x68] ss:$116 sps:$4 sm:$0xff]  }
 0x41c   :  { %11798 = vmatpush1.bf16.msra.mxu1 %v17649_v43  ;;  %11825 = vmatprep.mubr.bf16.mxu1 %v18409_v54  ;;  %v17733_v43 = vld [vmem:[%s24153_s1 + $0x15f0] ss:$28 sps:$4 sm:$0xff]   ;;  %v17747_v54 = vld [vmem:[%s24153_s1 + $0x169c] ss:$28 sps:$4 sm:$0xff]  }
 0x41d   :  { %12177 = vmatpush1.bf16.msra.mxu0 %v17652_v45  ;;  %11799 = vmatprep.subr.bf16.mxu1 %v17657_v46  ;;  %v17738_v45 = vld [vmem:[%s24153_s1 + $0x162c] ss:$28 sps:$4 sm:$0xff]  }
 0x41e   :  { %12178 = vmatprep.subr.bf16.mxu0 %v17660_v47  ;;  %v17742_v46 = vld [vmem:[%s24153_s1 + $0x3108] ss:$28 sps:$4 sm:$0xff]   ;;  %v17759_v47 = vld [vmem:[%s24153_s1 + $0x3114] ss:$28 sps:$4 sm:$0xff]  }
 0x420   :  { %11800 = vmatpush1.bf16.msra.mxu1 %v17655_v9  ;;  %v17736_v9 = vld [vmem:[%s24153_s1 + $0x1628] ss:$28 sps:$4 sm:$0xff]  }
 0x421   :  { %12179 = vmatpush1.bf16.msra.mxu0 %v17658_v11  ;;  %11801 = vmatprep.subr.bf16.mxu1 %v17663_v51  ;;  %v18415_v11 = vld [vmem:[%s24154_s0 + $0x154] ss:$116 sps:$4 sm:$0xff]   ;;  %v17741_v51 = vld [vmem:[%s24153_s1 + $0x1664] ss:$28 sps:$4 sm:$0xff]  }
 0x422   :  { %12180 = vmatprep.subr.bf16.mxu0 %v17666_v52  ;;  %v17739_v52 = vld [vmem:[%s24153_s1 + $0x1660] ss:$28 sps:$4 sm:$0xff]  }
 0x424   :  { %11802 = vmatpush1.bf16.msra.mxu1 %v17661_v12  ;;  %v18416_v12 = vld [vmem:[%s24154_s0 + $0x150] ss:$116 sps:$4 sm:$0xff]  }
 0x425   :  { %12181 = vmatpush1.bf16.msra.mxu0 %v17664_v55  ;;  %11803 = vmatprep.subr.bf16.mxu1 %v17669_v57  ;;  %v17745_v55 = vld [vmem:[%s24153_s1 + $0x1698] ss:$28 sps:$4 sm:$0xff]  }
 0x426   :  { %12182 = vmatprep.subr.bf16.mxu0 %v17672_v58  ;;  %v17750_v57 = vld [vmem:[%s24153_s1 + $0x16d4] ss:$28 sps:$4 sm:$0xff]  }
 0x427   :  { %v17748_v58 = vld [vmem:[%s24153_s1 + $0x16d0] ss:$28 sps:$4 sm:$0xff]  }
 0x428   :  { %11804 = vmatpush1.bf16.msra.mxu1 %v17667_v15  ;;  %v17753_v15 = vld [vmem:[%s24153_s1 + $0x170c] ss:$28 sps:$4 sm:$0xff]  }
 0x429   :  { %12183 = vmatpush1.bf16.msra.mxu0 %v17670_v59  ;;  %11805 = vmatprep.subr.bf16.mxu1 %v17675_v60  ;;  %v17757_v59 = vld [vmem:[%s24153_s1 + $0x3110] ss:$28 sps:$4 sm:$0xff]   ;;  %v17763_v60 = vld [vmem:[%s24153_s1 + $0x1d8] ss:$28 sps:$4 sm:$0xff]  }
 0x42a   :  { %12184 = vmatprep.subr.bf16.mxu0 %v17678_v61  ;;  %v18417_v61 = vld [vmem:[%s24154_s0 + $0x70] ss:$116 sps:$4 sm:$0xff]  }
 0x42c   :  { %11806 = vmatpush1.bf16.msra.mxu1 %v17673_v62  ;;  %v17751_v62 = vld [vmem:[%s24153_s1 + $0x1708] ss:$28 sps:$4 sm:$0xff]  }
 0x42d   :  { %12185 = vmatpush1.bf16.msra.mxu0 %v17676_v63  ;;  %11807 = vmatprep.subr.bf16.mxu1 %v17681_v37  ;;  %v17756_v63 = vld [vmem:[%s24153_s1 + $0x1744] ss:$28 sps:$4 sm:$0xff]  }
 0x42e   :  { %12186 = vmatprep.subr.bf16.mxu0 %v17684_v0  ;;  %v17754_v37 = vld [vmem:[%s24153_s1 + $0x1740] ss:$28 sps:$4 sm:$0xff]  }
 0x42f   :  { %v17762_v0 = vld [vmem:[%s24153_s1 + $0x177c] ss:$28 sps:$4 sm:$0xff]  }
 0x430   :  { %11808 = vmatpush1.bf16.msra.mxu1 %v17679_v38  ;;  %v18418_v38 = vld [vmem:[%s24154_s0 + $0x158] ss:$116 sps:$4 sm:$0xff]  }
 0x431   :  { %12187 = vmatpush1.bf16.msra.mxu0 %v17682_v1  ;;  %11809 = vmatprep.subr.bf16.mxu1 %v17687_v41  ;;  %v17760_v1 = vld [vmem:[%s24153_s1 + $0x1778] ss:$28 sps:$4 sm:$0xff]  }
 0x432   :  { %12188 = vmatprep.subr.bf16.mxu0 %v17690_v2  ;;  %v17767_v41 = vld [vmem:[%s24153_s1 + $0x17b4] ss:$28 sps:$4 sm:$0xff]  }
 0x433   :  { %v17764_v2 = vld [vmem:[%s24153_s1 + $0x18] ss:$28 sps:$4 sm:$0xff]  }
 0x434   :  { %11810 = vmatpush1.bf16.msra.mxu1 %v17685_v3  ;;  %v17765_v3 = vld [vmem:[%s24153_s1 + $0x17b0] ss:$28 sps:$4 sm:$0xff]  }
 0x435   :  { %12189 = vmatpush1.bf16.msra.mxu0 %v17688_v4  ;;  %11811 = vmatprep.subr.bf16.mxu1 %v17693_v6  ;;  %v17768_v4 = vld [vmem:[%s24153_s1 + $0x210] ss:$28 sps:$4 sm:$0xff]  }
 0x436   :  { %12190 = vmatprep.subr.bf16.mxu0 %v17696_v44  ;;  %v17772_v6 = vld [vmem:[%s24153_s1 + $0x17ec] ss:$28 sps:$4 sm:$0xff]  }
 0x437   :  { %v17769_v44 = vld [vmem:[%s24153_s1 + $0x50] ss:$28 sps:$4 sm:$0xff]  }
 0x438   :  { %11812 = vmatpush1.bf16.msra.mxu1 %v17691_v7  ;;  %v17770_v7 = vld [vmem:[%s24153_s1 + $0x17e8] ss:$28 sps:$4 sm:$0xff]  }
 0x439   :  { %12191 = vmatpush1.bf16.msra.mxu0 %v17694_v8  ;;  %11813 = vmatprep.subr.bf16.mxu1 %v17699_v10  ;;  %v17773_v8 = vld [vmem:[%s24153_s1 + $0x248] ss:$28 sps:$4 sm:$0xff]  }
 0x43a   :  { %12192 = vmatprep.subr.bf16.mxu0 %v17702_v23  ;;  %v17777_v10 = vld [vmem:[%s24153_s1 + $0x1824] ss:$28 sps:$4 sm:$0xff]  }
 0x43b   :  { %v17774_v23 = vld [vmem:[%s24153_s1 + $0x88] ss:$28 sps:$4 sm:$0xff]  }
 0x43c   :  { %11814 = vmatpush1.bf16.msra.mxu1 %v17697_v13  ;;  %v17775_v13 = vld [vmem:[%s24153_s1 + $0x1820] ss:$28 sps:$4 sm:$0xff]  }
 0x43d   :  { %12193 = vmatpush1.bf16.msra.mxu0 %v17700_v14  ;;  %11815 = vmatprep.subr.bf16.mxu1 %v17705_v25  ;;  %v17778_v14 = vld [vmem:[%s24153_s1 + $0x280] ss:$28 sps:$4 sm:$0xff]  }
 0x43e   :  { %12194 = vmatprep.subr.bf16.mxu0 %v17708_v16  ;;  %v17779_v25 = vld [vmem:[%s24153_s1 + $0xc0] ss:$28 sps:$4 sm:$0xff]   ;;  %v17780_v16 = vld [vmem:[%s24153_s1 + $0x1858] ss:$28 sps:$4 sm:$0xff]  }
 0x440   :  { %11816 = vmatpush1.bf16.msra.mxu1 %v17703_v17  ;;  %v17783_v17 = vld [vmem:[%s24153_s1 + $0x2b8] ss:$28 sps:$4 sm:$0xff]  }
 0x441   :  { %12195 = vmatpush1.bf16.msra.mxu0 %v17706_v18  ;;  %11817 = vmatprep.subr.bf16.mxu1 %v17711_v19  ;;  %v17787_v18 = vld [vmem:[%s24153_s1 + $0x1894] ss:$28 sps:$4 sm:$0xff]   ;;  %v18419_v19 = vld [vmem:[%s24154_s0 + $0x4] ss:$116 sps:$4 sm:$0xff]  }
 0x442   :  { %12217 = vmatprep.subr.bf16.mxu0 %v17714_v26  ;;  %v17784_v26 = vld [vmem:[%s24153_s1 + $0xf8] ss:$28 sps:$4 sm:$0xff]  }
 0x444   :  { %12197 = vmatmul.mubr.bf16.vlgmr.msra.gmra.mrb[8].mxu0 %v22238_v24  ;;  %11818 = vmatpush1.bf16.msra.mxu1 %v17709_v20  ;;  %v17785_v20 = vld [vmem:[%s24153_s1 + $0x1890] ss:$28 sps:$4 sm:$0xff]  }
 0x445   :  { %12218 = vmatpush1.bf16.msra.mxu0 %v17712_v21  ;;  %11819 = vmatprep.subr.bf16.mxu1 %v17717_v29  ;;  %v17788_v21 = vld [vmem:[%s24153_s1 + $0x2f0] ss:$28 sps:$4 sm:$0xff]  }
 0x446   :  { %12219 = vmatprep.subr.bf16.mxu0 %v17720_v22  ;;  %12206 = vmatprep.mubr.bf16.mxu0 %v22256_v49  ;;  %v17792_v29 = vld [vmem:[%s24153_s1 + $0x18cc] ss:$28 sps:$4 sm:$0xff]   ;;  %v22438_v22 = vld [vmem:[%s24154_s0 + $0x30] ss:$116 sps:$4 sm:$0xff]  }
 0x448   :  { %11820 = vmatpush1.bf16.msra.mxu1 %v17715_v27  ;;  %v17789_v27 = vld [vmem:[%s24153_s1 + $0x130] ss:$28 sps:$4 sm:$0xff]  }
 0x449   :  { %12220 = vmatpush1.bf16.msra.mxu0 %v17718_v28  ;;  %11821 = vmatprep.subr.bf16.mxu1 %v17723_v30  ;;  %v17790_v28 = vld [vmem:[%s24153_s1 + $0x18c8] ss:$28 sps:$4 sm:$0xff]  }
 0x44a   :  { %12221 = vmatprep.subr.bf16.mxu0 %v17726_v31  ;;  %v17793_v30 = vld [vmem:[%s24153_s1 + $0x328] ss:$28 sps:$4 sm:$0xff]  }
 0x44b   :  { %v17797_v31 = vld [vmem:[%s24153_s1 + $0x1904] ss:$28 sps:$4 sm:$0xff]  }
 0x44c   :  { %12207 = vmatmul.mubr.bf16.gmra.mrb[12].mxu0 %v18412_v35  ;;  %11822 = vmatpush1.bf16.msra.mxu1 %v17721_v32  ;;  %v22456_v32 = vld [vmem:[%s24154_s0 + $0x11c] ss:$116 sps:$4 sm:$0xff]  }
 0x44d   :  { %12222 = vmatpush1.bf16.msra.mxu0 %v17724_v33  ;;  %11823 = vmatprep.subr.bf16.mxu1 %v17729_v50  ;;  %v17794_v33 = vld [vmem:[%s24153_s1 + $0x168] ss:$28 sps:$4 sm:$0xff]   ;;  %v17795_v50 = vld [vmem:[%s24153_s1 + $0x1900] ss:$28 sps:$4 sm:$0xff]  }
 0x44e   :  { %12223 = vmatprep.subr.bf16.mxu0 %v17732_v34  ;;  %12249 = vmatprep.mubr.bf16.mxu0 %v18413_v42  ;;  %v17798_v34 = vld [vmem:[%s24153_s1 + $0x360] ss:$28 sps:$4 sm:$0xff]   ;;  %v17807_v42 = vld [vmem:[%s24153_s1 + $0x1974] ss:$28 sps:$4 sm:$0xff]  }
 0x44f   :  { %v17802_v35 = vld [vmem:[%s24153_s1 + $0x193c] ss:$28 sps:$4 sm:$0xff]  }
 0x450   :  { %11824 = vmatpush1.bf16.msra.mxu1 %v17727_v53  ;;  %v22474_v53 = vld [vmem:[%s24154_s0 + $0x118] ss:$116 sps:$4 sm:$0xff]  }
 0x451   :  { %12224 = vmatpush1.bf16.msra.mxu0 %v17730_v39  ;;  %11846 = vmatprep.subr.bf16.mxu1 %v17744_v56  ;;  %v17799_v39 = vld [vmem:[%s24153_s1 + $0x1a0] ss:$28 sps:$4 sm:$0xff]   ;;  %v17803_v56 = vld [vmem:[%s24153_s1 + $0x558] ss:$28 sps:$4 sm:$0xff]  }
 0x452   :  { %12225 = vmatprep.subr.bf16.mxu0 %v17735_v40  ;;  %v17800_v40 = vld [vmem:[%s24153_s1 + $0x1938] ss:$28 sps:$4 sm:$0xff]  }
 0x453   :  { %11826 = vmatmul.mubr.bf16.vlgmr.msra.gmra.mrb[16].mxu1 %v18414_v48  ;;  %v17812_v48 = vld [vmem:[%s24153_s1 + $0x19ac] ss:$28 sps:$4 sm:$0xff]  }
 0x454   :  { %11835 = vmatprep.mubr.bf16.mxu1 %v18415_v11  ;;  %11847 = vmatpush1.bf16.msra.mxu1 %v17742_v46  ;;  %v17805_v46 = vld [vmem:[%s24153_s1 + $0x1970] ss:$28 sps:$4 sm:$0xff]  }
 0x455   :  { %12226 = vmatpush1.bf16.msra.mxu0 %v17733_v43  ;;  %12641 = vmatprep.subr.bf16.mxu1 %v17759_v47  ;;  %v22492_v43 = vld [vmem:[%s24154_s0 + $0x3c] ss:$116 sps:$4 sm:$0xff]  }
 0x456   :  { %12227 = vmatprep.subr.bf16.mxu0 %v17738_v45  ;;  %v17804_v45 = vld [vmem:[%s24153_s1 + $0x398] ss:$28 sps:$4 sm:$0xff]   ;;  %v17808_v47 = vld [vmem:[%s24153_s1 + $0x590] ss:$28 sps:$4 sm:$0xff]  }
 0x457   :  { %v17809_v11 = vld [vmem:[%s24153_s1 + $0x3d0] ss:$28 sps:$4 sm:$0xff]  }
 0x459   :  { %12228 = vmatpush1.bf16.msra.mxu0 %v17736_v9  ;;  %v18424_v9 = vld [vmem:[%s24154_s0] ss:$116 sps:$4 sm:$0xff]  }
 0x45a   :  { %12229 = vmatprep.subr.bf16.mxu0 %v17741_v51  ;;  %v17810_v51 = vld [vmem:[%s24153_s1 + $0x19a8] ss:$28 sps:$4 sm:$0xff]  }
 0x45b   :  { %11836 = vmatmul.mubr.bf16.gmra.mrb[20].mxu1 %v18416_v12  ;;  %v18425_v12 = vld [vmem:[%s24154_s0 + $0xec] ss:$116 sps:$4 sm:$0xff]  }
 0x45c   :  { %11878 = vmatprep.mubr.bf16.mxu1 %v18477_v36 }
 0x45d   :  { %12230 = vmatpush1.bf16.msra.mxu0 %v17739_v52  ;;  %v17813_v52 = vld [vmem:[%s24153_s1 + $0x5c8] ss:$28 sps:$4 sm:$0xff]  }
 0x45e   :  { %12231 = vmatprep.subr.bf16.mxu0 %v17747_v54  ;;  %v17817_v54 = vld [vmem:[%s24153_s1 + $0x19e4] ss:$28 sps:$4 sm:$0xff]  }
 0x461   :  { %12232 = vmatpush1.bf16.msra.mxu0 %v17745_v55  ;;  %v17814_v55 = vld [vmem:[%s24153_s1 + $0x408] ss:$28 sps:$4 sm:$0xff]  }
 0x462   :  { %12233 = vmatprep.subr.bf16.mxu0 %v17750_v57  ;;  %v17815_v57 = vld [vmem:[%s24153_s1 + $0x19e0] ss:$28 sps:$4 sm:$0xff]  }
 0x463   :  { %15200 = vmatmul.mubr.msk.bf16.vlgmr.msra.gmra.mrb[16].mxu1 %vm10302_vm0, %v18417_v61 }
 0x464   :  { %11888 = vmatprep.mubr.bf16.mxu1 %v18477_v36  ;;  %12642 = vmatpush1.bf16.msra.mxu1 %v17757_v59  ;;  %v18426_v59 = vld [vmem:[%s24154_s0 + $0xe8] ss:$116 sps:$4 sm:$0xff]  }
 0x465   :  { %12234 = vmatpush1.bf16.msra.mxu0 %v17748_v58  ;;  %15238 = vmatprep.subr.bf16.mxu1 %v17763_v60  ;;  %v17818_v58 = vld [vmem:[%s24153_s1 + $0x600] ss:$28 sps:$4 sm:$0xff]  }
 0x466   :  { %12235 = vmatprep.subr.bf16.mxu0 %v17753_v15  ;;  %v17822_v15 = vld [vmem:[%s24153_s1 + $0x1a1c] ss:$28 sps:$4 sm:$0xff]  }
 0x467   :  { %v17819_v60 = vld [vmem:[%s24153_s1 + $0x440] ss:$28 sps:$4 sm:$0xff]  }
 0x469   :  { %12236 = vmatpush1.bf16.msra.mxu0 %v17751_v62  ;;  %v17823_v62 = vld [vmem:[%s24153_s1 + $0x638] ss:$28 sps:$4 sm:$0xff]  }
 0x46a   :  { %12237 = vmatprep.subr.bf16.mxu0 %v17756_v63  ;;  %v17827_v63 = vld [vmem:[%s24153_s1 + $0x1a54] ss:$28 sps:$4 sm:$0xff]  }
 0x46b   :  { %15201 = vmatmul.mubr.msk.bf16.gmra.mrb[20].mxu1 %vm10302_vm0, %v18418_v38 }
 0x46c   :  { %12673 = vmatprep.mubr.bf16.mxu1 %v18477_v36 }
 0x46d   :  { %12238 = vmatpush1.bf16.msra.mxu0 %v17754_v37  ;;  %v18427_v37 = vld [vmem:[%s24154_s0 + $0xc] ss:$116 sps:$4 sm:$0xff]  }
 0x46e   :  { %12239 = vmatprep.subr.bf16.mxu0 %v17762_v0  ;;  %v17824_v0 = vld [vmem:[%s24153_s1 + $0x478] ss:$28 sps:$4 sm:$0xff]  }
 0x471   :  { %12240 = vmatpush1.bf16.msra.mxu0 %v17760_v1  ;;  %v17828_v1 = vld [vmem:[%s24153_s1 + $0x670] ss:$28 sps:$4 sm:$0xff]  }
 0x472   :  { %12241 = vmatprep.subr.bf16.mxu0 %v17767_v41  ;;  %v17832_v41 = vld [vmem:[%s24153_s1 + $0x1a8c] ss:$28 sps:$4 sm:$0xff]  }
 0x473   :  { %15202 = vmatmul.mubr.msk.bf16.vlgmr.msra.gmra.mrb[24].mxu1 %vm10302_vm0, %v18417_v61  ;;  %v17820_v61 = vld [vmem:[%s24153_s1 + $0x1a18] ss:$28 sps:$4 sm:$0xff]  }
 0x474   :  { %15239 = vmatpush3.bf16.msra.mxu1 %v17764_v2  ;;  %12683 = vmatprep.mubr.bf16.mxu1 %v18477_v36  ;;  %v17782_v36 = vld [vmem:[%s24153_s1 + $0x185c] ss:$28 sps:$4 sm:$0xff]   ;;  %v17829_v2 = vld [vmem:[%s24153_s1 + $0x4b0] ss:$28 sps:$4 sm:$0xff]  }
 0x475   :  { %12242 = vmatpush1.bf16.msra.mxu0 %v17765_v3  ;;  %15240 = vmatprep.subr.bf16.mxu1 %v17768_v4  ;;  %v17830_v3 = vld [vmem:[%s24153_s1 + $0x1a88] ss:$28 sps:$4 sm:$0xff]  }
 0x476   :  { %12243 = vmatprep.subr.bf16.mxu0 %v17772_v6  ;;  %v17833_v4 = vld [vmem:[%s24153_s1 + $0x6a8] ss:$28 sps:$4 sm:$0xff]  }
 0x477   :  { %v17837_v6 = vld [vmem:[%s24153_s1 + $0x1ac4] ss:$28 sps:$4 sm:$0xff]  }
 0x478   :  { %15241 = vmatpush3.bf16.msra.mxu1 %v17769_v44  ;;  %v17834_v44 = vld [vmem:[%s24153_s1 + $0x4e8] ss:$28 sps:$4 sm:$0xff]  }
 0x479   :  { %12244 = vmatpush1.bf16.msra.mxu0 %v17770_v7  ;;  %15242 = vmatprep.subr.bf16.mxu1 %v17773_v8  ;;  %v17835_v7 = vld [vmem:[%s24153_s1 + $0x1ac0] ss:$28 sps:$4 sm:$0xff]  }
 0x47a   :  { %12245 = vmatprep.subr.bf16.mxu0 %v17777_v10  ;;  %v17838_v8 = vld [vmem:[%s24153_s1 + $0x6e0] ss:$28 sps:$4 sm:$0xff]  }
 0x47b   :  { %15203 = vmatmul.mubr.msk.bf16.gmra.mrb[28].mxu1 %vm10302_vm0, %v18418_v38  ;;  %v17825_v38 = vld [vmem:[%s24153_s1 + $0x1a50] ss:$28 sps:$4 sm:$0xff]   ;;  %v17842_v10 = vld [vmem:[%s24153_s1 + $0x1afc] ss:$28 sps:$4 sm:$0xff]  }
 0x47c   :  { %15243 = vmatpush3.bf16.msra.mxu1 %v17774_v23  ;;  %12726 = vmatprep.mubr.bf16.mxu1 %v18419_v19  ;;  %v17839_v23 = vld [vmem:[%s24153_s1 + $0x520] ss:$28 sps:$4 sm:$0xff]  }
 0x47d   :  { %12246 = vmatpush1.bf16.msra.mxu0 %v17775_v13  ;;  %15244 = vmatprep.subr.bf16.mxu1 %v17778_v14  ;;  %v17840_v13 = vld [vmem:[%s24153_s1 + $0x1af8] ss:$28 sps:$4 sm:$0xff]   ;;  %v18428_v19 = vld [vmem:[%s24154_s0 + $0x8] ss:$116 sps:$4 sm:$0xff]  }
 0x47e   :  { %12247 = vmatprep.subr.bf16.mxu0 %v17782_v36  ;;  %v17843_v14 = vld [vmem:[%s24153_s1 + $0x8d8] ss:$28 sps:$4 sm:$0xff]  }
 0x47f   :  { %v17847_v36 = vld [vmem:[%s24153_s1 + $0x1b34] ss:$28 sps:$4 sm:$0xff]  }
 0x480   :  { %15245 = vmatpush3.bf16.msra.mxu1 %v17779_v25  ;;  %v17844_v25 = vld [vmem:[%s24153_s1 + $0x718] ss:$28 sps:$4 sm:$0xff]  }
 0x481   :  { %12248 = vmatpush1.bf16.msra.mxu0 %v17780_v16  ;;  %15246 = vmatprep.subr.bf16.mxu1 %v17783_v17  ;;  %v17845_v16 = vld [vmem:[%s24153_s1 + $0x1b30] ss:$28 sps:$4 sm:$0xff]  }
 0x482   :  { %12270 = vmatprep.subr.bf16.mxu0 %v17787_v18  ;;  %v17848_v17 = vld [vmem:[%s24153_s1 + $0x910] ss:$28 sps:$4 sm:$0xff]  }
 0x483   :  { %v17852_v18 = vld [vmem:[%s24153_s1 + $0x1b6c] ss:$28 sps:$4 sm:$0xff]  }
 0x484   :  { %12250 = vmatmul.mubr.bf16.vlgmr.msra.gmra.mrb[8].mxu0 %v22438_v22  ;;  %15247 = vmatpush3.bf16.msra.mxu1 %v17784_v26  ;;  %v17849_v26 = vld [vmem:[%s24153_s1 + $0x750] ss:$28 sps:$4 sm:$0xff]  }
 0x485   :  { %12271 = vmatpush1.bf16.msra.mxu0 %v17785_v20  ;;  %15248 = vmatprep.subr.bf16.mxu1 %v17788_v21  ;;  %v17850_v20 = vld [vmem:[%s24153_s1 + $0x1b68] ss:$28 sps:$4 sm:$0xff]  }
 0x486   :  { %12272 = vmatprep.subr.bf16.mxu0 %v17792_v29  ;;  %12259 = vmatprep.mubr.bf16.mxu0 %v22456_v32  ;;  %v17853_v21 = vld [vmem:[%s24153_s1 + $0x948] ss:$28 sps:$4 sm:$0xff]  }
 0x487   :  { %v17857_v29 = vld [vmem:[%s24153_s1 + $0x1ba4] ss:$28 sps:$4 sm:$0xff]  }
 0x488   :  { %15249 = vmatpush3.bf16.msra.mxu1 %v17789_v27  ;;  %v18429_v27 = vld [vmem:[%s24154_s0 + $0xf4] ss:$116 sps:$4 sm:$0xff]  }
 0x489   :  { %12273 = vmatpush1.bf16.msra.mxu0 %v17790_v28  ;;  %15250 = vmatprep.subr.bf16.mxu1 %v17793_v30  ;;  %v17854_v28 = vld [vmem:[%s24153_s1 + $0x788] ss:$28 sps:$4 sm:$0xff]   ;;  %v17855_v30 = vld [vmem:[%s24153_s1 + $0x1ba0] ss:$28 sps:$4 sm:$0xff]  }
 0x48a   :  { %12274 = vmatprep.subr.bf16.mxu0 %v17797_v31  ;;  %v17858_v31 = vld [vmem:[%s24153_s1 + $0x980] ss:$28 sps:$4 sm:$0xff]  }
 0x48c   :  { %12260 = vmatmul.mubr.bf16.gmra.mrb[12].mxu0 %v22474_v53  ;;  %15251 = vmatpush3.bf16.msra.mxu1 %v17794_v33  ;;  %v17862_v33 = vld [vmem:[%s24153_s1 + $0x1bdc] ss:$28 sps:$4 sm:$0xff]  }
 0x48d   :  { %12275 = vmatpush1.bf16.msra.mxu0 %v17795_v50  ;;  %15252 = vmatprep.subr.bf16.mxu1 %v17798_v34  ;;  %v18430_v50 = vld [vmem:[%s24154_s0 + $0xf0] ss:$116 sps:$4 sm:$0xff]   ;;  %v17859_v34 = vld [vmem:[%s24153_s1 + $0x7c0] ss:$28 sps:$4 sm:$0xff]  }
 0x48e   :  { %12276 = vmatprep.subr.bf16.mxu0 %v17802_v35  ;;  %12302 = vmatprep.mubr.bf16.mxu0 %v22492_v43  ;;  %v17860_v35 = vld [vmem:[%s24153_s1 + $0x1bd8] ss:$28 sps:$4 sm:$0xff]  }
 0x490   :  { %15253 = vmatpush3.bf16.msra.mxu1 %v17799_v39  ;;  %v17863_v39 = vld [vmem:[%s24153_s1 + $0x9b8] ss:$28 sps:$4 sm:$0xff]  }
 0x491   :  { %12277 = vmatpush1.bf16.msra.mxu0 %v17800_v40  ;;  %15266 = vmatprep.subr.bf16.mxu1 %v17803_v56  ;;  %v17867_v40 = vld [vmem:[%s24153_s1 + $0x1c14] ss:$28 sps:$4 sm:$0xff]  }
 0x492   :  { %12278 = vmatprep.subr.bf16.mxu0 %v17807_v42  ;;  %v18431_v56 = vld [vmem:[%s24154_s0 + $0x14] ss:$116 sps:$4 sm:$0xff]  }
 0x493   :  { %12727 = vmatmul.mubr.bf16.vlgmr.msra.gmra.mrb[32].mxu1 %v18424_v9  ;;  %v17864_v42 = vld [vmem:[%s24153_s1 + $0x7f8] ss:$28 sps:$4 sm:$0xff]   ;;  %v17869_v9 = vld [vmem:[%s24153_s1 + $0x830] ss:$28 sps:$4 sm:$0xff]  }
 0x494   :  { %15267 = vmatpush3.bf16.msra.mxu1 %v17804_v45  ;;  %12734 = vmatprep.mubr.bf16.mxu1 %v18425_v12  ;;  %v17865_v45 = vld [vmem:[%s24153_s1 + $0x1c10] ss:$28 sps:$4 sm:$0xff]   ;;  %v17874_v12 = vld [vmem:[%s24153_s1 + $0x868] ss:$28 sps:$4 sm:$0xff]  }
 0x495   :  { %12279 = vmatpush1.bf16.msra.mxu0 %v17805_v46  ;;  %15268 = vmatprep.subr.bf16.mxu1 %v17808_v47  ;;  %v17868_v46 = vld [vmem:[%s24153_s1 + $0x9f0] ss:$28 sps:$4 sm:$0xff]  }
 0x496   :  { %12280 = vmatprep.subr.bf16.mxu0 %v17812_v48  ;;  %v17872_v47 = vld [vmem:[%s24153_s1 + $0x1c4c] ss:$28 sps:$4 sm:$0xff]  }
 0x497   :  { %v22678_v48 = vld [vmem:[%s24154_s0 + $0x38] ss:$116 sps:$4 sm:$0xff]  }
 0x498   :  { %15269 = vmatpush3.bf16.msra.mxu1 %v17809_v11  ;;  %v17870_v11 = vld [vmem:[%s24153_s1 + $0x1c48] ss:$28 sps:$4 sm:$0xff]  }
 0x499   :  { %12281 = vmatpush1.bf16.msra.mxu0 %v17810_v51  ;;  %15270 = vmatprep.subr.bf16.mxu1 %v17813_v52  ;;  %v17873_v51 = vld [vmem:[%s24153_s1 + $0xa28] ss:$28 sps:$4 sm:$0xff]  }
 0x49a   :  { %12282 = vmatprep.subr.bf16.mxu0 %v17817_v54  ;;  %v17877_v52 = vld [vmem:[%s24153_s1 + $0x1c84] ss:$28 sps:$4 sm:$0xff]  }
 0x49b   :  { %12735 = vmatmul.mubr.bf16.gmra.mrb[36].mxu1 %v18426_v59  ;;  %v22696_v54 = vld [vmem:[%s24154_s0 + $0x124] ss:$116 sps:$4 sm:$0xff]   ;;  %v17879_v59 = vld [vmem:[%s24153_s1 + $0x8a0] ss:$28 sps:$4 sm:$0xff]  }
 0x49c   :  { %15271 = vmatpush3.bf16.msra.mxu1 %v17814_v55  ;;  %12775 = vmatprep.mubr.bf16.mxu1 %v18427_v37  ;;  %v17875_v55 = vld [vmem:[%s24153_s1 + $0x1c80] ss:$28 sps:$4 sm:$0xff]   ;;  %v17884_v37 = vld [vmem:[%s24153_s1 + $0xa98] ss:$28 sps:$4 sm:$0xff]  }
 0x49d   :  { %12283 = vmatpush1.bf16.msra.mxu0 %v17815_v57  ;;  %15272 = vmatprep.subr.bf16.mxu1 %v17818_v58  ;;  %v17878_v57 = vld [vmem:[%s24153_s1 + $0xa60] ss:$28 sps:$4 sm:$0xff]  }
 0x49e   :  { %12284 = vmatprep.subr.bf16.mxu0 %v17822_v15  ;;  %v17882_v58 = vld [vmem:[%s24153_s1 + $0x1cbc] ss:$28 sps:$4 sm:$0xff]   ;;  %v22714_v15 = vld [vmem:[%s24154_s0 + $0x120] ss:$116 sps:$4 sm:$0xff]  }
 0x4a0   :  { %15273 = vmatpush3.bf16.msra.mxu1 %v17819_v60  ;;  %v17880_v60 = vld [vmem:[%s24153_s1 + $0x1cb8] ss:$28 sps:$4 sm:$0xff]  }
 0x4a1   :  { %12285 = vmatpush1.bf16.msra.mxu0 %v17820_v61  ;;  %15274 = vmatprep.subr.bf16.mxu1 %v17823_v62  ;;  %v17883_v61 = vld [vmem:[%s24153_s1 + $0xc58] ss:$28 sps:$4 sm:$0xff]  }
 0x4a2   :  { %12286 = vmatprep.subr.bf16.mxu0 %v17827_v63  ;;  %v17887_v62 = vld [vmem:[%s24153_s1 + $0x1cf4] ss:$28 sps:$4 sm:$0xff]   ;;  %v22732_v63 = vld [vmem:[%s24154_s0 + $0x44] ss:$116 sps:$4 sm:$0xff]  }
 0x4a4   :  { %15275 = vmatpush3.bf16.msra.mxu1 %v17824_v0  ;;  %v17885_v0 = vld [vmem:[%s24153_s1 + $0x1cf0] ss:$28 sps:$4 sm:$0xff]  }
 0x4a5   :  { %12287 = vmatpush1.bf16.msra.mxu0 %v17825_v38  ;;  %15276 = vmatprep.subr.bf16.mxu1 %v17828_v1  ;;  %v17888_v38 = vld [vmem:[%s24153_s1 + $0xc90] ss:$28 sps:$4 sm:$0xff]  }
 0x4a6   :  { %12288 = vmatprep.subr.bf16.mxu0 %v17832_v41  ;;  %v17892_v1 = vld [vmem:[%s24153_s1 + $0x1d2c] ss:$28 sps:$4 sm:$0xff]   ;;  %v18436_v41 = vld [vmem:[%s24154_s0 + $0x10] ss:$116 sps:$4 sm:$0xff]  }
 0x4a8   :  { %15277 = vmatpush3.bf16.msra.mxu1 %v17829_v2  ;;  %v17889_v2 = vld [vmem:[%s24153_s1 + $0xad0] ss:$28 sps:$4 sm:$0xff]  }
 0x4a9   :  { %12289 = vmatpush1.bf16.msra.mxu0 %v17830_v3  ;;  %15278 = vmatprep.subr.bf16.mxu1 %v17833_v4  ;;  %v17890_v3 = vld [vmem:[%s24153_s1 + $0x1d28] ss:$28 sps:$4 sm:$0xff]  }
 0x4aa   :  { %12290 = vmatprep.subr.bf16.mxu0 %v17837_v6  ;;  %v17893_v4 = vld [vmem:[%s24153_s1 + $0xcc8] ss:$28 sps:$4 sm:$0xff]  }
 0x4ab   :  { %v17897_v6 = vld [vmem:[%s24153_s1 + $0x1d64] ss:$28 sps:$4 sm:$0xff]  }
 0x4ac   :  { %15279 = vmatpush3.bf16.msra.mxu1 %v17834_v44  ;;  %v18437_v44 = vld [vmem:[%s24154_s0 + $0xfc] ss:$116 sps:$4 sm:$0xff]  }
 0x4ad   :  { %12291 = vmatpush1.bf16.msra.mxu0 %v17835_v7  ;;  %15280 = vmatprep.subr.bf16.mxu1 %v17838_v8  ;;  %v17894_v7 = vld [vmem:[%s24153_s1 + $0xb08] ss:$28 sps:$4 sm:$0xff]   ;;  %v17895_v8 = vld [vmem:[%s24153_s1 + $0x1d60] ss:$28 sps:$4 sm:$0xff]  }
 0x4ae   :  { %12292 = vmatprep.subr.bf16.mxu0 %v17842_v10  ;;  %v17898_v10 = vld [vmem:[%s24153_s1 + $0xd00] ss:$28 sps:$4 sm:$0xff]  }
 0x4b0   :  { %15281 = vmatpush3.bf16.msra.mxu1 %v17839_v23  ;;  %v17902_v23 = vld [vmem:[%s24153_s1 + $0x1d9c] ss:$28 sps:$4 sm:$0xff]  }
 0x4b1   :  { %12293 = vmatpush1.bf16.msra.mxu0 %v17840_v13  ;;  %15294 = vmatprep.subr.bf16.mxu1 %v17843_v14  ;;  %v18438_v13 = vld [vmem:[%s24154_s0 + $0xf8] ss:$116 sps:$4 sm:$0xff]   ;;  %v17899_v14 = vld [vmem:[%s24153_s1 + $0xb40] ss:$28 sps:$4 sm:$0xff]  }
 0x4b2   :  { %12294 = vmatprep.subr.bf16.mxu0 %v17847_v36  ;;  %v17900_v36 = vld [vmem:[%s24153_s1 + $0x1d98] ss:$28 sps:$4 sm:$0xff]  }
 0x4b3   :  { %12776 = vmatmul.mubr.bf16.vlgmr.msra.gmra.mrb[40].mxu1 %v18428_v19  ;;  %v17905_v19 = vld [vmem:[%s24153_s1 + $0x1dd0] ss:$28 sps:$4 sm:$0xff]  }
 0x4b4   :  { %15295 = vmatpush3.bf16.msra.mxu1 %v17844_v25  ;;  %12783 = vmatprep.mubr.bf16.mxu1 %v18429_v27  ;;  %v17903_v25 = vld [vmem:[%s24153_s1 + $0xd38] ss:$28 sps:$4 sm:$0xff]   ;;  %v17913_v27 = vld [vmem:[%s24153_s1 + $0xda8] ss:$28 sps:$4 sm:$0xff]  }
 0x4b5   :  { %12295 = vmatpush1.bf16.msra.mxu0 %v17845_v16  ;;  %15296 = vmatprep.subr.bf16.mxu1 %v17848_v17  ;;  %v17907_v16 = vld [vmem:[%s24153_s1 + $0x1dd4] ss:$28 sps:$4 sm:$0xff]  }
 0x4b6   :  { %12296 = vmatprep.subr.bf16.mxu0 %v17852_v18  ;;  %v18439_v17 = vld [vmem:[%s24154_s0 + $0x1c] ss:$116 sps:$4 sm:$0xff]   ;;  %v17904_v18 = vld [vmem:[%s24153_s1 + $0xb78] ss:$28 sps:$4 sm:$0xff]  }
 0x4b8   :  { %15297 = vmatpush3.bf16.msra.mxu1 %v17849_v26  ;;  %v17908_v26 = vld [vmem:[%s24153_s1 + $0xd70] ss:$28 sps:$4 sm:$0xff]  }
 0x4b9   :  { %12297 = vmatpush1.bf16.msra.mxu0 %v17850_v20  ;;  %15298 = vmatprep.subr.bf16.mxu1 %v17853_v21  ;;  %v17912_v20 = vld [vmem:[%s24153_s1 + $0x1e0c] ss:$28 sps:$4 sm:$0xff]  }
 0x4ba   :  { %12298 = vmatprep.subr.bf16.mxu0 %v17857_v29  ;;  %v17909_v21 = vld [vmem:[%s24153_s1 + $0xbb0] ss:$28 sps:$4 sm:$0xff]   ;;  %v17910_v29 = vld [vmem:[%s24153_s1 + $0x1e08] ss:$28 sps:$4 sm:$0xff]  }
 0x4bb   :  { %12784 = vmatmul.mubr.bf16.gmra.mrb[44].mxu1 %v18430_v50  ;;  %v17922_v50 = vld [vmem:[%s24153_s1 + $0x1e7c] ss:$28 sps:$4 sm:$0xff]  }
 0x4bc   :  { %15299 = vmatpush3.bf16.msra.mxu1 %v17854_v28  ;;  %12824 = vmatprep.mubr.bf16.mxu1 %v18431_v56  ;;  %v17917_v28 = vld [vmem:[%s24153_s1 + $0x1e44] ss:$28 sps:$4 sm:$0xff]   ;;  %v17924_v56 = vld [vmem:[%s24153_s1 + $0xe18] ss:$28 sps:$4 sm:$0xff]  }
 0x4bd   :  { %12299 = vmatpush1.bf16.msra.mxu0 %v17855_v30  ;;  %15300 = vmatprep.subr.bf16.mxu1 %v17858_v31  ;;  %v17914_v30 = vld [vmem:[%s24153_s1 + $0xbe8] ss:$28 sps:$4 sm:$0xff]   ;;  %v17915_v31 = vld [vmem:[%s24153_s1 + $0x1e40] ss:$28 sps:$4 sm:$0xff]  }
 0x4be   :  { %12300 = vmatprep.subr.bf16.mxu0 %v17862_v33  ;;  %v17918_v33 = vld [vmem:[%s24153_s1 + $0xde0] ss:$28 sps:$4 sm:$0xff]  }
 0x4c0   :  { %15301 = vmatpush3.bf16.msra.mxu1 %v17859_v34  ;;  %v17919_v34 = vld [vmem:[%s24153_s1 + $0xc20] ss:$28 sps:$4 sm:$0xff]  }
 0x4c1   :  { %12301 = vmatpush1.bf16.msra.mxu0 %v17860_v35  ;;  %15302 = vmatprep.subr.bf16.mxu1 %v17863_v39  ;;  %v17920_v35 = vld [vmem:[%s24153_s1 + $0x1e78] ss:$28 sps:$4 sm:$0xff]  }
 0x4c2   :  { %12323 = vmatprep.subr.bf16.mxu0 %v17867_v40  ;;  %v17923_v39 = vld [vmem:[%s24153_s1 + $0xfd8] ss:$28 sps:$4 sm:$0xff]  }
 0x4c3   :  { %v17927_v40 = vld [vmem:[%s24153_s1 + $0x1eb4] ss:$28 sps:$4 sm:$0xff]  }
 0x4c4   :  { %12303 = vmatmul.mubr.bf16.vlgmr.msra.gmra.mrb[8].mxu0 %v22678_v48  ;;  %15303 = vmatpush3.bf16.msra.mxu1 %v17864_v42  ;;  %v17925_v42 = vld [vmem:[%s24153_s1 + $0x1eb0] ss:$28 sps:$4 sm:$0xff]  }
 0x4c5   :  { %12324 = vmatpush1.bf16.msra.mxu0 %v17865_v45  ;;  %15304 = vmatprep.subr.bf16.mxu1 %v17868_v46  ;;  %v17928_v45 = vld [vmem:[%s24153_s1 + $0x1010] ss:$28 sps:$4 sm:$0xff]  }
 0x4c6   :  { %12325 = vmatprep.subr.bf16.mxu0 %v17872_v47  ;;  %12312 = vmatprep.mubr.bf16.mxu0 %v22696_v54  ;;  %v17932_v46 = vld [vmem:[%s24153_s1 + $0x1eec] ss:$28 sps:$4 sm:$0xff]  }
 0x4c7   :  { %v18440_v47 = vld [vmem:[%s24154_s0 + $0x18] ss:$116 sps:$4 sm:$0xff]  }
 0x4c8   :  { %15305 = vmatpush3.bf16.msra.mxu1 %v17869_v9  ;;  %v17929_v9 = vld [vmem:[%s24153_s1 + $0xe50] ss:$28 sps:$4 sm:$0xff]  }
 0x4c9   :  { %12326 = vmatpush1.bf16.msra.mxu0 %v17870_v11  ;;  %15306 = vmatprep.subr.bf16.mxu1 %v17873_v51  ;;  %v17930_v11 = vld [vmem:[%s24153_s1 + $0x1ee8] ss:$28 sps:$4 sm:$0xff]  }
 0x4ca   :  { %12327 = vmatprep.subr.bf16.mxu0 %v17877_v52  ;;  %v17933_v51 = vld [vmem:[%s24153_s1 + $0x1048] ss:$28 sps:$4 sm:$0xff]  }
 0x4cb   :  { %v17937_v52 = vld [vmem:[%s24153_s1 + $0x1f24] ss:$28 sps:$4 sm:$0xff]  }
 0x4cc   :  { %12313 = vmatmul.mubr.bf16.gmra.mrb[12].mxu0 %v22714_v15  ;;  %15307 = vmatpush3.bf16.msra.mxu1 %v17874_v12  ;;  %v18441_v12 = vld [vmem:[%s24154_s0 + $0x104] ss:$116 sps:$4 sm:$0xff]  }
 0x4cd   :  { %12328 = vmatpush1.bf16.msra.mxu0 %v17875_v55  ;;  %15308 = vmatprep.subr.bf16.mxu1 %v17878_v57  ;;  %v17934_v55 = vld [vmem:[%s24153_s1 + $0xe88] ss:$28 sps:$4 sm:$0xff]   ;;  %v17935_v57 = vld [vmem:[%s24153_s1 + $0x1f20] ss:$28 sps:$4 sm:$0xff]  }
 0x4ce   :  { %12329 = vmatprep.subr.bf16.mxu0 %v17882_v58  ;;  %12355 = vmatprep.mubr.bf16.mxu0 %v22732_v63  ;;  %v17938_v58 = vld [vmem:[%s24153_s1 + $0x1080] ss:$28 sps:$4 sm:$0xff]  }
 0x4d0   :  { %15309 = vmatpush3.bf16.msra.mxu1 %v17879_v59  ;;  %v17942_v59 = vld [vmem:[%s24153_s1 + $0x1f5c] ss:$28 sps:$4 sm:$0xff]  }
 0x4d1   :  { %12330 = vmatpush1.bf16.msra.mxu0 %v17880_v60  ;;  %15322 = vmatprep.subr.bf16.mxu1 %v17883_v61  ;;  %v18442_v60 = vld [vmem:[%s24154_s0 + $0x100] ss:$116 sps:$4 sm:$0xff]  }
 0x4d2   :  { %12331 = vmatprep.subr.bf16.mxu0 %v17887_v62  ;;  %v17939_v61 = vld [vmem:[%s24153_s1 + $0xec0] ss:$28 sps:$4 sm:$0xff]   ;;  %v17940_v62 = vld [vmem:[%s24153_s1 + $0x1f58] ss:$28 sps:$4 sm:$0xff]  }
 0x4d3   :  { %12825 = vmatmul.mubr.bf16.vlgmr.msra.gmra.mrb[48].mxu1 %v18436_v41  ;;  %v17945_v41 = vld [vmem:[%s24153_s1 + $0x1f90] ss:$28 sps:$4 sm:$0xff]  }
 0x4d4   :  { %15323 = vmatpush3.bf16.msra.mxu1 %v17884_v37  ;;  %12832 = vmatprep.mubr.bf16.mxu1 %v18437_v44  ;;  %v17943_v37 = vld [vmem:[%s24153_s1 + $0x10b8] ss:$28 sps:$4 sm:$0xff]   ;;  %v17950_v44 = vld [vmem:[%s24153_s1 + $0x1fc8] ss:$28 sps:$4 sm:$0xff]  }
 0x4d5   :  { %12332 = vmatpush1.bf16.msra.mxu0 %v17885_v0  ;;  %15324 = vmatprep.subr.bf16.mxu1 %v17888_v38  ;;  %v17947_v0 = vld [vmem:[%s24153_s1 + $0x1f94] ss:$28 sps:$4 sm:$0xff]   ;;  %v18443_v38 = vld [vmem:[%s24154_s0 + $0x24] ss:$116 sps:$4 sm:$0xff]  }
 0x4d6   :  { %12333 = vmatprep.subr.bf16.mxu0 %v17892_v1  ;;  %v17944_v1 = vld [vmem:[%s24153_s1 + $0xef8] ss:$28 sps:$4 sm:$0xff]  }
 0x4d8   :  { %15325 = vmatpush3.bf16.msra.mxu1 %v17889_v2  ;;  %v17948_v2 = vld [vmem:[%s24153_s1 + $0x10f0] ss:$28 sps:$4 sm:$0xff]  }
 0x4d9   :  { %12334 = vmatpush1.bf16.msra.mxu0 %v17890_v3  ;;  %15326 = vmatprep.subr.bf16.mxu1 %v17893_v4  ;;  %v17952_v3 = vld [vmem:[%s24153_s1 + $0x1fcc] ss:$28 sps:$4 sm:$0xff]   ;;  %v22918_v4 = vld [vmem:[%s24154_s0 + $0x40] ss:$116 sps:$4 sm:$0xff]  }
 0x4da   :  { %12335 = vmatprep.subr.bf16.mxu0 %v17897_v6  ;;  %v17949_v6 = vld [vmem:[%s24153_s1 + $0xf30] ss:$28 sps:$4 sm:$0xff]  }
 0x4db   :  { %12833 = vmatmul.mubr.bf16.gmra.mrb[52].mxu1 %v18438_v13  ;;  %v17955_v13 = vld [vmem:[%s24153_s1 + $0x2000] ss:$28 sps:$4 sm:$0xff]  }
 0x4dc   :  { %15327 = vmatpush3.bf16.msra.mxu1 %v17894_v7  ;;  %12873 = vmatprep.mubr.bf16.mxu1 %v18439_v17  ;;  %v17953_v7 = vld [vmem:[%s24153_s1 + $0x1128] ss:$28 sps:$4 sm:$0xff]   ;;  %v17960_v17 = vld [vmem:[%s24153_s1 + $0x2038] ss:$28 sps:$4 sm:$0xff]  }
 0x4dd   :  { %12336 = vmatpush1.bf16.msra.mxu0 %v17895_v8  ;;  %15328 = vmatprep.subr.bf16.mxu1 %v17898_v10  ;;  %v17957_v8 = vld [vmem:[%s24153_s1 + $0x2004] ss:$28 sps:$4 sm:$0xff]  }
 0x4de   :  { %12337 = vmatprep.subr.bf16.mxu0 %v17902_v23  ;;  %v22936_v10 = vld [vmem:[%s24154_s0 + $0x12c] ss:$116 sps:$4 sm:$0xff]   ;;  %v17954_v23 = vld [vmem:[%s24153_s1 + $0xf68] ss:$28 sps:$4 sm:$0xff]  }
 0x4e0   :  { %15329 = vmatpush3.bf16.msra.mxu1 %v17899_v14  ;;  %v17958_v14 = vld [vmem:[%s24153_s1 + $0x1160] ss:$28 sps:$4 sm:$0xff]  }
 0x4e1   :  { %12338 = vmatpush1.bf16.msra.mxu0 %v17900_v36  ;;  %15330 = vmatprep.subr.bf16.mxu1 %v17903_v25  ;;  %v17962_v36 = vld [vmem:[%s24153_s1 + $0x203c] ss:$28 sps:$4 sm:$0xff]  }
 0x4e2   :  { %12339 = vmatprep.subr.bf16.mxu0 %v17907_v16  ;;  %v22954_v25 = vld [vmem:[%s24154_s0 + $0x128] ss:$116 sps:$4 sm:$0xff]  }
 0x4e3   :  { %v17959_v16 = vld [vmem:[%s24153_s1 + $0xfa0] ss:$28 sps:$4 sm:$0xff]  }
 0x4e4   :  { %15331 = vmatpush3.bf16.msra.mxu1 %v17904_v18  ;;  %v17963_v18 = vld [vmem:[%s24153_s1 + $0x1358] ss:$28 sps:$4 sm:$0xff]  }
 0x4e5   :  { %12340 = vmatpush1.bf16.msra.mxu0 %v17905_v19  ;;  %15332 = vmatprep.subr.bf16.mxu1 %v17908_v26  ;;  %v17967_v19 = vld [vmem:[%s24153_s1 + $0x2074] ss:$28 sps:$4 sm:$0xff]   ;;  %v22972_v26 = vld [vmem:[%s24154_s0 + $0x4c] ss:$116 sps:$4 sm:$0xff]  }
 0x4e6   :  { %12341 = vmatprep.subr.bf16.mxu0 %v17912_v20  ;;  %v17964_v20 = vld [vmem:[%s24153_s1 + $0x1198] ss:$28 sps:$4 sm:$0xff]  }
 0x4e8   :  { %15333 = vmatpush3.bf16.msra.mxu1 %v17909_v21  ;;  %v17965_v21 = vld [vmem:[%s24153_s1 + $0x2070] ss:$28 sps:$4 sm:$0xff]  }
 0x4e9   :  { %12342 = vmatpush1.bf16.msra.mxu0 %v17910_v29  ;;  %15334 = vmatprep.subr.bf16.mxu1 %v17913_v27  ;;  %v17968_v29 = vld [vmem:[%s24153_s1 + $0x1390] ss:$28 sps:$4 sm:$0xff]  }
 0x4ea   :  { %12343 = vmatprep.subr.bf16.mxu0 %v17917_v28  ;;  %v17972_v27 = vld [vmem:[%s24153_s1 + $0x20ac] ss:$28 sps:$4 sm:$0xff]   ;;  %v18448_v28 = vld [vmem:[%s24154_s0 + $0x20] ss:$116 sps:$4 sm:$0xff]  }
 0x4ec   :  { %15335 = vmatpush3.bf16.msra.mxu1 %v17914_v30  ;;  %v17969_v30 = vld [vmem:[%s24153_s1 + $0x11d0] ss:$28 sps:$4 sm:$0xff]  }
 0x4ed   :  { %12344 = vmatpush1.bf16.msra.mxu0 %v17915_v31  ;;  %15336 = vmatprep.subr.bf16.mxu1 %v17918_v33  ;;  %v17970_v31 = vld [vmem:[%s24153_s1 + $0x20a8] ss:$28 sps:$4 sm:$0xff]  }
 0x4ee   :  { %12345 = vmatprep.subr.bf16.mxu0 %v17922_v50  ;;  %v17973_v33 = vld [vmem:[%s24153_s1 + $0x13c8] ss:$28 sps:$4 sm:$0xff]  }
 0x4ef   :  { %v17977_v50 = vld [vmem:[%s24153_s1 + $0x20e4] ss:$28 sps:$4 sm:$0xff]  }
 0x4f0   :  { %15337 = vmatpush3.bf16.msra.mxu1 %v17919_v34  ;;  %v18449_v34 = vld [vmem:[%s24154_s0 + $0x10c] ss:$116 sps:$4 sm:$0xff]  }
 0x4f1   :  { %12346 = vmatpush1.bf16.msra.mxu0 %v17920_v35  ;;  %15350 = vmatprep.subr.bf16.mxu1 %v17923_v39  ;;  %v17974_v35 = vld [vmem:[%s24153_s1 + $0x1208] ss:$28 sps:$4 sm:$0xff]   ;;  %v17975_v39 = vld [vmem:[%s24153_s1 + $0x20e0] ss:$28 sps:$4 sm:$0xff]  }
 0x4f2   :  { %12347 = vmatprep.subr.bf16.mxu0 %v17927_v40  ;;  %v17978_v40 = vld [vmem:[%s24153_s1 + $0x1400] ss:$28 sps:$4 sm:$0xff]  }
 0x4f3   :  { %12874 = vmatmul.mubr.bf16.vlgmr.msra.gmra.mrb[56].mxu1 %v18440_v47  ;;  %v17983_v47 = vld [vmem:[%s24153_s1 + $0x1438] ss:$28 sps:$4 sm:$0xff]  }
 0x4f4   :  { %15351 = vmatpush3.bf16.msra.mxu1 %v17924_v56  ;;  %12881 = vmatprep.mubr.bf16.mxu1 %v18441_v12  ;;  %v17982_v56 = vld [vmem:[%s24153_s1 + $0x211c] ss:$28 sps:$4 sm:$0xff]   ;;  %v17988_v12 = vld [vmem:[%s24153_s1 + $0x1470] ss:$28 sps:$4 sm:$0xff]  }
 0x4f5   :  { %12348 = vmatpush1.bf16.msra.mxu0 %v17925_v42  ;;  %15352 = vmatprep.subr.bf16.mxu1 %v17928_v45  ;;  %v18450_v42 = vld [vmem:[%s24154_s0 + $0x108] ss:$116 sps:$4 sm:$0xff]  }
 0x4f6   :  { %12349 = vmatprep.subr.bf16.mxu0 %v17932_v46  ;;  %v17979_v45 = vld [vmem:[%s24153_s1 + $0x1240] ss:$28 sps:$4 sm:$0xff]   ;;  %v17980_v46 = vld [vmem:[%s24153_s1 + $0x2118] ss:$28 sps:$4 sm:$0xff]  }
 0x4f8   :  { %15353 = vmatpush3.bf16.msra.mxu1 %v17929_v9  ;;  %v17987_v9 = vld [vmem:[%s24153_s1 + $0x2154] ss:$28 sps:$4 sm:$0xff]  }
 0x4f9   :  { %12350 = vmatpush1.bf16.msra.mxu0 %v17930_v11  ;;  %15354 = vmatprep.subr.bf16.mxu1 %v17933_v51  ;;  %v18451_v11 = vld [vmem:[%s24154_s0 + $0x2c] ss:$116 sps:$4 sm:$0xff]   ;;  %v17984_v51 = vld [vmem:[%s24153_s1 + $0x1278] ss:$28 sps:$4 sm:$0xff]  }
 0x4fa   :  { %12351 = vmatprep.subr.bf16.mxu0 %v17937_v52  ;;  %v17985_v52 = vld [vmem:[%s24153_s1 + $0x2150] ss:$28 sps:$4 sm:$0xff]  }
 0x4fb   :  { %12882 = vmatmul.mubr.bf16.gmra.mrb[60].mxu1 %v18442_v60  ;;  %v17997_v60 = vld [vmem:[%s24153_s1 + $0x21c4] ss:$28 sps:$4 sm:$0xff]  }
 0x4fc   :  { %15355 = vmatpush3.bf16.msra.mxu1 %v17934_v55  ;;  %12922 = vmatprep.mubr.bf16.mxu1 %v18443_v38  ;;  %v17992_v55 = vld [vmem:[%s24153_s1 + $0x218c] ss:$28 sps:$4 sm:$0xff]   ;;  %v17999_v38 = vld [vmem:[%s24153_s1 + $0x1320] ss:$28 sps:$4 sm:$0xff]  }
 0x4fd   :  { %12352 = vmatpush1.bf16.msra.mxu0 %v17935_v57  ;;  %15356 = vmatprep.subr.bf16.mxu1 %v17938_v58  ;;  %v17989_v57 = vld [vmem:[%s24153_s1 + $0x12b0] ss:$28 sps:$4 sm:$0xff]   ;;  %v17990_v58 = vld [vmem:[%s24153_s1 + $0x2188] ss:$28 sps:$4 sm:$0xff]  }
 0x4fe   :  { %12353 = vmatprep.subr.bf16.mxu0 %v17942_v59  ;;  %v17993_v59 = vld [vmem:[%s24153_s1 + $0x14a8] ss:$28 sps:$4 sm:$0xff]  }
 0x500   :  { %15357 = vmatpush3.bf16.msra.mxu1 %v17939_v61  ;;  %v17994_v61 = vld [vmem:[%s24153_s1 + $0x12e8] ss:$28 sps:$4 sm:$0xff]  }
 0x501   :  { %12354 = vmatpush1.bf16.msra.mxu0 %v17940_v62  ;;  %15358 = vmatprep.subr.bf16.mxu1 %v17943_v37  ;;  %v17995_v62 = vld [vmem:[%s24153_s1 + $0x21c0] ss:$28 sps:$4 sm:$0xff]  }
 0x502   :  { %12376 = vmatprep.subr.bf16.mxu0 %v17947_v0  ;;  %v17998_v37 = vld [vmem:[%s24153_s1 + $0x14e0] ss:$28 sps:$4 sm:$0xff]  }
 0x503   :  { %v18002_v0 = vld [vmem:[%s24153_s1 + $0x21fc] ss:$28 sps:$4 sm:$0xff]  }
 0x504   :  { %12356 = vmatmul.mubr.bf16.vlgmr.msra.gmra.mrb[8].mxu0 %v22918_v4  ;;  %15359 = vmatpush3.bf16.msra.mxu1 %v17944_v1  ;;  %v18000_v1 = vld [vmem:[%s24153_s1 + $0x21f8] ss:$28 sps:$4 sm:$0xff]  }
 0x505   :  { %12377 = vmatpush1.bf16.msra.mxu0 %v17945_v41  ;;  %15360 = vmatprep.subr.bf16.mxu1 %v17948_v2  ;;  %v18003_v41 = vld [vmem:[%s24153_s1 + $0x16d8] ss:$28 sps:$4 sm:$0xff]  }
 0x506   :  { %12378 = vmatprep.subr.bf16.mxu0 %v17952_v3  ;;  %12365 = vmatprep.mubr.bf16.mxu0 %v22936_v10  ;;  %v18007_v2 = vld [vmem:[%s24153_s1 + $0x2234] ss:$28 sps:$4 sm:$0xff]   ;;  %v1887_v3 = vsub.s32 2, %v21570_v5 }
 0x508   :  { %15361 = vmatpush3.bf16.msra.mxu1 %v17949_v6  ;;  %v18004_v6 = vld [vmem:[%s24153_s1 + $0x1518] ss:$28 sps:$4 sm:$0xff]  }
 0x509   :  { %12379 = vmatpush1.bf16.msra.mxu0 %v17950_v44  ;;  %15362 = vmatprep.subr.bf16.mxu1 %v17953_v7  ;;  %v18005_v44 = vld [vmem:[%s24153_s1 + $0x2230] ss:$28 sps:$4 sm:$0xff]   ;;  %v1891_v7 = vsub.s32 3, %v21570_v5 }
 0x50a   :  { %12380 = vmatprep.subr.bf16.mxu0 %v17957_v8  ;;  %v18008_v8 = vld [vmem:[%s24153_s1 + $0x1710] ss:$28 sps:$4 sm:$0xff]  }
 0x50c   :  { %12366 = vmatmul.mubr.bf16.gmra.mrb[12].mxu0 %v22954_v25  ;;  %15363 = vmatpush3.bf16.msra.mxu1 %v17954_v23  ;;  %v18012_v23 = vld [vmem:[%s24153_s1 + $0x226c] ss:$28 sps:$4 sm:$0xff]  }
 0x50d   :  { %12381 = vmatpush1.bf16.msra.mxu0 %v17955_v13  ;;  %15364 = vmatprep.subr.bf16.mxu1 %v17958_v14  ;;  %v23101_v13 = vld [vmem:[%s24155_s2] sm:$0xff] }
 0x50e   :  { %12382 = vmatprep.subr.bf16.mxu0 %v17962_v36  ;;  %12408 = vmatprep.mubr.bf16.mxu0 %v22972_v26  ;;  %v1888_v14 = vrot.slane %v23101_v13, %v1887_v3  ;;  %v1892_v36 = vrot.slane %v23101_v13, %v1891_v7 }
 0x510   :  { %15365 = vmatpush3.bf16.msra.mxu1 %v17959_v16  ;;  %v18009_v16 = vld [vmem:[%s24153_s1 + $0x1550] ss:$28 sps:$4 sm:$0xff]  }
 0x511   :  { %12383 = vmatpush1.bf16.msra.mxu0 %v17960_v17  ;;  %15378 = vmatprep.subr.bf16.mxu1 %v17963_v18  ;;  %v18010_v17 = vld [vmem:[%s24153_s1 + $0x2268] ss:$28 sps:$4 sm:$0xff]  }
 0x512   :  { %12384 = vmatprep.subr.bf16.mxu0 %v17967_v19  ;;  %v18017_v18 = vld [vmem:[%s24153_s1 + $0x22a4] ss:$28 sps:$4 sm:$0xff]  }
 0x513   :  { %12923 = vmatmul.mubr.bf16.vlgmr.msra.gmra.mrb[64].mxu1 %v18448_v28  ;;  %v18014_v28 = vld [vmem:[%s24153_s1 + $0x1588] ss:$28 sps:$4 sm:$0xff]  }
 0x514   :  { %15379 = vmatpush3.bf16.msra.mxu1 %v17964_v20  ;;  %12930 = vmatprep.mubr.bf16.mxu1 %v18449_v34  ;;  %v18022_v34 = vld [vmem:[%s24153_s1 + $0x22dc] ss:$28 sps:$4 sm:$0xff]  }
 0x515   :  { %12385 = vmatpush1.bf16.msra.mxu0 %v17965_v21  ;;  %15380 = vmatprep.subr.bf16.mxu1 %v17968_v29 }
 0x516   :  { %12386 = vmatprep.subr.bf16.mxu0 %v17972_v27 }
 0x518   :  { %15381 = vmatpush3.bf16.msra.mxu1 %v17969_v30  ;;  %v18015_v30 = vld [vmem:[%s24153_s1 + $0x22a0] ss:$28 sps:$4 sm:$0xff]  }
 0x519   :  { %12387 = vmatpush1.bf16.msra.mxu0 %v17970_v31  ;;  %15382 = vmatprep.subr.bf16.mxu1 %v17973_v33 }
 0x51a   :  { %12388 = vmatprep.subr.bf16.mxu0 %v17977_v50 }
 0x51b   :  { %12931 = vmatmul.mubr.bf16.gmra.mrb[68].mxu1 %v18450_v42 }
 0x51c   :  { %15383 = vmatpush3.bf16.msra.mxu1 %v17974_v35  ;;  %12971 = vmatprep.mubr.bf16.mxu1 %v18451_v11  ;;  %v18027_v11 = vld [vmem:[%s24153_s1 + $0x2314] ss:$28 sps:$4 sm:$0xff]  }
 0x51d   :  { %12389 = vmatpush1.bf16.msra.mxu0 %v17975_v39  ;;  %15384 = vmatprep.subr.bf16.mxu1 %v17978_v40 }
 0x51e   :  { %12390 = vmatprep.subr.bf16.mxu0 %v17982_v56  ;;  %v18453_v56 = vld [vmem:[%s24154_s0 + $0x110] ss:$116 sps:$4 sm:$0xff]  }
 0x520   :  { %15385 = vmatpush3.bf16.msra.mxu1 %v17979_v45 }
 0x521   :  { %12391 = vmatpush1.bf16.msra.mxu0 %v17980_v46  ;;  %15386 = vmatprep.subr.bf16.mxu1 %v17983_v47  ;;  %v18019_v46 = vld [vmem:[%s24153_s1 + $0x15c0] ss:$28 sps:$4 sm:$0xff]   ;;  %v18020_v47 = vld [vmem:[%s24153_s1 + $0x22d8] ss:$28 sps:$4 sm:$0xff]  }
 0x522   :  { %12392 = vmatprep.subr.bf16.mxu0 %v17987_v9  ;;  %v18023_v9 = vld [vmem:[%s24153_s1 + $0x17b8] ss:$28 sps:$4 sm:$0xff]  }
 0x524   :  { %15387 = vmatpush3.bf16.msra.mxu1 %v17984_v51 }
 0x525   :  { %12393 = vmatpush1.bf16.msra.mxu0 %v17985_v52  ;;  %15388 = vmatprep.subr.bf16.mxu1 %v17988_v12  ;;  %v18454_v12 = vld [vmem:[%s24154_s0 + $0x34] ss:$116 sps:$4 sm:$0xff]  }
 0x526   :  { %12394 = vmatprep.subr.bf16.mxu0 %v17992_v55 }
 0x528   :  { %15389 = vmatpush3.bf16.msra.mxu1 %v17989_v57 }
 0x529   :  { %12395 = vmatpush1.bf16.msra.mxu0 %v17990_v58  ;;  %15390 = vmatprep.subr.bf16.mxu1 %v17993_v59 }
 0x52a   :  { %12396 = vmatprep.subr.bf16.mxu0 %v17997_v60  ;;  %v18024_v60 = vld [vmem:[%s24153_s1 + $0x15f8] ss:$28 sps:$4 sm:$0xff]  }
 0x52c   :  { %15391 = vmatpush3.bf16.msra.mxu1 %v17994_v61  ;;  %v18025_v61 = vld [vmem:[%s24153_s1 + $0x2310] ss:$28 sps:$4 sm:$0xff]  }
 0x52d   :  { %12397 = vmatpush1.bf16.msra.mxu0 %v17995_v62  ;;  %15392 = vmatprep.subr.bf16.mxu1 %v17998_v37 }
 0x52e   :  { %12398 = vmatprep.subr.bf16.mxu0 %v18002_v0 }
 0x530   :  { %15393 = vmatpush3.bf16.msra.mxu1 %v17999_v38  ;;  %v18028_v38 = vld [vmem:[%s24153_s1 + $0x17f0] ss:$28 sps:$4 sm:$0xff]  }
 0x531   :  { %12399 = vmatpush1.bf16.msra.mxu0 %v18000_v1  ;;  %15406 = vmatprep.subr.bf16.mxu1 %v18003_v41  ;;  %v18032_v1 = vld [vmem:[%s24153_s1 + $0x234c] ss:$28 sps:$4 sm:$0xff]  }
 0x532   :  { %12400 = vmatprep.subr.bf16.mxu0 %v18007_v2 }
 0x533   :  { %12972 = vmatmul.mubr.bf16.vlgmr.msra.gmra.mrb[72].mxu1 %v22238_v24  ;;  %v18013_v24 = vld [vmem:[%s24153_s1 + $0x1748] ss:$28 sps:$4 sm:$0xff]  }
 0x534   :  { %15407 = vmatpush3.bf16.msra.mxu1 %v18004_v6  ;;  %12979 = vmatprep.mubr.bf16.mxu1 %v22256_v49  ;;  %v18018_v49 = vld [vmem:[%s24153_s1 + $0x1780] ss:$28 sps:$4 sm:$0xff]  }
 0x535   :  { %12401 = vmatpush1.bf16.msra.mxu0 %v18005_v44  ;;  %15408 = vmatprep.subr.bf16.mxu1 %v18008_v8  ;;  %v23169_v6 = vld [vmem:[%s24154_s0 + $0x48] ss:$116 sps:$4 sm:$0xff]   ;;  %v18029_v8 = vld [vmem:[%s24153_s1 + $0x1630] ss:$28 sps:$4 sm:$0xff]  }
 0x536   :  { %12402 = vmatprep.subr.bf16.mxu0 %v18012_v23  ;;  %v11880_v19 = vpop.f32.mrb[16].mxu1  ;;  %v18030_v23 = vld [vmem:[%s24153_s1 + $0x2348] ss:$28 sps:$4 sm:$0xff]  }
 0x537   :  { %v15663_v20 = vadd.f32 %v11880_v19, %v1888_v14  ;;  %v11882_v21 = vpop.f32.mrb[17].mxu1  ;;  %v18034_v19 = vld [vmem:[%s24153_s1 + $0x1668] ss:$28 sps:$4 sm:$0xff]  }
 0x538   :  { %v15664_v29 = vadd.f32 %v11882_v21, %v1892_v36  ;;  %15409 = vmatpush3.bf16.msra.mxu1 %v18009_v16  ;;  %v11884_v27 = vpop.f32.mrb[18].mxu1 }
 0x539   :  { %12403 = vmatpush1.bf16.msra.mxu0 %v18010_v17  ;;  %v13431_v31 = vmax.f32 %v15663_v20, 0.0  ;;  %v15665_v33 = vadd.f32 %v11884_v27, %v1888_v14  ;;  %v11886_v50 = vpop.f32.mrb[19].mxu1  ;;  %15410 = vmatprep.subr.bf16.mxu1 %v18013_v24  ;;  %v23192_v24 = vld [vmem:[%s24154_s0 + $0x134] ss:$116 sps:$4 sm:$0xff]   ;;  %v18035_v20 = vld [vmem:[%s24153_s1 + $0x2380] ss:$28 sps:$4 sm:$0xff]  }
 0x53a   :  { %12404 = vmatprep.subr.bf16.mxu0 %v18017_v18  ;;  %v13432_v35 = vmax.f32 %v15664_v29, 0.0  ;;  %v15666_v39 = vadd.f32 %v11886_v50, %v1892_v36  ;;  %v18038_v29 = vld [vmem:[%s24153_s1 + $0x1860] ss:$28 sps:$4 sm:$0xff]   ;;  %v18043_v50 = vld [vmem:[%s24153_s1 + $0x1a58] ss:$28 sps:$4 sm:$0xff]  }
 0x53b   :  { %v13438_v40 = vmax.f32 %v15665_v33, 0.0  ;;  %12980 = vmatmul.mubr.bf16.gmra.mrb[76].mxu1 %v18453_v56  ;;  %v18042_v27 = vld [vmem:[%s24153_s1 + $0x23bc] ss:$28 sps:$4 sm:$0xff]   ;;  %v18045_v56 = vld [vmem:[%s24153_s1 + $0x23f0] ss:$28 sps:$4 sm:$0xff]  }
 0x53c   :  { %v15223_v42 = vpack.c.bf16 %v13432_v35, %v13431_v31  ;;  %v13439_v45 = vmax.f32 %v15666_v39, 0.0  ;;  %15411 = vmatpush3.bf16.msra.mxu1 %v18014_v28  ;;  %13020 = vmatprep.mubr.bf16.mxu1 %v18454_v12  ;;  %v18039_v31 = vld [vmem:[%s24153_s1 + $0x16a0] ss:$28 sps:$4 sm:$0xff]   ;;  %v18040_v33 = vld [vmem:[%s24153_s1 + $0x23b8] ss:$28 sps:$4 sm:$0xff]  }
 0x53d   :  { %12405 = vmatpush1.bf16.msra.mxu0 %v18015_v30  ;;  %15412 = vmatprep.subr.bf16.mxu1 %v18018_v49  ;;  %v23219_v30 = vld [vmem:[%s24154_s0 + $0x130] ss:$116 sps:$4 sm:$0xff]   ;;  %v23239_v35 = vld [vmem:[%s24154_s0 + $0x54] ss:$116 sps:$4 sm:$0xff]   ;;  %v18055_v12 = vld [vmem:[%s24153_s1 + $0x2460] ss:$28 sps:$4 sm:$0xff]  }
 0x53e   :  { %12406 = vmatprep.subr.bf16.mxu0 %v18022_v34  ;;  %13546 = vst [vmem:[%s24156_s3 + $0x8] sm:$0xff] %v15223_v42  ;;  %v15227_v51 = vpack.c.bf16 %v13439_v45, %v13438_v40  ;;  %v11890_v52 = vpop.f32.mrb[20].mxu1  ;;  %v18047_v49 = vld [vmem:[%s24153_s1 + $0x23f4] ss:$28 sps:$4 sm:$0xff]  }
 0x53f   :  { %v15667_v55 = vadd.f32 %v11890_v52, %v1888_v14  ;;  %v11892_v57 = vpop.f32.mrb[21].mxu1  ;;  %v18044_v40 = vld [vmem:[%s24153_s1 + $0x1898] ss:$28 sps:$4 sm:$0xff]   ;;  %v18048_v45 = vld [vmem:[%s24153_s1 + $0x1a90] ss:$28 sps:$4 sm:$0xff]  }
 0x540   :  { %13550 = vst [vmem:[%s24156_s3 + $0x24] sm:$0xff] %v15227_v51  ;;  %v15668_v58 = vadd.f32 %v11892_v57, %v1892_v36  ;;  %15413 = vmatpush3.bf16.msra.mxu1 %v18019_v46  ;;  %v11894_v59 = vpop.f32.mrb[22].mxu1  ;;  %v18052_v46 = vld [vmem:[%s24153_s1 + $0x242c] ss:$28 sps:$4 sm:$0xff]   ;;  %v18059_v57 = vld [vmem:[%s24153_s1 + $0x1940] ss:$28 sps:$4 sm:$0xff]  }
 0x541   :  { %12407 = vmatpush1.bf16.msra.mxu0 %v18020_v47  ;;  %v13445_v62 = vmax.f32 %v15667_v55, 0.0  ;;  %v15669_v37 = vadd.f32 %v11894_v59, %v1888_v14  ;;  %v11896_v0 = vpop.f32.mrb[23].mxu1  ;;  %15414 = vmatprep.subr.bf16.mxu1 %v18023_v9  ;;  %v18033_v14 = vld [vmem:[%s24153_s1 + $0x1828] ss:$28 sps:$4 sm:$0xff]   ;;  %v18049_v9 = vld [vmem:[%s24153_s1 + $0x18d0] ss:$28 sps:$4 sm:$0xff]  }
 0x542   :  { %12429 = vmatprep.subr.bf16.mxu0 %v18027_v11  ;;  %v13446_v41 = vmax.f32 %v15668_v58, 0.0  ;;  %v15670_v2 = vadd.f32 %v11896_v0, %v1892_v36  ;;  %v18037_v36 = vld [vmem:[%s24153_s1 + $0x2384] ss:$28 sps:$4 sm:$0xff]   ;;  %v18060_v58 = vld [vmem:[%s24153_s1 + $0x2498] ss:$28 sps:$4 sm:$0xff]  }
 0x543   :  { %v13452_v3 = vmax.f32 %v15669_v37, 0.0  ;;  %v18050_v11 = vld [vmem:[%s24153_s1 + $0x2428] ss:$28 sps:$4 sm:$0xff]   ;;  %v18058_v55 = vld [vmem:[%s24153_s1 + $0x1b00] ss:$28 sps:$4 sm:$0xff]  }
 0x544   :  { %12409 = vmatmul.mubr.bf16.vlgmr.msra.gmra.mrb[8].mxu0 %v23169_v6  ;;  %v15231_v44 = vpack.c.bf16 %v13446_v41, %v13445_v62  ;;  %v13453_v7 = vmax.f32 %v15670_v2, 0.0  ;;  %15415 = vmatpush3.bf16.msra.mxu1 %v18024_v60  ;;  %v18053_v51 = vld [vmem:[%s24153_s1 + $0x1ac8] ss:$28 sps:$4 sm:$0xff]   ;;  %v18063_v59 = vld [vmem:[%s24153_s1 + $0x1b38] ss:$28 sps:$4 sm:$0xff]  }
 0x545   :  { %12430 = vmatpush1.bf16.msra.mxu0 %v18025_v61  ;;  %15416 = vmatprep.subr.bf16.mxu1 %v18028_v38  ;;  %v18054_v52 = vld [vmem:[%s24153_s1 + $0x1908] ss:$28 sps:$4 sm:$0xff]   ;;  %v18064_v60 = vld [vmem:[%s24153_s1 + $0x1978] ss:$28 sps:$4 sm:$0xff]   ;;  %v18065_v61 = vld [vmem:[%s24153_s1 + $0x24d0] ss:$28 sps:$4 sm:$0xff]  }
 0x546   :  { %12431 = vmatprep.subr.bf16.mxu0 %v18032_v1  ;;  %13554 = vst [vmem:[%s24156_s3 + $0x40] sm:$0xff] %v15231_v44  ;;  %v15235_v16 = vpack.c.bf16 %v13453_v7, %v13452_v3  ;;  %v23187_v17 = vpop.f32.mrb[24].mxu1  ;;  %12418 = vmatprep.mubr.bf16.mxu0 %v23192_v24  ;;  %v18068_v62 = vld [vmem:[%s24153_s1 + $0x1b70] ss:$28 sps:$4 sm:$0xff]   ;;  %v18070_v0 = vld [vmem:[%s24153_s1 + $0x2508] ss:$28 sps:$4 sm:$0xff]  }
 0x547   :  { %v23195_v18 = vpop.f32.mrb[25].mxu1  ;;  %v18069_v37 = vld [vmem:[%s24153_s1 + $0x19b0] ss:$28 sps:$4 sm:$0xff]   ;;  %v18073_v38 = vld [vmem:[%s24153_s1 + $0x1ba8] ss:$28 sps:$4 sm:$0xff]  }
 0x548   :  { %13558 = vst [vmem:[%s24156_s3 + $0x5c] sm:$0xff] %v15235_v16  ;;  %15417 = vmatpush3.bf16.msra.mxu1 %v18029_v8  ;;  %v23206_v21 = vpop.f32.mrb[26].mxu1  ;;  %v18077_v1 = vld [vmem:[%s24153_s1 + $0x2544] ss:$28 sps:$4 sm:$0xff]  }
 0x549   :  { %12432 = vmatpush1.bf16.msra.mxu0 %v18030_v23  ;;  %15418 = vmatprep.subr.bf16.mxu1 %v18033_v14  ;;  %v23214_v28 = vpop.f32.mrb[27].mxu1  ;;  %v18074_v3 = vld [vmem:[%s24153_s1 + $0x19e8] ss:$28 sps:$4 sm:$0xff]   ;;  %v18075_v44 = vld [vmem:[%s24153_s1 + $0x2540] ss:$28 sps:$4 sm:$0xff]  }
 0x54a   :  { %12433 = vmatprep.subr.bf16.mxu0 %v18037_v36  ;;  %v18078_v23 = vld [vmem:[%s24153_s1 + $0x1be0] ss:$28 sps:$4 sm:$0xff]  }
 0x54b   :  { %v18082_v14 = vld [vmem:[%s24153_s1 + $0x257c] ss:$28 sps:$4 sm:$0xff]  }
 0x54c   :  { %12419 = vmatmul.mubr.bf16.gmra.mrb[12].mxu0 %v23219_v30  ;;  %15419 = vmatpush3.bf16.msra.mxu1 %v18034_v19  ;;  %v18079_v19 = vld [vmem:[%s24153_s1 + $0x1a20] ss:$28 sps:$4 sm:$0xff]  }
 0x54d   :  { %12434 = vmatpush1.bf16.msra.mxu0 %v18035_v20  ;;  %15420 = vmatprep.subr.bf16.mxu1 %v18038_v29  ;;  %v18080_v20 = vld [vmem:[%s24153_s1 + $0x2578] ss:$28 sps:$4 sm:$0xff]  }
 0x54e   :  { %12435 = vmatprep.subr.bf16.mxu0 %v18042_v27  ;;  %v23234_v34 = vpop.f32.mrb[28].mxu1  ;;  %12461 = vmatprep.mubr.bf16.mxu0 %v23239_v35  ;;  %v18083_v29 = vld [vmem:[%s24153_s1 + $0x1dd8] ss:$28 sps:$4 sm:$0xff]  }
 0x54f   :  { %v23242_v39 = vpop.f32.mrb[29].mxu1  ;;  %v18087_v27 = vld [vmem:[%s24153_s1 + $0x25b4] ss:$28 sps:$4 sm:$0xff]  }
 0x550   :  { %15421 = vmatpush3.bf16.msra.mxu1 %v18039_v31  ;;  %v23250_v42 = vpop.f32.mrb[30].mxu1 }
 0x551   :  { %12436 = vmatpush1.bf16.msra.mxu0 %v18040_v33  ;;  %15434 = vmatprep.subr.bf16.mxu1 %v18043_v50  ;;  %v23258_v47 = vpop.f32.mrb[31].mxu1  ;;  %v18084_v50 = vld [vmem:[%s24153_s1 + $0x1c18] ss:$28 sps:$4 sm:$0xff]  }
 0x552   :  { %12437 = vmatprep.subr.bf16.mxu0 %v18047_v49  ;;  %v18085_v49 = vld [vmem:[%s24153_s1 + $0x25b0] ss:$28 sps:$4 sm:$0xff]  }
 0x553   :  { %13021 = vmatmul.mubr.bf16.vlgmr.msra.gmra.mrb[80].mxu1 %v22438_v22  ;;  %v18057_v22 = vld [vmem:[%s24153_s1 + $0x2464] ss:$28 sps:$4 sm:$0xff]  }
 0x554   :  { %15435 = vmatpush3.bf16.msra.mxu1 %v18044_v40  ;;  %13028 = vmatprep.mubr.bf16.mxu1 %v22456_v32  ;;  %v18062_v32 = vld [vmem:[%s24153_s1 + $0x249c] ss:$28 sps:$4 sm:$0xff]  }
 0x555   :  { %12438 = vmatpush1.bf16.msra.mxu0 %v18045_v56  ;;  %15436 = vmatprep.subr.bf16.mxu1 %v18048_v45  ;;  %v18088_v45 = vld [vmem:[%s24153_s1 + $0x1e10] ss:$28 sps:$4 sm:$0xff]  }
 0x556   :  { %12439 = vmatprep.subr.bf16.mxu0 %v18052_v46  ;;  %v18092_v46 = vld [vmem:[%s24153_s1 + $0x25ec] ss:$28 sps:$4 sm:$0xff]  }
 0x558   :  { %15437 = vmatpush3.bf16.msra.mxu1 %v18049_v9 }
 0x559   :  { %12440 = vmatpush1.bf16.msra.mxu0 %v18050_v11  ;;  %15438 = vmatprep.subr.bf16.mxu1 %v18053_v51  ;;  %v18089_v51 = vld [vmem:[%s24153_s1 + $0x1c50] ss:$28 sps:$4 sm:$0xff]  }
 0x55a   :  { %12441 = vmatprep.subr.bf16.mxu0 %v18057_v22  ;;  %v18090_v22 = vld [vmem:[%s24153_s1 + $0x25e8] ss:$28 sps:$4 sm:$0xff]  }
 0x55b   :  { %13029 = vmatmul.mubr.bf16.gmra.mrb[84].mxu1 %v22474_v53  ;;  %v18067_v53 = vld [vmem:[%s24153_s1 + $0x24d4] ss:$28 sps:$4 sm:$0xff]  }
 0x55c   :  { %15439 = vmatpush3.bf16.msra.mxu1 %v18054_v52  ;;  %13069 = vmatprep.mubr.bf16.mxu1 %v22492_v43  ;;  %v18072_v43 = vld [vmem:[%s24153_s1 + $0x250c] ss:$28 sps:$4 sm:$0xff]  }
 0x55d   :  { %12442 = vmatpush1.bf16.msra.mxu0 %v18055_v12  ;;  %15440 = vmatprep.subr.bf16.mxu1 %v18058_v55  ;;  %v18093_v52 = vld [vmem:[%s24153_s1 + $0x1e48] ss:$28 sps:$4 sm:$0xff]   ;;  %v18095_v55 = vld [vmem:[%s24153_s1 + $0x2620] ss:$28 sps:$4 sm:$0xff]  }
 0x55e   :  { %12443 = vmatprep.subr.bf16.mxu0 %v18062_v32  ;;  %v18094_v12 = vld [vmem:[%s24153_s1 + $0x1c88] ss:$28 sps:$4 sm:$0xff]   ;;  %v18098_v32 = vld [vmem:[%s24153_s1 + $0x1e80] ss:$28 sps:$4 sm:$0xff]  }
 0x560   :  { %15441 = vmatpush3.bf16.msra.mxu1 %v18059_v57  ;;  %v18099_v57 = vld [vmem:[%s24153_s1 + $0x1cc0] ss:$28 sps:$4 sm:$0xff]  }
 0x561   :  { %12444 = vmatpush1.bf16.msra.mxu0 %v18060_v58  ;;  %15442 = vmatprep.subr.bf16.mxu1 %v18063_v59  ;;  %v18100_v58 = vld [vmem:[%s24153_s1 + $0x2658] ss:$28 sps:$4 sm:$0xff]  }
 0x562   :  { %12445 = vmatprep.subr.bf16.mxu0 %v18067_v53  ;;  %v18103_v59 = vld [vmem:[%s24153_s1 + $0x1eb8] ss:$28 sps:$4 sm:$0xff]   ;;  %v1903_v53 = vsub.s32 6, %v21570_v5 }
 0x564   :  { %15443 = vmatpush3.bf16.msra.mxu1 %v18064_v60  ;;  %v18104_v60 = vld [vmem:[%s24153_s1 + $0x1cf8] ss:$28 sps:$4 sm:$0xff]  }
 0x565   :  { %12446 = vmatpush1.bf16.msra.mxu0 %v18065_v61  ;;  %15444 = vmatprep.subr.bf16.mxu1 %v18068_v62  ;;  %v18105_v61 = vld [vmem:[%s24153_s1 + $0x2690] ss:$28 sps:$4 sm:$0xff]  }
 0x566   :  { %12447 = vmatprep.subr.bf16.mxu0 %v18072_v43  ;;  %v15254_v41 = vpop.f32.mrb[32].mxu1  ;;  %v18108_v62 = vld [vmem:[%s24153_s1 + $0x1ef0] ss:$28 sps:$4 sm:$0xff]  }
 0x567   :  { %v15255_v2 = vpop.f32.mrb[33].mxu1  ;;  %v23424_v43 = vld [vmem:[%s24154_s0 + $0x50] ss:$116 sps:$4 sm:$0xff]  }
 0x568   :  { %15445 = vmatpush3.bf16.msra.mxu1 %v18069_v37  ;;  %v23330_v7 = vadd.f32 %v15255_v2, %v15254_v41  ;;  %v15257_v8 = vpop.f32.mrb[34].mxu1  ;;  %v1904_v37 = vrot.slane %v23101_v13, %v1903_v53  ;;  %v18117_v13 = vld [vmem:[%s24153_s1 + $0x2704] ss:$28 sps:$4 sm:$0xff]   ;;  %v23443_v2 = vld [vmem:[%s24154_s0 + $0x13c] ss:$116 sps:$4 sm:$0xff]  }
 0x569   :  { %12448 = vmatpush1.bf16.msra.mxu0 %v18070_v0  ;;  %15446 = vmatprep.subr.bf16.mxu1 %v18073_v38  ;;  %v15258_v36 = vpop.f32.mrb[35].mxu1  ;;  %v18109_v0 = vld [vmem:[%s24153_s1 + $0x1d30] ss:$28 sps:$4 sm:$0xff]   ;;  %v18110_v38 = vld [vmem:[%s24153_s1 + $0x26c8] ss:$28 sps:$4 sm:$0xff]  }
 0x56a   :  { %12449 = vmatprep.subr.bf16.mxu0 %v18077_v1  ;;  %v23338_v16 = vadd.f32 %v15258_v36, %v15257_v8  ;;  %v18113_v1 = vld [vmem:[%s24153_s1 + $0x1f28] ss:$28 sps:$4 sm:$0xff]   ;;  %v18115_v36 = vld [vmem:[%s24153_s1 + $0x2700] ss:$28 sps:$4 sm:$0xff]   ;;  %v18129_v53 = vld [vmem:[%s24153_s1 + $0x1fd0] ss:$28 sps:$4 sm:$0xff]  }
 0x56c   :  { %15447 = vmatpush3.bf16.msra.mxu1 %v18074_v3 }
 0x56d   :  { %12450 = vmatpush1.bf16.msra.mxu0 %v18075_v44  ;;  %15448 = vmatprep.subr.bf16.mxu1 %v18078_v23  ;;  %v12729_v44 = vadd.f32 %v23330_v7, %v1904_v37  ;;  %v18122_v7 = vld [vmem:[%s24153_s1 + $0x273c] ss:$28 sps:$4 sm:$0xff]  }
 0x56e   :  { %12451 = vmatprep.subr.bf16.mxu0 %v18082_v14  ;;  %v15260_v31 = vpop.f32.mrb[36].mxu1  ;;  %v18114_v14 = vld [vmem:[%s24153_s1 + $0x1d68] ss:$28 sps:$4 sm:$0xff]  }
 0x56f   :  { %v15261_v33 = vpop.f32.mrb[37].mxu1 }
 0x570   :  { %15449 = vmatpush3.bf16.msra.mxu1 %v18079_v19  ;;  %v23358_v40 = vadd.f32 %v15261_v33, %v15260_v31  ;;  %v15263_v56 = vpop.f32.mrb[38].mxu1  ;;  %v23465_v33 = vld [vmem:[%s24154_s0 + $0x138] ss:$116 sps:$4 sm:$0xff]  }
 0x571   :  { %12452 = vmatpush1.bf16.msra.mxu0 %v18080_v20  ;;  %15462 = vmatprep.subr.bf16.mxu1 %v18083_v29  ;;  %v15264_v9 = vpop.f32.mrb[39].mxu1  ;;  %v18118_v20 = vld [vmem:[%s24153_s1 + $0x1f60] ss:$28 sps:$4 sm:$0xff]   ;;  %v12732_v29 = vadd.f32 %v23338_v16, %v1904_v37  ;;  %v18120_v16 = vld [vmem:[%s24153_s1 + $0x2738] ss:$28 sps:$4 sm:$0xff]  }
 0x572   :  { %12453 = vmatprep.subr.bf16.mxu0 %v18087_v27  ;;  %v23366_v11 = vadd.f32 %v15264_v9, %v15263_v56  ;;  %v18123_v56 = vld [vmem:[%s24153_s1 + $0x2158] ss:$28 sps:$4 sm:$0xff]   ;;  %v23485_v9 = vld [vmem:[%s24154_s0 + $0x5c] ss:$116 sps:$4 sm:$0xff]  }
 0x573   :  { %13070 = vmatmul.mubr.bf16.vlgmr.msra.gmra.mrb[88].mxu1 %v22678_v48  ;;  %v18097_v48 = vld [vmem:[%s24153_s1 + $0x2624] ss:$28 sps:$4 sm:$0xff]  }
 0x574   :  { %15463 = vmatpush3.bf16.msra.mxu1 %v18084_v50  ;;  %13077 = vmatprep.mubr.bf16.mxu1 %v22696_v54  ;;  %v18102_v54 = vld [vmem:[%s24153_s1 + $0x265c] ss:$28 sps:$4 sm:$0xff]  }
 0x575   :  { %12454 = vmatpush1.bf16.msra.mxu0 %v18085_v49  ;;  %15464 = vmatprep.subr.bf16.mxu1 %v18088_v45  ;;  %v18119_v49 = vld [vmem:[%s24153_s1 + $0x1da0] ss:$28 sps:$4 sm:$0xff]   ;;  %v18127_v45 = vld [vmem:[%s24153_s1 + $0x2774] ss:$28 sps:$4 sm:$0xff]  }
 0x576   :  { %12455 = vmatprep.subr.bf16.mxu0 %v18092_v46 }
 0x578   :  { %15465 = vmatpush3.bf16.msra.mxu1 %v18089_v51 }
 0x579   :  { %12456 = vmatpush1.bf16.msra.mxu0 %v18090_v22  ;;  %15466 = vmatprep.subr.bf16.mxu1 %v18093_v52  ;;  %v12737_v22 = vadd.f32 %v23358_v40, %v1904_v37  ;;  %v18132_v40 = vld [vmem:[%s24153_s1 + $0x27ac] ss:$28 sps:$4 sm:$0xff]  }
 0x57a   :  { %12457 = vmatprep.subr.bf16.mxu0 %v18097_v48 }
 0x57b   :  { %13078 = vmatmul.mubr.bf16.gmra.mrb[92].mxu1 %v22714_v15  ;;  %v18107_v15 = vld [vmem:[%s24153_s1 + $0x2694] ss:$28 sps:$4 sm:$0xff]  }
 0x57c   :  { %15467 = vmatpush3.bf16.msra.mxu1 %v18094_v12  ;;  %13118 = vmatprep.mubr.bf16.mxu1 %v22732_v63  ;;  %v18112_v63 = vld [vmem:[%s24153_s1 + $0x26cc] ss:$28 sps:$4 sm:$0xff]   ;;  %v18124_v12 = vld [vmem:[%s24153_s1 + $0x1f98] ss:$28 sps:$4 sm:$0xff]  }
 0x57d   :  { %12458 = vmatpush1.bf16.msra.mxu0 %v18095_v55  ;;  %15468 = vmatprep.subr.bf16.mxu1 %v18098_v32  ;;  %v18125_v55 = vld [vmem:[%s24153_s1 + $0x2770] ss:$28 sps:$4 sm:$0xff]  }
 0x57e   :  { %12459 = vmatprep.subr.bf16.mxu0 %v18102_v54  ;;  %v18128_v54 = vld [vmem:[%s24153_s1 + $0x2190] ss:$28 sps:$4 sm:$0xff]  }
 0x580   :  { %15469 = vmatpush3.bf16.msra.mxu1 %v18099_v57  ;;  %v12740_v57 = vadd.f32 %v23366_v11, %v1904_v37  ;;  %v18133_v11 = vld [vmem:[%s24153_s1 + $0x21c8] ss:$28 sps:$4 sm:$0xff]   ;;  %v18139_v37 = vld [vmem:[%s24153_s1 + $0x2040] ss:$28 sps:$4 sm:$0xff]  }
 0x581   :  { %12460 = vmatpush1.bf16.msra.mxu0 %v18100_v58  ;;  %15470 = vmatprep.subr.bf16.mxu1 %v18103_v59 }
 0x582   :  { %12482 = vmatprep.subr.bf16.mxu0 %v18107_v15 }
 0x584   :  { %12462 = vmatmul.mubr.bf16.vlgmr.msra.gmra.mrb[8].mxu0 %v23424_v43  ;;  %15471 = vmatpush3.bf16.msra.mxu1 %v18104_v60  ;;  %v18130_v60 = vld [vmem:[%s24153_s1 + $0x27a8] ss:$28 sps:$4 sm:$0xff]  }
 0x585   :  { %12483 = vmatpush1.bf16.msra.mxu0 %v18105_v61  ;;  %15472 = vmatprep.subr.bf16.mxu1 %v18108_v62  ;;  %v18134_v61 = vld [vmem:[%s24153_s1 + $0x2008] ss:$28 sps:$4 sm:$0xff]   ;;  %v18135_v62 = vld [vmem:[%s24153_s1 + $0x27e0] ss:$28 sps:$4 sm:$0xff]  }
 0x586   :  { %12484 = vmatprep.subr.bf16.mxu0 %v18112_v63  ;;  %v15282_v41 = vpop.f32.mrb[40].mxu1  ;;  %12471 = vmatprep.mubr.bf16.mxu0 %v23443_v2  ;;  %v18138_v63 = vld [vmem:[%s24153_s1 + $0x2200] ss:$28 sps:$4 sm:$0xff]  }
 0x587   :  { %v15283_v3 = vpop.f32.mrb[41].mxu1 }
 0x588   :  { %v15284_v8 = vadd.f32 %v15283_v3, %v15282_v41  ;;  %v15285_v23 = vpop.f32.mrb[42].mxu1  ;;  %15473 = vmatpush3.bf16.msra.mxu1 %v18109_v0  ;;  %v18140_v0 = vld [vmem:[%s24153_s1 + $0x2818] ss:$28 sps:$4 sm:$0xff]   ;;  %v18148_v41 = vld [vmem:[%s24153_s1 + $0x2270] ss:$28 sps:$4 sm:$0xff]  }
 0x589   :  { %12485 = vmatpush1.bf16.msra.mxu0 %v18110_v38  ;;  %v15286_v19 = vpop.f32.mrb[43].mxu1  ;;  %15474 = vmatprep.subr.bf16.mxu1 %v18113_v1  ;;  %v18143_v38 = vld [vmem:[%s24153_s1 + $0x2238] ss:$28 sps:$4 sm:$0xff]   ;;  %v18149_v3 = vld [vmem:[%s24153_s1 + $0x20b0] ss:$28 sps:$4 sm:$0xff]  }
 0x58a   :  { %12486 = vmatprep.subr.bf16.mxu0 %v18117_v13  ;;  %v23460_v27 = vadd.f32 %v15284_v8, %v12729_v44  ;;  %v15287_v31 = vadd.f32 %v15286_v19, %v15285_v23  ;;  %v18144_v1 = vld [vmem:[%s24153_s1 + $0x2078] ss:$28 sps:$4 sm:$0xff]   ;;  %v18145_v13 = vld [vmem:[%s24153_s1 + $0x2850] ss:$28 sps:$4 sm:$0xff]   ;;  %v18150_v44 = vld [vmem:[%s24153_s1 + $0x2888] ss:$28 sps:$4 sm:$0xff]  }
 0x58b   :  { %v18153_v8 = vld [vmem:[%s24153_s1 + $0x22a8] ss:$28 sps:$4 sm:$0xff]  }
 0x58c   :  { %12472 = vmatmul.mubr.bf16.gmra.mrb[12].mxu0 %v23465_v33  ;;  %v23468_v50 = vadd.f32 %v15287_v31, %v12732_v29  ;;  %15475 = vmatpush3.bf16.msra.mxu1 %v18114_v14  ;;  %v18157_v23 = vld [vmem:[%s24153_s1 + $0x28c4] ss:$28 sps:$4 sm:$0xff]  }
 0x58d   :  { %12487 = vmatpush1.bf16.msra.mxu0 %v18115_v36  ;;  %15476 = vmatprep.subr.bf16.mxu1 %v18118_v20  ;;  %v18155_v29 = vld [vmem:[%s24153_s1 + $0x28c0] ss:$28 sps:$4 sm:$0xff]  }
 0x58e   :  { %12488 = vmatprep.subr.bf16.mxu0 %v18122_v7  ;;  %v15288_v46 = vpop.f32.mrb[44].mxu1  ;;  %12514 = vmatprep.mubr.bf16.mxu0 %v23485_v9  ;;  %v18154_v7 = vld [vmem:[%s24153_s1 + $0x20e8] ss:$28 sps:$4 sm:$0xff]  }
 0x58f   :  { %v15289_v51 = vpop.f32.mrb[45].mxu1 }
 0x590   :  { %v15290_v52 = vadd.f32 %v15289_v51, %v15288_v46  ;;  %v15291_v48 = vpop.f32.mrb[46].mxu1  ;;  %15477 = vmatpush3.bf16.msra.mxu1 %v18119_v49  ;;  %v18158_v49 = vld [vmem:[%s24153_s1 + $0x22e0] ss:$28 sps:$4 sm:$0xff]  }
 0x591   :  { %12489 = vmatpush1.bf16.msra.mxu0 %v18120_v16  ;;  %v15292_v32 = vpop.f32.mrb[47].mxu1  ;;  %15490 = vmatprep.subr.bf16.mxu1 %v18123_v56  ;;  %v18162_v16 = vld [vmem:[%s24153_s1 + $0x28fc] ss:$28 sps:$4 sm:$0xff]  }
 0x592   :  { %12490 = vmatprep.subr.bf16.mxu0 %v18127_v45  ;;  %v23502_v58 = vadd.f32 %v15290_v52, %v12737_v22  ;;  %v15293_v59 = vadd.f32 %v15292_v32, %v15291_v48  ;;  %v18159_v51 = vld [vmem:[%s24153_s1 + $0x2120] ss:$28 sps:$4 sm:$0xff]   ;;  %v18160_v22 = vld [vmem:[%s24153_s1 + $0x28f8] ss:$28 sps:$4 sm:$0xff]  }
 0x593   :  { %13119 = vmatmul.mubr.bf16.vlgmr.msra.gmra.mrb[96].mxu1 %v22918_v4  ;;  %v18137_v4 = vld [vmem:[%s24153_s1 + $0x27e4] ss:$28 sps:$4 sm:$0xff]   ;;  %v18164_v32 = vld [vmem:[%s24153_s1 + $0x2318] ss:$28 sps:$4 sm:$0xff]  }
 0x594   :  { %v23505_v15 = vadd.f32 %v15293_v59, %v12740_v57  ;;  %15491 = vmatpush3.bf16.msra.mxu1 %v18124_v12  ;;  %13126 = vmatprep.mubr.bf16.mxu1 %v22936_v10  ;;  %v18142_v10 = vld [vmem:[%s24153_s1 + $0x281c] ss:$28 sps:$4 sm:$0xff]   ;;  %v18168_v57 = vld [vmem:[%s24153_s1 + $0x2510] ss:$28 sps:$4 sm:$0xff]  }
 0x595   :  { %12491 = vmatpush1.bf16.msra.mxu0 %v18125_v55  ;;  %15492 = vmatprep.subr.bf16.mxu1 %v18128_v54  ;;  %v18165_v54 = vld [vmem:[%s24153_s1 + $0x2930] ss:$28 sps:$4 sm:$0xff]  }
 0x596   :  { %12492 = vmatprep.subr.bf16.mxu0 %v18132_v40  ;;  %v18172_v59 = vld [vmem:[%s24153_s1 + $0x296c] ss:$28 sps:$4 sm:$0xff]  }
 0x598   :  { %15493 = vmatpush3.bf16.msra.mxu1 %v18129_v53 }
 0x599   :  { %12493 = vmatpush1.bf16.msra.mxu0 %v18130_v60  ;;  %15494 = vmatprep.subr.bf16.mxu1 %v18133_v11 }
 0x59a   :  { %12494 = vmatprep.subr.bf16.mxu0 %v18137_v4  ;;  %v18169_v4 = vld [vmem:[%s24153_s1 + $0x2350] ss:$28 sps:$4 sm:$0xff]  }
 0x59b   :  { %13127 = vmatmul.mubr.bf16.gmra.mrb[100].mxu1 %v22954_v25  ;;  %v18147_v25 = vld [vmem:[%s24153_s1 + $0x2854] ss:$28 sps:$4 sm:$0xff]  }
 0x59c   :  { %15495 = vmatpush3.bf16.msra.mxu1 %v18134_v61  ;;  %13167 = vmatprep.mubr.bf16.mxu1 %v22972_v26  ;;  %v18152_v26 = vld [vmem:[%s24153_s1 + $0x288c] ss:$28 sps:$4 sm:$0xff]  }
 0x59d   :  { %12495 = vmatpush1.bf16.msra.mxu0 %v18135_v62  ;;  %15496 = vmatprep.subr.bf16.mxu1 %v18138_v63  ;;  %v18170_v61 = vld [vmem:[%s24153_s1 + $0x2968] ss:$28 sps:$4 sm:$0xff]   ;;  %v18175_v62 = vld [vmem:[%s24153_s1 + $0x29a0] ss:$28 sps:$4 sm:$0xff]  }
 0x59e   :  { %12496 = vmatprep.subr.bf16.mxu0 %v18142_v10  ;;  %v18178_v63 = vld [vmem:[%s24153_s1 + $0x2580] ss:$28 sps:$4 sm:$0xff]  }
 0x59f   :  { %v18179_v10 = vld [vmem:[%s24153_s1 + $0x23c0] ss:$28 sps:$4 sm:$0xff]  }
 0x5a0   :  { %15497 = vmatpush3.bf16.msra.mxu1 %v18139_v37  ;;  %v18180_v37 = vld [vmem:[%s24153_s1 + $0x29d8] ss:$28 sps:$4 sm:$0xff]  }
 0x5a1   :  { %12497 = vmatpush1.bf16.msra.mxu0 %v18140_v0  ;;  %15498 = vmatprep.subr.bf16.mxu1 %v18143_v38  ;;  %v18183_v0 = vld [vmem:[%s24153_s1 + $0x25b8] ss:$28 sps:$4 sm:$0xff]  }
 0x5a2   :  { %12498 = vmatprep.subr.bf16.mxu0 %v18147_v25  ;;  %v18184_v38 = vld [vmem:[%s24153_s1 + $0x23f8] ss:$28 sps:$4 sm:$0xff]   ;;  %v18185_v25 = vld [vmem:[%s24153_s1 + $0x2a10] ss:$28 sps:$4 sm:$0xff]  }
 0x5a4   :  { %15499 = vmatpush3.bf16.msra.mxu1 %v18144_v1  ;;  %v18188_v1 = vld [vmem:[%s24153_s1 + $0x25f0] ss:$28 sps:$4 sm:$0xff]  }
 0x5a5   :  { %12499 = vmatpush1.bf16.msra.mxu0 %v18145_v13  ;;  %15500 = vmatprep.subr.bf16.mxu1 %v18148_v41  ;;  %v23673_v13 = vld [vmem:[%s24154_s0 + $0x58] ss:$116 sps:$4 sm:$0xff]  }
 0x5a6   :  { %12500 = vmatprep.subr.bf16.mxu0 %v18152_v26  ;;  %v15310_v14 = vpop.f32.mrb[48].mxu1  ;;  %v18189_v41 = vld [vmem:[%s24153_s1 + $0x2430] ss:$28 sps:$4 sm:$0xff]   ;;  %v18190_v26 = vld [vmem:[%s24153_s1 + $0x2a48] ss:$28 sps:$4 sm:$0xff]  }
 0x5a7   :  { %v15311_v36 = vpop.f32.mrb[49].mxu1 }
 0x5a8   :  { %v15312_v19 = vadd.f32 %v15311_v36, %v15310_v14  ;;  %v15313_v20 = vpop.f32.mrb[50].mxu1  ;;  %15501 = vmatpush3.bf16.msra.mxu1 %v18149_v3  ;;  %v18193_v3 = vld [vmem:[%s24153_s1 + $0x2628] ss:$28 sps:$4 sm:$0xff]  }
 0x5a9   :  { %12501 = vmatpush1.bf16.msra.mxu0 %v18150_v44  ;;  %v15314_v31 = vpop.f32.mrb[51].mxu1  ;;  %15502 = vmatprep.subr.bf16.mxu1 %v18153_v8  ;;  %v18197_v44 = vld [vmem:[%s24153_s1 + $0x2a84] ss:$28 sps:$4 sm:$0xff]  }
 0x5aa   :  { %12502 = vmatprep.subr.bf16.mxu0 %v18157_v23  ;;  %v23583_v56 = vadd.f32 %v15312_v19, %v23460_v27  ;;  %v15315_v45 = vadd.f32 %v15314_v31, %v15313_v20  ;;  %v18163_v27 = vld [vmem:[%s24153_s1 + $0x24d8] ss:$28 sps:$4 sm:$0xff]   ;;  %v18194_v20 = vld [vmem:[%s24153_s1 + $0x2468] ss:$28 sps:$4 sm:$0xff]   ;;  %v18198_v31 = vld [vmem:[%s24153_s1 + $0x2660] ss:$28 sps:$4 sm:$0xff]  }
 0x5ab   :  { %v23691_v23 = vld [vmem:[%s24154_s0 + $0x144] ss:$116 sps:$4 sm:$0xff]  }
 0x5ac   :  { %v23586_v46 = vadd.f32 %v15315_v45, %v23468_v50  ;;  %15503 = vmatpush3.bf16.msra.mxu1 %v18154_v7  ;;  %v18167_v50 = vld [vmem:[%s24153_s1 + $0x2934] ss:$28 sps:$4 sm:$0xff]   ;;  %v18195_v7 = vld [vmem:[%s24153_s1 + $0x2a80] ss:$28 sps:$4 sm:$0xff]  }
 0x5ad   :  { %12503 = vmatpush1.bf16.msra.mxu0 %v18155_v29  ;;  %15504 = vmatprep.subr.bf16.mxu1 %v18158_v49  ;;  %v18202_v49 = vld [vmem:[%s24153_s1 + $0x2abc] ss:$28 sps:$4 sm:$0xff]  }
 0x5ae   :  { %12504 = vmatprep.subr.bf16.mxu0 %v18162_v16  ;;  %v15316_v52 = vpop.f32.mrb[52].mxu1 }
 0x5af   :  { %v15317_v48 = vpop.f32.mrb[53].mxu1 }
 0x5b0   :  { %v15318_v12 = vadd.f32 %v15317_v48, %v15316_v52  ;;  %v15319_v55 = vpop.f32.mrb[54].mxu1  ;;  %15505 = vmatpush3.bf16.msra.mxu1 %v18159_v51  ;;  %v23712_v51 = vld [vmem:[%s24154_s0 + $0x140] ss:$116 sps:$4 sm:$0xff]   ;;  %v23733_v48 = vld [vmem:[%s24154_s0 + $0x64] ss:$116 sps:$4 sm:$0xff]  }
 0x5b1   :  { %12505 = vmatpush1.bf16.msra.mxu0 %v18160_v22  ;;  %v15320_v40 = vpop.f32.mrb[55].mxu1  ;;  %15518 = vmatprep.subr.bf16.mxu1 %v18163_v27  ;;  %v18199_v27 = vld [vmem:[%s24153_s1 + $0x24a0] ss:$28 sps:$4 sm:$0xff]  }
 0x5b2   :  { %12506 = vmatprep.subr.bf16.mxu0 %v18167_v50  ;;  %v23613_v53 = vadd.f32 %v15318_v12, %v23502_v58  ;;  %v15321_v60 = vadd.f32 %v15320_v40, %v15319_v55  ;;  %v18173_v58 = vld [vmem:[%s24153_s1 + $0x2548] ss:$28 sps:$4 sm:$0xff]   ;;  %v18203_v50 = vld [vmem:[%s24153_s1 + $0x2858] ss:$28 sps:$4 sm:$0xff]   ;;  %v18205_v40 = vld [vmem:[%s24153_s1 + $0x2af0] ss:$28 sps:$4 sm:$0xff]  }
 0x5b3   :  { %13168 = vmatmul.mubr.bf16.vlgmr.msra.gmra.mrb[104].mxu1 %v23169_v6  ;;  %v18177_v6 = vld [vmem:[%s24153_s1 + $0x29a4] ss:$28 sps:$4 sm:$0xff]  }
 0x5b4   :  { %v23617_v11 = vadd.f32 %v15321_v60, %v23505_v15  ;;  %15519 = vmatpush3.bf16.msra.mxu1 %v18164_v32  ;;  %13175 = vmatprep.mubr.bf16.mxu1 %v23192_v24  ;;  %v18174_v15 = vld [vmem:[%s24153_s1 + $0x2388] ss:$28 sps:$4 sm:$0xff]   ;;  %v18182_v24 = vld [vmem:[%s24153_s1 + $0x29dc] ss:$28 sps:$4 sm:$0xff]  }
 0x5b5   :  { %12507 = vmatpush1.bf16.msra.mxu0 %v18165_v54  ;;  %15520 = vmatprep.subr.bf16.mxu1 %v18168_v57  ;;  %v18204_v54 = vld [vmem:[%s24153_s1 + $0x2698] ss:$28 sps:$4 sm:$0xff]   ;;  %v18212_v60 = vld [vmem:[%s24153_s1 + $0x2b2c] ss:$28 sps:$4 sm:$0xff]  }
 0x5b6   :  { %12508 = vmatprep.subr.bf16.mxu0 %v18172_v59  ;;  %v18208_v59 = vld [vmem:[%s24153_s1 + $0x2890] ss:$28 sps:$4 sm:$0xff]  }
 0x5b8   :  { %15521 = vmatpush3.bf16.msra.mxu1 %v18169_v4 }
 0x5b9   :  { %12509 = vmatpush1.bf16.msra.mxu0 %v18170_v61  ;;  %15522 = vmatprep.subr.bf16.mxu1 %v18173_v58 }
 0x5ba   :  { %12510 = vmatprep.subr.bf16.mxu0 %v18177_v6  ;;  %v18209_v6 = vld [vmem:[%s24153_s1 + $0x26d0] ss:$28 sps:$4 sm:$0xff]  }
 0x5bb   :  { %13176 = vmatmul.mubr.bf16.gmra.mrb[108].mxu1 %v23219_v30  ;;  %v18187_v30 = vld [vmem:[%s24153_s1 + $0x2a14] ss:$28 sps:$4 sm:$0xff]  }
 0x5bc   :  { %15523 = vmatpush3.bf16.msra.mxu1 %v18174_v15  ;;  %13216 = vmatprep.mubr.bf16.mxu1 %v23239_v35  ;;  %v18192_v35 = vld [vmem:[%s24153_s1 + $0x2a4c] ss:$28 sps:$4 sm:$0xff]  }
 0x5bd   :  { %12511 = vmatpush1.bf16.msra.mxu0 %v18175_v62  ;;  %15524 = vmatprep.subr.bf16.mxu1 %v18178_v63  ;;  %v18210_v15 = vld [vmem:[%s24153_s1 + $0x2b28] ss:$28 sps:$4 sm:$0xff]   ;;  %v18215_v62 = vld [vmem:[%s24153_s1 + $0x2b60] ss:$28 sps:$4 sm:$0xff]  }
 0x5be   :  { %12512 = vmatprep.subr.bf16.mxu0 %v18182_v24  ;;  %v18218_v63 = vld [vmem:[%s24153_s1 + $0x2900] ss:$28 sps:$4 sm:$0xff]  }
 0x5bf   :  { %v18219_v24 = vld [vmem:[%s24153_s1 + $0x2740] ss:$28 sps:$4 sm:$0xff]  }
 0x5c0   :  { %15525 = vmatpush3.bf16.msra.mxu1 %v18179_v10  ;;  %v18220_v10 = vld [vmem:[%s24153_s1 + $0x2b98] ss:$28 sps:$4 sm:$0xff]  }
 0x5c1   :  { %12513 = vmatpush1.bf16.msra.mxu0 %v18180_v37  ;;  %15526 = vmatprep.subr.bf16.mxu1 %v18183_v0  ;;  %v18223_v37 = vld [vmem:[%s24153_s1 + $0x2938] ss:$28 sps:$4 sm:$0xff]  }
 0x5c2   :  { %12535 = vmatprep.subr.bf16.mxu0 %v18187_v30  ;;  %v18224_v0 = vld [vmem:[%s24153_s1 + $0x2778] ss:$28 sps:$4 sm:$0xff]   ;;  %v18225_v30 = vld [vmem:[%s24153_s1 + $0x2bd0] ss:$28 sps:$4 sm:$0xff]  }
 0x5c4   :  { %12515 = vmatmul.mubr.bf16.vlgmr.msra.gmra.mrb[8].mxu0 %v23673_v13  ;;  %15527 = vmatpush3.bf16.msra.mxu1 %v18184_v38  ;;  %v18228_v38 = vld [vmem:[%s24153_s1 + $0x2970] ss:$28 sps:$4 sm:$0xff]  }
 0x5c5   :  { %12536 = vmatpush1.bf16.msra.mxu0 %v18185_v25  ;;  %15528 = vmatprep.subr.bf16.mxu1 %v18188_v1  ;;  %v18229_v25 = vld [vmem:[%s24153_s1 + $0x27b0] ss:$28 sps:$4 sm:$0xff]   ;;  %v18230_v1 = vld [vmem:[%s24153_s1 + $0x2c08] ss:$28 sps:$4 sm:$0xff]  }
 0x5c6   :  { %12537 = vmatprep.subr.bf16.mxu0 %v18192_v35  ;;  %v15338_v8 = vpop.f32.mrb[56].mxu1  ;;  %12524 = vmatprep.mubr.bf16.mxu0 %v23691_v23  ;;  %v18233_v35 = vld [vmem:[%s24153_s1 + $0x29a8] ss:$28 sps:$4 sm:$0xff]  }
 0x5c7   :  { %v15339_v14 = vpop.f32.mrb[57].mxu1 }
 0x5c8   :  { %v15340_v36 = vadd.f32 %v15339_v14, %v15338_v8  ;;  %v15341_v19 = vpop.f32.mrb[58].mxu1  ;;  %15529 = vmatpush3.bf16.msra.mxu1 %v18189_v41  ;;  %v18237_v41 = vld [vmem:[%s24153_s1 + $0x2c44] ss:$28 sps:$4 sm:$0xff]  }
 0x5c9   :  { %12538 = vmatpush1.bf16.msra.mxu0 %v18190_v26  ;;  %v15342_v29 = vpop.f32.mrb[59].mxu1  ;;  %15530 = vmatprep.subr.bf16.mxu1 %v18193_v3  ;;  %v18234_v14 = vld [vmem:[%s24153_s1 + $0x27e8] ss:$28 sps:$4 sm:$0xff]  }
 0x5ca   :  { %12539 = vmatprep.subr.bf16.mxu0 %v18197_v44  ;;  %v23707_v16 = vadd.f32 %v15340_v36, %v23583_v56  ;;  %v15343_v45 = vadd.f32 %v15342_v29, %v15341_v19  ;;  %v18200_v56 = vld [vmem:[%s24153_s1 + $0x2ab8] ss:$28 sps:$4 sm:$0xff]   ;;  %v18235_v36 = vld [vmem:[%s24153_s1 + $0x2c40] ss:$28 sps:$4 sm:$0xff]  }
 0x5cc   :  { %12525 = vmatmul.mubr.bf16.gmra.mrb[12].mxu0 %v23712_v51  ;;  %v23716_v22 = vadd.f32 %v15343_v45, %v23586_v46  ;;  %15531 = vmatpush3.bf16.msra.mxu1 %v18194_v20  ;;  %v18207_v46 = vld [vmem:[%s24153_s1 + $0x2af4] ss:$28 sps:$4 sm:$0xff]   ;;  %v18238_v20 = vld [vmem:[%s24153_s1 + $0x29e0] ss:$28 sps:$4 sm:$0xff]  }
 0x5cd   :  { %12540 = vmatpush1.bf16.msra.mxu0 %v18195_v7  ;;  %15532 = vmatprep.subr.bf16.mxu1 %v18198_v31  ;;  %v18242_v7 = vld [vmem:[%s24153_s1 + $0x2c7c] ss:$28 sps:$4 sm:$0xff]  }
 0x5ce   :  { %12541 = vmatprep.subr.bf16.mxu0 %v18202_v49  ;;  %v15344_v52 = vpop.f32.mrb[60].mxu1  ;;  %12567 = vmatprep.mubr.bf16.mxu0 %v23733_v48  ;;  %v18239_v45 = vld [vmem:[%s24153_s1 + $0x2820] ss:$28 sps:$4 sm:$0xff]  }
 0x5cf   :  { %v15345_v12 = vpop.f32.mrb[61].mxu1 }
 0x5d0   :  { %v15346_v55 = vadd.f32 %v15345_v12, %v15344_v52  ;;  %v15347_v32 = vpop.f32.mrb[62].mxu1  ;;  %15533 = vmatpush3.bf16.msra.mxu1 %v18199_v27  ;;  %v18240_v27 = vld [vmem:[%s24153_s1 + $0x2c78] ss:$28 sps:$4 sm:$0xff]  }
 0x5d1   :  { %12542 = vmatpush1.bf16.msra.mxu0 %v18200_v56  ;;  %v15348_v57 = vpop.f32.mrb[63].mxu1  ;;  %15546 = vmatprep.subr.bf16.mxu1 %v18203_v50  ;;  %v18244_v12 = vld [vmem:[%s24153_s1 + $0x2a18] ss:$28 sps:$4 sm:$0xff]  }
 0x5d2   :  { %12543 = vmatprep.subr.bf16.mxu0 %v18207_v46  ;;  %v23749_v4 = vadd.f32 %v15346_v55, %v23613_v53  ;;  %v15349_v61 = vadd.f32 %v15348_v57, %v15347_v32  ;;  %v18213_v53 = vld [vmem:[%s24153_s1 + $0x28c8] ss:$28 sps:$4 sm:$0xff]   ;;  %v18245_v55 = vld [vmem:[%s24153_s1 + $0x2cb0] ss:$28 sps:$4 sm:$0xff]  }
 0x5d3   :  { %13217 = vmatmul.mubr.bf16.vlgmr.msra.gmra.mrb[112].mxu1 %v23424_v43  ;;  %v18217_v43 = vld [vmem:[%s24153_s1 + $0x2b64] ss:$28 sps:$4 sm:$0xff]  }
 0x5d4   :  { %v23753_v58 = vadd.f32 %v15349_v61, %v23617_v11  ;;  %15547 = vmatpush3.bf16.msra.mxu1 %v18204_v54  ;;  %13224 = vmatprep.mubr.bf16.mxu1 %v23443_v2  ;;  %v18214_v11 = vld [vmem:[%s24153_s1 + $0x2708] ss:$28 sps:$4 sm:$0xff]   ;;  %v18222_v2 = vld [vmem:[%s24153_s1 + $0x2b9c] ss:$28 sps:$4 sm:$0xff]   ;;  %v18248_v54 = vld [vmem:[%s24153_s1 + $0x2c10] ss:$28 sps:$4 sm:$0xff]  }
 0x5d5   :  { %12544 = vmatpush1.bf16.msra.mxu0 %v18205_v40  ;;  %15548 = vmatprep.subr.bf16.mxu1 %v18208_v59  ;;  %v18252_v40 = vld [vmem:[%s24153_s1 + $0x2cec] ss:$28 sps:$4 sm:$0xff]  }
 0x5d6   :  { %12545 = vmatprep.subr.bf16.mxu0 %v18212_v60  ;;  %v18249_v61 = vld [vmem:[%s24153_s1 + $0x2a50] ss:$28 sps:$4 sm:$0xff]  }
 0x5d8   :  { %15549 = vmatpush3.bf16.msra.mxu1 %v18209_v6  ;;  %v18250_v6 = vld [vmem:[%s24153_s1 + $0x2ce8] ss:$28 sps:$4 sm:$0xff]  }
 0x5d9   :  { %12546 = vmatpush1.bf16.msra.mxu0 %v18210_v15  ;;  %15550 = vmatprep.subr.bf16.mxu1 %v18213_v53  ;;  %v18255_v15 = vld [vmem:[%s24153_s1 + $0x2d20] ss:$28 sps:$4 sm:$0xff]  }
 0x5da   :  { %12547 = vmatprep.subr.bf16.mxu0 %v18217_v43  ;;  %v18258_v53 = vld [vmem:[%s24153_s1 + $0x2c80] ss:$28 sps:$4 sm:$0xff]  }
 0x5db   :  { %13225 = vmatmul.mubr.bf16.gmra.mrb[116].mxu1 %v23465_v33  ;;  %v18227_v33 = vld [vmem:[%s24153_s1 + $0x2bd4] ss:$28 sps:$4 sm:$0xff]   ;;  %v18259_v43 = vld [vmem:[%s24153_s1 + $0x2ac0] ss:$28 sps:$4 sm:$0xff]  }
 0x5dc   :  { %15551 = vmatpush3.bf16.msra.mxu1 %v18214_v11  ;;  %13265 = vmatprep.mubr.bf16.mxu1 %v23485_v9  ;;  %v18232_v9 = vld [vmem:[%s24153_s1 + $0x2c0c] ss:$28 sps:$4 sm:$0xff]   ;;  %v18260_v11 = vld [vmem:[%s24153_s1 + $0x2d58] ss:$28 sps:$4 sm:$0xff]  }
 0x5dd   :  { %12548 = vmatpush1.bf16.msra.mxu0 %v18215_v62  ;;  %15552 = vmatprep.subr.bf16.mxu1 %v18218_v63  ;;  %v18263_v62 = vld [vmem:[%s24153_s1 + $0x2cb8] ss:$28 sps:$4 sm:$0xff]  }
 0x5de   :  { %12549 = vmatprep.subr.bf16.mxu0 %v18222_v2  ;;  %v18264_v63 = vld [vmem:[%s24153_s1 + $0x2af8] ss:$28 sps:$4 sm:$0xff]   ;;  %v18265_v2 = vld [vmem:[%s24153_s1 + $0x2d90] ss:$28 sps:$4 sm:$0xff]  }
 0x5e0   :  { %15553 = vmatpush3.bf16.msra.mxu1 %v18219_v24  ;;  %v18268_v24 = vld [vmem:[%s24153_s1 + $0x2cf0] ss:$28 sps:$4 sm:$0xff]  }
 0x5e1   :  { %12550 = vmatpush1.bf16.msra.mxu0 %v18220_v10  ;;  %15554 = vmatprep.subr.bf16.mxu1 %v18223_v37  ;;  %v18467_v10 = vld [vmem:[%s24154_s0 + $0x60] ss:$116 sps:$4 sm:$0xff]   ;;  %v18269_v37 = vld [vmem:[%s24153_s1 + $0x2b30] ss:$28 sps:$4 sm:$0xff]  }
 0x5e2   :  { %12551 = vmatprep.subr.bf16.mxu0 %v18227_v33  ;;  %v18270_v33 = vld [vmem:[%s24153_s1 + $0x2dc8] ss:$28 sps:$4 sm:$0xff]  }
 0x5e4   :  { %15555 = vmatpush3.bf16.msra.mxu1 %v18224_v0  ;;  %v18273_v0 = vld [vmem:[%s24153_s1 + $0x2d28] ss:$28 sps:$4 sm:$0xff]  }
 0x5e5   :  { %12552 = vmatpush1.bf16.msra.mxu0 %v18225_v30  ;;  %15556 = vmatprep.subr.bf16.mxu1 %v18228_v38  ;;  %v18277_v30 = vld [vmem:[%s24153_s1 + $0x2e04] ss:$28 sps:$4 sm:$0xff]  }
 0x5e6   :  { %12553 = vmatprep.subr.bf16.mxu0 %v18232_v9  ;;  %v15366_v26 = vpop.f32.mrb[64].mxu1  ;;  %v18468_v9 = vld [vmem:[%s24154_s0 + $0x14c] ss:$116 sps:$4 sm:$0xff]  }
 0x5e7   :  { %v15367_v3 = vpop.f32.mrb[65].mxu1 }
 0x5e8   :  { %v15368_v44 = vadd.f32 %v15367_v3, %v15366_v26  ;;  %v15369_v8 = vpop.f32.mrb[66].mxu1  ;;  %15557 = vmatpush3.bf16.msra.mxu1 %v18229_v25  ;;  %v18275_v26 = vld [vmem:[%s24153_s1 + $0x2e00] ss:$28 sps:$4 sm:$0xff]  }
 0x5e9   :  { %12554 = vmatpush1.bf16.msra.mxu0 %v18230_v1  ;;  %v15370_v19 = vpop.f32.mrb[67].mxu1  ;;  %15558 = vmatprep.subr.bf16.mxu1 %v18233_v35 }
 0x5ea   :  { %12555 = vmatprep.subr.bf16.mxu0 %v18237_v41  ;;  %v23831_v29 = vadd.f32 %v15368_v44, %v23707_v16  ;;  %v15371_v31 = vadd.f32 %v15370_v19, %v15369_v8  ;;  %v18243_v16 = vld [vmem:[%s24153_s1 + $0x2bd8] ss:$28 sps:$4 sm:$0xff]   ;;  %v18274_v41 = vld [vmem:[%s24153_s1 + $0x2b68] ss:$28 sps:$4 sm:$0xff]   ;;  %v18278_v44 = vld [vmem:[%s24153_s1 + $0x2d60] ss:$28 sps:$4 sm:$0xff]  }
 0x5eb   :  { %v18282_v8 = vld [vmem:[%s24153_s1 + $0x2e3c] ss:$28 sps:$4 sm:$0xff]  }
 0x5ec   :  { %v23834_v49 = vadd.f32 %v15371_v31, %v23716_v22  ;;  %15559 = vmatpush3.bf16.msra.mxu1 %v18234_v14  ;;  %v18247_v22 = vld [vmem:[%s24153_s1 + $0x2cb4] ss:$28 sps:$4 sm:$0xff]   ;;  %v18469_v19 = vld [vmem:[%s24154_s0 + $0x148] ss:$116 sps:$4 sm:$0xff]  }
 0x5ed   :  { %12556 = vmatpush1.bf16.msra.mxu0 %v18235_v36  ;;  %15560 = vmatprep.subr.bf16.mxu1 %v18238_v20  ;;  %v18283_v31 = vld [vmem:[%s24153_s1 + $0x2f58] ss:$28 sps:$4 sm:$0xff]  }
 0x5ee   :  { %12557 = vmatprep.subr.bf16.mxu0 %v18242_v7  ;;  %v15372_v56 = vpop.f32.mrb[68].mxu1  ;;  %v18279_v7 = vld [vmem:[%s24153_s1 + $0x2ba0] ss:$28 sps:$4 sm:$0xff]  }
 0x5ef   :  { %v15373_v50 = vpop.f32.mrb[69].mxu1 }
 0x5f0   :  { %v15374_v46 = vadd.f32 %v15373_v50, %v15372_v56  ;;  %v15375_v52 = vpop.f32.mrb[70].mxu1  ;;  %15561 = vmatpush3.bf16.msra.mxu1 %v18239_v45  ;;  %v18284_v50 = vld [vmem:[%s24153_s1 + $0x2d98] ss:$28 sps:$4 sm:$0xff]  }
 0x5f1   :  { %12558 = vmatpush1.bf16.msra.mxu0 %v18240_v27  ;;  %v15376_v32 = vpop.f32.mrb[71].mxu1  ;;  %15574 = vmatprep.subr.bf16.mxu1 %v18243_v16  ;;  %v18470_v27 = vld [vmem:[%s24154_s0 + $0x6c] ss:$116 sps:$4 sm:$0xff]  }
 0x5f2   :  { %12559 = vmatprep.subr.bf16.mxu0 %v18247_v22  ;;  %v23861_v57 = vadd.f32 %v15374_v46, %v23749_v4  ;;  %v15377_v59 = vadd.f32 %v15376_v32, %v15375_v52  ;;  %v18253_v4 = vld [vmem:[%s24153_s1 + $0x2c48] ss:$28 sps:$4 sm:$0xff]   ;;  %v18285_v46 = vld [vmem:[%s24153_s1 + $0x2e70] ss:$28 sps:$4 sm:$0xff]  }
 0x5f3   :  { %13266 = vmatmul.mubr.bf16.vlgmr.msra.gmra.mrb[120].mxu1 %v23673_v13  ;;  %v18257_v13 = vld [vmem:[%s24153_s1 + $0x2d24] ss:$28 sps:$4 sm:$0xff]  }
 0x5f4   :  { %v23865_v60 = vadd.f32 %v15377_v59, %v23753_v58  ;;  %15575 = vmatpush3.bf16.msra.mxu1 %v18244_v12  ;;  %13273 = vmatprep.mubr.bf16.mxu1 %v23691_v23  ;;  %v18254_v58 = vld [vmem:[%s24153_s1 + $0x2a88] ss:$28 sps:$4 sm:$0xff]   ;;  %v18262_v23 = vld [vmem:[%s24153_s1 + $0x2d5c] ss:$28 sps:$4 sm:$0xff]   ;;  %v18288_v12 = vld [vmem:[%s24153_s1 + $0x2f90] ss:$28 sps:$4 sm:$0xff]  }
 0x5f5   :  { %12560 = vmatpush1.bf16.msra.mxu0 %v18245_v55  ;;  %15576 = vmatprep.subr.bf16.mxu1 %v18248_v54  ;;  %v18292_v55 = vld [vmem:[%s24153_s1 + $0x2eac] ss:$28 sps:$4 sm:$0xff]  }
 0x5f6   :  { %12561 = vmatprep.subr.bf16.mxu0 %v18252_v40  ;;  %v18289_v59 = vld [vmem:[%s24153_s1 + $0x2dd0] ss:$28 sps:$4 sm:$0xff]  }
 0x5f8   :  { %15577 = vmatpush3.bf16.msra.mxu1 %v18249_v61  ;;  %v18290_v61 = vld [vmem:[%s24153_s1 + $0x2ea8] ss:$28 sps:$4 sm:$0xff]  }
 0x5f9   :  { %12562 = vmatpush1.bf16.msra.mxu0 %v18250_v6  ;;  %15578 = vmatprep.subr.bf16.mxu1 %v18253_v4  ;;  %v18294_v6 = vld [vmem:[%s24153_s1 + $0x2e08] ss:$28 sps:$4 sm:$0xff]   ;;  %v18295_v4 = vld [vmem:[%s24153_s1 + $0x2ee0] ss:$28 sps:$4 sm:$0xff]  }
 0x5fa   :  { %12563 = vmatprep.subr.bf16.mxu0 %v18257_v13  ;;  %v18298_v13 = vld [vmem:[%s24153_s1 + $0x3000] ss:$28 sps:$4 sm:$0xff]  }
 0x5fb   :  { %13274 = vmatmul.mubr.bf16.gmra.mrb[124].mxu1 %v23712_v51  ;;  %v18267_v51 = vld [vmem:[%s24153_s1 + $0x2d94] ss:$28 sps:$4 sm:$0xff]  }
 0x5fc   :  { %15579 = vmatpush3.bf16.msra.mxu1 %v18254_v58  ;;  %13314 = vmatprep.mubr.bf16.mxu1 %v23733_v48  ;;  %v18272_v48 = vld [vmem:[%s24153_s1 + $0x2dcc] ss:$28 sps:$4 sm:$0xff]   ;;  %v18302_v58 = vld [vmem:[%s24153_s1 + $0x2f1c] ss:$28 sps:$4 sm:$0xff]  }
 0x5fd   :  { %12564 = vmatpush1.bf16.msra.mxu0 %v18255_v15  ;;  %15580 = vmatprep.subr.bf16.mxu1 %v18258_v53  ;;  %v18299_v15 = vld [vmem:[%s24153_s1 + $0x2e40] ss:$28 sps:$4 sm:$0xff]   ;;  %v18300_v53 = vld [vmem:[%s24153_s1 + $0x2f18] ss:$28 sps:$4 sm:$0xff]  }
 0x5fe   :  { %12565 = vmatprep.subr.bf16.mxu0 %v18262_v23  ;;  %v18303_v23 = vld [vmem:[%s24153_s1 + $0x3038] ss:$28 sps:$4 sm:$0xff]  }
 0x600   :  { %15581 = vmatpush3.bf16.msra.mxu1 %v18259_v43  ;;  %v18307_v43 = vld [vmem:[%s24153_s1 + $0x2f54] ss:$28 sps:$4 sm:$0xff]  }
 0x601   :  { %12566 = vmatpush1.bf16.msra.mxu0 %v18260_v11  ;;  %15582 = vmatprep.subr.bf16.mxu1 %v18263_v62  ;;  %v18304_v11 = vld [vmem:[%s24153_s1 + $0x2e78] ss:$28 sps:$4 sm:$0xff]   ;;  %v18305_v62 = vld [vmem:[%s24153_s1 + $0x2f50] ss:$28 sps:$4 sm:$0xff]  }
 0x602   :  { %12588 = vmatprep.subr.bf16.mxu0 %v18267_v51  ;;  %v18308_v51 = vld [vmem:[%s24153_s1 + $0x3070] ss:$28 sps:$4 sm:$0xff]  }
 0x604   :  { %12568 = vmatmul.mubr.bf16.vlgmr.msra.gmra.mrb[8].mxu0 %v18467_v10  ;;  %15583 = vmatpush3.bf16.msra.mxu1 %v18264_v63  ;;  %v18312_v63 = vld [vmem:[%s24153_s1 + $0x2f8c] ss:$28 sps:$4 sm:$0xff]  }
 0x605   :  { %12589 = vmatpush1.bf16.msra.mxu0 %v18265_v2  ;;  %15584 = vmatprep.subr.bf16.mxu1 %v18268_v24  ;;  %v18309_v2 = vld [vmem:[%s24153_s1 + $0x2eb0] ss:$28 sps:$4 sm:$0xff]   ;;  %v18310_v24 = vld [vmem:[%s24153_s1 + $0x2f88] ss:$28 sps:$4 sm:$0xff]  }
 0x606   :  { %12590 = vmatprep.subr.bf16.mxu0 %v18272_v48  ;;  %v15394_v38 = vpop.f32.mrb[72].mxu1  ;;  %12577 = vmatprep.mubr.bf16.mxu0 %v18468_v9  ;;  %v18313_v48 = vld [vmem:[%s24153_s1 + $0x30a8] ss:$28 sps:$4 sm:$0xff]  }
 0x607   :  { %v15395_v25 = vpop.f32.mrb[73].mxu1 }
 0x608   :  { %v15396_v1 = vadd.f32 %v15395_v25, %v15394_v38  ;;  %v15397_v35 = vpop.f32.mrb[74].mxu1  ;;  %15585 = vmatpush3.bf16.msra.mxu1 %v18269_v37  ;;  %v18314_v38 = vld [vmem:[%s24153_s1 + $0x2ee8] ss:$28 sps:$4 sm:$0xff]  }
 0x609   :  { %12591 = vmatpush1.bf16.msra.mxu0 %v18270_v33  ;;  %v15398_v3 = vpop.f32.mrb[75].mxu1  ;;  %15586 = vmatprep.subr.bf16.mxu1 %v18273_v0 }
 0x60a   :  { %12592 = vmatprep.subr.bf16.mxu0 %v18277_v30  ;;  %v23949_v14 = vadd.f32 %v15396_v1, %v23831_v29  ;;  %v15399_v36 = vadd.f32 %v15398_v3, %v15397_v35  ;;  %v18280_v29 = vld [vmem:[%s24153_s1 + $0x2e38] ss:$28 sps:$4 sm:$0xff]   ;;  %v18318_v1 = vld [vmem:[%s24153_s1 + $0x30e0] ss:$28 sps:$4 sm:$0xff]  }
 0x60b   :  { %v18322_v35 = vld [vmem:[%s24153_s1 + $0x2ffc] ss:$28 sps:$4 sm:$0xff]  }
 0x60c   :  { %12578 = vmatmul.mubr.bf16.gmra.mrb[12].mxu0 %v18469_v19  ;;  %v23955_v20 = vadd.f32 %v15399_v36, %v23834_v49  ;;  %15587 = vmatpush3.bf16.msra.mxu1 %v18274_v41  ;;  %v18287_v49 = vld [vmem:[%s24153_s1 + $0x2e74] ss:$28 sps:$4 sm:$0xff]  }
 0x60d   :  { %12593 = vmatpush1.bf16.msra.mxu0 %v18275_v26  ;;  %15588 = vmatprep.subr.bf16.mxu1 %v18278_v44  ;;  %v18319_v44 = vld [vmem:[%s24153_s1 + $0x2f20] ss:$28 sps:$4 sm:$0xff]   ;;  %v18325_v36 = vld [vmem:[%s24153_s1 + $0x3034] ss:$28 sps:$4 sm:$0xff]  }
 0x60e   :  { %12594 = vmatprep.subr.bf16.mxu0 %v18282_v8  ;;  %v15400_v45 = vpop.f32.mrb[76].mxu1  ;;  %12620 = vmatprep.mubr.bf16.mxu0 %v18470_v27  ;;  %v18320_v8 = vld [vmem:[%s24153_s1 + $0x2ff8] ss:$28 sps:$4 sm:$0xff]  }
 0x60f   :  { %v15401_v16 = vpop.f32.mrb[77].mxu1 }
 0x610   :  { %v15402_v22 = vadd.f32 %v15401_v16, %v15400_v45  ;;  %v15403_v56 = vpop.f32.mrb[78].mxu1  ;;  %15589 = vmatpush3.bf16.msra.mxu1 %v18279_v7  ;;  %v18328_v45 = vld [vmem:[%s24153_s1 + $0x306c] ss:$28 sps:$4 sm:$0xff]  }
 0x611   :  { %12595 = vmatpush1.bf16.msra.mxu0 %v18280_v29  ;;  %v15404_v52 = vpop.f32.mrb[79].mxu1  ;;  %15602 = vmatprep.subr.bf16.mxu1 %v18283_v31  ;;  %v18323_v31 = vld [vmem:[%s24153_s1 + $0x3030] ss:$28 sps:$4 sm:$0xff]  }
 0x612   :  { %12596 = vmatprep.subr.bf16.mxu0 %v18287_v49  ;;  %v23985_v32 = vadd.f32 %v15402_v22, %v23861_v57  ;;  %v15405_v54 = vadd.f32 %v15404_v52, %v15403_v56  ;;  %v18293_v57 = vld [vmem:[%s24153_s1 + $0x2fc8] ss:$28 sps:$4 sm:$0xff]  }
 0x613   :  { %13315 = vmatmul.mubr.bf16.vlgmr.msra.gmra.mrb[128].mxu1 %v18467_v10  ;;  %v18317_v10 = vld [vmem:[%s24153_s1 + $0x2fc4] ss:$28 sps:$4 sm:$0xff]   ;;  %v18471_v22 = vld [vmem:[%s24154_s0 + $0x68] ss:$116 sps:$4 sm:$0xff]  }
 0x614   :  { %v23988_v40 = vadd.f32 %v15405_v54, %v23865_v60  ;;  %15603 = vmatpush3.bf16.msra.mxu1 %v18284_v50  ;;  %v18297_v60 = vld [vmem:[%s24153_s1 + $0x2ee4] ss:$28 sps:$4 sm:$0xff]   ;;  %13322 = vmatprep.mubr.bf16.mxu1 %v18468_v9  ;;  %v18333_v54 = vld [vmem:[%s24153_s1 + $0x30d8] ss:$28 sps:$4 sm:$0xff]  }
 0x615   :  { %12597 = vmatpush1.bf16.msra.mxu0 %v18285_v46  ;;  %15604 = vmatprep.subr.bf16.mxu1 %v18288_v12  ;;  %v18315_v9 = vld [vmem:[%s24153_s1 + $0x2fc0] ss:$28 sps:$4 sm:$0xff]   ;;  %v18326_v50 = vld [vmem:[%s24153_s1 + $0x3068] ss:$28 sps:$4 sm:$0xff]  }
 0x616   :  { %12598 = vmatprep.subr.bf16.mxu0 %v18292_v55  ;;  %v18472_v46 = vld [vmem:[%s24154_s0 + $0x154] ss:$116 sps:$4 sm:$0xff]   ;;  %v18331_v52 = vld [vmem:[%s24153_s1 + $0x30a4] ss:$28 sps:$4 sm:$0xff]   ;;  %v18335_v55 = vld [vmem:[%s24153_s1 + $0x30dc] ss:$28 sps:$4 sm:$0xff]  }
 0x617   :  { %v18329_v12 = vld [vmem:[%s24153_s1 + $0x30a0] ss:$28 sps:$4 sm:$0xff]  }
 0x618   :  { %15605 = vmatpush3.bf16.msra.mxu1 %v18289_v59  ;;  %v18475_v59 = vld [vmem:[%s24154_s0 + $0x158] ss:$116 sps:$4 sm:$0xff]  }
 0x619   :  { %12599 = vmatpush1.bf16.msra.mxu0 %v18290_v61  ;;  %15606 = vmatprep.subr.bf16.mxu1 %v18293_v57 }
 0x61a   :  { %12600 = vmatprep.subr.bf16.mxu0 %v18297_v60 }
 0x61b   :  { %13323 = vmatmul.mubr.bf16.gmra.mrb[132].mxu1 %v18469_v19 }
 0x61c   :  { %15607 = vmatpush3.bf16.msra.mxu1 %v18294_v6  ;;  %13363 = vmatprep.mubr.bf16.mxu1 %v18470_v27 }
 0x61d   :  { %12601 = vmatpush1.bf16.msra.mxu0 %v18295_v4  ;;  %15608 = vmatprep.subr.bf16.mxu1 %v18298_v13 }
 0x61e   :  { %12602 = vmatprep.subr.bf16.mxu0 %v18302_v58 }
 0x620   :  { %15609 = vmatpush3.bf16.msra.mxu1 %v18299_v15 }
 0x621   :  { %12603 = vmatpush1.bf16.msra.mxu0 %v18300_v53  ;;  %15610 = vmatprep.subr.bf16.mxu1 %v18303_v23 }
 0x622   :  { %12604 = vmatprep.subr.bf16.mxu0 %v18307_v43 }
 0x624   :  { %15611 = vmatpush3.bf16.msra.mxu1 %v18304_v11 }
 0x625   :  { %12605 = vmatpush1.bf16.msra.mxu0 %v18305_v62  ;;  %15612 = vmatprep.subr.bf16.mxu1 %v18308_v51 }
 0x626   :  { %12606 = vmatprep.subr.bf16.mxu0 %v18312_v63  ;;  %v15422_v37 = vpop.f32.mrb[80].mxu1 }
 0x627   :  { %v15423_v33 = vpop.f32.mrb[81].mxu1 }
 0x628   :  { %v15424_v0 = vadd.f32 %v15423_v33, %v15422_v37  ;;  %v15425_v30 = vpop.f32.mrb[82].mxu1  ;;  %15613 = vmatpush3.bf16.msra.mxu1 %v18309_v2 }
 0x629   :  { %12607 = vmatpush1.bf16.msra.mxu0 %v18310_v24  ;;  %v15426_v25 = vpop.f32.mrb[83].mxu1  ;;  %15614 = vmatprep.subr.bf16.mxu1 %v18313_v48 }
 0x62a   :  { %12608 = vmatprep.subr.bf16.mxu0 %v18317_v10  ;;  %v13023_v41 = vadd.f32 %v15424_v0, %v23949_v14  ;;  %v15427_v26 = vadd.f32 %v15426_v25, %v15425_v30  ;;  %v18332_v14 = vld [vmem:[%s24153_s1 + $0x3118] ss:$28 sps:$4 sm:$0xff]  }
 0x62c   :  { %v13026_v3 = vadd.f32 %v15427_v26, %v23955_v20  ;;  %15615 = vmatpush3.bf16.msra.mxu1 %v18314_v38 }
 0x62d   :  { %12609 = vmatpush1.bf16.msra.mxu0 %v18315_v9  ;;  %15616 = vmatprep.subr.bf16.mxu1 %v18318_v1 }
 0x62e   :  { %12610 = vmatprep.subr.bf16.mxu0 %v18322_v35  ;;  %v15428_v19 = vpop.f32.mrb[84].mxu1 }
 0x62f   :  { %v15429_v20 = vpop.f32.mrb[85].mxu1 }
 0x630   :  { %v15430_v7 = vadd.f32 %v15429_v20, %v15428_v19  ;;  %v15431_v29 = vpop.f32.mrb[86].mxu1  ;;  %15617 = vmatpush3.bf16.msra.mxu1 %v18319_v44 }
 0x631   :  { %12611 = vmatpush1.bf16.msra.mxu0 %v18320_v8  ;;  %v15432_v49 = vpop.f32.mrb[87].mxu1  ;;  %15633 = vmatprep.subr.bf16.mxu1 %v18332_v14 }
 0x632   :  { %12612 = vmatprep.subr.bf16.mxu0 %v18325_v36  ;;  %v13031_v27 = vadd.f32 %v15430_v7, %v23985_v32  ;;  %v15433_v16 = vadd.f32 %v15432_v49, %v15431_v29  ;;  %v18473_v32 = vld [vmem:[%s24154_s0 + $0x150] ss:$116 sps:$4 sm:$0xff]  }
 0x633   :  { %13364 = vmatmul.mubr.bf16.vlgmr.msra.gmra.mrb[136].mxu1 %v18471_v22 }
 0x634   :  { %v13034_v56 = vadd.f32 %v15433_v16, %v23988_v40  ;;  %13371 = vmatprep.mubr.bf16.mxu1 %v18472_v46  ;;  %15634 = vmatpush3.bf16.msra.mxu1 %v18332_v14  ;;  %v18474_v40 = vld [vmem:[%s24154_s0 + $0x70] ss:$116 sps:$4 sm:$0xff]  }
 0x635   :  { %12613 = vmatpush1.bf16.msra.mxu0 %v18323_v31 }
 0x636   :  { %12614 = vmatprep.subr.bf16.mxu0 %v18328_v45 }
 0x639   :  { %12615 = vmatpush1.bf16.msra.mxu0 %v18326_v50 }
 0x63a   :  { %12616 = vmatprep.subr.bf16.mxu0 %v18331_v52 }
 0x63b   :  { %13372 = vmatmul.mubr.bf16.gmra.mrb[140].mxu1 %v18473_v32 }
 0x63c   :  { %15635 = vmatprep.mubr.msk.bf16.mxu1 %vm10302_vm0, %v18474_v40 }
 0x63d   :  { %12617 = vmatpush1.bf16.msra.mxu0 %v18329_v12 }
 0x63e   :  { %12618 = vmatprep.subr.bf16.mxu0 %v18335_v55 }
 0x641   :  { %12619 = vmatpush1.bf16.msra.mxu0 %v18333_v54 }
 0x643   :  { %15636 = vmatmul.mubr.msk.bf16.vlgmr.msra.gmra.mrb[144].mxu1 %vm10302_vm0, %v18475_v59 }
 0x644   :  { %12621 = vmatmul.mubr.bf16.vlgmr.msra.gmra.mrb[8].mxu0 %v18471_v22 }
 0x645   :  { %12630 = vmatprep.mubr.bf16.mxu0 %v18472_v46 }
 0x646   :  { %v15450_v61 = vpop.f32.mrb[88].mxu1 }
 0x647   :  { %v15451_v57 = vpop.f32.mrb[89].mxu1 }
 0x648   :  { %v15452_v60 = vadd.f32 %v15451_v57, %v15450_v61  ;;  %v15453_v6 = vpop.f32.mrb[90].mxu1 }
 0x649   :  { %v15454_v4 = vpop.f32.mrb[91].mxu1 }
 0x64a   :  { %v13072_v13 = vadd.f32 %v15452_v60, %v13023_v41  ;;  %v15455_v58 = vadd.f32 %v15454_v4, %v15453_v6 }
 0x64c   :  { %12631 = vmatmul.mubr.bf16.gmra.mrb[12].mxu0 %v18473_v32  ;;  %v13075_v15 = vadd.f32 %v15455_v58, %v13026_v3 }
 0x64e   :  { %v15456_v53 = vpop.f32.mrb[92].mxu1 }
 0x64f   :  { %v15457_v23 = vpop.f32.mrb[93].mxu1 }
 0x650   :  { %v15458_v43 = vadd.f32 %v15457_v23, %v15456_v53  ;;  %v15459_v11 = vpop.f32.mrb[94].mxu1 }
 0x651   :  { %v15460_v62 = vpop.f32.mrb[95].mxu1 }
 0x652   :  { %v13080_v51 = vadd.f32 %v15458_v43, %v13031_v27  ;;  %v15461_v63 = vadd.f32 %v15460_v62, %v15459_v11 }
 0x654   :  { %v13083_v2 = vadd.f32 %v15461_v63, %v13034_v56 }
 0x666   :  { %v15478_v24 = vpop.f32.mrb[96].mxu1 }
 0x667   :  { %v15479_v48 = vpop.f32.mrb[97].mxu1 }
 0x668   :  { %v15480_v10 = vadd.f32 %v15479_v48, %v15478_v24  ;;  %v15481_v37 = vpop.f32.mrb[98].mxu1 }
 0x669   :  { %v15482_v33 = vpop.f32.mrb[99].mxu1 }
 0x66a   :  { %v13121_v0 = vadd.f32 %v15480_v10, %v13072_v13  ;;  %v15483_v30 = vadd.f32 %v15482_v33, %v15481_v37 }
 0x66c   :  { %v13124_v38 = vadd.f32 %v15483_v30, %v13075_v15 }
 0x66e   :  { %v15484_v9 = vpop.f32.mrb[100].mxu1 }
 0x66f   :  { %v15485_v25 = vpop.f32.mrb[101].mxu1 }
 0x670   :  { %v15486_v1 = vadd.f32 %v15485_v25, %v15484_v9  ;;  %v15487_v35 = vpop.f32.mrb[102].mxu1 }
 0x671   :  { %v15488_v41 = vpop.f32.mrb[103].mxu1 }
 0x672   :  { %v13129_v26 = vadd.f32 %v15486_v1, %v13080_v51  ;;  %v15489_v3 = vadd.f32 %v15488_v41, %v15487_v35 }
 0x674   :  { %v13132_v44 = vadd.f32 %v15489_v3, %v13083_v2 }
 0x686   :  { %v15506_v8 = vpop.f32.mrb[104].mxu1 }
 0x687   :  { %v15507_v36 = vpop.f32.mrb[105].mxu1 }
 0x688   :  { %v15508_v14 = vadd.f32 %v15507_v36, %v15506_v8  ;;  %v15509_v19 = vpop.f32.mrb[106].mxu1 }
 0x689   :  { %v15510_v20 = vpop.f32.mrb[107].mxu1 }
 0x68a   :  { %v13170_v7 = vadd.f32 %v15508_v14, %v13121_v0  ;;  %v15511_v29 = vadd.f32 %v15510_v20, %v15509_v19 }
 0x68c   :  { %v13173_v31 = vadd.f32 %v15511_v29, %v13124_v38 }
 0x68e   :  { %v15512_v49 = vpop.f32.mrb[108].mxu1 }
 0x68f   :  { %v15513_v45 = vpop.f32.mrb[109].mxu1 }
 0x690   :  { %v15514_v27 = vadd.f32 %v15513_v45, %v15512_v49  ;;  %v15515_v16 = vpop.f32.mrb[110].mxu1 }
 0x691   :  { %v15516_v22 = vpop.f32.mrb[111].mxu1 }
 0x692   :  { %v13178_v56 = vadd.f32 %v15514_v27, %v13129_v26  ;;  %v15517_v50 = vadd.f32 %v15516_v22, %v15515_v16 }
 0x694   :  { %v13181_v46 = vadd.f32 %v15517_v50, %v13132_v44 }
 0x6a6   :  { %v15534_v52 = vpop.f32.mrb[112].mxu1 }
 0x6a7   :  { %v15535_v12 = vpop.f32.mrb[113].mxu1 }
 0x6a8   :  { %v15536_v55 = vadd.f32 %v15535_v12, %v15534_v52  ;;  %v15537_v32 = vpop.f32.mrb[114].mxu1 }
 0x6a9   :  { %v15538_v54 = vpop.f32.mrb[115].mxu1 }
 0x6aa   :  { %v13219_v40 = vadd.f32 %v15536_v55, %v13170_v7  ;;  %v15539_v59 = vadd.f32 %v15538_v54, %v15537_v32  ;;  %v1895_v32 = vsub.s32 4, %v21570_v5 }
 0x6ac   :  { %v13222_v61 = vadd.f32 %v15539_v59, %v13173_v31  ;;  %v1899_v59 = vsub.s32 5, %v21570_v5 }
 0x6ae   :  { %v15540_v57 = vpop.f32.mrb[116].mxu1 }
 0x6af   :  { %v15541_v60 = vpop.f32.mrb[117].mxu1 }
 0x6b0   :  { %v15542_v6 = vadd.f32 %v15541_v60, %v15540_v57  ;;  %v15543_v4 = vpop.f32.mrb[118].mxu1 }
 0x6b1   :  { %v15544_v13 = vpop.f32.mrb[119].mxu1 }
 0x6b2   :  { %v13227_v58 = vadd.f32 %v15542_v6, %v13178_v56  ;;  %v15545_v15 = vadd.f32 %v15544_v13, %v15543_v4  ;;  %v18476_v6 = vld [vmem:[%s24155_s2] sm:$0xff] }
 0x6b3   :  { %v1896_v4 = vrot.slane %v18476_v6, %v1895_v32 }
 0x6b4   :  { %v13230_v53 = vadd.f32 %v15545_v15, %v13181_v46 }
 0x6c6   :  { %v15562_v23 = vpop.f32.mrb[120].mxu1 }
 0x6c7   :  { %v15563_v43 = vpop.f32.mrb[121].mxu1 }
 0x6c8   :  { %v15564_v11 = vadd.f32 %v15563_v43, %v15562_v23  ;;  %v15565_v62 = vpop.f32.mrb[122].mxu1 }
 0x6c9   :  { %v15566_v51 = vpop.f32.mrb[123].mxu1 }
 0x6ca   :  { %v13268_v63 = vadd.f32 %v15564_v11, %v13219_v40  ;;  %v15567_v2 = vadd.f32 %v15566_v51, %v15565_v62 }
 0x6cc   :  { %v13271_v24 = vadd.f32 %v15567_v2, %v13222_v61 }
 0x6ce   :  { %v15568_v48 = vpop.f32.mrb[124].mxu1 }
 0x6cf   :  { %v15569_v10 = vpop.f32.mrb[125].mxu1 }
 0x6d0   :  { %v15570_v37 = vadd.f32 %v15569_v10, %v15568_v48  ;;  %v15571_v33 = vpop.f32.mrb[126].mxu1 }
 0x6d1   :  { %v15572_v0 = vpop.f32.mrb[127].mxu1 }
 0x6d2   :  { %v13276_v30 = vadd.f32 %v15570_v37, %v13227_v58  ;;  %v15573_v38 = vadd.f32 %v15572_v0, %v15571_v33  ;;  %v1900_v58 = vrot.slane %v18476_v6, %v1899_v59 }
 0x6d4   :  { %v13279_v9 = vadd.f32 %v15573_v38, %v13230_v53 }
 0x6e6   :  { %v15590_v25 = vpop.f32.mrb[128].mxu1 }
 0x6e7   :  { %v15591_v1 = vpop.f32.mrb[129].mxu1 }
 0x6e8   :  { %v15592_v35 = vadd.f32 %v15591_v1, %v15590_v25  ;;  %v15593_v41 = vpop.f32.mrb[130].mxu1 }
 0x6e9   :  { %v15594_v26 = vpop.f32.mrb[131].mxu1 }
 0x6ea   :  { %v13317_v3 = vadd.f32 %v15592_v35, %v13268_v63  ;;  %v15595_v44 = vadd.f32 %v15594_v26, %v15593_v41 }
 0x6ec   :  { %v13320_v8 = vadd.f32 %v15595_v44, %v13271_v24 }
 0x6ee   :  { %v15596_v36 = vpop.f32.mrb[132].mxu1 }
 0x6ef   :  { %v15597_v14 = vpop.f32.mrb[133].mxu1 }
 0x6f0   :  { %v15598_v19 = vadd.f32 %v15597_v14, %v15596_v36  ;;  %v15599_v20 = vpop.f32.mrb[134].mxu1 }
 0x6f1   :  { %v15600_v7 = vpop.f32.mrb[135].mxu1 }
 0x6f2   :  { %v13325_v29 = vadd.f32 %v15598_v19, %v13276_v30  ;;  %v15601_v31 = vadd.f32 %v15600_v7, %v15599_v20 }
 0x6f4   :  { %v13328_v49 = vadd.f32 %v15601_v31, %v13279_v9 }
 0x706   :  { %v15618_v45 = vpop.f32.mrb[136].mxu1 }
 0x707   :  { %v15619_v27 = vpop.f32.mrb[137].mxu1 }
 0x708   :  { %v15620_v16 = vadd.f32 %v15619_v27, %v15618_v45  ;;  %v15621_v22 = vpop.f32.mrb[138].mxu1 }
 0x709   :  { %v15622_v56 = vpop.f32.mrb[139].mxu1 }
 0x70a   :  { %v15623_v50 = vadd.f32 %v15622_v56, %v15621_v22  ;;  %v13366_v46 = vadd.f32 %v15620_v16, %v13317_v3 }
 0x70c   :  { %v13369_v52 = vadd.f32 %v15623_v50, %v13320_v8 }
 0x70e   :  { %v15624_v12 = vpop.f32.mrb[140].mxu1 }
 0x70f   :  { %v15625_v55 = vpop.f32.mrb[141].mxu1 }
 0x710   :  { %v15626_v54 = vadd.f32 %v15625_v55, %v15624_v12  ;;  %v15627_v40 = vpop.f32.mrb[142].mxu1 }
 0x711   :  { %v15628_v61 = vpop.f32.mrb[143].mxu1 }
 0x712   :  { %v15629_v57 = vadd.f32 %v15628_v61, %v15627_v40  ;;  %v13374_v60 = vadd.f32 %v15626_v54, %v13325_v29 }
 0x714   :  { %v13377_v13 = vadd.f32 %v15629_v57, %v13328_v49 }
 0x716   :  { %v15637_v15 = vpop.f32.mrb[144].mxu1 }
 0x717   :  { %v12622_v53 = vpop.f32.mrb[8].mxu0  ;;  %v13423_v23 = vadd.f32 %v15637_v15, %v13374_v60  ;;  %v13414_v43 = vpop.f32.mrb[145].mxu1 }
 0x718   :  { %v15671_v11 = vadd.f32 %v12622_v53, %v1896_v4  ;;  %v12624_v62 = vpop.f32.mrb[9].mxu0  ;;  %v13415_v51 = vadd.f32 %v13414_v43, %v13366_v46  ;;  %v15638_v63 = vpop.f32.mrb[146].mxu1 }
 0x719   :  { %v15673_v2 = vadd.f32 %v12624_v62, %v1900_v58  ;;  %v12626_v5 = vpop.f32.mrb[10].mxu0  ;;  %v13449_v24 = vmax.f32 %v13423_v23, 0.0  ;;  %v13426_v10 = vadd.f32 %v15638_v63, %v13377_v13  ;;  %v13417_v37 = vpop.f32.mrb[147].mxu1 }
 0x71a   :  { %v15672_v48 = vadd.f32 %v15671_v11, %v23187_v17  ;;  %v15675_v33 = vadd.f32 %v12626_v5, %v1896_v4  ;;  %v12628_v0 = vpop.f32.mrb[11].mxu0  ;;  %v13435_v30 = vmax.f32 %v13415_v51, 0.0  ;;  %v13418_v9 = vadd.f32 %v13417_v37, %v13369_v52 }
 0x71b   :  { %v15674_v38 = vadd.f32 %v15673_v2, %v23195_v18  ;;  %v15677_v25 = vadd.f32 %v12628_v0, %v1900_v58  ;;  %v15233_v1 = vpack.c.bf16 %v13449_v24, %v13449_v24  ;;  %v13456_v41 = vmax.f32 %v13426_v10, 0.0 }
 0x71c   :  { %v13433_v35 = vmax.f32 %v15672_v48, 0.0  ;;  %v15676_v26 = vadd.f32 %v15675_v33, %v23206_v21  ;;  %v15225_v3 = vpack.c.bf16 %v13435_v30, %v13435_v30  ;;  %v13442_v8 = vmax.f32 %v13418_v9, 0.0 }
 0x71d   :  { %v13434_v44 = vmax.f32 %v15674_v38, 0.0  ;;  %v15678_v36 = vadd.f32 %v15677_v25, %v23214_v28  ;;  %13556 = vst [vmem:[%s24156_s3 + $0x50] sm:$0xf] %v15233_v1  ;;  %v15237_v17 = vpack.c.bf16 %v13456_v41, %v13456_v41 }
 0x71e   :  { %v13440_v14 = vmax.f32 %v15676_v26, 0.0  ;;  %13548 = vst [vmem:[%s24156_s3 + $0x18] sm:$0xf] %v15225_v3  ;;  %v15229_v19 = vpack.c.bf16 %v13442_v8, %v13442_v8 }
 0x71f   :  { %v15224_v18 = vpack.c.bf16 %v13434_v44, %v13433_v35  ;;  %v13441_v20 = vmax.f32 %v15678_v36, 0.0  ;;  %v12632_v7 = vpop.f32.mrb[12].mxu0  ;;  %13560 = vst [vmem:[%s24156_s3 + $0x6c] sm:$0xf] %v15237_v17 }
 0x720   :  { %v15679_v21 = vadd.f32 %v12632_v7, %v1896_v4  ;;  %v12634_v28 = vpop.f32.mrb[13].mxu0  ;;  %13552 = vst [vmem:[%s24156_s3 + $0x34] sm:$0xf] %v15229_v19 }
 0x721   :  { %13547 = vst [vmem:[%s24156_s3 + $0x10] sm:$0xff] %v15224_v18  ;;  %v15228_v29 = vpack.c.bf16 %v13441_v20, %v13440_v14  ;;  %v15681_v31 = vadd.f32 %v12634_v28, %v1900_v58  ;;  %v12636_v49 = vpop.f32.mrb[14].mxu0 }
 0x722   :  { %v15680_v45 = vadd.f32 %v15679_v21, %v23234_v34  ;;  %v15683_v27 = vadd.f32 %v12636_v49, %v1896_v4  ;;  %v12638_v16 = vpop.f32.mrb[15].mxu0 }
 0x723   :  { %13551 = vst [vmem:[%s24156_s3 + $0x2c] sm:$0xff] %v15228_v29  ;;  %v15682_v22 = vadd.f32 %v15681_v31, %v23242_v39  ;;  %v15685_v56 = vadd.f32 %v12638_v16, %v1900_v58 }
 0x724   :  { %v13447_v50 = vmax.f32 %v15680_v45, 0.0  ;;  %v15684_v46 = vadd.f32 %v15683_v27, %v23250_v42 }
 0x725   :  { %v13448_v52 = vmax.f32 %v15682_v22, 0.0  ;;  %v15686_v12 = vadd.f32 %v15685_v56, %v23258_v47 }
 0x726   :  { %v13454_v55 = vmax.f32 %v15684_v46, 0.0 }
 0x727   :  { %v15232_v32 = vpack.c.bf16 %v13448_v52, %v13447_v50  ;;  %v13455_v54 = vmax.f32 %v15686_v12, 0.0 }
 0x729   :  { %13555 = vst [vmem:[%s24156_s3 + $0x48] sm:$0xff] %v15232_v32  ;;  %v15236_v34 = vpack.c.bf16 %v13455_v54, %v13454_v55 }
 0x72b   :  { %13559 = vst [vmem:[%s24156_s3 + $0x64] sm:$0xff] %v15236_v34 }

</bundles_post_ra>
